<compile_context>
chip_gen: v7x
topology: tpu7x:2x2x1
jax: 0.10.0
libtpu: 0.0.40
codegen_flags: <defaults>
</compile_context>

<pallas_src>
import functools

import jax
import jax.numpy as jnp
from jax.experimental import pallas as pl
from jax.experimental.pallas import tpu as pltpu


# --------------------------------------------------------------------------- #
# Kernel
# --------------------------------------------------------------------------- #
def bahdanau_kernel(qw_ref, keys_ref, ua_ref, va_ref, ctx_ref, w_ref, *,
                    seq_len, chunk):
    """One batch tile.

    qw_ref:   (tb, Hp)        f32   Wa(query) + ba + bu (precomputed)
    keys_ref: (tb, Sp, H2p)   bf16
    ua_ref:   (H2p, Hp)       bf16  Ua^T (resident, single-buffered)
    va_ref:   (1, Hp)         f32   Va as a row (resident)
    ctx_ref:  (tb, H2p)       f32   context output (lane-dense)
    w_ref:    (tb, Sp)        f32   attention weights output (lane-dense)
    """
    tb, Sp, H2p = keys_ref.shape
    Hp = qw_ref.shape[1]
    n_chunks = Sp // chunk

    qw = qw_ref[...].reshape(tb, 1, Hp)        # f32
    va = va_ref[...].reshape(1, 1, Hp)         # f32
    ua = ua_ref[...]                           # bf16 (H2p, Hp)

    # -- pass 1: raw scores, chunked over the sequence axis -----------------
    # Static unrolled chunk loop (== lax.fori_loop(unroll=True)); keeps the
    # (tb, Sc, Hp) kU / e intermediates small instead of (tb, Sp, Hp).
    for c in range(n_chunks):
        s0 = c * chunk
        kc = keys_ref[:, s0:s0 + chunk, :]                    # (tb, Sc, H2p) bf16
        # Sc, Sp are multiples of 8 -> this flatten is a layout no-op.
        ku = jnp.dot(kc.reshape(tb * chunk, H2p), ua,
                     preferred_element_type=jnp.float32)      # MXU bf16 in / f32 acc
        e = jnp.tanh(qw + ku.reshape(tb, chunk, Hp))          # (tb, Sc, Hp) f32
        w_ref[:, s0:s0 + chunk] = jnp.sum(e * va, axis=-1)    # raw scores chunk

    # -- softmax over the lane-major sequence axis ---------------------------
    scores = w_ref[...]                                       # (tb, Sp) f32
    if seq_len < Sp:
        # Padded sequence positions MUST be masked out before the softmax.
        pos = jax.lax.broadcasted_iota(jnp.int32, (tb, Sp), 1)
        scores = jnp.where(pos < seq_len, scores, -jnp.inf)
    m = jnp.max(scores, axis=-1, keepdims=True)
    p = jnp.exp(scores - m)
    w = p * pl.reciprocal(jnp.sum(p, axis=-1, keepdims=True), approx=True)
    w_ref[...] = w

    # -- pass 2: context = sum_s w[:, s] * keys[:, s, :] (VPU, S-chunked) ----
    ctx_ref[...] = jnp.zeros_like(ctx_ref)
    for c in range(n_chunks):
        s0 = c * chunk
        kc = keys_ref[:, s0:s0 + chunk, :].astype(jnp.float32)  # (tb, Sc, H2p)
        wc = w[:, s0:s0 + chunk]                                 # (tb, Sc)
        ctx_ref[...] += jnp.sum(wc[:, :, None] * kc, axis=1)


# --------------------------------------------------------------------------- #
# Wrapper: padding, VMEM budgeting, pallas_call
# --------------------------------------------------------------------------- #
def _round_up(x, m):
    return (x + m - 1) // m * m


def _vmem_budget_bytes():
    # Per-generation budget: ~48 MiB on v7x (64 MiB/TC), ~96 MiB on v5e/v6e.
    try:
        cap = int(pltpu.get_tpu_info().vmem_capacity_bytes)
    except Exception:
        cap = 64 << 20  # conservative default (v7x per-core VMEM)
    return (cap * 3) // 4


def _pick_chunk(tb, Hp, Sp):
    # Keep the per-chunk kU/e intermediates (~2*tb*Sc*Hp*4 bytes) under ~4 MiB.
    for chunk in (128, 64, 32, 16, 8):
        if chunk <= Sp and 2 * tb * chunk * Hp * 4 <= (4 << 20):
            return chunk
    return 8


def _tile_vmem_bytes(tb, Sp, Hp, H2p, chunk):
    keys_blk = tb * Sp * H2p * 2          # bf16 keys tile
    qw_blk = tb * Hp * 4
    out_ctx = tb * H2p * 4
    out_w = tb * Sp * 4
    resident = H2p * Hp * 2 + Hp * 4      # Ua^T (single-buffered) + Va row
    interm = 2 * tb * chunk * Hp * 4 + tb * chunk * H2p * 4
    return 2 * (keys_blk + qw_blk + out_ctx + out_w) + resident + interm


def _pick_tb(B, Sp, Hp, H2p, budget):
    best = 8
    tb = 8
    while tb <= 256:
        chunk = _pick_chunk(tb, Hp, Sp)
        if _tile_vmem_bytes(tb, Sp, Hp, H2p, chunk) <= budget:
            best = tb
            tb *= 2
        else:
            break
    # No point tiling beyond the (sublane-rounded) batch.
    return max(8, min(best, _round_up(B, 8)))


def bahdanau_attention(query, keys, wa_t, ba, ua_t, bu, va_t, bv):
    """query: (B,1,H), keys: (B,S,2H) -> (context (B,1,2H), weights (B,1,S)).

    wa_t: (H,H)=Wa.weight.T, ba: (1,H), ua_t: (2H,H)=Ua.weight.T, bu: (1,H),
    va_t: (H,1)=Va.weight.T, bv: (1,1).
    """
    B, _, H = query.shape
    _, S, H2 = keys.shape

    # bv shifts every score equally -> softmax-invariant -> dropped.
    del bv

    # Lane-dense padding: multiples of 128 on all last dims.
    Hp, H2p, Sp = _round_up(H, 128), _round_up(H2, 128), _round_up(S, 128)

    budget = _vmem_budget_bytes()
    tb = _pick_tb(B, Sp, Hp, H2p, budget)
    chunk = _pick_chunk(tb, Hp, Sp)
    Bp = _round_up(B, tb)

    # Hoisted Wa(query) with the ba+bu bias fused in: one dense f32 XLA matmul.
    qw = query.reshape(B, H).astype(jnp.float32) @ wa_t.astype(jnp.float32)
    qw = qw + (ba + bu).reshape(1, H).astype(jnp.float32)
    qw = jnp.pad(qw, ((0, Bp - B), (0, Hp - H)))

    # keys / Ua feed the MXU and dominate HBM traffic -> bf16 (f32 accumulate).
    keys_p = jnp.pad(keys.astype(jnp.bfloat16),
                     ((0, Bp - B), (0, Sp - S), (0, H2p - H2)))
    ua_p = jnp.pad(ua_t.astype(jnp.bfloat16), ((0, H2p - H2), (0, Hp - H)))
    va_p = jnp.pad(va_t.reshape(1, H).astype(jnp.float32), ((0, 0), (0, Hp - H)))

    kernel = functools.partial(bahdanau_kernel, seq_len=S, chunk=chunk)
    out_shape = (
        jax.ShapeDtypeStruct((Bp, H2p), jnp.float32),   # context (lane-dense)
        jax.ShapeDtypeStruct((Bp, Sp), jnp.float32),    # weights (lane-dense)
    )

    def build(single_buffer_weights):
        res_mode = {}
        if single_buffer_weights:
            # Grid-invariant blocks: a second pipeline buffer is dead VMEM.
            res_mode = dict(pipeline_mode=pl.Buffered(1))
        grid_spec = pltpu.PrefetchScalarGridSpec(
            num_scalar_prefetch=0,
            grid=(Bp // tb,),
            in_specs=[
                pl.BlockSpec((tb, Hp), lambda i: (i, 0)),          # qW tile
                pl.BlockSpec((tb, Sp, H2p), lambda i: (i, 0, 0)),  # keys tile
                pl.BlockSpec((H2p, Hp), lambda i: (0, 0), **res_mode),  # Ua^T
                pl.BlockSpec((1, Hp), lambda i: (0, 0), **res_mode),    # Va row
            ],
            out_specs=[
                pl.BlockSpec((tb, H2p), lambda i: (i, 0)),
                pl.BlockSpec((tb, Sp), lambda i: (i, 0)),
            ],
        )
        return pl.pallas_call(
            kernel,
            out_shape=out_shape,
            grid_spec=grid_spec,
            compiler_params=pltpu.CompilerParams(
                dimension_semantics=("parallel",),   # batch tiles shard across TCs
                vmem_limit_bytes=int(budget),
            ),
        )

    try:
        ctx, w = build(True)(qw, keys_p, ua_p, va_p)
    except Exception:
        # TODO(synk): drop this fallback once pl.Buffered(1) single-buffering
        # is available in all deployed JAX versions.
        ctx, w = build(False)(qw, keys_p, ua_p, va_p)

    context = ctx[:B, :H2].reshape(B, 1, H2)
    weights = w[:B, :S].reshape(B, 1, S)
    return context, weights


# --------------------------------------------------------------------------- #
# Pure-JAX reference (f32) and self-test
# --------------------------------------------------------------------------- #
def bahdanau_reference(query, keys, wa_t, ba, ua_t, bu, va_t, bv):
    qW = query @ wa_t + ba                                   # (B, 1, H)
    kU = keys @ ua_t + bu                                    # (B, S, H)
    scores = (jnp.tanh(qW + kU) @ va_t + bv)[..., 0]         # (B, S)
    weights = jax.nn.softmax(scores, axis=-1)[:, None, :]    # (B, 1, S)
    context = jnp.einsum("bqs,bsd->bqd", weights, keys)      # (B, 1, 2H)
    return context, weights


if __name__ == "__main__":
    B, S, H = 2, 8, 32   # module default hidden_size=1000 shrunk for the test

    key = jax.random.PRNGKey(0)
    k_q, k_k, k_wa, k_ba, k_ua, k_bu, k_va, k_bv = jax.random.split(key, 8)

    query = jax.random.normal(k_q, (B, 1, H), dtype=jnp.float32)
    keys = jax.random.normal(k_k, (B, S, 2 * H), dtype=jnp.float32)

    # Synthetic nn.Linear params, stored pre-transposed (in, out); biases (1, out).
    scale = 0.1
    wa_t = scale * jax.random.normal(k_wa, (H, H), dtype=jnp.float32)       # Wa
    ba = scale * jax.random.normal(k_ba, (1, H), dtype=jnp.float32)
    ua_t = scale * jax.random.normal(k_ua, (2 * H, H), dtype=jnp.float32)   # Ua
    bu = scale * jax.random.normal(k_bu, (1, H), dtype=jnp.float32)
    va_t = scale * jax.random.normal(k_va, (H, 1), dtype=jnp.float32)       # Va
    bv = scale * jax.random.normal(k_bv, (1, 1), dtype=jnp.float32)

    context, weights = bahdanau_attention(query, keys, wa_t, ba, ua_t, bu, va_t, bv)
    jax.block_until_ready(context)
    jax.block_until_ready(weights)

    ctx_ref, w_ref = bahdanau_reference(query, keys, wa_t, ba, ua_t, bu, va_t, bv)
    assert context.shape == (B, 1, 2 * H) and weights.shape == (B, 1, S)
    # bf16 matmul inputs -> slightly looser tolerances than a pure-f32 path.
    assert jnp.allclose(context, ctx_ref, atol=2e-2, rtol=2e-2)
    assert jnp.allclose(weights, w_ref, atol=2e-2, rtol=2e-2)

    print("KERNEL_OK")
</pallas_src>

<mosaic_0001>
module attributes {stable_mosaic.version = 11 : i64} {
  func.func @bahdanau_kernel(%arg0: i32, %arg1: memref<8x128xf32, #tpu.memory_space<vmem>>, %arg2: memref<8x128x128xbf16, #tpu.memory_space<vmem>>, %arg3: memref<128x128xbf16, #tpu.memory_space<vmem>>, %arg4: memref<1x128xf32, #tpu.memory_space<vmem>>, %arg5: memref<8x128xf32, #tpu.memory_space<vmem>>, %arg6: memref<8x128xf32, #tpu.memory_space<vmem>>) attributes {dimension_semantics = [#tpu.dimension_semantics<parallel>], iteration_bounds = array<i64: 1>, scalar_prefetch = 0 : i64, scratch_operands = 0 : i64, tpu.core_type = #tpu.core_type<tc>, window_params = [{transform_indices = @transform_0, window_bounds = array<i64: 8, 128>}, {transform_indices = @transform_1, window_bounds = array<i64: 8, 128, 128>}, {pipeline_mode = #tpu.pipeline_mode<synchronous>, transform_indices = @transform_2, window_bounds = array<i64: 128, 128>}, {pipeline_mode = #tpu.pipeline_mode<synchronous>, transform_indices = @transform_3, window_bounds = array<i64: 1, 128>}, {transform_indices = @transform_4, window_bounds = array<i64: 8, 128>}, {transform_indices = @transform_5, window_bounds = array<i64: 8, 128>}]} {
    %c0 = arith.constant 0 : index
    %c0_0 = arith.constant 0 : index
    %0 = vector.load %arg1[%c0, %c0_0] : memref<8x128xf32, #tpu.memory_space<vmem>>, vector<8x128xf32>
    %1 = vector.shape_cast %0 : vector<8x128xf32> to vector<8x1x128xf32>
    %c0_1 = arith.constant 0 : index
    %c0_2 = arith.constant 0 : index
    %2 = vector.load %arg4[%c0_1, %c0_2] : memref<1x128xf32, #tpu.memory_space<vmem>>, vector<1x128xf32>
    %3 = vector.shape_cast %2 : vector<1x128xf32> to vector<1x1x128xf32>
    %c0_3 = arith.constant 0 : index
    %c0_4 = arith.constant 0 : index
    %4 = vector.load %arg3[%c0_3, %c0_4] : memref<128x128xbf16, #tpu.memory_space<vmem>>, vector<128x128xbf16>
    %c0_5 = arith.constant 0 : index
    %c0_6 = arith.constant 0 : index
    %c0_7 = arith.constant 0 : index
    %5 = vector.load %arg2[%c0_5, %c0_6, %c0_7] : memref<8x128x128xbf16, #tpu.memory_space<vmem>>, vector<8x128x128xbf16>
    %6 = vector.shape_cast %5 : vector<8x128x128xbf16> to vector<1024x128xbf16>
    %cst = arith.constant dense<0.000000e+00> : vector<1024x128xf32>
    %7 = tpu.matmul %6, %4, %cst {dimension_numbers = #tpu.dot_dimension_numbers<[1], [0], [0], [1], [0, 0, 1, 1], [], []>} : vector<1024x128xbf16>, vector<128x128xbf16>, vector<1024x128xf32> -> vector<1024x128xf32>
    %8 = vector.shape_cast %7 : vector<1024x128xf32> to vector<8x128x128xf32>
    %9 = vector.broadcast %1 : vector<8x1x128xf32> to vector<8x128x128xf32>
    %10 = arith.addf %9, %8 : vector<8x128x128xf32>
    %11 = math.tanh %10 : vector<8x128x128xf32>
    %12 = vector.broadcast %3 : vector<1x1x128xf32> to vector<8x128x128xf32>
    %13 = arith.mulf %11, %12 : vector<8x128x128xf32>
    %cst_8 = arith.constant dense<0.000000e+00> : vector<8x128xf32>
    %14 = vector.multi_reduction <add>, %13, %cst_8 [2] : vector<8x128x128xf32> to vector<8x128xf32>
    %c0_9 = arith.constant 0 : index
    %c0_10 = arith.constant 0 : index
    %15 = vector.load %arg6[%c0_9, %c0_10] : memref<8x128xf32, #tpu.memory_space<vmem>>, vector<8x128xf32>
    tpu.vector_store %arg6[%c0_9, %c0_10], %14 {strides = array<i32>} : memref<8x128xf32, #tpu.memory_space<vmem>>, vector<8x128xf32>,
    %c0_11 = arith.constant 0 : index
    %c0_12 = arith.constant 0 : index
    %16 = vector.load %arg6[%c0_11, %c0_12] : memref<8x128xf32, #tpu.memory_space<vmem>>, vector<8x128xf32>
    %17 = tpu.iota {dimensions = array<i32: 1>} : vector<8x128xi32>
    %c8_i32 = arith.constant 8 : i32
    %18 = vector.broadcast %c8_i32 : i32 to vector<8x128xi32>
    %19 = arith.cmpi slt, %17, %18 : vector<8x128xi32>
    %cst_13 = arith.constant 0xFF800000 : f32
    %20 = vector.broadcast %cst_13 : f32 to vector<8x128xf32>
    %21 = arith.select %19, %16, %20 : vector<8x128xi1>, vector<8x128xf32>
    %cst_14 = arith.constant dense<0xFF800000> : vector<8xf32>
    %22 = vector.multi_reduction <maximumf>, %21, %cst_14 [1] : vector<8x128xf32> to vector<8xf32>
    %23 = vector.shape_cast %22 : vector<8xf32> to vector<8x1xf32>
    %24 = vector.broadcast %23 : vector<8x1xf32> to vector<8x128xf32>
    %25 = arith.subf %21, %24 : vector<8x128xf32>
    %26 = math.exp %25 : vector<8x128xf32>
    %cst_15 = arith.constant dense<0.000000e+00> : vector<8xf32>
    %27 = vector.multi_reduction <add>, %26, %cst_15 [1] : vector<8x128xf32> to vector<8xf32>
    %28 = vector.shape_cast %27 : vector<8xf32> to vector<8x1xf32>
    %29 = tpu.reciprocal %28 {approx = true} : vector<8x1xf32> -> vector<8x1xf32>
    %30 = vector.broadcast %29 : vector<8x1xf32> to vector<8x128xf32>
    %31 = arith.mulf %26, %30 : vector<8x128xf32>
    %c0_16 = arith.constant 0 : index
    %c0_17 = arith.constant 0 : index
    %32 = vector.load %arg6[%c0_16, %c0_17] : memref<8x128xf32, #tpu.memory_space<vmem>>, vector<8x128xf32>
    tpu.vector_store %arg6[%c0_16, %c0_17], %31 {strides = array<i32>} : memref<8x128xf32, #tpu.memory_space<vmem>>, vector<8x128xf32>,
    %cst_18 = arith.constant 0.000000e+00 : f32
    %33 = vector.broadcast %cst_18 : f32 to vector<8x128xf32>
    %c0_19 = arith.constant 0 : index
    %c0_20 = arith.constant 0 : index
    %34 = vector.load %arg5[%c0_19, %c0_20] : memref<8x128xf32, #tpu.memory_space<vmem>>, vector<8x128xf32>
    tpu.vector_store %arg5[%c0_19, %c0_20], %33 {strides = array<i32>} : memref<8x128xf32, #tpu.memory_space<vmem>>, vector<8x128xf32>,
    %c0_21 = arith.constant 0 : index
    %c0_22 = arith.constant 0 : index
    %c0_23 = arith.constant 0 : index
    %35 = vector.load %arg2[%c0_21, %c0_22, %c0_23] : memref<8x128x128xbf16, #tpu.memory_space<vmem>>, vector<8x128x128xbf16>
    %36 = arith.extf %35 : vector<8x128x128xbf16> to vector<8x128x128xf32>
    %c0_24 = arith.constant 0 : index
    %c0_25 = arith.constant 0 : index
    %37 = vector.load %arg5[%c0_24, %c0_25] : memref<8x128xf32, #tpu.memory_space<vmem>>, vector<8x128xf32>
    %38 = vector.shape_cast %31 : vector<8x128xf32> to vector<8x128x1xf32>
    %39 = vector.broadcast %38 : vector<8x128x1xf32> to vector<8x128x128xf32>
    %40 = arith.mulf %39, %36 : vector<8x128x128xf32>
    %cst_26 = arith.constant dense<0.000000e+00> : vector<8x128xf32>
    %41 = vector.multi_reduction <add>, %40, %cst_26 [1] : vector<8x128x128xf32> to vector<8x128xf32>
    %42 = arith.addf %37, %41 : vector<8x128xf32>
    %c0_27 = arith.constant 0 : index
    %c0_28 = arith.constant 0 : index
    %43 = vector.load %arg5[%c0_27, %c0_28] : memref<8x128xf32, #tpu.memory_space<vmem>>, vector<8x128xf32>
    tpu.vector_store %arg5[%c0_27, %c0_28], %42 {strides = array<i32>} : memref<8x128xf32, #tpu.memory_space<vmem>>, vector<8x128xf32>,
    return
  }
  func.func @transform_0(%arg0: i32) -> (i32, i32) {
    %c0_i32 = arith.constant 0 : i32
    %c0_i32_0 = arith.constant 0 : i32
    return %arg0, %c0_i32 : i32, i32
  }
  func.func @transform_1(%arg0: i32) -> (i32, i32, i32) {
    %c0_i32 = arith.constant 0 : i32
    %c0_i32_0 = arith.constant 0 : i32
    %c0_i32_1 = arith.constant 0 : i32
    return %arg0, %c0_i32, %c0_i32_0 : i32, i32, i32
  }
  func.func @transform_2(%arg0: i32) -> (i32, i32) {
    %c0_i32 = arith.constant 0 : i32
    %c0_i32_0 = arith.constant 0 : i32
    %c0_i32_1 = arith.constant 0 : i32
    return %c0_i32, %c0_i32_0 : i32, i32
  }
  func.func @transform_3(%arg0: i32) -> (i32, i32) {
    %c0_i32 = arith.constant 0 : i32
    %c0_i32_0 = arith.constant 0 : i32
    %c0_i32_1 = arith.constant 0 : i32
    return %c0_i32, %c0_i32_0 : i32, i32
  }
  func.func @transform_4(%arg0: i32) -> (i32, i32) {
    %c0_i32 = arith.constant 0 : i32
    %c0_i32_0 = arith.constant 0 : i32
    return %arg0, %c0_i32 : i32, i32
  }
  func.func @transform_5(%arg0: i32) -> (i32, i32) {
    %c0_i32 = arith.constant 0 : i32
    %c0_i32_0 = arith.constant 0 : i32
    return %arg0, %c0_i32 : i32, i32
  }
}

module attributes {stable_mosaic.version = 11 : i64} {
  func.func @bahdanau_kernel(%arg0: i32, %arg1: memref<8x128xf32, #tpu.memory_space<vmem>>, %arg2: memref<8x128x128xbf16, #tpu.memory_space<vmem>>, %arg3: memref<128x128xbf16, #tpu.memory_space<vmem>>, %arg4: memref<1x128xf32, #tpu.memory_space<vmem>>, %arg5: memref<8x128xf32, #tpu.memory_space<vmem>>, %arg6: memref<8x128xf32, #tpu.memory_space<vmem>>) attributes {dimension_semantics = [#tpu.dimension_semantics<parallel>], iteration_bounds = array<i64: 1>, scalar_prefetch = 0 : i64, scratch_operands = 0 : i64, tpu.core_type = #tpu.core_type<tc>, window_params = [{transform_indices = @transform_0, window_bounds = array<i64: 8, 128>}, {transform_indices = @transform_1, window_bounds = array<i64: 8, 128, 128>}, {pipeline_mode = #tpu.pipeline_mode<synchronous>, transform_indices = @transform_2, window_bounds = array<i64: 128, 128>}, {pipeline_mode = #tpu.pipeline_mode<synchronous>, transform_indices = @transform_3, window_bounds = array<i64: 1, 128>}, {transform_indices = @transform_4, window_bounds = array<i64: 8, 128>}, {transform_indices = @transform_5, window_bounds = array<i64: 8, 128>}]} {
    %c0 = arith.constant 0 : index
    %c0_0 = arith.constant 0 : index
    %0 = vector.load %arg1[%c0, %c0_0] : memref<8x128xf32, #tpu.memory_space<vmem>>, vector<8x128xf32>
    %1 = vector.shape_cast %0 : vector<8x128xf32> to vector<8x1x128xf32>
    %c0_1 = arith.constant 0 : index
    %c0_2 = arith.constant 0 : index
    %2 = vector.load %arg4[%c0_1, %c0_2] : memref<1x128xf32, #tpu.memory_space<vmem>>, vector<1x128xf32>
    %3 = vector.shape_cast %2 : vector<1x128xf32> to vector<1x1x128xf32>
    %c0_3 = arith.constant 0 : index
    %c0_4 = arith.constant 0 : index
    %4 = vector.load %arg3[%c0_3, %c0_4] : memref<128x128xbf16, #tpu.memory_space<vmem>>, vector<128x128xbf16>
    %c0_5 = arith.constant 0 : index
    %c0_6 = arith.constant 0 : index
    %c0_7 = arith.constant 0 : index
    %5 = vector.load %arg2[%c0_5, %c0_6, %c0_7] : memref<8x128x128xbf16, #tpu.memory_space<vmem>>, vector<8x128x128xbf16>
    %6 = vector.shape_cast %5 : vector<8x128x128xbf16> to vector<1024x128xbf16>
    %cst = arith.constant dense<0.000000e+00> : vector<1024x128xf32>
    %7 = tpu.matmul %6, %4, %cst {dimension_numbers = #tpu.dot_dimension_numbers<[1], [0], [0], [1], [0, 0, 1, 1], [], []>} : vector<1024x128xbf16>, vector<128x128xbf16>, vector<1024x128xf32> -> vector<1024x128xf32>
    %8 = vector.shape_cast %7 : vector<1024x128xf32> to vector<8x128x128xf32>
    %9 = vector.broadcast %1 : vector<8x1x128xf32> to vector<8x128x128xf32>
    %10 = arith.addf %9, %8 : vector<8x128x128xf32>
    %11 = math.tanh %10 : vector<8x128x128xf32>
    %12 = vector.broadcast %3 : vector<1x1x128xf32> to vector<8x128x128xf32>
    %13 = arith.mulf %11, %12 : vector<8x128x128xf32>
    %cst_8 = arith.constant dense<0.000000e+00> : vector<8x128xf32>
    %14 = vector.multi_reduction <add>, %13, %cst_8 [2] : vector<8x128x128xf32> to vector<8x128xf32>
    %c0_9 = arith.constant 0 : index
    %c0_10 = arith.constant 0 : index
    %15 = vector.load %arg6[%c0_9, %c0_10] : memref<8x128xf32, #tpu.memory_space<vmem>>, vector<8x128xf32>
    tpu.vector_store %arg6[%c0_9, %c0_10], %14 {strides = array<i32>} : memref<8x128xf32, #tpu.memory_space<vmem>>, vector<8x128xf32>,
    %c0_11 = arith.constant 0 : index
    %c0_12 = arith.constant 0 : index
    %16 = vector.load %arg6[%c0_11, %c0_12] : memref<8x128xf32, #tpu.memory_space<vmem>>, vector<8x128xf32>
    %17 = tpu.iota {dimensions = array<i32: 1>} : vector<8x128xi32>
    %c8_i32 = arith.constant 8 : i32
    %18 = vector.broadcast %c8_i32 : i32 to vector<8x128xi32>
    %19 = arith.cmpi slt, %17, %18 : vector<8x128xi32>
    %cst_13 = arith.constant 0xFF800000 : f32
    %20 = vector.broadcast %cst_13 : f32 to vector<8x128xf32>
    %21 = arith.select %19, %16, %20 : vector<8x128xi1>, vector<8x128xf32>
    %cst_14 = arith.constant dense<0xFF800000> : vector<8xf32>
    %22 = vector.multi_reduction <maximumf>, %21, %cst_14 [1] : vector<8x128xf32> to vector<8xf32>
    %23 = vector.shape_cast %22 : vector<8xf32> to vector<8x1xf32>
    %24 = vector.broadcast %23 : vector<8x1xf32> to vector<8x128xf32>
    %25 = arith.subf %21, %24 : vector<8x128xf32>
    %26 = math.exp %25 : vector<8x128xf32>
    %cst_15 = arith.constant dense<0.000000e+00> : vector<8xf32>
    %27 = vector.multi_reduction <add>, %26, %cst_15 [1] : vector<8x128xf32> to vector<8xf32>
    %28 = vector.shape_cast %27 : vector<8xf32> to vector<8x1xf32>
    %29 = tpu.reciprocal %28 {approx = true} : vector<8x1xf32> -> vector<8x1xf32>
    %30 = vector.broadcast %29 : vector<8x1xf32> to vector<8x128xf32>
    %31 = arith.mulf %26, %30 : vector<8x128xf32>
    %c0_16 = arith.constant 0 : index
    %c0_17 = arith.constant 0 : index
    %32 = vector.load %arg6[%c0_16, %c0_17] : memref<8x128xf32, #tpu.memory_space<vmem>>, vector<8x128xf32>
    tpu.vector_store %arg6[%c0_16, %c0_17], %31 {strides = array<i32>} : memref<8x128xf32, #tpu.memory_space<vmem>>, vector<8x128xf32>,
    %cst_18 = arith.constant 0.000000e+00 : f32
    %33 = vector.broadcast %cst_18 : f32 to vector<8x128xf32>
    %c0_19 = arith.constant 0 : index
    %c0_20 = arith.constant 0 : index
    %34 = vector.load %arg5[%c0_19, %c0_20] : memref<8x128xf32, #tpu.memory_space<vmem>>, vector<8x128xf32>
    tpu.vector_store %arg5[%c0_19, %c0_20], %33 {strides = array<i32>} : memref<8x128xf32, #tpu.memory_space<vmem>>, vector<8x128xf32>,
    %c0_21 = arith.constant 0 : index
    %c0_22 = arith.constant 0 : index
    %c0_23 = arith.constant 0 : index
    %35 = vector.load %arg2[%c0_21, %c0_22, %c0_23] : memref<8x128x128xbf16, #tpu.memory_space<vmem>>, vector<8x128x128xbf16>
    %36 = arith.extf %35 : vector<8x128x128xbf16> to vector<8x128x128xf32>
    %c0_24 = arith.constant 0 : index
    %c0_25 = arith.constant 0 : index
    %37 = vector.load %arg5[%c0_24, %c0_25] : memref<8x128xf32, #tpu.memory_space<vmem>>, vector<8x128xf32>
    %38 = vector.shape_cast %31 : vector<8x128xf32> to vector<8x128x1xf32>
    %39 = vector.broadcast %38 : vector<8x128x1xf32> to vector<8x128x128xf32>
    %40 = arith.mulf %39, %36 : vector<8x128x128xf32>
    %cst_26 = arith.constant dense<0.000000e+00> : vector<8x128xf32>
    %41 = vector.multi_reduction <add>, %40, %cst_26 [1] : vector<8x128x128xf32> to vector<8x128xf32>
    %42 = arith.addf %37, %41 : vector<8x128xf32>
    %c0_27 = arith.constant 0 : index
    %c0_28 = arith.constant 0 : index
    %43 = vector.load %arg5[%c0_27, %c0_28] : memref<8x128xf32, #tpu.memory_space<vmem>>, vector<8x128xf32>
    tpu.vector_store %arg5[%c0_27, %c0_28], %42 {strides = array<i32>} : memref<8x128xf32, #tpu.memory_space<vmem>>, vector<8x128xf32>,
    return
  }
  func.func @transform_0(%arg0: i32) -> (i32, i32) {
    %c0_i32 = arith.constant 0 : i32
    %c0_i32_0 = arith.constant 0 : i32
    return %arg0, %c0_i32 : i32, i32
  }
  func.func @transform_1(%arg0: i32) -> (i32, i32, i32) {
    %c0_i32 = arith.constant 0 : i32
    %c0_i32_0 = arith.constant 0 : i32
    %c0_i32_1 = arith.constant 0 : i32
    return %arg0, %c0_i32, %c0_i32_0 : i32, i32, i32
  }
  func.func @transform_2(%arg0: i32) -> (i32, i32) {
    %c0_i32 = arith.constant 0 : i32
    %c0_i32_0 = arith.constant 0 : i32
    %c0_i32_1 = arith.constant 0 : i32
    return %c0_i32, %c0_i32_0 : i32, i32
  }
  func.func @transform_3(%arg0: i32) -> (i32, i32) {
    %c0_i32 = arith.constant 0 : i32
    %c0_i32_0 = arith.constant 0 : i32
    %c0_i32_1 = arith.constant 0 : i32
    return %c0_i32, %c0_i32_0 : i32, i32
  }
  func.func @transform_4(%arg0: i32) -> (i32, i32) {
    %c0_i32 = arith.constant 0 : i32
    %c0_i32_0 = arith.constant 0 : i32
    return %arg0, %c0_i32 : i32, i32
  }
  func.func @transform_5(%arg0: i32) -> (i32, i32) {
    %c0_i32 = arith.constant 0 : i32
    %c0_i32_0 = arith.constant 0 : i32
    return %arg0, %c0_i32 : i32, i32
  }
}

</mosaic_0001>

<bundles_post_ra>
// kernel: tpu_custom_call.1
= control target key start
LH: loop header
LB: loop body
LE: loop exit
PB: predicated region body
PF: predicated region fallthrough
CT: control target
= control target key end

     0   :  { %11 = vsyncpa [#allocation3], 0  ;;  %s6588_s0 = inlined_call_operand.hbm [shape: f32[8,128], index: 0, kind: input, shape index: {}]   ;;  %s6589_s1 = inlined_call_operand.hbm [shape: bf16[8,128,128], index: 1, kind: input, shape index: {}]   ;;  %s6590_s2 = inlined_call_operand.hbm [shape: bf16[128,128], index: 2, kind: input, shape index: {}]   ;;  %s6591_s3 = inlined_call_operand.vmem [shape: f32[1,128], index: 3, kind: input, shape index: {}]   ;;  %s6592_s4 = inlined_call_operand.hbm [shape: f32[8,128], index: 4, kind: output, shape index: {0}]   ;;  %s6593_s5 = inlined_call_operand.hbm [shape: f32[8,128], index: 5, kind: output, shape index: {1}]  }
   0x1   :  { %12 = vsyncpa [#allocation6], 0 }
   0x2   :  { %13 = vsyncpa [#allocation4], 0 }
   0x3   :  { %14 = vsyncpa [#allocation10], 0  ;;  %s4964_s18 = smov [#allocation5]   ;;  %s4846_s22 = scalar_lea.hbm %s6589_s1, 8192 }
   0x4   :  { %s30_s19 = sshll.u32 %s4964_s18, 4  ;;  %p4847_p0 = scmp.ne.s32.totalorder %s6589_s1, %s4846_s22  ;;  %s31_s19 = int_to_ptr.vmem [resolvable:$true] %s30_s19 }
   0x5   :  { %p4850_p1 = scmp.lt.u32.totalorder %s4846_s22, %s6589_s1 }
   0x7   :  { %p4852_p2 = pnand %p4850_p1, %p4847_p0 }
   0x9   :  { %4855 = shalt.err (!%p4852_p2)
}
   0xa   :  { %s4856_s27 = scalar_lea.vmem %s31_s19, 8192  ;;  %p4861_p4 = scmp.lt.s32.totalorder %s31_s19, %s31_s19 }
   0xb   :  { %p4857_p3 = scmp.ne.s32.totalorder %s31_s19, %s4856_s27  ;;  %p4862_p5 = scmp.lt.s32.totalorder %s4856_s27, %s4856_s27 }
   0xd   :  { %p4863_p6 = por %p4862_p5, %p4861_p4 }
   0xf   :  { %p4864_p7 = pnand %p4863_p6, %p4857_p3 }
  0x11   :  { %4867 = shalt.err (!%p4864_p7)
}
  0x12   :  { %s4965_s28 = smov 64   ;;  %s4966_s29 = smov 4  }
  0x13   :  { %36 = dma.hbm_to_vmem [thread:$0]  %s6589_s1, 8192, %s31_s19, [#allocation6], %s4965_s28, %s4965_s28, %s4966_s29  }
  0x14   :  { %s4967_s7 = smov [#allocation2]   ;;  %s4968_s9 = smov [#allocation7]  }
  0x15   :  { %s21_s8 = sshll.u32 %s4967_s7, 4  ;;  %s42_s10 = sshll.u32 %s4968_s9, 4  ;;  %s22_s8 = int_to_ptr.vmem [resolvable:$true] %s21_s8  ;;  %s43_s10 = int_to_ptr.vmem [resolvable:$true] %s42_s10 }
  0x16   :  { %s4868_s13 = scalar_lea.hbm %s6588_s0, 128 }
  0x17   :  { %p4869_p8 = scmp.ne.s32.totalorder %s6588_s0, %s4868_s13  ;;  %p4872_p9 = scmp.lt.u32.totalorder %s4868_s13, %s6588_s0 }
  0x19   :  { %p4874_p10 = pnand %p4872_p9, %p4869_p8 }
  0x1b   :  { %4877 = shalt.err (!%p4874_p10)
}
  0x1c   :  { %s4878_s1 = scalar_lea.vmem %s22_s8, 128  ;;  %p4883_p12 = scmp.lt.s32.totalorder %s22_s8, %s22_s8 }
  0x1d   :  { %p4879_p11 = scmp.ne.s32.totalorder %s22_s8, %s4878_s1  ;;  %p4884_p13 = scmp.lt.s32.totalorder %s4878_s1, %s4878_s1 }
  0x1f   :  { %p4885_p0 = por %p4884_p13, %p4883_p12 }
  0x21   :  { %p4886_p1 = pnand %p4885_p0, %p4879_p11 }
  0x23   :  { %4889 = shalt.err (!%p4886_p1)
}
  0x24   :  { %24 = dma.hbm_to_vmem [thread:$0]  %s6588_s0, 128, %s22_s8, [#allocation3]  }
  0x25   :  { %s4890_s22 = scalar_lea.hbm %s6590_s2, 1024 }
  0x26   :  { %p4891_p2 = scmp.ne.s32.totalorder %s6590_s2, %s4890_s22  ;;  %p4894_p3 = scmp.lt.u32.totalorder %s4890_s22, %s6590_s2 }
  0x28   :  { %p4896_p4 = pnand %p4894_p3, %p4891_p2 }
  0x2a   :  { %4899 = shalt.err (!%p4896_p4)
}
  0x2b   :  { %s4900_s27 = scalar_lea.vmem %s43_s10, 1024  ;;  %p4905_p6 = scmp.lt.s32.totalorder %s43_s10, %s43_s10 }
  0x2c   :  { %p4901_p5 = scmp.ne.s32.totalorder %s43_s10, %s4900_s27  ;;  %p4906_p7 = scmp.lt.s32.totalorder %s4900_s27, %s4900_s27 }
  0x2e   :  { %p4907_p8 = por %p4906_p7, %p4905_p6 }
  0x30   :  { %p4908_p9 = pnand %p4907_p8, %p4901_p5 }
  0x32   :  { %4911 = shalt.err (!%p4908_p9)
}
  0x33   :  { %48 = dma.hbm_to_vmem [thread:$0]  %s6590_s2, 1024, %s43_s10, [#allocation6], %s4965_s28, %s4965_s28, %s4966_s29  }
  0x34   :  { %4956 = dma.done.wait [#allocation3], 128  }
  0x35   :  { %4957 = vsyncadd [#allocation3], 4294967168 }
  0x36   :  { %4958 = dma.done.wait [#allocation6], 9216  }
  0x37   :  { %4959 = vsyncadd [#allocation6], 4294958080  ;;  %v4512_v0 = vld [vmem:[#allocation7] sm:$0xff]   ;;  %v4513_v1 = vld [vmem:[#allocation7 + $0x8] sm:$0xff]   ;;  %vm2059_vm0 = vcmask 130112   ;;  %vm2066_vm1 = vcmask 195712  }
  0x38   :  { %4343 = vmatprep.subr.bf16.mxu0 %v4512_v0  ;;  %4487 = vmatprep.subr.bf16.mxu1 %v4512_v0  ;;  %v4514_v2 = vld [vmem:[#allocation7 + $0x10] sm:$0xff]   ;;  %v4515_v3 = vld [vmem:[#allocation7 + $0x18] sm:$0xff]   ;;  %v4520_v4 = vld [vmem:[#allocation5] sm:$0xff]   ;;  %vm2073_vm2 = vcmask 261312   ;;  %vm2080_vm3 = vcmask 326912   ;;  %vm2087_vm4 = vcmask 392512  }
  0x39   :  { %4344 = vmatpush3.bf16.msra.mxu0 %v4512_v0  ;;  %4495 = vmatpush3.bf16.msra.mxu1 %v4512_v0  ;;  %v4521_v5 = vld [vmem:[#allocation5 + $0x100] sm:$0xff]   ;;  %v4517_v7 = vld [vmem:[#allocation7 + $0x28] sm:$0xff]   ;;  %v4518_v8 = vld [vmem:[#allocation7 + $0x30] sm:$0xff]   ;;  %vm2094_vm5 = vcmask 458112   ;;  %vm2101_vm6 = vcmask 523712   ;;  %vm2108_vm7 = vcmask 589312  }
  0x3a   :  { %4345 = vmatprep.subr.bf16.mxu0 %v4513_v1  ;;  %4488 = vmatprep.subr.bf16.mxu1 %v4513_v1  ;;  %v4516_v6 = vld [vmem:[#allocation7 + $0x20] sm:$0xff]   ;;  %v4519_v9 = vld [vmem:[#allocation7 + $0x38] sm:$0xff]   ;;  %v4522_v10 = vld [vmem:[#allocation5 + $0x8] sm:$0xff]   ;;  %vm2115_vm8 = vcmask 654912   ;;  %vm2122_vm9 = vcmask 720512   ;;  %vm2129_vm10 = vcmask 786112  }
  0x3b   :  { %4359 = vmatprep.mubr.bf16.mxu0 %v4520_v4  ;;  %4423 = vmatprep.mubr.bf16.mxu1 %v4521_v5  ;;  %v4523_v11 = vld [vmem:[#allocation5 + $0x108] sm:$0xff]   ;;  %v4524_v12 = vld [vmem:[#allocation5 + $0x10] sm:$0xff]   ;;  %v4525_v14 = vld [vmem:[#allocation5 + $0x18] sm:$0xff]   ;;  %vm2136_vm11 = vcmask 851712   ;;  %vm2143_vm12 = vcmask 917312   ;;  %vm2150_vm13 = vcmask 982912  }
  0x3c   :  { %v4526_v13 = vld [vmem:[#allocation5 + $0x110] sm:$0xff]   ;;  %v4527_v15 = vld [vmem:[#allocation5 + $0x118] sm:$0xff]   ;;  %v4528_v16 = vld [vmem:[#allocation5 + $0x20] sm:$0xff]   ;;  %vm2157_vm14 = vcmask 1048512   ;;  %vm2712_vm15 = vcmask 1041409  }
  0x3d   :  { %4346 = vmatpush3.bf16.msra.mxu0 %v4513_v1  ;;  %4496 = vmatpush3.bf16.msra.mxu1 %v4513_v1  ;;  %v4530_v17 = vld [vmem:[#allocation5 + $0x120] sm:$0xff]   ;;  %v4529_v18 = vld [vmem:[#allocation5 + $0x28] sm:$0xff]   ;;  %v4532_v20 = vld [vmem:[#allocation5 + $0x30] sm:$0xff]  }
  0x3e   :  { %4347 = vmatprep.subr.bf16.mxu0 %v4514_v2  ;;  %4489 = vmatprep.subr.bf16.mxu1 %v4514_v2  ;;  %v4531_v19 = vld [vmem:[#allocation5 + $0x128] sm:$0xff]   ;;  %v4534_v21 = vld [vmem:[#allocation5 + $0x130] sm:$0xff]   ;;  %v4533_v22 = vld [vmem:[#allocation5 + $0x38] sm:$0xff]  }
  0x3f   :  { %v4535_v23 = vld [vmem:[#allocation5 + $0x138] sm:$0xff]   ;;  %v4536_v24 = vld [vmem:[#allocation5 + $0x140] sm:$0xff]   ;;  %v4537_v26 = vld [vmem:[#allocation5 + $0x148] sm:$0xff]  }
  0x40   :  { %v4538_v25 = vld [vmem:[#allocation5 + $0x40] sm:$0xff]   ;;  %v4539_v27 = vld [vmem:[#allocation5 + $0x48] sm:$0xff]   ;;  %v4540_v28 = vld [vmem:[#allocation5 + $0x150] sm:$0xff]  }
  0x41   :  { %4348 = vmatpush3.bf16.msra.mxu0 %v4514_v2  ;;  %4497 = vmatpush3.bf16.msra.mxu1 %v4514_v2  ;;  %v4542_v29 = vld [vmem:[#allocation5 + $0x50] sm:$0xff]   ;;  %v4541_v30 = vld [vmem:[#allocation5 + $0x158] sm:$0xff]   ;;  %v4544_v32 = vld [vmem:[#allocation5 + $0x160] sm:$0xff]  }
  0x42   :  { %4349 = vmatprep.subr.bf16.mxu0 %v4515_v3  ;;  %4490 = vmatprep.subr.bf16.mxu1 %v4515_v3  ;;  %v4543_v31 = vld [vmem:[#allocation5 + $0x58] sm:$0xff]   ;;  %v4546_v33 = vld [vmem:[#allocation5 + $0x60] sm:$0xff]   ;;  %v4545_v34 = vld [vmem:[#allocation5 + $0x168] sm:$0xff]  }
  0x43   :  { %v4547_v35 = vld [vmem:[#allocation5 + $0x68] sm:$0xff]   ;;  %v4548_v36 = vld [vmem:[#allocation5 + $0x170] sm:$0xff]   ;;  %v4549_v38 = vld [vmem:[#allocation5 + $0x178] sm:$0xff]  }
  0x44   :  { %v4550_v37 = vld [vmem:[#allocation5 + $0x70] sm:$0xff]   ;;  %v4551_v39 = vld [vmem:[#allocation5 + $0x78] sm:$0xff]   ;;  %v4552_v40 = vld [vmem:[#allocation5 + $0x180] sm:$0xff]  }
  0x45   :  { %4350 = vmatpush3.bf16.msra.mxu0 %v4515_v3  ;;  %4498 = vmatpush3.bf16.msra.mxu1 %v4515_v3  ;;  %v4554_v41 = vld [vmem:[#allocation5 + $0x80] sm:$0xff]   ;;  %v4553_v42 = vld [vmem:[#allocation5 + $0x188] sm:$0xff]   ;;  %v4556_v44 = vld [vmem:[#allocation5 + $0x90] sm:$0xff]  }
  0x46   :  { %4351 = vmatprep.subr.bf16.mxu0 %v4516_v6  ;;  %4491 = vmatprep.subr.bf16.mxu1 %v4516_v6  ;;  %v4555_v43 = vld [vmem:[#allocation5 + $0x88] sm:$0xff]   ;;  %v4558_v45 = vld [vmem:[#allocation5 + $0x190] sm:$0xff]   ;;  %v4557_v46 = vld [vmem:[#allocation5 + $0x98] sm:$0xff]  }
  0x47   :  { %v4559_v47 = vld [vmem:[#allocation5 + $0x198] sm:$0xff]   ;;  %v4560_v48 = vld [vmem:[#allocation5 + $0xa0] sm:$0xff]   ;;  %v4561_v50 = vld [vmem:[#allocation5 + $0xa8] sm:$0xff]  }
  0x48   :  { %v4562_v49 = vld [vmem:[#allocation5 + $0x1a0] sm:$0xff]   ;;  %v4563_v51 = vld [vmem:[#allocation5 + $0x1a8] sm:$0xff]   ;;  %v4564_v52 = vld [vmem:[#allocation5 + $0x1b0] sm:$0xff]  }
  0x49   :  { %4352 = vmatpush3.bf16.msra.mxu0 %v4516_v6  ;;  %4499 = vmatpush3.bf16.msra.mxu1 %v4516_v6  ;;  %v4566_v53 = vld [vmem:[#allocation5 + $0xb0] sm:$0xff]   ;;  %v4565_v54 = vld [vmem:[#allocation5 + $0x1b8] sm:$0xff]   ;;  %v4568_v56 = vld [vmem:[#allocation5 + $0x1c0] sm:$0xff]  }
  0x4a   :  { %4353 = vmatprep.subr.bf16.mxu0 %v4517_v7  ;;  %4492 = vmatprep.subr.bf16.mxu1 %v4517_v7  ;;  %v4567_v55 = vld [vmem:[#allocation5 + $0xb8] sm:$0xff]   ;;  %v4570_v57 = vld [vmem:[#allocation5 + $0xc0] sm:$0xff]   ;;  %v4569_v58 = vld [vmem:[#allocation5 + $0x1c8] sm:$0xff]  }
  0x4b   :  { %v4571_v59 = vld [vmem:[#allocation5 + $0xc8] sm:$0xff]   ;;  %v4572_v60 = vld [vmem:[#allocation5 + $0x1d0] sm:$0xff]   ;;  %v4573_v62 = vld [vmem:[#allocation5 + $0x1d8] sm:$0xff]  }
  0x4c   :  { %v4574_v61 = vld [vmem:[#allocation5 + $0xd0] sm:$0xff]   ;;  %v4575_v63 = vld [vmem:[#allocation5 + $0xd8] sm:$0xff]   ;;  %v4577_v0 = vld [vmem:[#allocation5 + $0x1e0] sm:$0xff]  }
  0x4d   :  { %4354 = vmatpush3.bf16.msra.mxu0 %v4517_v7  ;;  %4500 = vmatpush3.bf16.msra.mxu1 %v4517_v7  ;;  %v4579_v1 = vld [vmem:[#allocation5 + $0xe0] sm:$0xff]   ;;  %v4578_v2 = vld [vmem:[#allocation5 + $0x1e8] sm:$0xff]   ;;  %v4581_v4 = vld [vmem:[#allocation5 + $0x1f0] sm:$0xff]  }
  0x4e   :  { %4355 = vmatprep.subr.bf16.mxu0 %v4518_v8  ;;  %4493 = vmatprep.subr.bf16.mxu1 %v4518_v8  ;;  %v4580_v3 = vld [vmem:[#allocation5 + $0xe8] sm:$0xff]   ;;  %v4583_v5 = vld [vmem:[#allocation5 + $0xf0] sm:$0xff]   ;;  %v4582_v6 = vld [vmem:[#allocation5 + $0x1f8] sm:$0xff]  }
  0x4f   :  { %v4584_v7 = vld [vmem:[#allocation5 + $0xf8] sm:$0xff]  }
  0x51   :  { %4356 = vmatpush3.bf16.msra.mxu0 %v4518_v8  ;;  %4501 = vmatpush3.bf16.msra.mxu1 %v4518_v8  ;;  %v4969_v8 = vmov 1966171168  }
  0x52   :  { %4357 = vmatprep.subr.bf16.mxu0 %v4519_v9  ;;  %4494 = vmatprep.subr.bf16.mxu1 %v4519_v9 }
  0x55   :  { %4358 = vmatpush3.bf16.msra.mxu0 %v4519_v9  ;;  %4502 = vmatpush3.bf16.msra.mxu1 %v4519_v9  ;;  %v65_v9 = vunpack.c.l.s4 %v4969_v8 }
  0x58   :  { %4360 = vmatmul.mubr.bf16.vlgmr.msra.gmra.mrb[0].mxu0 %v4522_v10  ;;  %4424 = vmatmul.mubr.bf16.vlgmr.msra.gmra.mrb[0].mxu1 %v4523_v11  ;;  %v6594_v10 = vlaneseq  ;;  %v66_v11 = vunpack.c.0.s8 %v65_v9 }
  0x59   :  { %4363 = vmatprep.mubr.bf16.mxu0 %v4524_v12  ;;  %4427 = vmatprep.mubr.bf16.mxu1 %v4526_v13  ;;  %v61_v13 = vld [vmem:[#allocation2] sm:$0xff] }
  0x5a   :  { %v5045_v12 = vshrl.u32 %v6594_v10, 7 }
  0x5c   :  { %6599 = vst [vmem:[#allocation15_spill] sm:$0xff] %v5045_v12 }
  0x60   :  { %4364 = vmatmul.mubr.bf16.gmra.mrb[4].mxu0 %v4525_v14  ;;  %4428 = vmatmul.mubr.bf16.gmra.mrb[4].mxu1 %v4527_v15  ;;  %v5048_v14 = vsub.s32 %v66_v11, %v5045_v12  ;;  %v63_v15 = vcombine.high %v61_v13, %v61_v13 }
  0x61   :  { %4367 = vmatprep.mubr.bf16.mxu0 %v4528_v16  ;;  %4431 = vmatprep.mubr.bf16.mxu1 %v4530_v17 }
  0x62   :  { %v5051_v16 = vrot.slane %v61_v13, %v5048_v14  ;;  %v5054_v17 = vrot.slane %v63_v15, %v5048_v14 }
  0x64   :  { %v79_v13 = vcombine.high %v5054_v17, %v5054_v17 }
  0x68   :  { %4368 = vmatmul.mubr.bf16.gmra.mrb[8].mxu0 %v4529_v18  ;;  %4432 = vmatmul.mubr.bf16.gmra.mrb[8].mxu1 %v4531_v19  ;;  %v5058_v18 = vrot.slane %v5051_v16, %v5048_v14  ;;  %v5061_v19 = vsub.s32 0, %v5045_v12 }
  0x69   :  { %4371 = vmatprep.mubr.bf16.mxu0 %v4532_v20  ;;  %4435 = vmatprep.mubr.bf16.mxu1 %v4534_v21  ;;  %v5065_v20 = vrot.slane %v5054_v17, %v5048_v14 }
  0x6a   :  { %6600 = vst [vmem:[#allocation16_spill] sm:$0xff] %v5061_v19  ;;  %v5069_v21 = vrot.slane %v5058_v18, %v5061_v19 }
  0x70   :  { %4372 = vmatmul.mubr.bf16.gmra.mrb[12].mxu0 %v4533_v22  ;;  %4436 = vmatmul.mubr.bf16.gmra.mrb[12].mxu1 %v4535_v23  ;;  %v5073_v22 = vrot.slane %v5065_v20, %v5061_v19 }
  0x71   :  { %4439 = vmatprep.mubr.bf16.mxu1 %v4536_v24  ;;  %4375 = vmatprep.mubr.bf16.mxu0 %v4538_v25 }
  0x78   :  { %4440 = vmatmul.mubr.bf16.gmra.mrb[16].mxu1 %v4537_v26  ;;  %4376 = vmatmul.mubr.bf16.gmra.mrb[16].mxu0 %v4539_v27 }
  0x79   :  { %4443 = vmatprep.mubr.bf16.mxu1 %v4540_v28  ;;  %4379 = vmatprep.mubr.bf16.mxu0 %v4542_v29 }
  0x80   :  { %4444 = vmatmul.mubr.bf16.gmra.mrb[20].mxu1 %v4541_v30  ;;  %4380 = vmatmul.mubr.bf16.gmra.mrb[20].mxu0 %v4543_v31 }
  0x81   :  { %4447 = vmatprep.mubr.bf16.mxu1 %v4544_v32  ;;  %4383 = vmatprep.mubr.bf16.mxu0 %v4546_v33 }
  0x88   :  { %4448 = vmatmul.mubr.bf16.gmra.mrb[24].mxu1 %v4545_v34  ;;  %4384 = vmatmul.mubr.bf16.gmra.mrb[24].mxu0 %v4547_v35 }
  0x89   :  { %4451 = vmatprep.mubr.bf16.mxu1 %v4548_v36  ;;  %4387 = vmatprep.mubr.bf16.mxu0 %v4550_v37 }
  0x90   :  { %4452 = vmatmul.mubr.bf16.gmra.mrb[28].mxu1 %v4549_v38  ;;  %4388 = vmatmul.mubr.bf16.gmra.mrb[28].mxu0 %v4551_v39 }
  0x91   :  { %4455 = vmatprep.mubr.bf16.mxu1 %v4552_v40  ;;  %4391 = vmatprep.mubr.bf16.mxu0 %v4554_v41 }
  0x98   :  { %4456 = vmatmul.mubr.bf16.gmra.mrb[32].mxu1 %v4553_v42  ;;  %4392 = vmatmul.mubr.bf16.gmra.mrb[32].mxu0 %v4555_v43 }
  0x99   :  { %4395 = vmatprep.mubr.bf16.mxu0 %v4556_v44  ;;  %4459 = vmatprep.mubr.bf16.mxu1 %v4558_v45 }
  0xa0   :  { %4396 = vmatmul.mubr.bf16.gmra.mrb[36].mxu0 %v4557_v46  ;;  %4460 = vmatmul.mubr.bf16.gmra.mrb[36].mxu1 %v4559_v47  ;;  %v5090_v47 = vld [vmem:[%s6591_s3] ss:$0 sm:$0xff] }
  0xa1   :  { %4399 = vmatprep.mubr.bf16.mxu0 %v4560_v48  ;;  %4463 = vmatprep.mubr.bf16.mxu1 %v4562_v49 }
  0xa8   :  { %4400 = vmatmul.mubr.bf16.gmra.mrb[40].mxu0 %v4561_v50  ;;  %4464 = vmatmul.mubr.bf16.gmra.mrb[40].mxu1 %v4563_v51 }
  0xa9   :  { %4467 = vmatprep.mubr.bf16.mxu1 %v4564_v52  ;;  %4403 = vmatprep.mubr.bf16.mxu0 %v4566_v53 }
  0xb0   :  { %4468 = vmatmul.mubr.bf16.gmra.mrb[44].mxu1 %v4565_v54  ;;  %4404 = vmatmul.mubr.bf16.gmra.mrb[44].mxu0 %v4567_v55 }
  0xb1   :  { %4471 = vmatprep.mubr.bf16.mxu1 %v4568_v56  ;;  %4407 = vmatprep.mubr.bf16.mxu0 %v4570_v57 }
  0xb8   :  { %4472 = vmatmul.mubr.bf16.gmra.mrb[48].mxu1 %v4569_v58  ;;  %4408 = vmatmul.mubr.bf16.gmra.mrb[48].mxu0 %v4571_v59 }
  0xb9   :  { %4475 = vmatprep.mubr.bf16.mxu1 %v4572_v60  ;;  %4411 = vmatprep.mubr.bf16.mxu0 %v4574_v61 }
  0xc0   :  { %4476 = vmatmul.mubr.bf16.gmra.mrb[52].mxu1 %v4573_v62  ;;  %4412 = vmatmul.mubr.bf16.gmra.mrb[52].mxu0 %v4575_v63 }
  0xc1   :  { %4479 = vmatprep.mubr.bf16.mxu1 %v4577_v0  ;;  %4415 = vmatprep.mubr.bf16.mxu0 %v4579_v1 }
  0xc8   :  { %4480 = vmatmul.mubr.bf16.gmra.mrb[56].mxu1 %v4578_v2  ;;  %4416 = vmatmul.mubr.bf16.gmra.mrb[56].mxu0 %v4580_v3 }
  0xc9   :  { %4483 = vmatprep.mubr.bf16.mxu1 %v4581_v4  ;;  %4419 = vmatprep.mubr.bf16.mxu0 %v4583_v5 }
  0xd0   :  { %4484 = vmatmul.mubr.bf16.gmra.mrb[60].mxu1 %v4582_v6  ;;  %4420 = vmatmul.mubr.bf16.gmra.mrb[60].mxu0 %v4584_v7 }
 0x12b   :  { %v4361_v23 = vpop.f32.mrb[0].mxu0  ;;  %v4425_v24 = vpop.f32.mrb[0].mxu1 }
 0x12c   :  { %v1276_v25 = vadd.f32 %v4361_v23, %v5069_v21  ;;  %v1340_v26 = vadd.f32 %v4425_v24, %v5073_v22  ;;  %v723_v27 = vpop.f32.mrb[1].mxu0  ;;  %v979_v28 = vpop.f32.mrb[1].mxu1 }
 0x12d   :  { %v1274_v29 = vadd.f32 %v5069_v21, %v723_v27  ;;  %v4362_v30 = vpop.f32.mrb[2].mxu0  ;;  %v4426_v31 = vpop.f32.mrb[2].mxu1  ;;  %v1338_v36 = vadd.f32 %v5073_v22, %v979_v28 }
 0x12e   :  { %4585 = vtanh.f32 %v1276_v25  ;;  %v1277_v32 = vadd.f32 %v4362_v30, %v5069_v21  ;;  %v726_v33 = vpop.f32.mrb[3].mxu0  ;;  %v982_v34 = vpop.f32.mrb[3].mxu1  ;;  %v1341_v35 = vadd.f32 %v4426_v31, %v5073_v22 }
 0x12f   :  { %4587 = vtanh.f32 %v1340_v26  ;;  %v1339_v39 = vadd.f32 %v5073_v22, %v982_v34  ;;  %v1275_v42 = vadd.f32 %v5069_v21, %v726_v33 }
 0x130   :  { %4589 = vtanh.f32 %v1274_v29 }
 0x131   :  { %4591 = vtanh.f32 %v1277_v32 }
 0x132   :  { %4593 = vtanh.f32 %v1341_v35 }
 0x133   :  { %v4365_v37 = vpop.f32.mrb[4].mxu0  ;;  %v4429_v38 = vpop.f32.mrb[4].mxu1  ;;  %4595 = vtanh.f32 %v1338_v36 }
 0x134   :  { %v739_v40 = vpop.f32.mrb[5].mxu0  ;;  %v995_v41 = vpop.f32.mrb[5].mxu1  ;;  %4597 = vtanh.f32 %v1339_v39  ;;  %v1280_v51 = vadd.f32 %v4365_v37, %v5069_v21  ;;  %v1344_v61 = vadd.f32 %v4429_v38, %v5073_v22 }
 0x135   :  { %v4366_v43 = vpop.f32.mrb[6].mxu0  ;;  %v5083_v44 = vpop.f32.mrb[6].mxu1  ;;  %4599 = vtanh.f32 %v1275_v42  ;;  %v1278_v7 = vadd.f32 %v5069_v21, %v739_v40  ;;  %v1342_v23 = vadd.f32 %v5073_v22, %v995_v41  ;;  %v5138_v40 = vrot.slane %v79_v13, %v5048_v14 }
 0x136   :  { %v742_v45 = vpop.f32.mrb[7].mxu0  ;;  %v5085_v46 = vpop.f32.mrb[7].mxu1  ;;  %v1281_v49 = vadd.f32 %v4366_v43, %v5069_v21 }
 0x137   :  { %v1279_v58 = vadd.f32 %v5069_v21, %v742_v45  ;;  %v1345_v45 = vadd.f32 %v5083_v44, %v5073_v22  ;;  %v78_v44 = vcombine.high %v5051_v16, %v5051_v16 }
 0x138   :  { %v4586_v48 = vpop.eup %4585  ;;  %4601 = vtanh.f32 %v1281_v49 }
 0x139   :  { %v4588_v50 = vpop.eup %4587  ;;  %v1538_v52 = vmul.f32 %v4586_v48, %v5090_v47  ;;  %4603 = vtanh.f32 %v1280_v51  ;;  %v5150_v51 = vrot.slane %v5138_v40, %v5061_v19 }
 0x13a   :  { %v1602_v53 = vmul.f32 %v4588_v50, %v5090_v47  ;;  %v4590_v54 = vpop.eup %4589  ;;  %4605 = vtanh.f32 %v1279_v58 }
 0x13b   :  { %1668 = vadd.xlane.f32.xlu1 %v1538_v52  ;;  %v5096_v55 = vpop.f32.mrb[8].mxu0  ;;  %v5098_v56 = vpop.f32.mrb[8].mxu1  ;;  %v1536_v2 = vmul.f32 %v4590_v54, %v5090_v47  ;;  %4607 = vtanh.f32 %v1344_v61 }
 0x13c   :  { %v4592_v57 = vpop.eup %4591  ;;  %1796 = vadd.xlane.f32.xlu0 %v1602_v53  ;;  %v5101_v59 = vpop.f32.mrb[9].mxu0 }
 0x13d   :  { %v5103_v60 = vpop.f32.mrb[9].mxu1  ;;  %v1539_v62 = vmul.f32 %v4592_v57, %v5090_v47  ;;  %v4370_v63 = vpop.f32.mrb[10].mxu0 }
 0x13e   :  { %v5107_v0 = vpop.f32.mrb[10].mxu1  ;;  %v4594_v1 = vpop.eup %4593  ;;  %v1285_v6 = vadd.f32 %v4370_v63, %v5069_v21 }
 0x13f   :  { %v758_v3 = vpop.f32.mrb[11].mxu0  ;;  %v5110_v4 = vpop.f32.mrb[11].mxu1  ;;  %1670 = vadd.xlane.f32.xlu1 %v1539_v62  ;;  %v1603_v8 = vmul.f32 %v4594_v1, %v5090_v47  ;;  %v1343_v62 = vadd.f32 %v5073_v22, %v5085_v46  ;;  %v1284_v46 = vadd.f32 %v5096_v55, %v5069_v21 }
 0x140   :  { %v4596_v5 = vpop.eup %4595  ;;  %1664 = vadd.xlane.f32.xlu0 %v1536_v2  ;;  %4609 = vtanh.f32 %v1285_v6  ;;  %v1283_v26 = vadd.f32 %v5069_v21, %v758_v3 }
 0x141   :  { %v4598_v9 = vpop.eup %4597  ;;  %v1600_v11 = vmul.f32 %v4596_v5, %v5090_v47  ;;  %4611 = vtanh.f32 %v1278_v7 }
 0x142   :  { %v4600_v15 = vpop.eup %4599  ;;  %v1601_v31 = vmul.f32 %v4598_v9, %v5090_v47  ;;  %4613 = vtanh.f32 %v1283_v26  ;;  %v5169_v9 = vrot.slane %v78_v44, %v5048_v14 }
 0x143   :  { %1798 = vadd.xlane.f32.xlu1 %v1603_v8  ;;  %v4373_v24 = vpop.f32.mrb[12].mxu0  ;;  %v4437_v25 = vpop.f32.mrb[12].mxu1  ;;  %v1537_v36 = vmul.f32 %v4600_v15, %v5090_v47  ;;  %4615 = vtanh.f32 %v1342_v23 }
 0x144   :  { %1792 = vadd.xlane.f32.xlu0 %v1600_v11  ;;  %v5121_v27 = vadd.f32 %v4373_v24, %v5069_v21  ;;  %v771_v28 = vpop.f32.mrb[13].mxu0  ;;  %v5124_v29 = vadd.f32 %v4437_v25, %v5073_v22  ;;  %v1027_v30 = vpop.f32.mrb[13].mxu1  ;;  %v5180_v14 = vrot.slane %v5169_v9, %v5061_v19 }
 0x145   :  { %v5127_v17 = vadd.f32 %v5069_v21, %v771_v28  ;;  %v4374_v32 = vpop.f32.mrb[14].mxu0  ;;  %v5131_v33 = vadd.f32 %v5073_v22, %v1027_v30  ;;  %v4438_v34 = vpop.f32.mrb[14].mxu1  ;;  %v1348_v30 = vadd.f32 %v5098_v56, %v5073_v22  ;;  %v1282_v56 = vadd.f32 %v5069_v21, %v5101_v59 }
 0x146   :  { %v4602_v35 = vpop.eup %4601  ;;  %v774_v37 = vpop.f32.mrb[15].mxu0  ;;  %v5135_v38 = vadd.f32 %v4438_v34, %v5073_v22  ;;  %v1289_v43 = vadd.f32 %v4374_v32, %v5069_v21 }
 0x147   :  { %v1030_v39 = vpop.f32.mrb[15].mxu1  ;;  %v4604_v41 = vpop.eup %4603  ;;  %1794 = vadd.xlane.f32.xlu1 %v1601_v31  ;;  %v1543_v48 = vmul.f32 %v4602_v35, %v5090_v47  ;;  %v1287_v57 = vadd.f32 %v5069_v21, %v774_v37 }
 0x148   :  { %v5141_v42 = vadd.f32 %v5073_v22, %v1030_v39  ;;  %1666 = vadd.xlane.f32.xlu0 %v1537_v36  ;;  %v4606_v49 = vpop.eup %4605  ;;  %v1542_v50 = vmul.f32 %v4604_v41, %v5090_v47  ;;  %4617 = vtanh.f32 %v1289_v43 }
 0x149   :  { %v4608_v52 = vpop.eup %4607  ;;  %4619 = vtanh.f32 %v1345_v45  ;;  %v1541_v63 = vmul.f32 %v4606_v49, %v5090_v47 }
 0x14a   :  { %v4610_v3 = vpop.eup %4609  ;;  %v1606_v5 = vmul.f32 %v4608_v52, %v5090_v47  ;;  %4621 = vtanh.f32 %v1287_v57 }
 0x14b   :  { %1678 = vadd.xlane.f32.xlu1 %v1543_v48  ;;  %v4441_v53 = vpop.f32.mrb[16].mxu1  ;;  %v5152_v54 = vpop.f32.mrb[16].mxu0  ;;  %4623 = vtanh.f32 %v1343_v62  ;;  %v1547_v11 = vmul.f32 %v4610_v3, %v5090_v47  ;;  %v1346_v62 = vadd.f32 %v5073_v22, %v5103_v60 }
 0x14c   :  { %1676 = vadd.xlane.f32.xlu0 %v1542_v50  ;;  %v1043_v58 = vpop.f32.mrb[17].mxu1  ;;  %v5157_v61 = vpop.f32.mrb[17].mxu0  ;;  %v1356_v6 = vadd.f32 %v4441_v53, %v5150_v51 }
 0x14d   :  { %v5162_v1 = vpop.f32.mrb[18].mxu1  ;;  %v4378_v2 = vpop.f32.mrb[18].mxu0  ;;  %v1354_v26 = vadd.f32 %v5150_v51, %v1043_v58 }
 0x14e   :  { %v5166_v7 = vpop.f32.mrb[19].mxu1  ;;  %v790_v8 = vpop.f32.mrb[19].mxu0  ;;  %4625 = vtanh.f32 %v1356_v6  ;;  %v1293_v43 = vadd.f32 %v4378_v2, %v5180_v14 }
 0x14f   :  { %v4612_v16 = vpop.eup %4611  ;;  %1674 = vadd.xlane.f32.xlu1 %v1541_v63  ;;  %4627 = vtanh.f32 %v1284_v46  ;;  %v1291_v58 = vadd.f32 %v5180_v14, %v790_v8 }
 0x150   :  { %1804 = vadd.xlane.f32.xlu0 %v1606_v5  ;;  %v4614_v13 = vpop.eup %4613  ;;  %v1540_v15 = vmul.f32 %v4612_v16, %v5090_v47  ;;  %4629 = vtanh.f32 %v1354_v26 }
 0x151   :  { %v4616_v23 = vpop.eup %4615  ;;  %v1545_v31 = vmul.f32 %v4614_v13, %v5090_v47  ;;  %4631 = vtanh.f32 %v1348_v30  ;;  %v1349_v13 = vadd.f32 %v5107_v0, %v5073_v22 }
 0x152   :  { %v4618_v35 = vpop.eup %4617  ;;  %v1604_v36 = vmul.f32 %v4616_v23, %v5090_v47  ;;  %4633 = vtanh.f32 %v1293_v43 }
 0x153   :  { %1686 = vadd.xlane.f32.xlu1 %v1547_v11  ;;  %v4445_v24 = vpop.f32.mrb[20].mxu1  ;;  %v5175_v25 = vpop.f32.mrb[20].mxu0  ;;  %v1551_v45 = vmul.f32 %v4618_v35, %v5090_v47  ;;  %4635 = vtanh.f32 %v1282_v56 }
 0x154   :  { %1672 = vadd.xlane.f32.xlu0 %v1540_v15  ;;  %v1059_v28 = vpop.f32.mrb[21].mxu1  ;;  %v5182_v55 = vpop.f32.mrb[21].mxu0  ;;  %v1360_v8 = vadd.f32 %v4445_v24, %v5150_v51  ;;  %4637 = vtanh.f32 %v1291_v58 }
 0x155   :  { %v5187_v32 = vpop.f32.mrb[22].mxu1  ;;  %v5189_v34 = vpop.f32.mrb[22].mxu0  ;;  %4639 = vtanh.f32 %v1346_v62  ;;  %v1358_v35 = vadd.f32 %v5150_v51, %v1059_v28 }
 0x156   :  { %v5192_v37 = vpop.f32.mrb[23].mxu1  ;;  %v5194_v39 = vpop.f32.mrb[23].mxu0  ;;  %4641 = vtanh.f32 %v1360_v8 }
 0x157   :  { %v4620_v41 = vpop.eup %4619  ;;  %1682 = vadd.xlane.f32.xlu1 %v1545_v31  ;;  %v1347_v31 = vadd.f32 %v5073_v22, %v5110_v4  ;;  %4643 = vtanh.f32 %v1349_v13 }
 0x158   :  { %1800 = vadd.xlane.f32.xlu0 %v1604_v36  ;;  %v4622_v48 = vpop.eup %4621  ;;  %v1607_v49 = vmul.f32 %v4620_v41, %v5090_v47  ;;  %4645 = vtanh.f32 %v1358_v35 }
 0x159   :  { %v4624_v50 = vpop.eup %4623  ;;  %v1549_v63 = vmul.f32 %v4622_v48, %v5090_v47  ;;  %4647 = vtanh.f32 %v1347_v31 }
 0x15a   :  { %v4626_v57 = vpop.eup %4625  ;;  %v1605_v6 = vmul.f32 %v4624_v50, %v5090_v47 }
 0x15b   :  { %1694 = vadd.xlane.f32.xlu1 %v1551_v45  ;;  %v5201_v52 = vpop.f32.mrb[24].mxu1  ;;  %v4385_v53 = vpop.f32.mrb[24].mxu0  ;;  %v1618_v60 = vmul.f32 %v4626_v57, %v5090_v47 }
 0x15c   :  { %1806 = vadd.xlane.f32.xlu0 %v1607_v49  ;;  %v5204_v44 = vpop.f32.mrb[25].mxu1  ;;  %v5207_v21 = vadd.f32 %v4385_v53, %v5180_v14  ;;  %v819_v59 = vpop.f32.mrb[25].mxu0 }
 0x15d   :  { %v5212_v2 = vpop.f32.mrb[26].mxu1  ;;  %v5215_v3 = vadd.f32 %v5180_v14, %v819_v59  ;;  %v5217_v5 = vpop.f32.mrb[26].mxu0 }
 0x15e   :  { %v5221_v16 = vpop.f32.mrb[27].mxu1  ;;  %v5223_v46 = vpop.f32.mrb[27].mxu0 }
 0x15f   :  { %v4628_v11 = vpop.eup %4627  ;;  %1690 = vadd.xlane.f32.xlu1 %v1549_v63 }
 0x160   :  { %1802 = vadd.xlane.f32.xlu0 %v1605_v6  ;;  %v4630_v15 = vpop.eup %4629  ;;  %v1546_v23 = vmul.f32 %v4628_v11, %v5090_v47  ;;  %v1297_v6 = vadd.f32 %v5189_v34, %v5180_v14 }
 0x161   :  { %v4632_v26 = vpop.eup %4631  ;;  %v1616_v56 = vmul.f32 %v4630_v15, %v5090_v47 }
 0x162   :  { %v4634_v28 = vpop.eup %4633  ;;  %v1610_v49 = vmul.f32 %v4632_v26, %v5090_v47  ;;  %4649 = vtanh.f32 %v1297_v6  ;;  %v1359_v6 = vadd.f32 %v5150_v51, %v5192_v37  ;;  %v1364_v37 = vadd.f32 %v5201_v52, %v5150_v51 }
 0x163   :  { %1828 = vadd.xlane.f32.xlu1 %v1618_v60  ;;  %v4453_v24 = vpop.f32.mrb[28].mxu1  ;;  %v4389_v30 = vpop.f32.mrb[28].mxu0  ;;  %v1555_v8 = vmul.f32 %v4634_v28, %v5090_v47  ;;  %4651 = vtanh.f32 %v5121_v27  ;;  %v1295_v27 = vadd.f32 %v5180_v14, %v5194_v39 }
 0x164   :  { %1684 = vadd.xlane.f32.xlu0 %v1546_v23  ;;  %v5233_v36 = vadd.f32 %v4453_v24, %v5150_v51  ;;  %v1091_v41 = vpop.f32.mrb[29].mxu1  ;;  %v5236_v0 = vadd.f32 %v4389_v30, %v5180_v14  ;;  %v835_v43 = vpop.f32.mrb[29].mxu0  ;;  %v1361_v24 = vadd.f32 %v5187_v32, %v5150_v51 }
 0x165   :  { %v5240_v45 = vadd.f32 %v5150_v51, %v1091_v41  ;;  %v4454_v48 = vpop.f32.mrb[30].mxu1  ;;  %v5243_v22 = vadd.f32 %v5180_v14, %v835_v43  ;;  %v4390_v4 = vpop.f32.mrb[30].mxu0 }
 0x166   :  { %v5247_v50 = vadd.f32 %v4454_v48, %v5150_v51  ;;  %v1094_v53 = vpop.f32.mrb[31].mxu1  ;;  %v5250_v57 = vadd.f32 %v4390_v4, %v5180_v14  ;;  %v838_v58 = vpop.f32.mrb[31].mxu0  ;;  %4653 = vtanh.f32 %v1361_v24 }
 0x167   :  { %v4636_v59 = vpop.eup %4635  ;;  %1824 = vadd.xlane.f32.xlu1 %v1616_v56  ;;  %v5253_v62 = vadd.f32 %v5150_v51, %v1094_v53  ;;  %v5256_v63 = vadd.f32 %v5180_v14, %v838_v58  ;;  %4655 = vtanh.f32 %v5124_v29 }
 0x168   :  { %1812 = vadd.xlane.f32.xlu0 %v1610_v49  ;;  %v4638_v11 = vpop.eup %4637  ;;  %v1544_v60 = vmul.f32 %v4636_v59, %v5090_v47  ;;  %4657 = vtanh.f32 %v1295_v27 }
 0x169   :  { %v4640_v13 = vpop.eup %4639  ;;  %v1553_v31 = vmul.f32 %v4638_v11, %v5090_v47  ;;  %4659 = vtanh.f32 %v5127_v17  ;;  %v109_v17 = vcombine.high %v5065_v20, %v5065_v20 }
 0x16a   :  { %v4642_v26 = vpop.eup %4641  ;;  %v1608_v43 = vmul.f32 %v4640_v13, %v5090_v47  ;;  %4661 = vtanh.f32 %v1359_v6 }
 0x16b   :  { %1702 = vadd.xlane.f32.xlu1 %v1555_v8  ;;  %v5262_v15 = vpop.f32.mrb[32].mxu1  ;;  %v5264_v23 = vpop.f32.mrb[32].mxu0  ;;  %v1622_v4 = vmul.f32 %v4642_v26, %v5090_v47  ;;  %4663 = vtanh.f32 %v5131_v33  ;;  %v5323_v20 = vrot.slane %v109_v17, %v5061_v19 }
 0x16c   :  { %1680 = vadd.xlane.f32.xlu0 %v1544_v60  ;;  %v5268_v30 = vpop.f32.mrb[33].mxu1  ;;  %v5270_v34 = vpop.f32.mrb[33].mxu0  ;;  %4665 = vtanh.f32 %v1364_v37 }
 0x16d   :  { %v5274_v35 = vpop.f32.mrb[34].mxu1  ;;  %v5276_v41 = vpop.f32.mrb[34].mxu0  ;;  %4667 = vtanh.f32 %v5135_v38 }
 0x16e   :  { %v5279_v56 = vpop.f32.mrb[35].mxu1  ;;  %v5281_v48 = vpop.f32.mrb[35].mxu0 }
 0x16f   :  { %v4644_v32 = vpop.eup %4643  ;;  %1698 = vadd.xlane.f32.xlu1 %v1553_v31 }
 0x170   :  { %1808 = vadd.xlane.f32.xlu0 %v1608_v43  ;;  %v4646_v28 = vpop.eup %4645  ;;  %v1611_v49 = vmul.f32 %v4644_v32, %v5090_v47 }
 0x171   :  { %v4648_v53 = vpop.eup %4647  ;;  %v1620_v29 = vmul.f32 %v4646_v28, %v5090_v47 }
 0x172   :  { %v4650_v13 = vpop.eup %4649  ;;  %v1609_v26 = vmul.f32 %v4648_v53, %v5090_v47  ;;  %v1362_v53 = vadd.f32 %v5150_v51, %v5204_v44  ;;  %v108_v44 = vcombine.high %v5058_v18, %v5058_v18  ;;  %v1292_v18 = vadd.f32 %v5152_v54, %v5180_v14 }
 0x173   :  { %1836 = vadd.xlane.f32.xlu1 %v1622_v4  ;;  %v5288_v58 = vpop.f32.mrb[36].mxu0  ;;  %v5290_v59 = vpop.f32.mrb[36].mxu1  ;;  %v1559_v32 = vmul.f32 %v4650_v13, %v5090_v47  ;;  %v1365_v54 = vadd.f32 %v5212_v2, %v5150_v51 }
 0x174   :  { %1814 = vadd.xlane.f32.xlu0 %v1611_v49  ;;  %v5294_v8 = vpop.f32.mrb[37].mxu0  ;;  %v5296_v39 = vpop.f32.mrb[37].mxu1  ;;  %4669 = vtanh.f32 %v1362_v53 }
 0x175   :  { %v5300_v11 = vpop.f32.mrb[38].mxu0  ;;  %v5302_v60 = vpop.f32.mrb[38].mxu1  ;;  %4671 = vtanh.f32 %v5141_v42  ;;  %v1290_v42 = vadd.f32 %v5180_v14, %v5157_v61 }
 0x176   :  { %v5307_v24 = vpop.f32.mrb[39].mxu0  ;;  %v5309_v31 = vpop.f32.mrb[39].mxu1 }
 0x177   :  { %v4652_v43 = vpop.eup %4651  ;;  %1832 = vadd.xlane.f32.xlu1 %v1620_v29 }
 0x178   :  { %1810 = vadd.xlane.f32.xlu0 %v1609_v26  ;;  %v4654_v4 = vpop.eup %4653  ;;  %v1550_v27 = vmul.f32 %v4652_v43, %v5090_v47 }
 0x179   :  { %v4656_v52 = vpop.eup %4655  ;;  %v1623_v29 = vmul.f32 %v4654_v4, %v5090_v47  ;;  %v1301_v4 = vadd.f32 %v5217_v5, %v5180_v14 }
 0x17a   :  { %v4658_v37 = vpop.eup %4657  ;;  %v1614_v43 = vmul.f32 %v4656_v52, %v5090_v47 }
 0x17b   :  { %1710 = vadd.xlane.f32.xlu1 %v1559_v32  ;;  %v5316_v28 = vpop.f32.mrb[40].mxu0  ;;  %v5318_v49 = vpop.f32.mrb[40].mxu1  ;;  %v1557_v52 = vmul.f32 %v4658_v37, %v5090_v47  ;;  %4673 = vtanh.f32 %v1301_v4 }
 0x17c   :  { %1692 = vadd.xlane.f32.xlu0 %v1550_v27  ;;  %v5325_v33 = vpop.f32.mrb[41].mxu0  ;;  %v5327_v6 = vpop.f32.mrb[41].mxu1  ;;  %4675 = vtanh.f32 %v1292_v18 }
 0x17d   :  { %6601 = vst [vmem:[#allocation17_spill] sm:$0xff] %v5325_v33  ;;  %6602 = vst [vmem:[#allocation18_spill] sm:$0xff] %v5327_v6  ;;  %v5331_v13 = vpop.f32.mrb[42].mxu0  ;;  %v4466_v26 = vpop.f32.mrb[42].mxu1  ;;  %4677 = vtanh.f32 %v1365_v54  ;;  %v1363_v54 = vadd.f32 %v5150_v51, %v5221_v16 }
 0x17e   :  { %v5336_v32 = vpop.f32.mrb[43].mxu0  ;;  %v5339_v17 = vadd.f32 %v4466_v26, %v5323_v20  ;;  %v1142_v27 = vpop.f32.mrb[43].mxu1  ;;  %4679 = vtanh.f32 %v1290_v42 }
 0x17f   :  { %v4660_v10 = vpop.eup %4659  ;;  %1838 = vadd.xlane.f32.xlu1 %v1623_v29  ;;  %v5342_v38 = vadd.f32 %v5323_v20, %v1142_v27  ;;  %v5352_v29 = vrot.slane %v108_v44, %v5061_v19 }
 0x180   :  { %6603 = vst [vmem:[#allocation19_spill] sm:$0xff] %v5339_v17  ;;  %1820 = vadd.xlane.f32.xlu0 %v1614_v43  ;;  %v4662_v26 = vpop.eup %4661  ;;  %v1548_v17 = vmul.f32 %v4660_v10, %v5090_v47 }
 0x181   :  { %6604 = vst [vmem:[#allocation20_spill] sm:$0xff] %v5342_v38  ;;  %v4664_v27 = vpop.eup %4663  ;;  %v1621_v44 = vmul.f32 %v4662_v26, %v5090_v47 }
 0x182   :  { %v4666_v38 = vpop.eup %4665  ;;  %v1612_v2 = vmul.f32 %v4664_v27, %v5090_v47 }
 0x183   :  { %1706 = vadd.xlane.f32.xlu1 %v1557_v52  ;;  %v5354_v53 = vpop.f32.mrb[44].mxu1  ;;  %v4405_v43 = vpop.f32.mrb[44].mxu0  ;;  %v1626_v18 = vmul.f32 %v4666_v38, %v5090_v47 }
 0x184   :  { %1688 = vadd.xlane.f32.xlu0 %v1548_v17  ;;  %v1155_v5 = vpop.f32.mrb[45].mxu1  ;;  %v5361_v10 = vadd.f32 %v4405_v43, %v5352_v29  ;;  %v899_v37 = vpop.f32.mrb[45].mxu0 }
 0x185   :  { %v5365_v52 = vadd.f32 %v5323_v20, %v1155_v5  ;;  %v5367_v6 = vpop.f32.mrb[46].mxu1  ;;  %v5370_v61 = vadd.f32 %v5352_v29, %v899_v37  ;;  %v5372_v33 = vpop.f32.mrb[46].mxu0  ;;  %v1299_v5 = vadd.f32 %v5180_v14, %v5223_v46  ;;  %v1357_v37 = vadd.f32 %v5162_v1, %v5150_v51 }
 0x186   :  { %v1158_v17 = vpop.f32.mrb[47].mxu1  ;;  %v5375_v4 = vpop.f32.mrb[47].mxu0  ;;  %v1355_v1 = vadd.f32 %v5150_v51, %v5166_v7  ;;  %v1296_v51 = vadd.f32 %v5175_v25, %v5180_v14  ;;  %v1294_v25 = vadd.f32 %v5180_v14, %v5182_v55  ;;  %v111_v55 = vcombine.high %v5138_v40, %v5138_v40 }
 0x187   :  { %6605 = vst [vmem:[#allocation21_spill] sm:$0xff] %v5365_v52  ;;  %6606 = vst [vmem:[#allocation22_spill] sm:$0xff] %v5370_v61  ;;  %v4668_v43 = vpop.eup %4667  ;;  %1834 = vadd.xlane.f32.xlu1 %v1621_v44  ;;  %v5379_v26 = vadd.f32 %v5323_v20, %v1158_v17  ;;  %4681 = vtanh.f32 %v1299_v5 }
 0x188   :  { %1816 = vadd.xlane.f32.xlu0 %v1612_v2  ;;  %v4670_v27 = vpop.eup %4669  ;;  %v1615_v52 = vmul.f32 %v4668_v43, %v5090_v47  ;;  %4683 = vtanh.f32 %v1357_v37 }
 0x189   :  { %6607 = vst [vmem:[#allocation23_spill] sm:$0xff] %v5379_v26  ;;  %v4672_v61 = vpop.eup %4671  ;;  %v1624_v42 = vmul.f32 %v4670_v27, %v5090_v47  ;;  %4685 = vtanh.f32 %v1363_v54 }
 0x18a   :  { %4687 = vtanh.f32 %v1355_v1 }
 0x18b   :  { %1844 = vadd.xlane.f32.xlu1 %v1626_v18  ;;  %v5386_v44 = vpop.f32.mrb[48].mxu1  ;;  %v5388_v38 = vpop.f32.mrb[48].mxu0  ;;  %4689 = vtanh.f32 %v5233_v36 }
 0x18c   :  { %6608 = vst [vmem:[#allocation24_spill] sm:$0xff] %v5388_v38  ;;  %1822 = vadd.xlane.f32.xlu0 %v1615_v52  ;;  %v5392_v46 = vpop.f32.mrb[49].mxu1  ;;  %v5394_v2 = vpop.f32.mrb[49].mxu0  ;;  %v1613_v38 = vmul.f32 %v4672_v61, %v5090_v47  ;;  %4691 = vtanh.f32 %v1296_v51 }
 0x18d   :  { %6609 = vst [vmem:[#allocation25_spill] sm:$0xff] %v5392_v46  ;;  %6610 = vst [vmem:[#allocation26_spill] sm:$0xff] %v5394_v2  ;;  %v5399_v17 = vpop.f32.mrb[50].mxu1  ;;  %v5401_v43 = vpop.f32.mrb[50].mxu0  ;;  %4693 = vtanh.f32 %v5240_v45 }
 0x18e   :  { %v4674_v18 = vpop.eup %4673  ;;  %v5404_v16 = vpop.f32.mrb[51].mxu1  ;;  %4695 = vtanh.f32 %v1294_v25 }
 0x18f   :  { %v5406_v52 = vpop.f32.mrb[51].mxu0  ;;  %v4676_v5 = vpop.eup %4675  ;;  %1840 = vadd.xlane.f32.xlu1 %v1624_v42  ;;  %v1563_v7 = vmul.f32 %v4674_v18, %v5090_v47  ;;  %4697 = vtanh.f32 %v5250_v57  ;;  %v110_v57 = vcombine.high %v5169_v9, %v5169_v9  ;;  %v1372_v9 = vadd.f32 %v5262_v15, %v5323_v20 }
 0x190   :  { %1818 = vadd.xlane.f32.xlu0 %v1613_v38  ;;  %v4678_v37 = vpop.eup %4677  ;;  %v1554_v27 = vmul.f32 %v4676_v5, %v5090_v47  ;;  %4699 = vtanh.f32 %v5207_v21 }
 0x191   :  { %v4680_v61 = vpop.eup %4679  ;;  %v1627_v1 = vmul.f32 %v4678_v37, %v5090_v47  ;;  %4701 = vtanh.f32 %v5256_v63 }
 0x192   :  { %v4682_v18 = vpop.eup %4681  ;;  %v1552_v5 = vmul.f32 %v4680_v61, %v5090_v47  ;;  %4703 = vtanh.f32 %v5215_v3 }
 0x193   :  { %1718 = vadd.xlane.f32.xlu1 %v1563_v7  ;;  %v5413_v46 = vpop.f32.mrb[52].mxu1  ;;  %v5415_v2 = vpop.f32.mrb[52].mxu0  ;;  %v1561_v14 = vmul.f32 %v4682_v18, %v5090_v47  ;;  %4705 = vtanh.f32 %v5253_v62 }
 0x194   :  { %6611 = vst [vmem:[#allocation27_spill] sm:$0xff] %v5415_v2  ;;  %1700 = vadd.xlane.f32.xlu0 %v1554_v27  ;;  %v5417_v54 = vpop.f32.mrb[53].mxu1  ;;  %v5419_v38 = vpop.f32.mrb[53].mxu0  ;;  %4707 = vtanh.f32 %v5236_v0 }
 0x195   :  { %6612 = vst [vmem:[#allocation28_spill] sm:$0xff] %v5419_v38  ;;  %v5424_v36 = vpop.f32.mrb[54].mxu1  ;;  %v5426_v42 = vpop.f32.mrb[54].mxu0  ;;  %4709 = vtanh.f32 %v1372_v9  ;;  %v1309_v9 = vadd.f32 %v5276_v41, %v5352_v29 }
 0x196   :  { %v5429_v7 = vpop.f32.mrb[55].mxu1  ;;  %v5431_v27 = vpop.f32.mrb[55].mxu0  ;;  %4711 = vtanh.f32 %v5243_v22 }
 0x197   :  { %6613 = vst [vmem:[#allocation29_spill] sm:$0xff] %v5429_v7  ;;  %v4684_v2 = vpop.eup %4683  ;;  %1846 = vadd.xlane.f32.xlu1 %v1627_v1  ;;  %4713 = vtanh.f32 %v1309_v9 }
 0x198   :  { %1696 = vadd.xlane.f32.xlu0 %v1552_v5  ;;  %v4686_v51 = vpop.eup %4685  ;;  %v1619_v37 = vmul.f32 %v4684_v2, %v5090_v47  ;;  %v5450_v2 = vrot.slane %v111_v55, %v5061_v19  ;;  %4715 = vtanh.f32 %v5247_v50  ;;  %v1306_v50 = vadd.f32 %v5352_v29, %v5270_v34 }
 0x199   :  { %v4688_v38 = vpop.eup %4687  ;;  %v1625_v40 = vmul.f32 %v4686_v51, %v5090_v47 }
 0x19a   :  { %v4690_v26 = vpop.eup %4689  ;;  %v1617_v5 = vmul.f32 %v4688_v38, %v5090_v47 }
 0x19b   :  { %1714 = vadd.xlane.f32.xlu1 %v1561_v14  ;;  %v5438_v61 = vpop.f32.mrb[56].mxu1  ;;  %v5440_v7 = vpop.f32.mrb[56].mxu0  ;;  %v1630_v21 = vmul.f32 %v4690_v26, %v5090_v47 }
 0x19c   :  { %6614 = vst [vmem:[#allocation30_spill] sm:$0xff] %v5440_v7  ;;  %1830 = vadd.xlane.f32.xlu0 %v1619_v37  ;;  %v5443_v45 = vpop.f32.mrb[57].mxu1  ;;  %v5445_v25 = vpop.f32.mrb[57].mxu0  ;;  %v5471_v7 = vrot.slane %v110_v57, %v5061_v19 }
 0x19d   :  { %6615 = vst [vmem:[#allocation31_spill] sm:$0xff] %v5445_v25  ;;  %v5452_v1 = vpop.f32.mrb[58].mxu1  ;;  %v5454_v18 = vpop.f32.mrb[58].mxu0 }
 0x19e   :  { %v1206_v14 = vpop.f32.mrb[59].mxu1  ;;  %v5459_v37 = vpop.f32.mrb[59].mxu0 }
 0x19f   :  { %6616 = vst [vmem:[#allocation32_spill] sm:$0xff] %v5459_v37  ;;  %v4692_v25 = vpop.eup %4691  ;;  %1842 = vadd.xlane.f32.xlu1 %v1625_v40  ;;  %v5463_v51 = vadd.f32 %v5450_v2, %v1206_v14 }
 0x1a0   :  { %1826 = vadd.xlane.f32.xlu0 %v1617_v5  ;;  %v4694_v55 = vpop.eup %4693  ;;  %v1558_v38 = vmul.f32 %v4692_v25, %v5090_v47 }
 0x1a1   :  { %v4696_v40 = vpop.eup %4695  ;;  %v1628_v15 = vmul.f32 %v4694_v55, %v5090_v47 }
 0x1a3   :  { %1852 = vadd.xlane.f32.xlu1 %v1630_v21  ;;  %v4485_v26 = vpop.f32.mrb[60].mxu1  ;;  %v4421_v37 = vpop.f32.mrb[60].mxu0 }
 0x1a4   :  { %1708 = vadd.xlane.f32.xlu0 %v1558_v38  ;;  %v5475_v63 = vadd.f32 %v4485_v26, %v5450_v2  ;;  %v1219_v3 = vpop.f32.mrb[61].mxu1  ;;  %v5478_v5 = vadd.f32 %v4421_v37, %v5471_v7  ;;  %v963_v25 = vpop.f32.mrb[61].mxu0  ;;  %v1556_v26 = vmul.f32 %v4696_v40, %v5090_v47 }
 0x1a5   :  { %v5483_v57 = vadd.f32 %v5450_v2, %v1219_v3  ;;  %v4486_v14 = vpop.f32.mrb[62].mxu1  ;;  %v5486_v21 = vadd.f32 %v5471_v7, %v963_v25  ;;  %v4422_v62 = vpop.f32.mrb[62].mxu0 }
 0x1a6   :  { %6617 = vst [vmem:[#allocation33_spill] sm:$0xff] %v5475_v63  ;;  %v4698_v38 = vpop.eup %4697  ;;  %v5490_v37 = vadd.f32 %v4486_v14, %v5450_v2  ;;  %v1222_v19 = vpop.f32.mrb[63].mxu1  ;;  %v5493_v0 = vadd.f32 %v4422_v62, %v5471_v7 }
 0x1a7   :  { %v966_v55 = vpop.f32.mrb[63].mxu0  ;;  %v4700_v63 = vpop.eup %4699  ;;  %1848 = vadd.xlane.f32.xlu1 %v1628_v15  ;;  %v5496_v3 = vadd.f32 %v5450_v2, %v1222_v19  ;;  %v1567_v40 = vmul.f32 %v4698_v38, %v5090_v47  ;;  %v1307_v19 = vadd.f32 %v5352_v29, %v5281_v48  ;;  %v1308_v15 = vadd.f32 %v5264_v23, %v5352_v29 }
 0x1a8   :  { %6618 = vst [vmem:[#allocation34_spill] sm:$0xff] %v5490_v37  ;;  %v5499_v25 = vadd.f32 %v5471_v7, %v966_v55  ;;  %1704 = vadd.xlane.f32.xlu0 %v1556_v26  ;;  %v4702_v14 = vpop.eup %4701  ;;  %v1562_v62 = vmul.f32 %v4700_v63, %v5090_v47  ;;  %v1371_v55 = vadd.f32 %v5323_v20, %v5279_v56 }
 0x1a9   :  { %v4704_v37 = vpop.eup %4703  ;;  %v1565_v41 = vmul.f32 %v4702_v14, %v5090_v47  ;;  %4717 = vtanh.f32 %v1307_v19  ;;  %v1370_v56 = vadd.f32 %v5323_v20, %v5268_v30  ;;  %v1311_v19 = vadd.f32 %v5352_v29, %v5307_v24 }
 0x1aa   :  { %v4706_v22 = vpop.eup %4705  ;;  %v1560_v38 = vmul.f32 %v4704_v37, %v5090_v47  ;;  %4719 = vtanh.f32 %v1308_v15  ;;  %v1373_v15 = vadd.f32 %v5274_v35, %v5323_v20  ;;  %v1312_v24 = vadd.f32 %v5288_v58, %v5352_v29 }
 0x1ab   :  { %1726 = vadd.xlane.f32.xlu1 %v1567_v40  ;;  %v4708_v26 = vpop.eup %4707  ;;  %v1629_v48 = vmul.f32 %v4706_v22, %v5090_v47  ;;  %4721 = vtanh.f32 %v1371_v55  ;;  %v1313_v40 = vadd.f32 %v5300_v11, %v5352_v29 }
 0x1ac   :  { %1716 = vadd.xlane.f32.xlu0 %v1562_v62  ;;  %v4710_v63 = vpop.eup %4709  ;;  %v1566_v23 = vmul.f32 %v4708_v26, %v5090_v47  ;;  %4723 = vtanh.f32 %v1306_v50  ;;  %v1315_v50 = vadd.f32 %v5352_v29, %v5336_v32 }
 0x1ad   :  { %v4712_v9 = vpop.eup %4711  ;;  %v1634_v37 = vmul.f32 %v4710_v63, %v5090_v47  ;;  %4725 = vtanh.f32 %v1313_v40  ;;  %v1310_v40 = vadd.f32 %v5352_v29, %v5294_v8  ;;  %v1374_v8 = vadd.f32 %v5323_v20, %v5296_v39 }
 0x1ae   :  { %v4714_v14 = vpop.eup %4713  ;;  %v1564_v34 = vmul.f32 %v4712_v9, %v5090_v47  ;;  %4727 = vtanh.f32 %v1370_v56  ;;  %v1384_v9 = vadd.f32 %v5354_v53, %v5323_v20  ;;  %v1321_v53 = vadd.f32 %v5372_v33, %v5352_v29 }
 0x1af   :  { %1722 = vadd.xlane.f32.xlu1 %v1565_v41  ;;  %v4716_v62 = vpop.eup %4715  ;;  %v1571_v11 = vmul.f32 %v4714_v14, %v5090_v47  ;;  %4729 = vtanh.f32 %v1311_v19  ;;  %v1385_v39 = vadd.f32 %v5367_v6, %v5323_v20 }
 0x1b0   :  { %1712 = vadd.xlane.f32.xlu0 %v1560_v38  ;;  %v1631_v30 = vmul.f32 %v4716_v62, %v5090_v47  ;;  %v1317_v38 = vadd.f32 %v5331_v13, %v5352_v29  ;;  %4731 = vtanh.f32 %v1373_v15  ;;  %v1376_v13 = vadd.f32 %v5290_v59, %v5323_v20 }
 0x1b2   :  { %4733 = vtanh.f32 %v1317_v38 }
 0x1b3   :  { %1850 = vadd.xlane.f32.xlu1 %v1629_v48  ;;  %v4718_v41 = vpop.eup %4717  ;;  %4735 = vtanh.f32 %v1312_v24 }
 0x1b4   :  { %1724 = vadd.xlane.f32.xlu0 %v1566_v23  ;;  %v4720_v22 = vpop.eup %4719  ;;  %v1569_v26 = vmul.f32 %v4718_v41, %v5090_v47  ;;  %4737 = vtanh.f32 %v1315_v50 }
 0x1b5   :  { %v4722_v63 = vpop.eup %4721  ;;  %v1570_v35 = vmul.f32 %v4720_v22, %v5090_v47  ;;  %4739 = vtanh.f32 %v1376_v13 }
 0x1b6   :  { %v4724_v55 = vpop.eup %4723  ;;  %v1633_v48 = vmul.f32 %v4722_v63, %v5090_v47  ;;  %4741 = vtanh.f32 %v1384_v9 }
 0x1b7   :  { %1860 = vadd.xlane.f32.xlu1 %v1634_v37  ;;  %v4726_v23 = vpop.eup %4725  ;;  %v1568_v58 = vmul.f32 %v4724_v55, %v5090_v47  ;;  %4743 = vtanh.f32 %v1310_v40 }
 0x1b8   :  { %1720 = vadd.xlane.f32.xlu0 %v1564_v34  ;;  %v4728_v37 = vpop.eup %4727  ;;  %v1575_v32 = vmul.f32 %v4726_v23, %v5090_v47  ;;  %4745 = vtanh.f32 %v1321_v53  ;;  %v1319_v23 = vadd.f32 %v5352_v29, %v5375_v4 }
 0x1b9   :  { %v4730_v56 = vpop.eup %4729  ;;  %v1632_v59 = vmul.f32 %v4728_v37, %v5090_v47  ;;  %4747 = vtanh.f32 %v1374_v8  ;;  %v1316_v8 = vadd.f32 %v5316_v28, %v5352_v29 }
 0x1ba   :  { %v4732_v14 = vpop.eup %4731  ;;  %v1573_v19 = vmul.f32 %v4730_v56, %v5090_v47  ;;  %v1377_v47 = vadd.f32 %v5302_v60, %v5323_v20  ;;  %4749 = vtanh.f32 %v1385_v39 }
 0x1bb   :  { %1734 = vadd.xlane.f32.xlu1 %v1571_v11  ;;  %v6619_v11 = vlaneseq }
 0x1bc   :  { %1854 = vadd.xlane.f32.xlu0 %v1631_v30  ;;  %v4734_v15 = vpop.eup %4733  ;;  %v5564_v30 = vld [vmem:[%s6591_s3] ss:$0 sm:$0xff]  ;;  %4751 = vtanh.f32 %v1377_v47  ;;  %s4970_s3 = smov [#allocation9]  }
 0x1bd   :  { %v5559_v41 = vand.u32 127, %v6619_v11  ;;  %v1635_v33 = vmul.f32 %v5564_v30, %v4732_v14  ;;  %v4736_v22 = vpop.eup %4735  ;;  %v1388_v14 = vadd.f32 %v5386_v44, %v5450_v2  ;;  %4753 = vtanh.f32 %v1319_v23  ;;  %s3865_s7 = sshll.u32 %s4970_s3, 4  ;;  %s3866_s7 = int_to_ptr.vmem [resolvable:$true] %s3865_s7 }
 0x1be   :  { %v1574_v50 = vmul.f32 %v5564_v30, %v4736_v22  ;;  %s4912_s8 = scalar_lea.vmem %s3866_s7, 128  ;;  %p4917_p11 = scmp.lt.s32.totalorder %s3866_s7, %s3866_s7 }
 0x1bf   :  { %1730 = vadd.xlane.f32.xlu1 %v1569_v26  ;;  %6620 = vst [vmem:[#allocation35_spill] sm:$0xff] %v5559_v41  ;;  %v1579_v26 = vmul.f32 %v5564_v30, %v4734_v15  ;;  %v2054_v63 = vadd.s32 4294967288, %v5559_v41  ;;  %v2061_v55 = vadd.s32 4294967280, %v5559_v41  ;;  %v2068_v6 = vadd.s32 4294967272, %v5559_v41  ;;  %p4913_p10 = scmp.ne.s32.totalorder %s3866_s7, %s4912_s8  ;;  %p4918_p12 = scmp.lt.s32.totalorder %s4912_s8, %s4912_s8 }
 0x1c0   :  { %1732 = vadd.xlane.f32.xlu0 %v1570_v35  ;;  %v4738_v35 = vpop.eup %4737 }
 0x1c1   :  { %v4740_v13 = vpop.eup %4739  ;;  %v1577_v37 = vmul.f32 %v5564_v30, %v4738_v35  ;;  %v5584_v40 = vsub.s32 %v2054_v63, %v5045_v12  ;;  %v5587_v56 = vsub.s32 %v2061_v55, %v5045_v12  ;;  %v1380_v63 = vadd.f32 %v5318_v49, %v5323_v20  ;;  %p4919_p13 = por %p4918_p12, %p4917_p11 }
 0x1c2   :  { %v1638_v4 = vmul.f32 %v5564_v30, %v4740_v13 }
 0x1c3   :  { %1858 = vadd.xlane.f32.xlu1 %v1633_v48  ;;  %v4742_v48 = vpop.eup %4741  ;;  %p4920_p0 = pnand %p4919_p13, %p4913_p10 }
 0x1c4   :  { %1728 = vadd.xlane.f32.xlu0 %v1568_v58  ;;  %v1375_v58 = vadd.f32 %v5323_v20, %v5309_v31  ;;  %v5597_v31 = vsub.s32 %v2068_v6, %v5045_v12  ;;  %v1646_v53 = vmul.f32 %v5564_v30, %v4742_v48  ;;  %v1325_v6 = vadd.f32 %v5401_v43, %v5471_v7 }
 0x1c6   :  { %4755 = vtanh.f32 %v1375_v58 }
 0x1c7   :  { %1742 = vadd.xlane.f32.xlu1 %v1575_v32  ;;  %v4744_v32 = vpop.eup %4743  ;;  %4757 = vtanh.f32 %v1388_v14  ;;  %v2096_v14 = vadd.s32 4294967240, %v5559_v41 }
 0x1c8   :  { %1856 = vadd.xlane.f32.xlu0 %v1632_v59  ;;  %v5551_v34 = vpop.xlane.xlu1 %1668  ;;  %v5591_v59 = vsub.s32 %v5559_v41, %v5045_v12  ;;  %v4746_v22 = vpop.eup %4745  ;;  %4759 = vtanh.f32 %v1316_v8 }
 0x1c9   :  { %v5555_v62 = vpop.xlane.xlu0 %1796  ;;  %v2065_v35 = vrot.slane %v5551_v34, %v5587_v56  ;;  %v1583_v23 = vmul.f32 %v5564_v30, %v4746_v22  ;;  %4761 = vtanh.f32 %v1325_v6 }
 0x1ca   :  { %v2408_v39 = vrot.slane %v5555_v62, %v5587_v56  ;;  %4763 = vtanh.f32 %v1380_v63  ;;  %v1323_v63 = vadd.f32 %v5471_v7, %v5406_v52 }
 0x1cb   :  { %1738 = vadd.xlane.f32.xlu1 %v1573_v19 }
 0x1cc   :  { %1862 = vadd.xlane.f32.xlu0 %v1635_v33  ;;  %v5569_v38 = vpop.xlane.xlu1 %1670  ;;  %v1572_v33 = vmul.f32 %v5564_v30, %v4744_v32  ;;  %v2082_v32 = vadd.s32 4294967256, %v5559_v41 }
 0x1cd   :  { %v1665_v24 = vpop.xlane.xlu0 %1664  ;;  %v2072_v62 = vrot.slane %v5569_v38, %v5597_v31 }
 0x1ce   :  { %v2053_v47 = vrot.slane %v1665_v24, %v5591_v59 }
 0x1cf   :  { %1750 = vadd.xlane.f32.xlu1 %v1579_v26  ;;  %v4748_v26 = vpop.eup %4747 }
 0x1d0   :  { %1740 = vadd.xlane.f32.xlu0 %v1574_v50  ;;  %v1799_v60 = vpop.xlane.xlu1 %1798  ;;  %v4750_v38 = vpop.eup %4749  ;;  %v1636_v58 = vmul.f32 %v5564_v30, %v4748_v26 }
 0x1d1   :  { %v1793_v9 = vpop.xlane.xlu0 %1792  ;;  %v2413_v55 = vrot.slane %v1799_v60, %v5597_v31  ;;  %v4752_v43 = vpop.eup %4751 }
 0x1d2   :  { %v2399_v15 = vrot.slane %v1793_v9, %v5591_v59  ;;  %v1639_v22 = vmul.f32 %v5564_v30, %v4752_v43 }
 0x1d3   :  { %1746 = vadd.xlane.f32.xlu1 %v1577_v37  ;;  %v2075_v37 = vadd.s32 4294967264, %v5559_v41 }
 0x1d4   :  { %1868 = vadd.xlane.f32.xlu0 %v1638_v4  ;;  %v1795_v19 = vpop.xlane.xlu1 %1794  ;;  %v1389_v4 = vadd.f32 %v5399_v17, %v5450_v2 }
 0x1d5   :  { %v2403_v44 = vrot.slane %v1795_v19, %v5584_v40  ;;  %v1667_v11 = vpop.xlane.xlu0 %1666  ;;  %v6621_v19 = vld [vmem:[#allocation17_spill] sm:$0xff]  ;;  %v5645_v17 = vsub.s32 %v2075_v37, %v5045_v12 }
 0x1d6   :  { %v2058_v28 = vrot.slane %v1667_v11, %v5584_v40  ;;  %v1647_v11 = vmul.f32 %v5564_v30, %v4750_v38  ;;  %4765 = vtanh.f32 %v1389_v4 }
 0x1d7   :  { %v2404_v50 = vsel %vm2059_vm0, %v2403_v44, %v2399_v15  ;;  %1884 = vadd.xlane.f32.xlu1 %v1646_v53  ;;  %v2089_v53 = vadd.s32 4294967248, %v5559_v41  ;;  %v1314_v15 = vadd.f32 %v5352_v29, %v6621_v19  ;;  %v5651_v29 = vsub.s32 %v2096_v14, %v5045_v12 }
 0x1d8   :  { %v2409_v24 = vsel %vm2066_vm1, %v2408_v39, %v2404_v50  ;;  %v2060_v13 = vsel %vm2059_vm0, %v2058_v28, %v2053_v47  ;;  %1736 = vadd.xlane.f32.xlu0 %v1572_v33  ;;  %v5621_v49 = vpop.xlane.xlu1 %1678  ;;  %v4754_v33 = vpop.eup %4753  ;;  %v5648_v47 = vsub.s32 %v2082_v32, %v5045_v12 }
 0x1d9   :  { %v2067_v34 = vsel %vm2066_vm1, %v2065_v35, %v2060_v13  ;;  %v5624_v48 = vpop.xlane.xlu0 %1676  ;;  %v5628_v60 = vsel %vm2073_vm2, %v2413_v55, %v2409_v24  ;;  %v4756_v39 = vpop.eup %4755  ;;  %v5654_v26 = vsub.s32 %v2089_v53, %v5045_v12  ;;  %4767 = vtanh.f32 %v1314_v15  ;;  %v6622_v55 = vld [vmem:[#allocation18_spill] sm:$0xff] }
 0x1da   :  { %v2074_v9 = vsel %vm2073_vm2, %v2072_v62, %v2067_v34  ;;  %v4758_v28 = vpop.eup %4757  ;;  %v1378_v50 = vadd.f32 %v5323_v20, %v6622_v55  ;;  %v1581_v24 = vmul.f32 %v5564_v30, %v4754_v33  ;;  %v1637_v6 = vmul.f32 %v5564_v30, %v4756_v39 }
 0x1db   :  { %1758 = vadd.xlane.f32.xlu1 %v1583_v23  ;;  %v4760_v34 = vpop.eup %4759  ;;  %v1650_v52 = vmul.f32 %v5564_v30, %v4758_v28  ;;  %v1387_v20 = vadd.f32 %v5450_v2, %v5404_v16  ;;  %v2093_v38 = vrot.slane %v5624_v48, %v5654_v26  ;;  %4769 = vtanh.f32 %v1323_v63 }
 0x1dc   :  { %1864 = vadd.xlane.f32.xlu0 %v1636_v58  ;;  %v1675_v8 = vpop.xlane.xlu1 %1674  ;;  %4771 = vtanh.f32 %v1378_v50  ;;  %v2100_v43 = vrot.slane %v5621_v49, %v5651_v29  ;;  %v4762_v14 = vpop.eup %4761  ;;  %v1578_v16 = vmul.f32 %v5564_v30, %v4760_v34  ;;  %v1392_v48 = vadd.f32 %v5413_v46, %v5450_v2 }
 0x1dd   :  { %v5640_v44 = vpop.xlane.xlu0 %1804  ;;  %v2086_v23 = vrot.slane %v1675_v8, %v5648_v47  ;;  %v4764_v8 = vpop.eup %4763  ;;  %4773 = vtanh.f32 %v1387_v20  ;;  %v1390_v63 = vadd.f32 %v5450_v2, %v5417_v54  ;;  %v1329_v20 = vadd.f32 %v5426_v42, %v5471_v7 }
 0x1de   :  { %v1642_v39 = vmul.f32 %v5564_v30, %v4764_v8 }
 0x1df   :  { %1886 = vadd.xlane.f32.xlu1 %v1647_v11  ;;  %v6623_v11 = vld [vmem:[#allocation19_spill] sm:$0xff] }
 0x1e0   :  { %1870 = vadd.xlane.f32.xlu0 %v1639_v22  ;;  %v5658_v35 = vpop.xlane.xlu1 %1686  ;;  %4775 = vtanh.f32 %v6623_v11  ;;  %v1587_v22 = vmul.f32 %v5564_v30, %v4762_v14  ;;  %v4766_v46 = vpop.eup %4765  ;;  %v2103_v14 = vadd.s32 4294967232, %v5559_v41  ;;  %v2124_v11 = vadd.s32 4294967208, %v5559_v41 }
 0x1e1   :  { %v1673_v62 = vpop.xlane.xlu0 %1672  ;;  %4777 = vtanh.f32 %v1392_v48  ;;  %v2110_v48 = vadd.s32 4294967224, %v5559_v41 }
 0x1e2   :  { %v2079_v13 = vrot.slane %v1673_v62, %v5645_v17  ;;  %v1651_v62 = vmul.f32 %v5564_v30, %v4766_v46 }
 0x1e3   :  { %1754 = vadd.xlane.f32.xlu1 %v1581_v24  ;;  %v4768_v28 = vpop.eup %4767 }
 0x1e4   :  { %v2081_v58 = vsel %vm2080_vm3, %v2079_v13, %v2074_v9  ;;  %1866 = vadd.xlane.f32.xlu0 %v1637_v6  ;;  %v5672_v37 = vpop.xlane.xlu1 %1682  ;;  %v1576_v6 = vmul.f32 %v5564_v30, %v4768_v28  ;;  %v5730_v28 = vsub.s32 %v2110_v48, %v5045_v12 }
 0x1e5   :  { %v2088_v32 = vsel %vm2087_vm4, %v2086_v23, %v2081_v58  ;;  %v1801_v4 = vpop.xlane.xlu0 %1800  ;;  %v4770_v24 = vpop.eup %4769  ;;  %v2428_v23 = vrot.slane %v5640_v44, %v5654_v26 }
 0x1e6   :  { %v2418_v53 = vrot.slane %v1801_v4, %v5645_v17  ;;  %v2095_v9 = vsel %vm2094_vm5, %v2093_v38, %v2088_v32  ;;  %v4772_v34 = vpop.eup %4771  ;;  %v1585_v32 = vmul.f32 %v5564_v30, %v4770_v24  ;;  %v6626_v24 = vld [vmem:[#allocation21_spill] sm:$0xff] }
 0x1e7   :  { %1892 = vadd.xlane.f32.xlu1 %v1650_v52  ;;  %v5683_v19 = vsel %vm2101_vm6, %v2100_v43, %v2095_v9  ;;  %v4774_v44 = vpop.eup %4773  ;;  %v1640_v4 = vmul.f32 %v5564_v30, %v4772_v34  ;;  %v2117_v9 = vadd.s32 4294967216, %v5559_v41 }
 0x1e8   :  { %v2419_v49 = vsel %vm2080_vm3, %v2418_v53, %v5628_v60  ;;  %1748 = vadd.xlane.f32.xlu0 %v1578_v16  ;;  %v5687_v15 = vpop.xlane.xlu1 %1694  ;;  %v6624_v60 = vld [vmem:[#allocation20_spill] sm:$0xff] }
 0x1e9   :  { %v1807_v33 = vpop.xlane.xlu0 %1806  ;;  %4779 = vtanh.f32 %v6624_v60  ;;  %v5734_v60 = vsub.s32 %v2117_v9, %v5045_v12 }
 0x1ea   :  { %v2433_v54 = vrot.slane %v1807_v33, %v5651_v29  ;;  %4781 = vtanh.f32 %v1390_v63  ;;  %v4776_v16 = vpop.eup %4775 }
 0x1eb   :  { %1766 = vadd.xlane.f32.xlu1 %v1587_v22  ;;  %4783 = vtanh.f32 %v5361_v10  ;;  %v4778_v42 = vpop.eup %4777  ;;  %v1393_v10 = vadd.f32 %v5424_v36, %v5450_v2  ;;  %v1649_v22 = vmul.f32 %v5564_v30, %v4774_v44  ;;  %v1643_v46 = vmul.f32 %v5564_v30, %v4776_v16  ;;  %v6629_v16 = vld [vmem:[#allocation24_spill] sm:$0xff] }
 0x1ec   :  { %1876 = vadd.xlane.f32.xlu0 %v1642_v39  ;;  %v5694_v55 = vpop.xlane.xlu1 %1690  ;;  %4785 = vtanh.f32 %v1329_v20  ;;  %v5727_v39 = vsub.s32 %v2103_v14, %v5045_v12  ;;  %v1654_v63 = vmul.f32 %v5564_v30, %v4778_v42  ;;  %v6627_v20 = vld [vmem:[#allocation23_spill] sm:$0xff]  ;;  %v1324_v48 = vadd.f32 %v6629_v16, %v5471_v7 }
 0x1ed   :  { %v1803_v50 = vpop.xlane.xlu0 %1802 }
 0x1ee   :  { %v2423_v13 = vrot.slane %v1803_v50, %v5648_v47  ;;  %v1327_v50 = vadd.f32 %v5471_v7, %v5431_v27  ;;  %v2114_v27 = vrot.slane %v5672_v37, %v5730_v28 }
 0x1ef   :  { %1894 = vadd.xlane.f32.xlu1 %v1651_v62 }
 0x1f0   :  { %v2424_v52 = vsel %vm2087_vm4, %v2423_v13, %v2419_v49  ;;  %1744 = vadd.xlane.f32.xlu0 %v1576_v6  ;;  %v5706_v38 = vpop.xlane.xlu1 %1828  ;;  %v6625_v49 = vld [vmem:[#allocation22_spill] sm:$0xff]  ;;  %v5742_v13 = vsub.s32 %v2124_v11, %v5045_v12 }
 0x1f1   :  { %v2429_v58 = vsel %vm2094_vm5, %v2428_v23, %v2424_v52  ;;  %v1685_v43 = vpop.xlane.xlu0 %1684  ;;  %4787 = vtanh.f32 %v6625_v49 }
 0x1f2   :  { %v2434_v53 = vsel %vm2101_vm6, %v2433_v54, %v2429_v58  ;;  %4789 = vtanh.f32 %v1393_v10  ;;  %v6628_v58 = vld [vmem:[#allocation29_spill] sm:$0xff]  ;;  %v2121_v44 = vrot.slane %v1685_v43, %v5734_v60  ;;  %v2128_v37 = vrot.slane %v5658_v35, %v5742_v13 }
 0x1f3   :  { %1762 = vadd.xlane.f32.xlu1 %v1585_v32  ;;  %v4780_v36 = vpop.eup %4779  ;;  %4791 = vtanh.f32 %v6626_v24  ;;  %v1391_v32 = vadd.f32 %v5450_v2, %v6628_v58 }
 0x1f4   :  { %1872 = vadd.xlane.f32.xlu0 %v1640_v4  ;;  %v5718_v8 = vpop.xlane.xlu1 %1824  ;;  %v4782_v34 = vpop.eup %4781  ;;  %v1641_v54 = vmul.f32 %v5564_v30, %v4780_v36  ;;  %4793 = vtanh.f32 %v6627_v20 }
 0x1f5   :  { %v5722_v33 = vpop.xlane.xlu0 %1812  ;;  %v4784_v52 = vpop.eup %4783  ;;  %4795 = vtanh.f32 %v1327_v50  ;;  %v1652_v9 = vmul.f32 %v5564_v30, %v4782_v34  ;;  %v6630_v50 = vld [vmem:[#allocation26_spill] sm:$0xff] }
 0x1f6   :  { %v4786_v49 = vpop.eup %4785  ;;  %v1582_v11 = vmul.f32 %v5564_v30, %v4784_v52  ;;  %4797 = vtanh.f32 %v1391_v32  ;;  %v1322_v24 = vadd.f32 %v5471_v7, %v6630_v50  ;;  %v1394_v52 = vadd.f32 %v5450_v2, %v5443_v45 }
 0x1f7   :  { %1890 = vadd.xlane.f32.xlu1 %v1649_v22  ;;  %4799 = vtanh.f32 %v1324_v48 }
 0x1f8   :  { %1878 = vadd.xlane.f32.xlu0 %v1643_v46  ;;  %v5738_v62 = vpop.xlane.xlu1 %1702 }
 0x1f9   :  { %v1681_v6 = vpop.xlane.xlu0 %1680 }
 0x1fa   :  { %v2107_v23 = vrot.slane %v1681_v6, %v5727_v39 }
 0x1fb   :  { %1900 = vadd.xlane.f32.xlu1 %v1654_v63  ;;  %v4788_v46 = vpop.eup %4787 }
 0x1fc   :  { %v2109_v4 = vsel %vm2108_vm7, %v2107_v23, %v5683_v19  ;;  %1874 = vadd.xlane.f32.xlu0 %v1641_v54  ;;  %v5754_v14 = vpop.xlane.xlu1 %1698  ;;  %v1396_v19 = vadd.f32 %v5438_v61, %v5450_v2  ;;  %v1591_v61 = vmul.f32 %v5564_v30, %v4786_v49  ;;  %v4790_v34 = vpop.eup %4789  ;;  %v1580_v23 = vmul.f32 %v5564_v30, %v4788_v46  ;;  %v6632_v49 = vld [vmem:[#allocation27_spill] sm:$0xff] }
 0x1fd   :  { %v2116_v42 = vsel %vm2115_vm8, %v2114_v27, %v2109_v4  ;;  %v1809_v10 = vpop.xlane.xlu0 %1808  ;;  %v4792_v54 = vpop.eup %4791  ;;  %v6631_v27 = vld [vmem:[#allocation25_spill] sm:$0xff] }
 0x1fe   :  { %v2438_v43 = vrot.slane %v1809_v10, %v5727_v39  ;;  %v2123_v22 = vsel %vm2122_vm9, %v2121_v44, %v2116_v42  ;;  %4801 = vtanh.f32 %v1396_v19  ;;  %v4794_v20 = vpop.eup %4793  ;;  %v1386_v58 = vadd.f32 %v5450_v2, %v6631_v27 }
 0x1ff   :  { %1896 = vadd.xlane.f32.xlu1 %v1652_v9  ;;  %v5768_v36 = vsel %vm2129_vm10, %v2128_v37, %v2123_v22  ;;  %4803 = vtanh.f32 %v1322_v24  ;;  %v1655_v44 = vmul.f32 %v5564_v30, %v4790_v34  ;;  %v4796_v4 = vpop.eup %4795  ;;  %v1644_v48 = vmul.f32 %v5564_v30, %v4792_v54 }
 0x200   :  { %v2439_v35 = vsel %vm2108_vm7, %v2438_v43, %v2434_v53  ;;  %1756 = vadd.xlane.f32.xlu0 %v1582_v11  ;;  %v5771_v63 = vpop.xlane.xlu1 %1836  ;;  %v2448_v37 = vrot.slane %v5722_v33, %v5734_v60  ;;  %4805 = vtanh.f32 %v1394_v52  ;;  %v1333_v10 = vadd.f32 %v5454_v18, %v5471_v7  ;;  %v4798_v22 = vpop.eup %4797  ;;  %v6633_v52 = vld [vmem:[#allocation28_spill] sm:$0xff] }
 0x201   :  { %v1815_v6 = vpop.xlane.xlu0 %1814  ;;  %4807 = vtanh.f32 %v1386_v58  ;;  %v1328_v43 = vadd.f32 %v6632_v49, %v5471_v7  ;;  %v1589_v33 = vmul.f32 %v5564_v30, %v4796_v4  ;;  %v1645_v46 = vmul.f32 %v5564_v30, %v4794_v20  ;;  %v4800_v18 = vpop.eup %4799 }
 0x202   :  { %v2453_v45 = vrot.slane %v1815_v6, %v5742_v13  ;;  %v2138_v24 = vadd.s32 4294967192, %v5559_v41  ;;  %4809 = vtanh.f32 %v1333_v10  ;;  %v2145_v34 = vadd.s32 4294967184, %v5559_v41  ;;  %v6635_v10 = vld [vmem:[#allocation30_spill] sm:$0xff] }
 0x203   :  { %1774 = vadd.xlane.f32.xlu1 %v1591_v61  ;;  %v1397_v61 = vadd.f32 %v5452_v1, %v5450_v2  ;;  %v2152_v54 = vadd.s32 4294967176, %v5559_v41  ;;  %4811 = vtanh.f32 %v1328_v43  ;;  %v1326_v20 = vadd.f32 %v5471_v7, %v6633_v52 }
 0x204   :  { %1752 = vadd.xlane.f32.xlu0 %v1580_v23  ;;  %v5779_v53 = vpop.xlane.xlu1 %1832  ;;  %v1653_v58 = vmul.f32 %v5564_v30, %v4798_v22  ;;  %v1332_v49 = vadd.f32 %v6635_v10, %v5471_v7 }
 0x205   :  { %v1811_v32 = vpop.xlane.xlu0 %1810  ;;  %4813 = vtanh.f32 %v1397_v61 }
 0x206   :  { %v2443_v16 = vrot.slane %v1811_v32, %v5730_v28  ;;  %v1586_v32 = vmul.f32 %v5564_v30, %v4800_v18  ;;  %4815 = vtanh.f32 %v1326_v20  ;;  %v6636_v18 = vld [vmem:[#allocation31_spill] sm:$0xff] }
 0x207   :  { %1902 = vadd.xlane.f32.xlu1 %v1655_v44  ;;  %v5820_v44 = vsub.s32 %v2138_v24, %v5045_v12  ;;  %v1330_v24 = vadd.f32 %v5471_v7, %v6636_v18 }
 0x208   :  { %v2444_v42 = vsel %vm2115_vm8, %v2443_v16, %v2439_v35  ;;  %1880 = vadd.xlane.f32.xlu0 %v1644_v48  ;;  %v5792_v9 = vpop.xlane.xlu1 %1710  ;;  %v2131_v35 = vadd.s32 4294967200, %v5559_v41  ;;  %v4802_v6 = vpop.eup %4801  ;;  %v5824_v16 = vsub.s32 %v2145_v34, %v5045_v12  ;;  %v6634_v48 = vld [vmem:[#allocation32_spill] sm:$0xff] }
 0x209   :  { %v2449_v11 = vsel %vm2122_vm9, %v2448_v37, %v2444_v42  ;;  %v1693_v19 = vpop.xlane.xlu0 %1692  ;;  %v4804_v1 = vpop.eup %4803  ;;  %v1658_v4 = vmul.f32 %v5564_v30, %v4802_v6  ;;  %v1331_v37 = vadd.f32 %v5471_v7, %v6634_v48  ;;  %v5831_v42 = vsub.s32 %v2152_v54, %v5045_v12 }
 0x20a   :  { %v5801_v50 = vsel %vm2129_vm10, %v2453_v45, %v2449_v11  ;;  %v5817_v2 = vsub.s32 %v2131_v35, %v5045_v12  ;;  %v4806_v11 = vpop.eup %4805  ;;  %v1584_v22 = vmul.f32 %v5564_v30, %v4804_v1  ;;  %v2142_v35 = vrot.slane %v5694_v55, %v5820_v44 }
 0x20b   :  { %1770 = vadd.xlane.f32.xlu1 %v1589_v33  ;;  %v2149_v6 = vrot.slane %v1693_v19, %v5824_v16  ;;  %4817 = vtanh.f32 %v1331_v37  ;;  %v2156_v54 = vrot.slane %v5687_v15, %v5831_v42  ;;  %v1656_v20 = vmul.f32 %v5564_v30, %v4806_v11 }
 0x20c   :  { %1882 = vadd.xlane.f32.xlu0 %v1645_v46  ;;  %v5807_v23 = vpop.xlane.xlu1 %1838  ;;  %v4808_v46 = vpop.eup %4807  ;;  %4819 = vtanh.f32 %v1332_v49 }
 0x20d   :  { %v5812_v27 = vpop.xlane.xlu0 %1820  ;;  %v4810_v7 = vpop.eup %4809  ;;  %4821 = vtanh.f32 %v5463_v51 }
 0x20e   :  { %4823 = vtanh.f32 %v1330_v24 }
 0x20f   :  { %1898 = vadd.xlane.f32.xlu1 %v1653_v58  ;;  %v1648_v58 = vmul.f32 %v5564_v30, %v4808_v46  ;;  %4825 = vtanh.f32 %v5483_v57 }
 0x210   :  { %1764 = vadd.xlane.f32.xlu0 %v1586_v32  ;;  %v5828_v45 = vpop.xlane.xlu1 %1706  ;;  %v4812_v32 = vpop.eup %4811  ;;  %4827 = vtanh.f32 %v5478_v5 }
 0x211   :  { %v1689_v43 = vpop.xlane.xlu0 %1688  ;;  %v4814_v48 = vpop.eup %4813  ;;  %v1590_v37 = vmul.f32 %v5564_v30, %v4812_v32  ;;  %4829 = vtanh.f32 %v5493_v0  ;;  %v6637_v32 = vld [vmem:[#allocation34_spill] sm:$0xff] }
 0x212   :  { %v2135_v33 = vrot.slane %v1689_v43, %v5817_v2  ;;  %v4816_v10 = vpop.eup %4815  ;;  %v1659_v43 = vmul.f32 %v5564_v30, %v4814_v48  ;;  %4831 = vtanh.f32 %v5486_v21  ;;  %v6638_v48 = vld [vmem:[#allocation33_spill] sm:$0xff] }
 0x213   :  { %1908 = vadd.xlane.f32.xlu1 %v1658_v4  ;;  %v1595_v4 = vmul.f32 %v5564_v30, %v4810_v7  ;;  %4833 = vtanh.f32 %v5499_v25 }
 0x214   :  { %v2137_v61 = vsel %vm2136_vm11, %v2135_v33, %v5768_v36  ;;  %1760 = vadd.xlane.f32.xlu0 %v1584_v22  ;;  %v5844_v34 = vpop.xlane.xlu1 %1834  ;;  %v1588_v33 = vmul.f32 %v5564_v30, %v4816_v10  ;;  %4835 = vtanh.f32 %v5496_v3 }
 0x215   :  { %v2144_v55 = vsel %vm2143_vm12, %v2142_v35, %v2137_v61  ;;  %v5849_v52 = vpop.xlane.xlu0 %1816  ;;  %v4818_v11 = vpop.eup %4817  ;;  %4837 = vtanh.f32 %v6637_v32 }
 0x216   :  { %v2151_v19 = vsel %vm2150_vm13, %v2149_v6, %v2144_v55  ;;  %v4820_v22 = vpop.eup %4819  ;;  %v1593_v46 = vmul.f32 %v5564_v30, %v4818_v11  ;;  %v2166_v55 = vrot.slane %v5754_v14, %v5584_v40  ;;  %4839 = vtanh.f32 %v6638_v48 }
 0x217   :  { %v5855_v36 = vsel %vm2157_vm14, %v2156_v54, %v2151_v19  ;;  %1904 = vadd.xlane.f32.xlu1 %v1656_v20  ;;  %v4822_v35 = vpop.eup %4821  ;;  %v1594_v18 = vmul.f32 %v5564_v30, %v4820_v22 }
 0x218   :  { %1888 = vadd.xlane.f32.xlu0 %v1648_v58  ;;  %v5858_v15 = vpop.xlane.xlu1 %1844  ;;  %v4824_v24 = vpop.eup %4823  ;;  %v1657_v21 = vmul.f32 %v5564_v30, %v4822_v35  ;;  %v2176_v58 = vrot.slane %v5738_v62, %v5597_v31  ;;  %v2478_v35 = vrot.slane %v5718_v8, %v5591_v59 }
 0x219   :  { %v5860_v1 = vpop.xlane.xlu0 %1822  ;;  %v4826_v6 = vpop.eup %4825  ;;  %v1592_v7 = vmul.f32 %v5564_v30, %v4824_v24 }
 0x21a   :  { %v4828_v0 = vpop.eup %4827  ;;  %v1660_v25 = vmul.f32 %v5564_v30, %v4826_v6 }
 0x21b   :  { %1782 = vadd.xlane.f32.xlu1 %v1595_v4  ;;  %v1598_v14 = vmul.f32 %v5564_v30, %v4828_v0  ;;  %v2487_v0 = vrot.slane %v5706_v38, %v5587_v56  ;;  %v2502_v38 = vrot.slane %v5844_v34, %v5648_v47 }
 0x21c   :  { %1772 = vadd.xlane.f32.xlu0 %v1590_v37  ;;  %v5866_v49 = vpop.xlane.xlu1 %1840 }
 0x21d   :  { %v5868_v51 = vpop.xlane.xlu0 %1818 }
 0x21f   :  { %1910 = vadd.xlane.f32.xlu1 %v1659_v43  ;;  %v4830_v43 = vpop.eup %4829 }
 0x220   :  { %1768 = vadd.xlane.f32.xlu0 %v1588_v33  ;;  %v5873_v57 = vpop.xlane.xlu1 %1718  ;;  %v4832_v33 = vpop.eup %4831 }
 0x221   :  { %v1701_v5 = vpop.xlane.xlu0 %1700  ;;  %v1596_v24 = vmul.f32 %v5564_v30, %v4832_v33 }
 0x222   :  { %v2171_v19 = vrot.slane %v1701_v5, %v5587_v56  ;;  %v1599_v5 = vmul.f32 %v5564_v30, %v4830_v43 }
 0x223   :  { %1778 = vadd.xlane.f32.xlu1 %v1593_v46  ;;  %v4834_v46 = vpop.eup %4833 }
 0x224   :  { %1780 = vadd.xlane.f32.xlu0 %v1594_v18  ;;  %v5879_v61 = vpop.xlane.xlu1 %1846  ;;  %v4836_v6 = vpop.eup %4835 }
 0x225   :  { %v1697_v54 = vpop.xlane.xlu0 %1696  ;;  %v1661_v32 = vmul.f32 %v5564_v30, %v4836_v6 }
 0x226   :  { %v2162_v20 = vrot.slane %v1697_v54, %v5591_v59 }
 0x227   :  { %1906 = vadd.xlane.f32.xlu1 %v1657_v21 }
 0x228   :  { %v2167_v3 = vsel %vm2059_vm0, %v2166_v55, %v2162_v20  ;;  %1776 = vadd.xlane.f32.xlu0 %v1592_v7  ;;  %v5893_v4 = vpop.xlane.xlu1 %1714  ;;  %v2497_v20 = vrot.slane %v5779_v53, %v5645_v17 }
 0x229   :  { %v2172_v37 = vsel %vm2066_vm1, %v2171_v19, %v2167_v3  ;;  %v1831_v10 = vpop.xlane.xlu0 %1830  ;;  %v1597_v19 = vmul.f32 %v5564_v30, %v4834_v46 }
 0x22a   :  { %v2177_v11 = vsel %vm2073_vm2, %v2176_v58, %v2172_v37  ;;  %v2492_v54 = vrot.slane %v1831_v10, %v5597_v31 }
 0x22b   :  { %1912 = vadd.xlane.f32.xlu1 %v1660_v25  ;;  %v4838_v25 = vpop.eup %4837 }
 0x22c   :  { %1788 = vadd.xlane.f32.xlu0 %v1598_v14  ;;  %v5899_v62 = vpop.xlane.xlu1 %1842  ;;  %v4840_v3 = vpop.eup %4839  ;;  %v2507_v14 = vrot.slane %v5771_v63, %v5654_v26  ;;  %v1663_v43 = vmul.f32 %v5564_v30, %v4838_v25  ;;  %v2186_v63 = vrot.slane %v5828_v45, %v5648_v47  ;;  %v2206_v45 = vrot.slane %v5893_v4, %v5730_v28 }
 0x22d   :  { %v1827_v22 = vpop.xlane.xlu0 %1826 }
 0x22e   :  { %v2482_v18 = vrot.slane %v1827_v22, %v5584_v40  ;;  %v1662_v22 = vmul.f32 %v5564_v30, %v4840_v3 }
 0x22f   :  { %1790 = vadd.xlane.f32.xlu1 %v1599_v5 }
 0x230   :  { %v2483_v21 = vsel %vm2059_vm0, %v2482_v18, %v2478_v35  ;;  %1784 = vadd.xlane.f32.xlu0 %v1596_v24  ;;  %v5910_v55 = vpop.xlane.xlu1 %1852 }
 0x231   :  { %v2488_v8 = vsel %vm2066_vm1, %v2487_v0, %v2483_v21  ;;  %v1709_v7 = vpop.xlane.xlu0 %1708 }
 0x232   :  { %v2493_v58 = vsel %vm2073_vm2, %v2492_v54, %v2488_v8  ;;  %v2191_v24 = vrot.slane %v1709_v7, %v5654_v26  ;;  %v2196_v54 = vrot.slane %v5792_v9, %v5651_v29 }
 0x233   :  { %v2498_v48 = vsel %vm2080_vm3, %v2497_v20, %v2493_v58  ;;  %1786 = vadd.xlane.f32.xlu1 %v1597_v19  ;;  %v2216_v58 = vrot.slane %v5873_v57, %v5742_v13 }
 0x234   :  { %v2503_v53 = vsel %vm2087_vm4, %v2502_v38, %v2498_v48  ;;  %1914 = vadd.xlane.f32.xlu0 %v1661_v32  ;;  %v5924_v37 = vpop.xlane.xlu1 %1848 }
 0x235   :  { %6639 = vst [vmem:[#allocation17_spill] sm:$0xff] %v5924_v37  ;;  %v5927_v10 = vsel %vm2094_vm5, %v2507_v14, %v2503_v53  ;;  %v1705_v34 = vpop.xlane.xlu0 %1704 }
 0x236   :  { %v2181_v33 = vrot.slane %v1705_v34, %v5645_v17 }
 0x237   :  { %1918 = vadd.xlane.f32.xlu1 %v1663_v43 }
 0x238   :  { %v2182_v5 = vsel %vm2080_vm3, %v2181_v33, %v2177_v11  ;;  %1916 = vadd.xlane.f32.xlu0 %v1662_v22  ;;  %v1727_v46 = vpop.xlane.xlu1 %1726 }
 0x239   :  { %v2187_v35 = vsel %vm2087_vm4, %v2186_v63, %v2182_v5  ;;  %v1717_v18 = vpop.xlane.xlu0 %1716  ;;  %v2236_v43 = vrot.slane %v1727_v46, %v5831_v42 }
 0x23a   :  { %v2192_v6 = vsel %vm2094_vm5, %v2191_v24, %v2187_v35  ;;  %v2211_v25 = vrot.slane %v1717_v18, %v5734_v60 }
 0x23b   :  { %v2197_v11 = vsel %vm2101_vm6, %v2196_v54, %v2192_v6 }
 0x23c   :  { %v1723_v0 = vpop.xlane.xlu1 %1722 }
 0x23d   :  { %v1713_v30 = vpop.xlane.xlu0 %1712  ;;  %v2226_v3 = vrot.slane %v1723_v0, %v5820_v44 }
 0x23e   :  { %v2201_v21 = vrot.slane %v1713_v30, %v5727_v39 }
 0x240   :  { %v2202_v20 = vsel %vm2108_vm7, %v2201_v21, %v2197_v11  ;;  %v5945_v8 = vpop.xlane.xlu1 %1850 }
 0x241   :  { %6640 = vst [vmem:[#allocation18_spill] sm:$0xff] %v5945_v8  ;;  %v2207_v7 = vsel %vm2115_vm8, %v2206_v45, %v2202_v20  ;;  %v1725_v19 = vpop.xlane.xlu0 %1724 }
 0x242   :  { %v2212_v38 = vsel %vm2122_vm9, %v2211_v25, %v2207_v7  ;;  %v2231_v48 = vrot.slane %v1725_v19, %v5824_v16 }
 0x243   :  { %v2217_v14 = vsel %vm2129_vm10, %v2216_v58, %v2212_v38 }
 0x244   :  { %v5950_v9 = vpop.xlane.xlu1 %1860 }
 0x245   :  { %v1721_v32 = vpop.xlane.xlu0 %1720 }
 0x246   :  { %v2221_v4 = vrot.slane %v1721_v32, %v5817_v2 }
 0x248   :  { %v2222_v53 = vsel %vm2136_vm11, %v2221_v4, %v2217_v14  ;;  %v5959_v34 = vpop.xlane.xlu1 %1734 }
 0x249   :  { %v2227_v33 = vsel %vm2143_vm12, %v2226_v3, %v2222_v53  ;;  %v5963_v22 = vpop.xlane.xlu0 %1854 }
 0x24a   :  { %6641 = vst [vmem:[#allocation19_spill] sm:$0xff] %v5963_v22  ;;  %v2232_v57 = vsel %vm2150_vm13, %v2231_v48, %v2227_v33 }
 0x24b   :  { %v2237_v63 = vsel %vm2157_vm14, %v2236_v43, %v2232_v57 }
 0x24c   :  { %v5969_v5 = vsel %vm2712_vm15, %v2237_v63, %v5855_v36  ;;  %v1731_v35 = vpop.xlane.xlu1 %1730 }
 0x24d   :  { %6642 = vst [vmem:[#allocation20_spill] sm:$0xff] %v5969_v5  ;;  %v1733_v18 = vpop.xlane.xlu0 %1732 }
 0x250   :  { %v5971_v24 = vpop.xlane.xlu1 %1858 }
 0x251   :  { %v1729_v6 = vpop.xlane.xlu0 %1728 }
 0x252   :  { %v2241_v37 = vrot.slane %v1729_v6, %v5591_v59 }
 0x254   :  { %v5973_v0 = vpop.xlane.xlu1 %1742 }
 0x255   :  { %v5975_v46 = vpop.xlane.xlu0 %1856 }
 0x258   :  { %v1739_v54 = vpop.xlane.xlu1 %1738 }
 0x259   :  { %v5977_v30 = vpop.xlane.xlu0 %1862 }
 0x25c   :  { %v5979_v21 = vpop.xlane.xlu1 %1750 }
 0x25d   :  { %6643 = vst [vmem:[#allocation22_spill] sm:$0xff] %v5979_v21  ;;  %v5981_v45 = vpop.xlane.xlu0 %1740 }
 0x260   :  { %v5983_v11 = vpop.xlane.xlu1 %1746 }
 0x261   :  { %v5985_v36 = vpop.xlane.xlu0 %1868 }
 0x264   :  { %v5987_v20 = vpop.xlane.xlu1 %1884 }
 0x265   :  { %6644 = vst [vmem:[#allocation21_spill] sm:$0xff] %v5987_v20  ;;  %v1737_v7 = vpop.xlane.xlu0 %1736 }
 0x266   :  { %v2260_v21 = vrot.slane %v1737_v7, %v5645_v17 }
 0x268   :  { %v5989_v19 = vpop.xlane.xlu1 %1758 }
 0x269   :  { %6645 = vst [vmem:[#allocation23_spill] sm:$0xff] %v5989_v19  ;;  %v5991_v25 = vpop.xlane.xlu0 %1864 }
 0x26c   :  { %v5993_v38 = vpop.xlane.xlu1 %1886 }
 0x26d   :  { %6646 = vst [vmem:[#allocation29_spill] sm:$0xff] %v5993_v38  ;;  %v5995_v58 = vpop.xlane.xlu0 %1870 }
 0x26e   :  { %6647 = vst [vmem:[#allocation24_spill] sm:$0xff] %v5995_v58 }
 0x270   :  { %v5997_v32 = vpop.xlane.xlu1 %1754 }
 0x271   :  { %6648 = vst [vmem:[#allocation26_spill] sm:$0xff] %v5997_v32  ;;  %v5999_v4 = vpop.xlane.xlu0 %1866 }
 0x274   :  { %v6001_v3 = vpop.xlane.xlu1 %1892 }
 0x275   :  { %v6003_v14 = vpop.xlane.xlu0 %1748 }
 0x278   :  { %v6005_v48 = vpop.xlane.xlu1 %1766 }
 0x279   :  { %v6007_v53 = vpop.xlane.xlu0 %1876 }
 0x27a   :  { %6649 = vst [vmem:[#allocation25_spill] sm:$0xff] %v6007_v53 }
 0x27c   :  { %v6009_v43 = vpop.xlane.xlu1 %1894 }
 0x27d   :  { %v6011_v33 = vpop.xlane.xlu0 %1744 }
 0x280   :  { %v1763_v57 = vpop.xlane.xlu1 %1762 }
 0x281   :  { %v6013_v63 = vpop.xlane.xlu0 %1872 }
 0x282   :  { %6650 = vst [vmem:[#allocation27_spill] sm:$0xff] %v6013_v63 }
 0x284   :  { %v1891_v12 = vpop.xlane.xlu1 %1890 }
 0x285   :  { %v6015_v41 = vpop.xlane.xlu0 %1878 }
 0x286   :  { %6651 = vst [vmem:[#allocation28_spill] sm:$0xff] %v6015_v41 }
 0x288   :  { %v6017_v38 = vpop.xlane.xlu1 %1900 }
 0x289   :  { %6652 = vst [vmem:[#allocation32_spill] sm:$0xff] %v6017_v38  ;;  %v6019_v5 = vpop.xlane.xlu0 %1874 }
 0x28a   :  { %6653 = vst [vmem:[#allocation30_spill] sm:$0xff] %v6019_v5  ;;  %v2245_v5 = vrot.slane %v1731_v35, %v5584_v40  ;;  %v2255_v35 = vrot.slane %v5959_v34, %v5597_v31  ;;  %v2512_v34 = vrot.slane %v5807_v23, %v5651_v29  ;;  %v2517_v23 = vrot.slane %v5866_v49, %v5727_v39 }
 0x28c   :  { %v6021_v20 = vpop.xlane.xlu1 %1896  ;;  %v2246_v58 = vsel %vm2059_vm0, %v2245_v5, %v2241_v37 }
 0x28d   :  { %v6023_v22 = vpop.xlane.xlu0 %1756 }
 0x28e   :  { %6654 = vst [vmem:[#allocation31_spill] sm:$0xff] %v6023_v22  ;;  %v2250_v22 = vrot.slane %v1733_v18, %v5587_v56 }
 0x290   :  { %v6025_v19 = vpop.xlane.xlu1 %1774  ;;  %v2251_v6 = vsel %vm2066_vm1, %v2250_v22, %v2246_v58  ;;  %v2265_v22 = vrot.slane %v1739_v54, %v5648_v47  ;;  %v2527_v58 = vrot.slane %v5858_v15, %v5734_v60  ;;  %v2473_v54 = vrot.slane %v5860_v1, %v5831_v42 }
 0x291   :  { %6655 = vst [vmem:[#allocation34_spill] sm:$0xff] %v6025_v19  ;;  %v6027_v53 = vpop.xlane.xlu0 %1752  ;;  %v2256_v18 = vsel %vm2073_vm2, %v2255_v35, %v2251_v6  ;;  %v2640_v6 = vrot.slane %v1891_v12, %v5584_v40  ;;  %v2270_v35 = vrot.slane %v5981_v45, %v5654_v26  ;;  %v2645_v12 = vrot.slane %v6001_v3, %v5587_v56 }
 0x292   :  { %6656 = vst [vmem:[#allocation33_spill] sm:$0xff] %v6027_v53  ;;  %v2261_v53 = vsel %vm2080_vm3, %v2260_v21, %v2256_v18 }
 0x293   :  { %v2266_v21 = vsel %vm2087_vm4, %v2265_v22, %v2261_v53  ;;  %v2557_v53 = vrot.slane %v5975_v46, %v5591_v59  ;;  %v2275_v46 = vrot.slane %v5973_v0, %v5651_v29 }
 0x294   :  { %v6029_v8 = vpop.xlane.xlu1 %1902  ;;  %v2271_v45 = vsel %vm2094_vm5, %v2270_v35, %v2266_v21  ;;  %v2581_v21 = vrot.slane %v5999_v4, %v5648_v47 }
 0x295   :  { %6657 = vst [vmem:[#allocation36_spill] sm:$0xff] %v6029_v8  ;;  %v6031_v32 = vpop.xlane.xlu0 %1880  ;;  %v2458_v8 = vrot.slane %v5849_v52, %v5817_v2  ;;  %v2276_v0 = vsel %vm2101_vm6, %v2275_v46, %v2271_v45  ;;  %v6661_v46 = vld [vmem:[#allocation22_spill] sm:$0xff] }
 0x296   :  { %6658 = vst [vmem:[#allocation37_spill] sm:$0xff] %v6031_v32  ;;  %v2463_v32 = vrot.slane %v5868_v51, %v5820_v44  ;;  %v2468_v51 = vrot.slane %v5812_v27, %v5824_v16 }
 0x297   :  { %v2459_v5 = vsel %vm2136_vm11, %v2458_v8, %v5801_v50 }
 0x298   :  { %v6034_v63 = vpop.xlane.xlu1 %1770  ;;  %v2464_v52 = vsel %vm2143_vm12, %v2463_v32, %v2459_v5  ;;  %v2513_v5 = vsel %vm2101_vm6, %v2512_v34, %v5927_v10  ;;  %v2522_v34 = vrot.slane %v5899_v62, %v5730_v28  ;;  %v2576_v62 = vrot.slane %v5991_v25, %v5645_v17  ;;  %v6665_v15 = vld [vmem:[#allocation34_spill] sm:$0xff] }
 0x299   :  { %v6036_v41 = vpop.xlane.xlu0 %1882  ;;  %v2469_v32 = vsel %vm2150_vm13, %v2468_v51, %v2464_v52  ;;  %v2518_v22 = vsel %vm2108_vm7, %v2517_v23, %v2513_v5 }
 0x29a   :  { %6659 = vst [vmem:[#allocation38_spill] sm:$0xff] %v6036_v41  ;;  %v6089_v49 = vsel %vm2157_vm14, %v2473_v54, %v2469_v32  ;;  %v2523_v25 = vsel %vm2115_vm8, %v2522_v34, %v2518_v22  ;;  %v6663_v34 = vld [vmem:[#allocation24_spill] sm:$0xff] }
 0x29c   :  { %v6040_v38 = vpop.xlane.xlu1 %1898 }
 0x29d   :  { %v1765_v19 = vpop.xlane.xlu0 %1764  ;;  %v2660_v5 = vrot.slane %v6040_v38, %v5648_v47 }
 0x29e   :  { %v2329_v3 = vrot.slane %v1765_v19, %v5587_v56 }
 0x2a0   :  { %v6051_v41 = vpop.xlane.xlu1 %1908 }
 0x2a1   :  { %v1761_v37 = vpop.xlane.xlu0 %1760 }
 0x2a2   :  { %v2320_v50 = vrot.slane %v1761_v37, %v5591_v59  ;;  %v2324_v37 = vrot.slane %v1763_v57, %v5584_v40  ;;  %v2280_v57 = vrot.slane %v6011_v33, %v5727_v39  ;;  %v2566_v33 = vrot.slane %v5950_v9, %v5587_v56 }
 0x2a3   :  { %v2334_v56 = vrot.slane %v6005_v48, %v5597_v31  ;;  %v2344_v48 = vrot.slane %v6034_v63, %v5648_v47  ;;  %v6660_v47 = vld [vmem:[#allocation33_spill] sm:$0xff] }
 0x2a4   :  { %v6061_v7 = vpop.xlane.xlu1 %1904  ;;  %v2325_v10 = vsel %vm2059_vm0, %v2324_v37, %v2320_v50  ;;  %v2650_v50 = vrot.slane %v6009_v43, %v5597_v31  ;;  %v2281_v9 = vsel %vm2108_vm7, %v2280_v57, %v2276_v0  ;;  %v2290_v37 = vrot.slane %v6003_v14, %v5734_v60 }
 0x2a5   :  { %v1889_v8 = vpop.xlane.xlu0 %1888  ;;  %v2330_v19 = vsel %vm2066_vm1, %v2329_v3, %v2325_v10  ;;  %v2586_v10 = vrot.slane %v5985_v36, %v5654_v26  ;;  %v2300_v38 = vrot.slane %v6660_v47, %v5817_v2  ;;  %v2295_v3 = vrot.slane %v6661_v46, %v5742_v13  ;;  %v6672_v47 = vld [vmem:[#allocation31_spill] sm:$0xff]  ;;  %v6674_v46 = vld [vmem:[#allocation28_spill] sm:$0xff] }
 0x2a6   :  { %v2636_v27 = vrot.slane %v1889_v8, %v5591_v59  ;;  %v2561_v59 = vrot.slane %v5971_v24, %v5584_v40  ;;  %v2571_v24 = vrot.slane %v5977_v30, %v5597_v31  ;;  %v2285_v30 = vrot.slane %v5983_v11, %v5730_v28 }
 0x2a7   :  { %v2335_v54 = vsel %vm2073_vm2, %v2334_v56, %v2330_v19  ;;  %v6666_v19 = vld [vmem:[#allocation30_spill] sm:$0xff] }
 0x2a8   :  { %v2641_v18 = vsel %vm2059_vm0, %v2640_v6, %v2636_v27  ;;  %v6086_v1 = vpop.xlane.xlu1 %1782  ;;  %v2562_v40 = vsel %vm2059_vm0, %v2561_v59, %v2557_v53  ;;  %v2655_v6 = vrot.slane %v6021_v20, %v5645_v17  ;;  %v2286_v11 = vsel %vm2115_vm8, %v2285_v30, %v2281_v9  ;;  %v6667_v30 = vld [vmem:[#allocation36_spill] sm:$0xff] }
 0x2a9   :  { %v1773_v52 = vpop.xlane.xlu0 %1772  ;;  %v2646_v51 = vsel %vm2066_vm1, %v2645_v12, %v2641_v18  ;;  %v2567_v31 = vsel %vm2066_vm1, %v2566_v33, %v2562_v40  ;;  %v2532_v12 = vrot.slane %v5879_v61, %v5742_v13  ;;  %v2547_v18 = vrot.slane %v5910_v55, %v5824_v16  ;;  %v6664_v40 = vld [vmem:[#allocation27_spill] sm:$0xff] }
 0x2aa   :  { %v2651_v43 = vsel %vm2073_vm2, %v2650_v50, %v2646_v51  ;;  %v2572_v23 = vsel %vm2073_vm2, %v2571_v24, %v2567_v31  ;;  %v2349_v57 = vrot.slane %v1773_v52, %v5654_v26  ;;  %v2291_v14 = vsel %vm2122_vm9, %v2290_v37, %v2286_v11  ;;  %v6662_v52 = vld [vmem:[#allocation32_spill] sm:$0xff]  ;;  %v6669_v31 = vld [vmem:[#allocation26_spill] sm:$0xff] }
 0x2ab   :  { %v2656_v4 = vsel %vm2080_vm3, %v2655_v6, %v2651_v43  ;;  %v2528_v61 = vsel %vm2122_vm9, %v2527_v58, %v2523_v25  ;;  %v2665_v51 = vrot.slane %v6662_v52, %v5654_v26  ;;  %v2591_v33 = vrot.slane %v6663_v34, %v5651_v29 }
 0x2ac   :  { %v6113_v8 = vpop.xlane.xlu1 %1910  ;;  %v2661_v59 = vsel %vm2087_vm4, %v2660_v5, %v2656_v4  ;;  %v2596_v24 = vrot.slane %v6664_v40, %v5727_v39  ;;  %v2354_v58 = vrot.slane %v6665_v15, %v5651_v29  ;;  %v2296_v26 = vsel %vm2129_vm10, %v2295_v3, %v2291_v14  ;;  %v6676_v40 = vld [vmem:[#allocation38_spill] sm:$0xff] }
 0x2ad   :  { %v1769_v32 = vpop.xlane.xlu0 %1768  ;;  %v2666_v56 = vsel %vm2094_vm5, %v2665_v51, %v2661_v59  ;;  %v2533_v43 = vsel %vm2129_vm10, %v2532_v12, %v2528_v61  ;;  %vm2714_vm0 = vcmask 1042434   ;;  %vm2716_vm1 = vcmask 1043459   ;;  %v6673_v59 = vld [vmem:[#allocation23_spill] sm:$0xff] }
 0x2ae   :  { %v2339_v27 = vrot.slane %v1769_v32, %v5645_v17  ;;  %v2577_v17 = vsel %vm2080_vm3, %v2576_v62, %v2572_v23  ;;  %v2601_v62 = vrot.slane %v6666_v19, %v5730_v28  ;;  %v2301_v32 = vsel %vm2136_vm11, %v2300_v38, %v2296_v26  ;;  %v6677_v19 = vld [vmem:[#allocation19_spill] sm:$0xff] }
 0x2af   :  { %v2582_v45 = vsel %vm2087_vm4, %v2581_v21, %v2577_v17  ;;  %v2670_v21 = vrot.slane %v6667_v30, %v5651_v29  ;;  %v2315_v61 = vrot.slane %v6673_v59, %v5831_v42  ;;  %v2611_v3 = vrot.slane %v6674_v46, %v5742_v13 }
 0x2b0   :  { %v2340_v35 = vsel %vm2080_vm3, %v2339_v27, %v2335_v54  ;;  %v1779_v20 = vpop.xlane.xlu1 %1778  ;;  %v2587_v50 = vsel %vm2094_vm5, %v2586_v10, %v2582_v45  ;;  %v6668_v27 = vld [vmem:[#allocation17_spill] sm:$0xff]  ;;  %v2675_v45 = vrot.slane %v6061_v7, %v5727_v39  ;;  %v2685_v15 = vrot.slane %v6051_v41, %v5734_v60 }
 0x2b1   :  { %v2345_v63 = vsel %vm2087_vm4, %v2344_v48, %v2340_v35  ;;  %v1781_v53 = vpop.xlane.xlu0 %1780  ;;  %v2537_v25 = vrot.slane %v6668_v27, %v5817_v2  ;;  %v2305_v48 = vrot.slane %v6669_v31, %v5820_v44  ;;  %v2592_v54 = vsel %vm2101_vm6, %v2591_v33, %v2587_v50 }
 0x2b2   :  { %v2350_v36 = vsel %vm2094_vm5, %v2349_v57, %v2345_v63  ;;  %v2597_v4 = vsel %vm2108_vm7, %v2596_v24, %v2592_v54  ;;  %v2364_v35 = vrot.slane %v1779_v20, %v5730_v28  ;;  %v2671_v29 = vsel %vm2101_vm6, %v2670_v21, %v2666_v56  ;;  %v6670_v57 = vld [vmem:[#allocation18_spill] sm:$0xff]  ;;  %v6671_v20 = vld [vmem:[#allocation25_spill] sm:$0xff] }
 0x2b3   :  { %v2355_v6 = vsel %vm2101_vm6, %v2354_v58, %v2350_v36  ;;  %v2538_v5 = vsel %vm2136_vm11, %v2537_v25, %v2533_v43  ;;  %v2602_v63 = vsel %vm2115_vm8, %v2601_v62, %v2597_v4  ;;  %v2306_v12 = vsel %vm2143_vm12, %v2305_v48, %v2301_v32  ;;  %v6675_v36 = vld [vmem:[#allocation37_spill] sm:$0xff] }
 0x2b4   :  { %v1907_v22 = vpop.xlane.xlu1 %1906  ;;  %v2542_v10 = vrot.slane %v6670_v57, %v5820_v44  ;;  %v2606_v14 = vrot.slane %v6671_v20, %v5734_v60  ;;  %v2676_v7 = vsel %vm2108_vm7, %v2675_v45, %v2671_v29  ;;  %v2616_v34 = vrot.slane %v6675_v36, %v5817_v2  ;;  %v6678_v56 = vld [vmem:[#allocation21_spill] sm:$0xff]  ;;  %v6682_v36 = vld [vmem:[#allocation16_spill] sm:$0xff] }
 0x2b5   :  { %v1777_v0 = vpop.xlane.xlu0 %1776  ;;  %v2680_v17 = vrot.slane %v1907_v22, %v5730_v28  ;;  %v2310_v28 = vrot.slane %v6672_v47, %v5824_v16  ;;  %v2621_v24 = vrot.slane %v6676_v40, %v5820_v44  ;;  %v2552_v62 = vrot.slane %v6677_v19, %v5831_v42 }
 0x2b6   :  { %v2359_v9 = vrot.slane %v1777_v0, %v5727_v39  ;;  %v2369_v39 = vrot.slane %v1781_v53, %v5734_v60  ;;  %v2607_v51 = vsel %vm2122_vm9, %v2606_v14, %v2602_v63  ;;  %v2543_v0 = vsel %vm2143_vm12, %v2542_v10, %v2538_v5 }
 0x2b7   :  { %v2311_v22 = vsel %vm2150_vm13, %v2310_v28, %v2306_v12  ;;  %v2681_v33 = vsel %vm2115_vm8, %v2680_v17, %v2676_v7  ;;  %v2374_v26 = vrot.slane %v6086_v1, %v5742_v13  ;;  %vm2718_vm2 = vcmask 1044484   ;;  %v6679_v17 = vld [vmem:[#allocation20_spill] sm:$0xff]  ;;  %v6680_v12 = vld [vmem:[#allocation29_spill] sm:$0xff] }
 0x2b8   :  { %v2360_v23 = vsel %vm2108_vm7, %v2359_v9, %v2355_v6  ;;  %v6187_v11 = vpop.xlane.xlu1 %1912  ;;  %v2626_v9 = vrot.slane %v6678_v56, %v5824_v16  ;;  %v2316_v43 = vsel %vm2157_vm14, %v2315_v61, %v2311_v22  ;;  %v2612_v41 = vsel %vm2129_vm10, %v2611_v3, %v2607_v51 }
 0x2b9   :  { %v1789_v37 = vpop.xlane.xlu0 %1788  ;;  %v2365_v38 = vsel %vm2115_vm8, %v2364_v35, %v2360_v23  ;;  %v2686_v60 = vsel %vm2122_vm9, %v2685_v15, %v2681_v33  ;;  %v2617_v30 = vsel %vm2136_vm11, %v2616_v34, %v2612_v41  ;;  %v2690_v21 = vrot.slane %v6113_v8, %v5742_v13  ;;  %v6683_v33 = vld [vmem:[#allocation15_spill] sm:$0xff] }
 0x2ba   :  { %v2370_v53 = vsel %vm2122_vm9, %v2369_v39, %v2365_v38  ;;  %v2622_v25 = vsel %vm2143_vm12, %v2621_v24, %v2617_v30  ;;  %v2695_v31 = vrot.slane %v6187_v11, %v5817_v2  ;;  %v2389_v48 = vrot.slane %v1789_v37, %v5824_v16  ;;  %v6681_v38 = vld [vmem:[#allocation35_spill] sm:$0xff] }
 0x2bb   :  { %v2375_v6 = vsel %vm2129_vm10, %v2374_v26, %v2370_v53  ;;  %v2691_v23 = vsel %vm2129_vm10, %v2690_v21, %v2686_v60  ;;  %v2548_v35 = vsel %vm2150_vm13, %v2547_v18, %v2543_v0  ;;  %vm2720_vm3 = vcmask 1045509  }
 0x2bc   :  { %v1791_v52 = vpop.xlane.xlu1 %1790  ;;  %vm2722_vm4 = vcmask 1046534   ;;  %v2627_v11 = vsel %vm2150_vm13, %v2626_v9, %v2622_v25  ;;  %v2715_v37 = vsel %vm2714_vm0, %v2316_v43, %v6679_v17  ;;  %v2631_v55 = vrot.slane %v6680_v12, %v5831_v42 }
 0x2bd   :  { %v1785_v50 = vpop.xlane.xlu0 %1784  ;;  %v2394_v4 = vrot.slane %v1791_v52, %v5831_v42  ;;  %v2696_v18 = vsel %vm2136_vm11, %v2695_v31, %v2691_v23  ;;  %v2553_v10 = vsel %vm2157_vm14, %v2552_v62, %v2548_v35  ;;  %vm2724_vm5 = vcmask 1047559  }
 0x2be   :  { %v2379_v58 = vrot.slane %v1785_v50, %v5817_v2  ;;  %v2632_v47 = vsel %vm2157_vm14, %v2631_v55, %v2627_v11  ;;  %vm2729_vm6 = vcmp.lt.s32.totalorder %v6681_v38, 8  ;;  %v3068_v50 = vsub.s32 1, %v6683_v33  ;;  %v4216_v55 = vld [vmem:[#allocation5 + $0x48] sm:$0xff]  }
 0x2bf   :  { %v3135_v24 = vsub.s32 2, %v6683_v33  ;;  %v3202_v53 = vsub.s32 3, %v6683_v33  ;;  %v3269_v62 = vsub.s32 4, %v6683_v33  ;;  %v3336_v25 = vsub.s32 5, %v6683_v33 }
 0x2c0   :  { %v1787_v32 = vpop.xlane.xlu1 %1786  ;;  %v2380_v54 = vsel %vm2136_vm11, %v2379_v58, %v2375_v6 }
 0x2c1   :  { %v2384_v1 = vrot.slane %v1787_v32, %v5820_v44  ;;  %v1915_v27 = vpop.xlane.xlu0 %1914 }
 0x2c2   :  { %v2700_v8 = vrot.slane %v1915_v27, %v5820_v44  ;;  %v3953_v27 = vld [vmem:[#allocation5] sm:$0xff]  }
 0x2c3   :  { %v2385_v13 = vsel %vm2143_vm12, %v2384_v1, %v2380_v54  ;;  %v4208_v54 = vld [vmem:[#allocation5 + $0x8] sm:$0xff]   ;;  %v3955_v23 = vunpack.c.h.bf16 %v3953_v27 }
 0x2c4   :  { %v2390_v29 = vsel %vm2150_vm13, %v2389_v48, %v2385_v13  ;;  %v1919_v2 = vpop.xlane.xlu1 %1918  ;;  %v2701_v14 = vsel %vm2143_vm12, %v2700_v8, %v2696_v18  ;;  %v3403_v13 = vsub.s32 6, %v6683_v33  ;;  %v3958_v35 = vunpack.c.l.bf16 %v4208_v54 }
 0x2c5   :  { %v2395_v5 = vsel %vm2157_vm14, %v2394_v4, %v2390_v29  ;;  %v2710_v63 = vrot.slane %v1919_v2, %v5831_v42  ;;  %v1917_v44 = vpop.xlane.xlu0 %1916  ;;  %v3954_v4 = vunpack.c.l.bf16 %v3953_v27 }
 0x2c6   :  { %v2717_v45 = vsel %vm2716_vm1, %v2395_v5, %v2715_v37  ;;  %v2705_v57 = vrot.slane %v1917_v44, %v5824_v16  ;;  %v3959_v37 = vunpack.c.h.bf16 %v4208_v54  ;;  %v4215_v5 = vld [vmem:[#allocation5 + $0x40] sm:$0xff]  }
 0x2c7   :  { %v2719_v20 = vsel %vm2718_vm2, %v6089_v49, %v2717_v45  ;;  %v4209_v45 = vld [vmem:[#allocation5 + $0x10] sm:$0xff]  }
 0x2c8   :  { %v2721_v28 = vsel %vm2720_vm3, %v2553_v10, %v2719_v20  ;;  %v2706_v42 = vsel %vm2150_vm13, %v2705_v57, %v2701_v14  ;;  %v3986_v57 = vunpack.c.l.bf16 %v4215_v5  ;;  %v3987_v10 = vunpack.c.h.bf16 %v4215_v5 }
 0x2c9   :  { %v2723_v59 = vsel %vm2722_vm4, %v2632_v47, %v2721_v28  ;;  %v2711_v16 = vsel %vm2157_vm14, %v2710_v63, %v2706_v42  ;;  %v3990_v47 = vunpack.c.l.bf16 %v4216_v55  ;;  %v3470_v28 = vsub.s32 7, %v6683_v33 }
 0x2ca   :  { %v2725_v61 = vsel %vm2724_vm5, %v2711_v16, %v2723_v59  ;;  %v3962_v38 = vunpack.c.l.bf16 %v4209_v45  ;;  %v4217_v16 = vld [vmem:[#allocation5 + $0x50] sm:$0xff]  }
 0x2cb   :  { %v2730_v46 = vsel %vm2729_vm6, %v2725_v61, -inf }
 0x2cc   :  { %2731 = vmax.xlane.f32.xlu0 %v2730_v46 }
 0x359   :  { %v2732_v49 = vpop.xlane.xlu0 %2731 }
 0x35a   :  { %v2733_v3 = vsub.f32 %v2730_v46, %v2732_v49 }
 0x35c   :  { %v2734_v39 = vmul.f32 1.442695, %v2733_v3  ;;  %v3991_v3 = vunpack.c.h.bf16 %v4216_v55 }
 0x35e   :  { %4841 = vpow2.f32 %v2734_v39 }
 0x368   :  { %v4842_v7 = vpop.eup %4841 }
 0x369   :  { %2736 = vadd.xlane.f32.xlu1 %v4842_v7 }
 0x3f6   :  { %v2737_v52 = vpop.xlane.xlu1 %2736 }
 0x3f7   :  { %4843 = vrcp.f32 %v2737_v52 }
 0x401   :  { %v4844_v51 = vpop.eup %4843 }
 0x402   :  { %v6272_v22 = vmul.f32 %v4844_v51, %v4842_v7  ;;  %v3963_v7 = vunpack.c.h.bf16 %v4209_v45 }
 0x404   :  { %v3002_v34 = vrot.slane %v6272_v22, %v6682_v36  ;;  %2740 = vst [vmem:[#allocation9] sm:$0xff] %v6272_v22  ;;  %v3069_v40 = vrot.slane %v6272_v22, %v3068_v50  ;;  %v3136_v15 = vrot.slane %v6272_v22, %v3135_v24  ;;  %v3203_v58 = vrot.slane %v6272_v22, %v3202_v53 }
 0x405   :  { %v6287_v9 = vrot.slane %v6272_v22, %v3269_v62  ;;  %v6318_v8 = vrot.slane %v6272_v22, %v3336_v25  ;;  %v6325_v63 = vrot.slane %v6272_v22, %v3403_v13  ;;  %v3994_v36 = vunpack.c.l.bf16 %v4217_v16 }
 0x406   :  { %3008 = vbcast.lane.b32.xlu1 %v3002_v34, 264  ;;  %3004 = vbcast.lane.b32.xlu0 %v3002_v34, 256 }
 0x40a   :  { %3012 = vbcast.lane.b32.xlu1 %v3002_v34, 272  ;;  %3020 = vbcast.lane.b32.xlu0 %v3002_v34, 288 }
 0x40e   :  { %3016 = vbcast.lane.b32.xlu1 %v3002_v34, 280  ;;  %3028 = vbcast.lane.b32.xlu0 %v3002_v34, 304 }
 0x412   :  { %3024 = vbcast.lane.b32.xlu1 %v3002_v34, 296  ;;  %3036 = vbcast.lane.b32.xlu0 %v3002_v34, 320 }
 0x416   :  { %3032 = vbcast.lane.b32.xlu1 %v3002_v34, 312  ;;  %3044 = vbcast.lane.b32.xlu0 %v3002_v34, 336 }
 0x41a   :  { %3040 = vbcast.lane.b32.xlu1 %v3002_v34, 328  ;;  %3052 = vbcast.lane.b32.xlu0 %v3002_v34, 352 }
 0x41e   :  { %3048 = vbcast.lane.b32.xlu1 %v3002_v34, 344  ;;  %3060 = vbcast.lane.b32.xlu0 %v3002_v34, 368 }
 0x422   :  { %3056 = vbcast.lane.b32.xlu1 %v3002_v34, 360  ;;  %3071 = vbcast.lane.b32.xlu0 %v3069_v40, 256 }
 0x426   :  { %3064 = vbcast.lane.b32.xlu1 %v3002_v34, 376  ;;  %3079 = vbcast.lane.b32.xlu0 %v3069_v40, 272  ;;  %v6335_v34 = vrot.slane %v6272_v22, %v3470_v28 }
 0x42a   :  { %3075 = vbcast.lane.b32.xlu1 %v3069_v40, 264  ;;  %3087 = vbcast.lane.b32.xlu0 %v3069_v40, 288 }
 0x42e   :  { %3083 = vbcast.lane.b32.xlu1 %v3069_v40, 280  ;;  %3095 = vbcast.lane.b32.xlu0 %v3069_v40, 304 }
 0x432   :  { %3091 = vbcast.lane.b32.xlu1 %v3069_v40, 296  ;;  %3103 = vbcast.lane.b32.xlu0 %v3069_v40, 320 }
 0x436   :  { %3099 = vbcast.lane.b32.xlu1 %v3069_v40, 312  ;;  %3111 = vbcast.lane.b32.xlu0 %v3069_v40, 336 }
 0x43a   :  { %3107 = vbcast.lane.b32.xlu1 %v3069_v40, 328  ;;  %3119 = vbcast.lane.b32.xlu0 %v3069_v40, 352 }
 0x43e   :  { %3115 = vbcast.lane.b32.xlu1 %v3069_v40, 344  ;;  %3127 = vbcast.lane.b32.xlu0 %v3069_v40, 368 }
 0x442   :  { %3123 = vbcast.lane.b32.xlu1 %v3069_v40, 360  ;;  %3138 = vbcast.lane.b32.xlu0 %v3136_v15, 256 }
 0x446   :  { %3131 = vbcast.lane.b32.xlu1 %v3069_v40, 376  ;;  %3146 = vbcast.lane.b32.xlu0 %v3136_v15, 272  ;;  %v4218_v40 = vld [vmem:[#allocation5 + $0x58] sm:$0xff]  }
 0x447   :  { %v3998_v22 = vunpack.c.l.bf16 %v4218_v40  ;;  %v3999_v13 = vunpack.c.h.bf16 %v4218_v40  ;;  %v4212_v40 = vld [vmem:[#allocation5 + $0x28] sm:$0xff]  }
 0x44a   :  { %3142 = vbcast.lane.b32.xlu1 %v3136_v15, 264  ;;  %3154 = vbcast.lane.b32.xlu0 %v3136_v15, 288 }
 0x44e   :  { %3150 = vbcast.lane.b32.xlu1 %v3136_v15, 280  ;;  %3162 = vbcast.lane.b32.xlu0 %v3136_v15, 304 }
 0x452   :  { %3158 = vbcast.lane.b32.xlu1 %v3136_v15, 296  ;;  %3170 = vbcast.lane.b32.xlu0 %v3136_v15, 320 }
 0x456   :  { %3166 = vbcast.lane.b32.xlu1 %v3136_v15, 312  ;;  %3178 = vbcast.lane.b32.xlu0 %v3136_v15, 336 }
 0x45a   :  { %3174 = vbcast.lane.b32.xlu1 %v3136_v15, 328  ;;  %3186 = vbcast.lane.b32.xlu0 %v3136_v15, 352 }
 0x45e   :  { %3182 = vbcast.lane.b32.xlu1 %v3136_v15, 344  ;;  %3194 = vbcast.lane.b32.xlu0 %v3136_v15, 368 }
 0x462   :  { %3190 = vbcast.lane.b32.xlu1 %v3136_v15, 360  ;;  %3205 = vbcast.lane.b32.xlu0 %v3203_v58, 256 }
 0x466   :  { %3198 = vbcast.lane.b32.xlu1 %v3136_v15, 376  ;;  %3213 = vbcast.lane.b32.xlu0 %v3203_v58, 272  ;;  %v4210_v15 = vld [vmem:[#allocation5 + $0x18] sm:$0xff]  }
 0x467   :  { %v3966_v27 = vunpack.c.l.bf16 %v4210_v15 }
 0x46a   :  { %3209 = vbcast.lane.b32.xlu1 %v3203_v58, 264  ;;  %3221 = vbcast.lane.b32.xlu0 %v3203_v58, 288 }
 0x46e   :  { %3217 = vbcast.lane.b32.xlu1 %v3203_v58, 280  ;;  %3229 = vbcast.lane.b32.xlu0 %v3203_v58, 304 }
 0x472   :  { %3225 = vbcast.lane.b32.xlu1 %v3203_v58, 296  ;;  %3237 = vbcast.lane.b32.xlu0 %v3203_v58, 320 }
 0x476   :  { %3233 = vbcast.lane.b32.xlu1 %v3203_v58, 312  ;;  %3245 = vbcast.lane.b32.xlu0 %v3203_v58, 336 }
 0x478   :  { %v3009_v0 = vpop.permute.xlu1 %3008  ;;  %v3005_v19 = vpop.permute.xlu0 %3004 }
 0x479   :  { %v3536_v11 = vmul.f32 %v3955_v23, %v3009_v0  ;;  %v3535_v17 = vmul.f32 %v3954_v4, %v3005_v19  ;;  %v3995_v0 = vunpack.c.h.bf16 %v4217_v16 }
 0x47a   :  { %3241 = vbcast.lane.b32.xlu1 %v3203_v58, 328  ;;  %3253 = vbcast.lane.b32.xlu0 %v3203_v58, 352 }
 0x47b   :  { %v3663_v20 = vadd.f32 %v3536_v11, %v3535_v17 }
 0x47c   :  { %v3013_v26 = vpop.permute.xlu1 %3012  ;;  %v6284_v56 = vpop.permute.xlu0 %3020 }
 0x47d   :  { %v3537_v44 = vmul.f32 %v3958_v35, %v3013_v26  ;;  %v3539_v33 = vmul.f32 %v3962_v38, %v6284_v56  ;;  %v4219_v56 = vld [vmem:[#allocation5 + $0x60] sm:$0xff]  }
 0x47e   :  { %3249 = vbcast.lane.b32.xlu1 %v3203_v58, 344  ;;  %3261 = vbcast.lane.b32.xlu0 %v3203_v58, 368  ;;  %v4002_v17 = vunpack.c.l.bf16 %v4219_v56 }
 0x47f   :  { %v3664_v42 = vadd.f32 %v3663_v20, %v3537_v44  ;;  %v4220_v44 = vld [vmem:[#allocation5 + $0x68] sm:$0xff]  }
 0x480   :  { %v3017_v43 = vpop.permute.xlu1 %3016  ;;  %v6289_v41 = vpop.permute.xlu0 %3028 }
 0x481   :  { %v3538_v14 = vmul.f32 %v3959_v37, %v3017_v43  ;;  %v3541_v37 = vmul.f32 %v3966_v27, %v6289_v41  ;;  %v4221_v41 = vld [vmem:[#allocation5 + $0x70] sm:$0xff]  }
 0x482   :  { %3257 = vbcast.lane.b32.xlu1 %v3203_v58, 360  ;;  %3272 = vbcast.lane.b32.xlu0 %v6287_v9, 256 }
 0x483   :  { %v3665_v39 = vadd.f32 %v3664_v42, %v3538_v14  ;;  %v4006_v42 = vunpack.c.l.bf16 %v4220_v44 }
 0x484   :  { %v6292_v60 = vpop.permute.xlu1 %3024  ;;  %v6294_v32 = vpop.permute.xlu0 %3036 }
 0x485   :  { %v3540_v19 = vmul.f32 %v3963_v7, %v6292_v60  ;;  %v3666_v62 = vadd.f32 %v3665_v39, %v3539_v33  ;;  %v4222_v33 = vld [vmem:[#allocation5 + $0x78] sm:$0xff]  }
 0x486   :  { %3265 = vbcast.lane.b32.xlu1 %v3203_v58, 376  ;;  %3280 = vbcast.lane.b32.xlu0 %v6287_v9, 272 }
 0x487   :  { %v3667_v35 = vadd.f32 %v3666_v62, %v3540_v19 }
 0x488   :  { %v6297_v30 = vpop.permute.xlu1 %3032  ;;  %v6299_v21 = vpop.permute.xlu0 %3044 }
 0x489   :  { %v3668_v14 = vadd.f32 %v3667_v35, %v3541_v37 }
 0x48a   :  { %3276 = vbcast.lane.b32.xlu1 %v6287_v9, 264  ;;  %3288 = vbcast.lane.b32.xlu0 %v6287_v9, 288 }
 0x48c   :  { %v6303_v6 = vpop.permute.xlu1 %3040  ;;  %v6305_v1 = vpop.permute.xlu0 %3052 }
 0x48e   :  { %3284 = vbcast.lane.b32.xlu1 %v6287_v9, 280  ;;  %3296 = vbcast.lane.b32.xlu0 %v6287_v9, 304 }
 0x490   :  { %v6310_v31 = vpop.permute.xlu1 %3048  ;;  %v6312_v48 = vpop.permute.xlu0 %3060 }
 0x492   :  { %3292 = vbcast.lane.b32.xlu1 %v6287_v9, 296  ;;  %3304 = vbcast.lane.b32.xlu0 %v6287_v9, 320 }
 0x494   :  { %v6320_v29 = vpop.permute.xlu1 %3056  ;;  %v3072_v2 = vpop.permute.xlu0 %3071 }
 0x495   :  { %v3551_v46 = vmul.f32 %v3986_v57, %v3072_v2  ;;  %v3967_v2 = vunpack.c.h.bf16 %v4210_v15 }
 0x496   :  { %3300 = vbcast.lane.b32.xlu1 %v6287_v9, 312  ;;  %3339 = vbcast.lane.b32.xlu0 %v6318_v8, 256 }
 0x497   :  { %v3542_v20 = vmul.f32 %v3967_v2, %v6297_v30 }
 0x498   :  { %v6327_v12 = vpop.permute.xlu1 %3064  ;;  %v3080_v18 = vpop.permute.xlu0 %3079 }
 0x499   :  { %v3553_v52 = vmul.f32 %v3990_v47, %v3080_v18  ;;  %v4211_v18 = vld [vmem:[#allocation5 + $0x20] sm:$0xff]  }
 0x49a   :  { %3308 = vbcast.lane.b32.xlu1 %v6287_v9, 328  ;;  %3406 = vbcast.lane.b32.xlu0 %v6325_v63, 256  ;;  %v3970_v38 = vunpack.c.l.bf16 %v4211_v18  ;;  %v3971_v39 = vunpack.c.h.bf16 %v4211_v18 }
 0x49c   :  { %v3076_v59 = vpop.permute.xlu1 %3075  ;;  %v3088_v61 = vpop.permute.xlu0 %3087 }
 0x49d   :  { %v3552_v49 = vmul.f32 %v3987_v10, %v3076_v59  ;;  %v3555_v26 = vmul.f32 %v3994_v36, %v3088_v61  ;;  %v4003_v10 = vunpack.c.h.bf16 %v4219_v56  ;;  %v4015_v56 = vunpack.c.h.bf16 %v4222_v33 }
 0x49e   :  { %3343 = vbcast.lane.b32.xlu1 %v6318_v8, 264  ;;  %3347 = vbcast.lane.b32.xlu0 %v6318_v8, 272 }
 0x49f   :  { %v3684_v51 = vadd.f32 %v3552_v49, %v3551_v46  ;;  %v4007_v49 = vunpack.c.h.bf16 %v4220_v44 }
 0x4a0   :  { %v3084_v50 = vpop.permute.xlu1 %3083  ;;  %v3096_v24 = vpop.permute.xlu0 %3095 }
 0x4a1   :  { %v3554_v53 = vmul.f32 %v3991_v3, %v3084_v50  ;;  %v3685_v58 = vadd.f32 %v3684_v51, %v3553_v52  ;;  %v3557_v60 = vmul.f32 %v3998_v22, %v3096_v24  ;;  %v3669_v3 = vadd.f32 %v3668_v14, %v3542_v20  ;;  %v4225_v14 = vld [vmem:[#allocation5 + $0x90] sm:$0xff]  }
 0x4a2   :  { %3410 = vbcast.lane.b32.xlu1 %v6325_v63, 264  ;;  %3477 = vbcast.lane.b32.xlu0 %v6335_v34, 264  ;;  %v4010_v52 = vunpack.c.l.bf16 %v4221_v41  ;;  %v3543_v51 = vmul.f32 %v3970_v38, %v6294_v32 }
 0x4a3   :  { %v3686_v43 = vadd.f32 %v3685_v58, %v3554_v53  ;;  %v4011_v53 = vunpack.c.h.bf16 %v4221_v41  ;;  %v3544_v58 = vmul.f32 %v3971_v39, %v6303_v6 }
 0x4a4   :  { %v3092_v25 = vpop.permute.xlu1 %3091  ;;  %v3104_v54 = vpop.permute.xlu0 %3103 }
 0x4a5   :  { %v3556_v23 = vmul.f32 %v3995_v0, %v3092_v25  ;;  %v3687_v4 = vadd.f32 %v3686_v43, %v3555_v26  ;;  %v3559_v47 = vmul.f32 %v4002_v17, %v3104_v54  ;;  %v3670_v0 = vadd.f32 %v3669_v3, %v3543_v51  ;;  %v4213_v17 = vld [vmem:[#allocation5 + $0x30] sm:$0xff]   ;;  %v4226_v3 = vld [vmem:[#allocation5 + $0x98] sm:$0xff]  }
 0x4a6   :  { %3473 = vbcast.lane.b32.xlu1 %v6335_v34, 256  ;;  %3351 = vbcast.lane.b32.xlu0 %v6318_v8, 280  ;;  %v4014_v26 = vunpack.c.l.bf16 %v4222_v33  ;;  %v3974_v43 = vunpack.c.l.bf16 %v4212_v40  ;;  %v3978_v20 = vunpack.c.l.bf16 %v4213_v17  ;;  %v3979_v41 = vunpack.c.h.bf16 %v4213_v17 }
 0x4a7   :  { %v3688_v11 = vadd.f32 %v3687_v4, %v3556_v23  ;;  %v3671_v54 = vadd.f32 %v3670_v0, %v3544_v58  ;;  %v3975_v23 = vunpack.c.h.bf16 %v4212_v40  ;;  %v4223_v4 = vld [vmem:[#allocation5 + $0x80] sm:$0xff]   ;;  %v4027_v51 = vunpack.c.h.bf16 %v4225_v14 }
 0x4a8   :  { %v3100_v5 = vpop.permute.xlu1 %3099  ;;  %v3112_v55 = vpop.permute.xlu0 %3111  ;;  %v3545_v35 = vmul.f32 %v3974_v43, %v6299_v21  ;;  %v4018_v37 = vunpack.c.l.bf16 %v4223_v4 }
 0x4a9   :  { %v3558_v45 = vmul.f32 %v3999_v13, %v3100_v5  ;;  %v3689_v57 = vadd.f32 %v3688_v11, %v3557_v60  ;;  %v3561_v30 = vmul.f32 %v4006_v42, %v3112_v55  ;;  %v4224_v60 = vld [vmem:[#allocation5 + $0x88] sm:$0xff]   ;;  %v4019_v55 = vunpack.c.h.bf16 %v4223_v4 }
 0x4aa   :  { %3414 = vbcast.lane.b32.xlu1 %v6325_v63, 272  ;;  %3418 = vbcast.lane.b32.xlu0 %v6325_v63, 280  ;;  %v3546_v18 = vmul.f32 %v3975_v23, %v6310_v31  ;;  %v4023_v38 = vunpack.c.h.bf16 %v4224_v60 }
 0x4ab   :  { %v3690_v28 = vadd.f32 %v3689_v57, %v3558_v45  ;;  %v3672_v45 = vadd.f32 %v3671_v54, %v3545_v35 }
 0x4ac   :  { %v3108_v59 = vpop.permute.xlu1 %3107  ;;  %v3120_v16 = vpop.permute.xlu0 %3119 }
 0x4ad   :  { %v3560_v61 = vmul.f32 %v4003_v10, %v3108_v59  ;;  %v3691_v46 = vadd.f32 %v3690_v28, %v3559_v47  ;;  %v3563_v19 = vmul.f32 %v4010_v52, %v3120_v16  ;;  %v4022_v10 = vunpack.c.l.bf16 %v4224_v60 }
 0x4ae   :  { %3481 = vbcast.lane.b32.xlu1 %v6335_v34, 272  ;;  %3485 = vbcast.lane.b32.xlu0 %v6335_v34, 280  ;;  %v3673_v59 = vadd.f32 %v3672_v45, %v3546_v18 }
 0x4af   :  { %v3692_v7 = vadd.f32 %v3691_v46, %v3560_v61  ;;  %v4026_v61 = vunpack.c.l.bf16 %v4225_v14  ;;  %v3547_v46 = vmul.f32 %v3978_v20, %v6305_v1  ;;  %v4227_v1 = vld [vmem:[#allocation5 + $0xa0] sm:$0xff]   ;;  %v4230_v14 = vld [vmem:[#allocation5 + $0xb8] sm:$0xff]  }
 0x4b0   :  { %v3116_v36 = vpop.permute.xlu1 %3115  ;;  %v3128_v50 = vpop.permute.xlu0 %3127 }
 0x4b1   :  { %v3562_v24 = vmul.f32 %v4007_v49, %v3116_v36  ;;  %v3693_v15 = vadd.f32 %v3692_v7, %v3561_v30  ;;  %v3565_v6 = vmul.f32 %v4014_v26, %v3128_v50  ;;  %v4214_v30 = vld [vmem:[#allocation5 + $0x38] sm:$0xff]   ;;  %v3548_v36 = vmul.f32 %v3979_v41, %v6320_v29 }
 0x4b2   :  { %3355 = vbcast.lane.b32.xlu1 %v6318_v8, 288  ;;  %3359 = vbcast.lane.b32.xlu0 %v6318_v8, 296  ;;  %v3674_v33 = vadd.f32 %v3673_v59, %v3547_v46  ;;  %v3983_v43 = vunpack.c.h.bf16 %v4214_v30 }
 0x4b3   :  { %v3694_v62 = vadd.f32 %v3693_v15, %v3562_v24  ;;  %v4030_v24 = vunpack.c.l.bf16 %v4226_v3  ;;  %v3982_v15 = vunpack.c.l.bf16 %v4214_v30  ;;  %v4047_v30 = vunpack.c.h.bf16 %v4230_v14 }
 0x4b4   :  { %v3124_v22 = vpop.permute.xlu1 %3123  ;;  %v3139_v32 = vpop.permute.xlu0 %3138  ;;  %v3675_v26 = vadd.f32 %v3674_v33, %v3548_v36 }
 0x4b5   :  { %v3564_v27 = vmul.f32 %v4011_v53, %v3124_v22  ;;  %v3695_v25 = vadd.f32 %v3694_v62, %v3563_v19  ;;  %v3567_v28 = vmul.f32 %v4018_v37, %v3139_v32  ;;  %v4031_v62 = vunpack.c.h.bf16 %v4226_v3  ;;  %v4229_v37 = vld [vmem:[#allocation5 + $0xb0] sm:$0xff]  }
 0x4b6   :  { %3422 = vbcast.lane.b32.xlu1 %v6325_v63, 288  ;;  %3426 = vbcast.lane.b32.xlu0 %v6325_v63, 296  ;;  %v4034_v32 = vunpack.c.l.bf16 %v4227_v1 }
 0x4b7   :  { %v3696_v13 = vadd.f32 %v3695_v25, %v3564_v27  ;;  %v3549_v27 = vmul.f32 %v3982_v15, %v6312_v48 }
 0x4b8   :  { %v3132_v2 = vpop.permute.xlu1 %3131  ;;  %v3147_v11 = vpop.permute.xlu0 %3146 }
 0x4b9   :  { %v3566_v5 = vmul.f32 %v4015_v56, %v3132_v2  ;;  %v3697_v44 = vadd.f32 %v3696_v13, %v3565_v6  ;;  %v3569_v31 = vmul.f32 %v4022_v10, %v3147_v11  ;;  %v4228_v56 = vld [vmem:[#allocation5 + $0xa8] sm:$0xff]   ;;  %v4035_v6 = vunpack.c.h.bf16 %v4227_v1 }
 0x4ba   :  { %3489 = vbcast.lane.b32.xlu1 %v6335_v34, 288  ;;  %3493 = vbcast.lane.b32.xlu0 %v6335_v34, 296  ;;  %v3550_v13 = vmul.f32 %v3983_v43, %v6327_v12  ;;  %v3676_v35 = vadd.f32 %v3675_v26, %v3549_v27  ;;  %v4038_v11 = vunpack.c.l.bf16 %v4228_v56  ;;  %v4042_v10 = vunpack.c.l.bf16 %v4229_v37  ;;  %v4233_v43 = vld [vmem:[#allocation5 + $0xd0] sm:$0xff]  }
 0x4bb   :  { %v6359_v57 = vadd.f32 %v3697_v44, %v3566_v5 }
 0x4bc   :  { %v3143_v21 = vpop.permute.xlu1 %3142  ;;  %v3155_v47 = vpop.permute.xlu0 %3154  ;;  %v3677_v18 = vadd.f32 %v3676_v35, %v3550_v13 }
 0x4bd   :  { %v3568_v42 = vmul.f32 %v4019_v55, %v3143_v21  ;;  %v3571_v50 = vmul.f32 %v4026_v61, %v3155_v47  ;;  %v4039_v55 = vunpack.c.h.bf16 %v4228_v56  ;;  %v3699_v20 = vrot.slane %v6359_v57, 4 }
 0x4be   :  { %3363 = vbcast.lane.b32.xlu1 %v6318_v8, 304  ;;  %3367 = vbcast.lane.b32.xlu0 %v6318_v8, 312  ;;  %v3678_v59 = vrot.slane %v3677_v18, 4 }
 0x4bf   :  { %v3705_v16 = vadd.f32 %v3568_v42, %v3567_v28  ;;  %v3700_v61 = vadd.f32 %v3699_v20, %v6359_v57  ;;  %v4235_v20 = vld [vmem:[#allocation5 + $0xe0] sm:$0xff]  }
 0x4c0   :  { %v3151_v49 = vpop.permute.xlu1 %3150  ;;  %v3163_v39 = vpop.permute.xlu0 %3162 }
 0x4c1   :  { %v3570_v7 = vmul.f32 %v4023_v38, %v3151_v49  ;;  %v3706_v52 = vadd.f32 %v3705_v16, %v3569_v31  ;;  %v3573_v29 = vmul.f32 %v4030_v24, %v3163_v39  ;;  %v4043_v38 = vunpack.c.h.bf16 %v4229_v37 }
 0x4c2   :  { %3430 = vbcast.lane.b32.xlu1 %v6325_v63, 304  ;;  %3434 = vbcast.lane.b32.xlu0 %v6325_v63, 312  ;;  %v4046_v16 = vunpack.c.l.bf16 %v4230_v14  ;;  %v3701_v33 = vrot.slane %v3700_v61, 2 }
 0x4c3   :  { %v3707_v40 = vadd.f32 %v3706_v52, %v3570_v7  ;;  %v3679_v7 = vadd.f32 %v3678_v59, %v3677_v18  ;;  %v4231_v52 = vld [vmem:[#allocation5 + $0xc0] sm:$0xff]  }
 0x4c4   :  { %v3159_v53 = vpop.permute.xlu1 %3158  ;;  %v3171_v58 = vpop.permute.xlu0 %3170  ;;  %v4050_v15 = vunpack.c.l.bf16 %v4231_v52  ;;  %v4051_v1 = vunpack.c.h.bf16 %v4231_v52  ;;  %v4067_v52 = vunpack.c.h.bf16 %v4235_v20 }
 0x4c5   :  { %v3572_v0 = vmul.f32 %v4027_v51, %v3159_v53  ;;  %v3708_v19 = vadd.f32 %v3707_v40, %v3571_v50  ;;  %v3575_v2 = vmul.f32 %v4034_v32, %v3171_v58  ;;  %v4232_v40 = vld [vmem:[#allocation5 + $0xc8] sm:$0xff]   ;;  %v3680_v58 = vrot.slane %v3679_v7, 2 }
 0x4c6   :  { %3497 = vbcast.lane.b32.xlu1 %v6335_v34, 304  ;;  %3501 = vbcast.lane.b32.xlu0 %v6335_v34, 312 }
 0x4c7   :  { %v3709_v22 = vadd.f32 %v3708_v19, %v3572_v0  ;;  %v4054_v19 = vunpack.c.l.bf16 %v4232_v40  ;;  %v3681_v56 = vadd.f32 %v3680_v58, %v3679_v7 }
 0x4c8   :  { %v3167_v25 = vpop.permute.xlu1 %3166  ;;  %v3179_v54 = vpop.permute.xlu0 %3178 }
 0x4c9   :  { %v3574_v23 = vmul.f32 %v4031_v62, %v3167_v25  ;;  %v3710_v4 = vadd.f32 %v3709_v22, %v3573_v29  ;;  %v3577_v12 = vmul.f32 %v4038_v11, %v3179_v54  ;;  %v3702_v62 = vadd.f32 %v3701_v33, %v3700_v61 }
 0x4ca   :  { %3371 = vbcast.lane.b32.xlu1 %v6318_v8, 320  ;;  %3375 = vbcast.lane.b32.xlu0 %v6318_v8, 328  ;;  %v4055_v25 = vunpack.c.h.bf16 %v4232_v40  ;;  %v4237_v40 = vld [vmem:[#allocation5 + $0xf0] sm:$0xff]  }
 0x4cb   :  { %v3711_v60 = vadd.f32 %v3710_v4, %v3574_v23  ;;  %v3703_v13 = vrot.slane %v3702_v62, 1 }
 0x4cc   :  { %v3175_v17 = vpop.permute.xlu1 %3174  ;;  %v3187_v5 = vpop.permute.xlu0 %3186 }
 0x4cd   :  { %v3576_v48 = vmul.f32 %v4035_v6, %v3175_v17  ;;  %v3712_v44 = vadd.f32 %v3711_v60, %v3575_v2  ;;  %v3579_v41 = vmul.f32 %v4042_v10, %v3187_v5  ;;  %v4058_v6 = vunpack.c.l.bf16 %v4233_v43  ;;  %v4234_v2 = vld [vmem:[#allocation5 + $0xd8] sm:$0xff]  }
 0x4ce   :  { %3438 = vbcast.lane.b32.xlu1 %v6325_v63, 320  ;;  %3312 = vbcast.lane.b32.xlu0 %v6287_v9, 336  ;;  %v4059_v5 = vunpack.c.h.bf16 %v4233_v43 }
 0x4cf   :  { %v3713_v45 = vadd.f32 %v3712_v44, %v3576_v48  ;;  %v3682_v48 = vrot.slane %v3681_v56, 1 }
 0x4d0   :  { %v3183_v21 = vpop.permute.xlu1 %3182  ;;  %v3195_v47 = vpop.permute.xlu0 %3194 }
 0x4d1   :  { %v3578_v28 = vmul.f32 %v4039_v55, %v3183_v21  ;;  %v3714_v42 = vadd.f32 %v3713_v45, %v3577_v12  ;;  %v3581_v51 = vmul.f32 %v4046_v16, %v3195_v47  ;;  %v4062_v12 = vunpack.c.l.bf16 %v4234_v2 }
 0x4d2   :  { %3505 = vbcast.lane.b32.xlu1 %v6335_v34, 320  ;;  %3379 = vbcast.lane.b32.xlu0 %v6318_v8, 336  ;;  %v3704_v45 = vadd.f32 %v3703_v13, %v3702_v62  ;;  %v4066_v16 = vunpack.c.l.bf16 %v4235_v20  ;;  %v4238_v62 = vld [vmem:[#allocation5 + $0xf8] sm:$0xff]   ;;  %v4239_v13 = vld [vmem:[#allocation5 + $0x100] sm:$0xff]  }
 0x4d3   :  { %v3715_v31 = vadd.f32 %v3714_v42, %v3578_v28  ;;  %v4063_v42 = vunpack.c.h.bf16 %v4234_v2 }
 0x4d4   :  { %v3191_v46 = vpop.permute.xlu1 %3190  ;;  %v3206_v49 = vpop.permute.xlu0 %3205 }
 0x4d5   :  { %v3580_v3 = vmul.f32 %v4043_v38, %v3191_v46  ;;  %v3716_v39 = vadd.f32 %v3715_v31, %v3579_v41  ;;  %v3583_v22 = vmul.f32 %v4050_v15, %v3206_v49  ;;  %v3683_v38 = vadd.f32 %v3682_v48, %v3681_v56  ;;  %v4236_v49 = vld [vmem:[#allocation5 + $0xe8] sm:$0xff]  }
 0x4d6   :  { %3442 = vbcast.lane.b32.xlu1 %v6325_v63, 328  ;;  %3316 = vbcast.lane.b32.xlu0 %v6287_v9, 344  ;;  %v4070_v33 = vunpack.c.l.bf16 %v4236_v49 }
 0x4d7   :  { %v3717_v36 = vadd.f32 %v3716_v39, %v3580_v3  ;;  %v3839_v61 = vsel %vm2712_vm15, %v3704_v45, %v3683_v38  ;;  %v4241_v45 = vld [vmem:[#allocation5 + $0x110] sm:$0xff]  }
 0x4d8   :  { %v3199_v50 = vpop.permute.xlu1 %3198  ;;  %v3214_v24 = vpop.permute.xlu0 %3213  ;;  %v4090_v38 = vunpack.c.l.bf16 %v4241_v45 }
 0x4d9   :  { %v3582_v53 = vmul.f32 %v4047_v30, %v3199_v50  ;;  %v3718_v57 = vadd.f32 %v3717_v36, %v3581_v51  ;;  %v3585_v23 = vmul.f32 %v4054_v19, %v3214_v24 }
 0x4da   :  { %3509 = vbcast.lane.b32.xlu1 %v6335_v34, 328  ;;  %3383 = vbcast.lane.b32.xlu0 %v6318_v8, 344 }
 0x4db   :  { %v3719_v0 = vadd.f32 %v3718_v57, %v3582_v53  ;;  %v4071_v57 = vunpack.c.h.bf16 %v4236_v49 }
 0x4dc   :  { %v3210_v26 = vpop.permute.xlu1 %3209  ;;  %v3222_v29 = vpop.permute.xlu0 %3221 }
 0x4dd   :  { %v3720_v32 = vrot.slane %v3719_v0, 4  ;;  %v3584_v27 = vmul.f32 %v4051_v1, %v3210_v26  ;;  %v3587_v55 = vmul.f32 %v4058_v6, %v3222_v29  ;;  %v4079_v6 = vunpack.c.h.bf16 %v4238_v62 }
 0x4de   :  { %3446 = vbcast.lane.b32.xlu1 %v6325_v63, 336  ;;  %3320 = vbcast.lane.b32.xlu0 %v6287_v9, 352 }
 0x4df   :  { %v3721_v54 = vadd.f32 %v3720_v32, %v3719_v0  ;;  %v3726_v4 = vadd.f32 %v3584_v27, %v3583_v22  ;;  %v4074_v0 = vunpack.c.l.bf16 %v4237_v40  ;;  %v4075_v22 = vunpack.c.h.bf16 %v4237_v40 }
 0x4e0   :  { %v3218_v35 = vpop.permute.xlu1 %3217  ;;  %v3230_v60 = vpop.permute.xlu0 %3229 }
 0x4e1   :  { %v3722_v11 = vrot.slane %v3721_v54, 2  ;;  %v3586_v17 = vmul.f32 %v4055_v25, %v3218_v35  ;;  %v3727_v37 = vadd.f32 %v3726_v4, %v3585_v23  ;;  %v3589_v41 = vmul.f32 %v4062_v12, %v3230_v60 }
 0x4e2   :  { %3513 = vbcast.lane.b32.xlu1 %v6335_v34, 336  ;;  %3387 = vbcast.lane.b32.xlu0 %v6318_v8, 352  ;;  %v4078_v25 = vunpack.c.l.bf16 %v4238_v62 }
 0x4e3   :  { %v3723_v44 = vadd.f32 %v3722_v11, %v3721_v54  ;;  %v3728_v18 = vadd.f32 %v3727_v37, %v3586_v17  ;;  %v4240_v11 = vld [vmem:[#allocation5 + $0x108] sm:$0xff]   ;;  %v4082_v37 = vunpack.c.l.bf16 %v4239_v13 }
 0x4e4   :  { %v3226_v10 = vpop.permute.xlu1 %3225  ;;  %v3238_v21 = vpop.permute.xlu0 %3237 }
 0x4e5   :  { %v3724_v14 = vrot.slane %v3723_v44, 1  ;;  %v3588_v47 = vmul.f32 %v4059_v5, %v3226_v10  ;;  %v3729_v28 = vadd.f32 %v3728_v18, %v3587_v55  ;;  %v3591_v51 = vmul.f32 %v4066_v16, %v3238_v21 }
 0x4e6   :  { %3450 = vbcast.lane.b32.xlu1 %v6325_v63, 344  ;;  %3324 = vbcast.lane.b32.xlu0 %v6287_v9, 360  ;;  %v4086_v18 = vunpack.c.l.bf16 %v4240_v11 }
 0x4e7   :  { %v3725_v59 = vadd.f32 %v3724_v14, %v3723_v44  ;;  %v3730_v31 = vadd.f32 %v3729_v28, %v3588_v47  ;;  %v4083_v44 = vunpack.c.h.bf16 %v4239_v13  ;;  %v4087_v14 = vunpack.c.h.bf16 %v4240_v11 }
 0x4e8   :  { %v3234_v46 = vpop.permute.xlu1 %3233  ;;  %v3246_v3 = vpop.permute.xlu0 %3245 }
 0x4e9   :  { %v6391_v39 = vsel %vm2714_vm0, %v3725_v59, %v3839_v61  ;;  %v3590_v30 = vmul.f32 %v4063_v42, %v3234_v46  ;;  %v3731_v7 = vadd.f32 %v3730_v31, %v3589_v41  ;;  %v3593_v1 = vmul.f32 %v4070_v33, %v3246_v3  ;;  %v4242_v41 = vld [vmem:[#allocation5 + $0x118] sm:$0xff]  }
 0x4ea   :  { %3517 = vbcast.lane.b32.xlu1 %v6335_v34, 344  ;;  %3391 = vbcast.lane.b32.xlu0 %v6318_v8, 360  ;;  %v4091_v46 = vunpack.c.h.bf16 %v4241_v45  ;;  %v4095_v40 = vunpack.c.h.bf16 %v4242_v41 }
 0x4eb   :  { %v3732_v36 = vadd.f32 %v3731_v7, %v3590_v30  ;;  %v4094_v7 = vunpack.c.l.bf16 %v4242_v41 }
 0x4ec   :  { %v3242_v50 = vpop.permute.xlu1 %3241  ;;  %v3254_v24 = vpop.permute.xlu0 %3253 }
 0x4ed   :  { %v3592_v15 = vmul.f32 %v4067_v52, %v3242_v50  ;;  %v3733_v53 = vadd.f32 %v3732_v36, %v3591_v51  ;;  %v3595_v32 = vmul.f32 %v4074_v0, %v3254_v24  ;;  %v4243_v51 = vld [vmem:[#allocation5 + $0x120] sm:$0xff]  }
 0x4ee   :  { %3454 = vbcast.lane.b32.xlu1 %v6325_v63, 352  ;;  %3328 = vbcast.lane.b32.xlu0 %v6287_v9, 368 }
 0x4ef   :  { %v3734_v58 = vadd.f32 %v3733_v53, %v3592_v15 }
 0x4f0   :  { %v3250_v19 = vpop.permute.xlu1 %3249  ;;  %v3262_v26 = vpop.permute.xlu0 %3261 }
 0x4f1   :  { %v3594_v43 = vmul.f32 %v4071_v57, %v3250_v19  ;;  %v3735_v29 = vadd.f32 %v3734_v58, %v3593_v1  ;;  %v3597_v35 = vmul.f32 %v4078_v25, %v3262_v26  ;;  %v4098_v57 = vunpack.c.l.bf16 %v4243_v51  ;;  %v6411_v25 = vld [vmem:[#allocation5 + $0x148] sm:$0xff]  }
 0x4f2   :  { %3521 = vbcast.lane.b32.xlu1 %v6335_v34, 352  ;;  %3395 = vbcast.lane.b32.xlu0 %v6318_v8, 368  ;;  %v4099_v26 = vunpack.c.h.bf16 %v4243_v51 }
 0x4f3   :  { %v3736_v27 = vadd.f32 %v3735_v29, %v3594_v43  ;;  %v4247_v43 = vld [vmem:[#allocation5 + $0x140] sm:$0xff]  }
 0x4f4   :  { %v3258_v56 = vpop.permute.xlu1 %3257  ;;  %v3273_v54 = vpop.permute.xlu0 %3272 }
 0x4f5   :  { %v3596_v23 = vmul.f32 %v4075_v22, %v3258_v56  ;;  %v3737_v4 = vadd.f32 %v3736_v27, %v3595_v32  ;;  %v3599_v20 = vmul.f32 %v4082_v37, %v3273_v54 }
 0x4f6   :  { %3458 = vbcast.lane.b32.xlu1 %v6325_v63, 360  ;;  %3332 = vbcast.lane.b32.xlu0 %v6287_v9, 376 }
 0x4f7   :  { %v3738_v2 = vadd.f32 %v3737_v4, %v3596_v23  ;;  %v4115_v23 = vunpack.c.h.bf16 %v4247_v43  ;;  %v4255_v4 = vld [vmem:[#allocation5 + $0x180] sm:$0xff]  }
 0x4f8   :  { %v3266_v60 = vpop.permute.xlu1 %3265  ;;  %v3281_v17 = vpop.permute.xlu0 %3280 }
 0x4f9   :  { %v3598_v5 = vmul.f32 %v4079_v6, %v3266_v60  ;;  %v3739_v48 = vadd.f32 %v3738_v2, %v3597_v35  ;;  %v3601_v28 = vmul.f32 %v4086_v18, %v3281_v17 }
 0x4fa   :  { %3525 = vbcast.lane.b32.xlu1 %v6335_v34, 360  ;;  %3399 = vbcast.lane.b32.xlu0 %v6318_v8, 376 }
 0x4fb   :  { %v3740_v55 = vadd.f32 %v3739_v48, %v3598_v5 }
 0x4fc   :  { %v3277_v12 = vpop.permute.xlu1 %3276  ;;  %v3289_v10 = vpop.permute.xlu0 %3288 }
 0x4fd   :  { %v3741_v9 = vrot.slane %v3740_v55, 4  ;;  %v3600_v21 = vmul.f32 %v4083_v44, %v3277_v12  ;;  %v3603_v3 = vmul.f32 %v4090_v38, %v3289_v10 }
 0x4fe   :  { %3462 = vbcast.lane.b32.xlu1 %v6325_v63, 368  ;;  %3466 = vbcast.lane.b32.xlu0 %v6325_v63, 376 }
 0x4ff   :  { %v3742_v47 = vadd.f32 %v3741_v9, %v3740_v55  ;;  %v3747_v42 = vadd.f32 %v3600_v21, %v3599_v20 }
 0x500   :  { %v3285_v59 = vpop.permute.xlu1 %3284  ;;  %v3297_v8 = vpop.permute.xlu0 %3296 }
 0x501   :  { %v3743_v31 = vrot.slane %v3742_v47, 2  ;;  %v3602_v16 = vmul.f32 %v4087_v14, %v3285_v59  ;;  %v3748_v61 = vadd.f32 %v3747_v42, %v3601_v28  ;;  %v3605_v15 = vmul.f32 %v4094_v7, %v3297_v8 }
 0x502   :  { %3529 = vbcast.lane.b32.xlu1 %v6335_v34, 368 }
 0x503   :  { %v3744_v49 = vadd.f32 %v3743_v31, %v3742_v47  ;;  %v3749_v30 = vadd.f32 %v3748_v61, %v3602_v16 }
 0x504   :  { %v3293_v52 = vpop.permute.xlu1 %3292  ;;  %v3305_v63 = vpop.permute.xlu0 %3304 }
 0x505   :  { %v3745_v36 = vrot.slane %v3744_v49, 1  ;;  %v3604_v33 = vmul.f32 %v4091_v46, %v3293_v52  ;;  %v3750_v50 = vadd.f32 %v3749_v30, %v3603_v3  ;;  %v3607_v29 = vmul.f32 %v4098_v57, %v3305_v63 }
 0x506   :  { %3533 = vbcast.lane.b32.xlu1 %v6335_v34, 376  ;;  %v4114_v34 = vunpack.c.l.bf16 %v4247_v43 }
 0x507   :  { %v3746_v24 = vadd.f32 %v3745_v36, %v3744_v49  ;;  %v3751_v53 = vadd.f32 %v3750_v50, %v3604_v33 }
 0x508   :  { %v3301_v1 = vpop.permute.xlu1 %3300  ;;  %v3340_v58 = vpop.permute.xlu0 %3339 }
 0x509   :  { %v6409_v0 = vsel %vm2716_vm1, %v3746_v24, %v6391_v39  ;;  %v3606_v19 = vmul.f32 %v4095_v40, %v3301_v1  ;;  %v3752_v62 = vadd.f32 %v3751_v53, %v3605_v15  ;;  %v4118_v39 = vunpack.c.l.bf16 %v6411_v25 }
 0x50a   :  { %6684 = vst [vmem:[#allocation33_spill] sm:$0xff] %v6409_v0 }
 0x50b   :  { %v3753_v22 = vadd.f32 %v3752_v62, %v3606_v19 }
 0x50c   :  { %v3309_v32 = vpop.permute.xlu1 %3308  ;;  %v3407_v27 = vpop.permute.xlu0 %3406 }
 0x50d   :  { %v3608_v56 = vmul.f32 %v4099_v26, %v3309_v32  ;;  %v3754_v54 = vadd.f32 %v3753_v22, %v3607_v29 }
 0x50f   :  { %v6413_v6 = vadd.f32 %v3754_v54, %v3608_v56 }
 0x510   :  { %v3344_v13 = vpop.permute.xlu1 %3343  ;;  %v3348_v35 = vpop.permute.xlu0 %3347 }
 0x511   :  { %4923 = shalt.err (!%p4920_p0)
}
 0x512   :  { %s4924_s11 = scalar_lea.hbm %s6593_s5, 128 }
 0x513   :  { %p4925_p1 = scmp.ne.s32.totalorder %s6593_s5, %s4924_s11  ;;  %p4928_p2 = scmp.lt.u32.totalorder %s4924_s11, %s6593_s5 }
 0x515   :  { %p4930_p3 = pnand %p4928_p2, %p4925_p1 }
 0x517   :  { %4933 = shalt.err (!%p4930_p3)
}
 0x518   :  { %3868 = dma.vmem_to_hbm [thread:$0]  %s3866_s7, 128, %s6593_s5, [#allocation10]   ;;  %v3615_v2 = vmul.f32 %v4114_v34, %v3340_v58  ;;  %v4146_v60 = vunpack.c.l.bf16 %v4255_v4  ;;  %v3616_v11 = vmul.f32 %v4115_v23, %v3344_v13  ;;  %v4147_v17 = vunpack.c.h.bf16 %v4255_v4  ;;  %v4263_v37 = vld [vmem:[#allocation5 + $0x1c0] sm:$0xff]   ;;  %v3411_v44 = vpop.permute.xlu1 %3410  ;;  %v3478_v18 = vpop.permute.xlu0 %3477  ;;  %v6428_v9 = vld [vmem:[#allocation5 + $0x188] sm:$0xff]   ;;  %v4249_v62 = vld [vmem:[#allocation5 + $0x150] sm:$0xff]  }
 0x519   :  { %v3617_v48 = vmul.f32 %v4118_v39, %v3348_v35  ;;  %v4179_v55 = vunpack.c.h.bf16 %v4263_v37  ;;  %v4178_v20 = vunpack.c.l.bf16 %v4263_v37  ;;  %v4150_v38 = vunpack.c.l.bf16 %v6428_v9  ;;  %v4250_v56 = vld [vmem:[#allocation5 + $0x158] sm:$0xff]   ;;  %v4264_v54 = vld [vmem:[#allocation5 + $0x1c8] sm:$0xff]   ;;  %v4257_v4 = vld [vmem:[#allocation5 + $0x190] sm:$0xff]   ;;  %s4971_s5 = smov [#allocation8]  }
 0x51a   :  { %v3768_v5 = vadd.f32 %v3616_v11, %v3615_v2  ;;  %v3631_v12 = vmul.f32 %v4146_v60, %v3407_v27  ;;  %v3632_v10 = vmul.f32 %v4147_v17, %v3411_v44  ;;  %v4119_v29 = vunpack.c.h.bf16 %v6411_v25  ;;  %v6478_v60 = vld [vmem:[#allocation5 + $0x1d0] sm:$0xff]   ;;  %v6532_v0 = vld [vmem:[#allocation5 + $0x178] sm:$0xff]   ;;  %s3855_s1 = sshll.u32 %s4971_s5, 4  ;;  %s3856_s1 = int_to_ptr.vmem [resolvable:$true] %s3855_s1 }
 0x51b   :  { %v3648_v28 = vmul.f32 %v4179_v55, %v3478_v18  ;;  %v4122_v22 = vunpack.c.l.bf16 %v4249_v62  ;;  %v4123_v2 = vunpack.c.h.bf16 %v4249_v62  ;;  %v4126_v11 = vunpack.c.l.bf16 %v4250_v56  ;;  %v6483_v55 = vld [vmem:[#allocation5 + $0x1d8] sm:$0xff]   ;;  %s4934_s18 = scalar_lea.vmem %s3856_s1, 128  ;;  %p4939_p5 = scmp.lt.s32.totalorder %s3856_s1, %s3856_s1 }
 0x51c   :  { %v3769_v45 = vadd.f32 %v3768_v5, %v3617_v48  ;;  %v3789_v21 = vadd.f32 %v3632_v10, %v3631_v12  ;;  %v3474_v14 = vpop.permute.xlu1 %3473  ;;  %v3352_v47 = vpop.permute.xlu0 %3351  ;;  %v4151_v25 = vunpack.c.h.bf16 %v6428_v9  ;;  %v4182_v17 = vunpack.c.l.bf16 %v4264_v54  ;;  %v6481_v5 = vld [vmem:[#allocation5 + $0x198] sm:$0xff]   ;;  %p4935_p4 = scmp.ne.s32.totalorder %s3856_s1, %s4934_s18  ;;  %p4940_p6 = scmp.lt.s32.totalorder %s4934_s18, %s4934_s18 }
 0x51d   :  { %v3647_v42 = vmul.f32 %v4178_v20, %v3474_v14  ;;  %v3618_v34 = vmul.f32 %v4119_v29, %v3352_v47  ;;  %v4154_v37 = vunpack.c.l.bf16 %v4257_v4  ;;  %v4183_v48 = vunpack.c.h.bf16 %v4264_v54  ;;  %v6487_v20 = vld [vmem:[#allocation5 + $0x160] sm:$0xff]  }
 0x51e   :  { %v4155_v18 = vunpack.c.h.bf16 %v4257_v4  ;;  %v4186_v12 = vunpack.c.l.bf16 %v6478_v60  ;;  %v4131_v54 = vunpack.c.h.bf16 %v6487_v20  ;;  %p4941_p7 = por %p4940_p6, %p4939_p5 }
 0x51f   :  { %v6431_v59 = vadd.f32 %v3648_v28, %v3647_v42  ;;  %v3770_v35 = vadd.f32 %v3769_v45, %v3618_v34  ;;  %v4127_v45 = vunpack.c.h.bf16 %v4250_v56  ;;  %v4158_v28 = vunpack.c.l.bf16 %v6481_v5  ;;  %v6500_v34 = vld [vmem:[#allocation5 + $0x168] sm:$0xff]  }
 0x520   :  { %v3415_v41 = vpop.permute.xlu1 %3414  ;;  %v3419_v8 = vpop.permute.xlu0 %3418  ;;  %p4942_p8 = pnand %p4941_p7, %p4935_p4 }
 0x521   :  { %v3633_v31 = vmul.f32 %v4150_v38, %v3415_v41  ;;  %v6495_v38 = vld [vmem:[#allocation5 + $0x1a0] sm:$0xff]   ;;  %v4244_v41 = vld [vmem:[#allocation5 + $0x128] sm:$0xff]  }
 0x522   :  { %v4162_v4 = vunpack.c.l.bf16 %v6495_v38 }
 0x523   :  { %v6433_v16 = vadd.f32 %v3789_v21, %v3633_v31  ;;  %v6497_v31 = vld [vmem:[#allocation5 + $0x1e0] sm:$0xff]  }
 0x524   :  { %v3482_v61 = vpop.permute.xlu1 %3481  ;;  %v6435_v46 = vpop.permute.xlu0 %3485 }
 0x525   :  { %v3649_v62 = vmul.f32 %v4182_v17, %v3482_v61  ;;  %v6508_v61 = vld [vmem:[#allocation5 + $0x1a8] sm:$0xff]   ;;  %v4134_v17 = vunpack.c.l.bf16 %v6500_v34 }
 0x528   :  { %v3356_v49 = vpop.permute.xlu1 %3355  ;;  %v3360_v3 = vpop.permute.xlu0 %3359 }
 0x529   :  { %v3619_v23 = vmul.f32 %v4122_v22, %v3356_v49  ;;  %v3620_v9 = vmul.f32 %v4123_v2, %v3360_v3  ;;  %v3634_v49 = vmul.f32 %v4151_v25, %v3419_v8  ;;  %v4190_v22 = vunpack.c.l.bf16 %v6483_v55  ;;  %v6517_v8 = vld [vmem:[#allocation5 + $0x1e8] sm:$0xff]   ;;  %v4253_v3 = vld [vmem:[#allocation5 + $0x170] sm:$0xff]  }
 0x52b   :  { %v3771_v44 = vadd.f32 %v3770_v35, %v3619_v23  ;;  %v3791_v23 = vadd.f32 %v6433_v16, %v3634_v49  ;;  %v4102_v35 = vunpack.c.l.bf16 %v4244_v41  ;;  %v4135_v49 = vunpack.c.h.bf16 %v6500_v34 }
 0x52c   :  { %v3423_v30 = vpop.permute.xlu1 %3422  ;;  %v6437_v7 = vpop.permute.xlu0 %3426 }
 0x52d   :  { %v3635_v29 = vmul.f32 %v4154_v37, %v3423_v30  ;;  %v3772_v56 = vadd.f32 %v3771_v44, %v3620_v9  ;;  %v4245_v30 = vld [vmem:[#allocation5 + $0x130] sm:$0xff]   ;;  %v4163_v37 = vunpack.c.h.bf16 %v6495_v38  ;;  %v4103_v44 = vunpack.c.h.bf16 %v4244_v41 }
 0x52e   :  { %v3650_v38 = vmul.f32 %v4183_v48, %v6435_v46  ;;  %v3636_v41 = vmul.f32 %v4155_v18, %v6437_v7  ;;  %v4107_v48 = vunpack.c.h.bf16 %v4245_v30 }
 0x52f   :  { %v3792_v16 = vadd.f32 %v3791_v23, %v3635_v29  ;;  %v6528_v23 = vld [vmem:[#allocation5 + $0x1b0] sm:$0xff]  }
 0x530   :  { %v6439_v52 = vpop.permute.xlu1 %3489  ;;  %v6441_v51 = vpop.permute.xlu0 %3493 }
 0x531   :  { %v3793_v7 = vadd.f32 %v3792_v16, %v3636_v41 }
 0x534   :  { %v3364_v63 = vpop.permute.xlu1 %3363  ;;  %v6443_v36 = vpop.permute.xlu0 %3367 }
 0x535   :  { %v3621_v47 = vmul.f32 %v4126_v11, %v3364_v63  ;;  %v4130_v63 = vunpack.c.l.bf16 %v6487_v20  ;;  %v3811_v20 = vadd.f32 %v6431_v59, %v3649_v62  ;;  %v3622_v42 = vmul.f32 %v4127_v45, %v6443_v36 }
 0x536   :  { %v3651_v59 = vmul.f32 %v4186_v12, %v6439_v52  ;;  %v4138_v45 = vunpack.c.l.bf16 %v4253_v3  ;;  %v4167_v52 = vunpack.c.h.bf16 %v6508_v61  ;;  %v4139_v12 = vunpack.c.h.bf16 %v4253_v3 }
 0x537   :  { %v3773_v25 = vadd.f32 %v3772_v56, %v3621_v47  ;;  %v4166_v47 = vunpack.c.l.bf16 %v6508_v61  ;;  %v4106_v56 = vunpack.c.l.bf16 %v4245_v30  ;;  %v3812_v46 = vadd.f32 %v3811_v20, %v3650_v38 }
 0x538   :  { %v6445_v33 = vpop.permute.xlu1 %3430  ;;  %v6447_v50 = vpop.permute.xlu0 %3434  ;;  %v6688_v30 = vunpack.c.h.bf16 %v6481_v5 }
 0x539   :  { %v3637_v62 = vmul.f32 %v4158_v28, %v6445_v33  ;;  %v3774_v9 = vadd.f32 %v3773_v25, %v3622_v42  ;;  %v4170_v28 = vunpack.c.l.bf16 %v6528_v23  ;;  %v3813_v42 = vadd.f32 %v3812_v46, %v3651_v59 }
 0x53b   :  { %v3794_v25 = vadd.f32 %v3793_v7, %v3637_v62  ;;  %v6690_v62 = vunpack.c.l.bf16 %v6497_v31  ;;  %v4262_v7 = vld [vmem:[#allocation5 + $0x1b8] sm:$0xff]  }
 0x53c   :  { %v6449_v40 = vpop.permute.xlu1 %3497  ;;  %v6451_v24 = vpop.permute.xlu0 %3501 }
 0x53d   :  { %v3653_v16 = vmul.f32 %v4190_v22, %v6449_v40 }
 0x540   :  { %v6453_v15 = vpop.permute.xlu1 %3371  ;;  %v6455_v53 = vpop.permute.xlu0 %3375 }
 0x541   :  { %v3623_v10 = vmul.f32 %v4130_v63, %v6453_v15  ;;  %v4246_v63 = vld [vmem:[#allocation5 + $0x138] sm:$0xff]  }
 0x543   :  { %v3775_v33 = vadd.f32 %v3774_v9, %v3623_v10 }
 0x544   :  { %v6457_v57 = vpop.permute.xlu1 %3438  ;;  %v6459_v1 = vpop.permute.xlu0 %3312 }
 0x545   :  { %v3609_v36 = vmul.f32 %v4102_v35, %v6459_v1  ;;  %v4110_v35 = vunpack.c.l.bf16 %v4246_v63  ;;  %v3639_v9 = vmul.f32 %v4162_v4, %v6457_v57 }
 0x547   :  { %v3756_v20 = vadd.f32 %v6413_v6, %v3609_v36 }
 0x548   :  { %v6461_v58 = vpop.permute.xlu1 %3505  ;;  %v6463_v19 = vpop.permute.xlu0 %3379 }
 0x549   :  { %v3625_v61 = vmul.f32 %v4134_v17, %v6463_v19 }
 0x54c   :  { %v6465_v26 = vpop.permute.xlu1 %3442  ;;  %v6467_v43 = vpop.permute.xlu0 %3316 }
 0x54d   :  { %v3610_v18 = vmul.f32 %v4103_v44, %v6467_v43  ;;  %v6687_v43 = vunpack.c.h.bf16 %v6478_v60  ;;  %v3638_v44 = vmul.f32 %v6688_v30, %v6447_v50  ;;  %v4270_v30 = vld [vmem:[#allocation5 + $0x1f8] sm:$0xff]  }
 0x54f   :  { %v3652_v3 = vmul.f32 %v6687_v43, %v6441_v51  ;;  %v3795_v17 = vadd.f32 %v3794_v25, %v3638_v44  ;;  %v4111_v51 = vunpack.c.h.bf16 %v4246_v63  ;;  %v6693_v25 = vunpack.c.l.bf16 %v6517_v8 }
 0x550   :  { %v6470_v32 = vpop.permute.xlu1 %3509  ;;  %v6472_v27 = vpop.permute.xlu0 %3383 }
 0x551   :  { %v3626_v6 = vmul.f32 %v4135_v49, %v6472_v27  ;;  %v3814_v19 = vadd.f32 %v3813_v42, %v3652_v3  ;;  %v3796_v22 = vadd.f32 %v3795_v17, %v3639_v9  ;;  %v4143_v49 = vunpack.c.h.bf16 %v6532_v0 }
 0x553   :  { %v3815_v40 = vadd.f32 %v3814_v19, %v3653_v16 }
 0x554   :  { %v6474_v39 = vpop.permute.xlu1 %3446  ;;  %v6476_v13 = vpop.permute.xlu0 %3320 }
 0x555   :  { %v3611_v10 = vmul.f32 %v4106_v56, %v6476_v13  ;;  %v3640_v13 = vmul.f32 %v4163_v37, %v6465_v26  ;;  %v3641_v57 = vmul.f32 %v4166_v47, %v6474_v39  ;;  %v6689_v26 = vunpack.c.h.bf16 %v6483_v55 }
 0x556   :  { %v6691_v55 = vunpack.c.h.bf16 %v6497_v31 }
 0x557   :  { %v3654_v37 = vmul.f32 %v6689_v26, %v6451_v24  ;;  %v3797_v36 = vadd.f32 %v3796_v22, %v3640_v13  ;;  %v4206_v13 = vunpack.c.l.bf16 %v4270_v30 }
 0x558   :  { %v6489_v21 = vpop.permute.xlu1 %3513  ;;  %v6491_v14 = vpop.permute.xlu0 %3387  ;;  %v3656_v24 = vmul.f32 %v6691_v55, %v6470_v32 }
 0x559   :  { %6685 = vst [vmem:[#allocation22_spill] sm:$0xff] %v6489_v21  ;;  %v3624_v21 = vmul.f32 %v4131_v54, %v6455_v53  ;;  %v3757_v53 = vadd.f32 %v3756_v20, %v3610_v18  ;;  %v3627_v50 = vmul.f32 %v4138_v45, %v6491_v14  ;;  %v3655_v14 = vmul.f32 %v6690_v62, %v6461_v58  ;;  %v4269_v45 = vld [vmem:[#allocation5 + $0x1f0] sm:$0xff]  }
 0x55b   :  { %v3776_v38 = vadd.f32 %v3775_v33, %v3624_v21  ;;  %v3758_v59 = vadd.f32 %v3757_v53, %v3611_v10  ;;  %v4171_v21 = vunpack.c.h.bf16 %v6528_v23  ;;  %v4199_v33 = vunpack.c.h.bf16 %v6517_v8 }
 0x55c   :  { %v6510_v2 = vpop.permute.xlu1 %3450  ;;  %v3325_v11 = vpop.permute.xlu0 %3324  ;;  %v4174_v10 = vunpack.c.l.bf16 %v4262_v7 }
 0x55d   :  { %v3612_v54 = vmul.f32 %v4107_v48, %v3325_v11  ;;  %v3777_v41 = vadd.f32 %v3776_v38, %v3625_v61  ;;  %v3798_v48 = vadd.f32 %v3797_v36, %v3641_v57 }
 0x55f   :  { %v3778_v27 = vadd.f32 %v3777_v41, %v3626_v6  ;;  %v3759_v4 = vadd.f32 %v3758_v59, %v3612_v54  ;;  %v4175_v6 = vunpack.c.h.bf16 %v4262_v7 }
 0x560   :  { %v6526_v29 = vpop.permute.xlu1 %3517  ;;  %v3392_v34 = vpop.permute.xlu0 %3391  ;;  %v6692_v42 = vld [vmem:[#allocation22_spill] sm:$0xff] }
 0x561   :  { %6686 = vst [vmem:[#allocation32_spill] sm:$0xff] %v6526_v29  ;;  %v4142_v29 = vunpack.c.l.bf16 %v6532_v0  ;;  %v3628_v11 = vmul.f32 %v4139_v12, %v3392_v34  ;;  %v3779_v23 = vadd.f32 %v3778_v27, %v3627_v50  ;;  %v3816_v0 = vadd.f32 %v3815_v40, %v3654_v37 }
 0x562   :  { %v4202_v12 = vunpack.c.l.bf16 %v4269_v45 }
 0x563   :  { %v3780_v58 = vadd.f32 %v3779_v23, %v3628_v11  ;;  %v4207_v11 = vunpack.c.h.bf16 %v4270_v30 }
 0x564   :  { %v3455_v1 = vpop.permute.xlu1 %3454  ;;  %v3329_v15 = vpop.permute.xlu0 %3328 }
 0x565   :  { %v3613_v5 = vmul.f32 %v4110_v35, %v3329_v15  ;;  %v3642_v15 = vmul.f32 %v4167_v52, %v6510_v2  ;;  %v3643_v18 = vmul.f32 %v4170_v28, %v3455_v1  ;;  %v3817_v52 = vadd.f32 %v3816_v0, %v3655_v14 }
 0x566   :  { %v3657_v35 = vmul.f32 %v6693_v25, %v6692_v42  ;;  %v4203_v28 = vunpack.c.h.bf16 %v4269_v45 }
 0x567   :  { %v3760_v63 = vadd.f32 %v3759_v4, %v3613_v5  ;;  %v3818_v44 = vadd.f32 %v3817_v52, %v3656_v24 }
 0x568   :  { %v3522_v56 = vpop.permute.xlu1 %3521  ;;  %v3396_v60 = vpop.permute.xlu0 %3395  ;;  %v6694_v16 = vld [vmem:[#allocation32_spill] sm:$0xff] }
 0x569   :  { %v3629_v46 = vmul.f32 %v4142_v29, %v3396_v60  ;;  %v3799_v29 = vadd.f32 %v3798_v48, %v3642_v15  ;;  %v3658_v9 = vmul.f32 %v4199_v33, %v6694_v16  ;;  %v3819_v54 = vadd.f32 %v3818_v44, %v3657_v35 }
 0x56a   :  { %v3659_v8 = vmul.f32 %v4202_v12, %v3522_v56 }
 0x56b   :  { %v3781_v43 = vadd.f32 %v3780_v58, %v3629_v46  ;;  %v3800_v1 = vadd.f32 %v3799_v29, %v3643_v18  ;;  %v3820_v50 = vadd.f32 %v3819_v54, %v3658_v9 }
 0x56c   :  { %v3459_v39 = vpop.permute.xlu1 %3458  ;;  %v3333_v47 = vpop.permute.xlu0 %3332 }
 0x56d   :  { %v3614_v34 = vmul.f32 %v4111_v51, %v3333_v47  ;;  %v3644_v3 = vmul.f32 %v4171_v21, %v3459_v39  ;;  %v3821_v27 = vadd.f32 %v3820_v50, %v3659_v8  ;;  %v6695_v47 = vld [vmem:[#allocation33_spill] sm:$0xff] }
 0x56f   :  { %v3761_v2 = vadd.f32 %v3760_v63, %v3614_v34  ;;  %v3801_v60 = vadd.f32 %v3800_v1, %v3644_v3 }
 0x570   :  { %v3526_v20 = vpop.permute.xlu1 %3525  ;;  %v3400_v61 = vpop.permute.xlu0 %3399 }
 0x571   :  { %v3762_v31 = vrot.slane %v3761_v2, 4  ;;  %v3630_v32 = vmul.f32 %v4143_v49, %v3400_v61  ;;  %v3660_v5 = vmul.f32 %v4203_v28, %v3526_v20 }
 0x573   :  { %v3763_v38 = vadd.f32 %v3762_v31, %v3761_v2  ;;  %v3782_v53 = vadd.f32 %v3781_v43, %v3630_v32  ;;  %v3822_v62 = vadd.f32 %v3821_v27, %v3660_v5 }
 0x574   :  { %v3463_v19 = vpop.permute.xlu1 %3462  ;;  %v3467_v17 = vpop.permute.xlu0 %3466 }
 0x575   :  { %v3764_v51 = vrot.slane %v3763_v38, 2  ;;  %v3783_v41 = vrot.slane %v3782_v53, 4  ;;  %v3645_v59 = vmul.f32 %v4174_v10, %v3463_v19  ;;  %v3646_v21 = vmul.f32 %v4175_v6, %v3467_v17 }
 0x577   :  { %v3765_v40 = vadd.f32 %v3764_v51, %v3763_v38  ;;  %v3784_v22 = vadd.f32 %v3783_v41, %v3782_v53  ;;  %v3802_v57 = vadd.f32 %v3801_v60, %v3645_v59 }
 0x578   :  { %v3530_v4 = vpop.permute.xlu1 %3529 }
 0x579   :  { %v3766_v49 = vrot.slane %v3765_v40, 1  ;;  %v3785_v26 = vrot.slane %v3784_v22, 2  ;;  %v3803_v37 = vadd.f32 %v3802_v57, %v3646_v21  ;;  %v3661_v56 = vmul.f32 %v4206_v13, %v3530_v4 }
 0x57b   :  { %v3767_v14 = vadd.f32 %v3766_v49, %v3765_v40  ;;  %v3786_v36 = vadd.f32 %v3785_v26, %v3784_v22  ;;  %v3804_v15 = vrot.slane %v3803_v37, 4  ;;  %v3823_v45 = vadd.f32 %v3822_v62, %v3661_v56 }
 0x57c   :  { %v3534_v39 = vpop.permute.xlu1 %3533 }
 0x57d   :  { %v3842_v23 = vsel %vm2718_vm2, %v3767_v14, %v6695_v47  ;;  %v3787_v63 = vrot.slane %v3786_v36, 1  ;;  %v3805_v46 = vadd.f32 %v3804_v15, %v3803_v37  ;;  %v3662_v34 = vmul.f32 %v4207_v11, %v3534_v39 }
 0x57f   :  { %v3788_v7 = vadd.f32 %v3787_v63, %v3786_v36  ;;  %v3806_v0 = vrot.slane %v3805_v46, 2  ;;  %v3824_v55 = vadd.f32 %v3823_v45, %v3662_v34 }
 0x581   :  { %v3807_v24 = vadd.f32 %v3806_v0, %v3805_v46  ;;  %v3825_v48 = vrot.slane %v3824_v55, 4  ;;  %v3843_v33 = vsel %vm2720_vm3, %v3788_v7, %v3842_v23 }
 0x583   :  { %v3808_v58 = vrot.slane %v3807_v24, 1  ;;  %v3826_v18 = vadd.f32 %v3825_v48, %v3824_v55 }
 0x585   :  { %v3809_v12 = vadd.f32 %v3808_v58, %v3807_v24  ;;  %v3827_v2 = vrot.slane %v3826_v18, 2 }
 0x587   :  { %v3828_v52 = vadd.f32 %v3827_v2, %v3826_v18  ;;  %v3844_v42 = vsel %vm2722_vm4, %v3809_v12, %v3843_v33 }
 0x589   :  { %v3829_v25 = vrot.slane %v3828_v52, 1 }
 0x58b   :  { %v3830_v35 = vadd.f32 %v3829_v25, %v3828_v52 }
 0x58d   :  { %v3845_v29 = vsel %vm2724_vm5, %v3830_v35, %v3844_v42 }
 0x58e   :  { %3848 = vst [vmem:[#allocation8] sm:$0xff] %v3845_v29 }
 0x58f   :  { %4945 = shalt.err (!%p4942_p8)
}
 0x590   :  { %s4946_s21 = scalar_lea.hbm %s6592_s4, 128 }
 0x591   :  { %p4947_p9 = scmp.ne.s32.totalorder %s6592_s4, %s4946_s21  ;;  %p4950_p10 = scmp.lt.u32.totalorder %s4946_s21, %s6592_s4 }
 0x593   :  { %p4952_p11 = pnand %p4950_p10, %p4947_p9 }
 0x595   :  { %4955 = shalt.err (!%p4952_p11)
}
 0x596   :  { %3858 = dma.vmem_to_hbm [thread:$0]  %s3856_s1, 128, %s6592_s4, [#allocation4]  }
 0x597   :  { %4960 = dma.done.wait [#allocation4], 128  }
 0x598   :  { %4961 = vsyncadd [#allocation4], 4294967168 }
 0x599   :  { %4962 = dma.done.wait [#allocation10], 128  }
 0x59a   :  { %4963 = vsyncadd [#allocation10], 4294967168 }
 0x59b   :  { %3875 = vsyncpa [#allocation3], 1 }
 0x59c   :  { %3876 = vsyncpa [#allocation6], 1 }
 0x59d   :  { %3877 = vsyncpa [#allocation4], 1 }
 0x59e   :  { %3878 = vsyncpa [#allocation10], 1 }

// kernel: tpu_custom_call.1
= control target key start
LH: loop header
LB: loop body
LE: loop exit
PB: predicated region body
PF: predicated region fallthrough
CT: control target
= control target key end

     0   :  { %11 = vsyncpa [#allocation3], 0  ;;  %s6588_s0 = inlined_call_operand.hbm [shape: f32[8,128], index: 0, kind: input, shape index: {}]   ;;  %s6589_s1 = inlined_call_operand.hbm [shape: bf16[8,128,128], index: 1, kind: input, shape index: {}]   ;;  %s6590_s2 = inlined_call_operand.hbm [shape: bf16[128,128], index: 2, kind: input, shape index: {}]   ;;  %s6591_s3 = inlined_call_operand.vmem [shape: f32[1,128], index: 3, kind: input, shape index: {}]   ;;  %s6592_s4 = inlined_call_operand.hbm [shape: f32[8,128], index: 4, kind: output, shape index: {0}]   ;;  %s6593_s5 = inlined_call_operand.hbm [shape: f32[8,128], index: 5, kind: output, shape index: {1}]  }
   0x1   :  { %12 = vsyncpa [#allocation6], 0 }
   0x2   :  { %13 = vsyncpa [#allocation4], 0 }
   0x3   :  { %14 = vsyncpa [#allocation10], 0  ;;  %s4964_s18 = smov [#allocation5]   ;;  %s4846_s22 = scalar_lea.hbm %s6589_s1, 8192 }
   0x4   :  { %s30_s19 = sshll.u32 %s4964_s18, 4  ;;  %p4847_p0 = scmp.ne.s32.totalorder %s6589_s1, %s4846_s22  ;;  %s31_s19 = int_to_ptr.vmem [resolvable:$true] %s30_s19 }
   0x5   :  { %p4850_p1 = scmp.lt.u32.totalorder %s4846_s22, %s6589_s1 }
   0x7   :  { %p4852_p2 = pnand %p4850_p1, %p4847_p0 }
   0x9   :  { %4855 = shalt.err (!%p4852_p2)
}
   0xa   :  { %s4856_s27 = scalar_lea.vmem %s31_s19, 8192  ;;  %p4861_p4 = scmp.lt.s32.totalorder %s31_s19, %s31_s19 }
   0xb   :  { %p4857_p3 = scmp.ne.s32.totalorder %s31_s19, %s4856_s27  ;;  %p4862_p5 = scmp.lt.s32.totalorder %s4856_s27, %s4856_s27 }
   0xd   :  { %p4863_p6 = por %p4862_p5, %p4861_p4 }
   0xf   :  { %p4864_p7 = pnand %p4863_p6, %p4857_p3 }
  0x11   :  { %4867 = shalt.err (!%p4864_p7)
}
  0x12   :  { %s4965_s28 = smov 64   ;;  %s4966_s29 = smov 4  }
  0x13   :  { %36 = dma.hbm_to_vmem [thread:$0]  %s6589_s1, 8192, %s31_s19, [#allocation6], %s4965_s28, %s4965_s28, %s4966_s29  }
  0x14   :  { %s4967_s7 = smov [#allocation2]   ;;  %s4968_s9 = smov [#allocation7]  }
  0x15   :  { %s21_s8 = sshll.u32 %s4967_s7, 4  ;;  %s42_s10 = sshll.u32 %s4968_s9, 4  ;;  %s22_s8 = int_to_ptr.vmem [resolvable:$true] %s21_s8  ;;  %s43_s10 = int_to_ptr.vmem [resolvable:$true] %s42_s10 }
  0x16   :  { %s4868_s13 = scalar_lea.hbm %s6588_s0, 128 }
  0x17   :  { %p4869_p8 = scmp.ne.s32.totalorder %s6588_s0, %s4868_s13  ;;  %p4872_p9 = scmp.lt.u32.totalorder %s4868_s13, %s6588_s0 }
  0x19   :  { %p4874_p10 = pnand %p4872_p9, %p4869_p8 }
  0x1b   :  { %4877 = shalt.err (!%p4874_p10)
}
  0x1c   :  { %s4878_s1 = scalar_lea.vmem %s22_s8, 128  ;;  %p4883_p12 = scmp.lt.s32.totalorder %s22_s8, %s22_s8 }
  0x1d   :  { %p4879_p11 = scmp.ne.s32.totalorder %s22_s8, %s4878_s1  ;;  %p4884_p13 = scmp.lt.s32.totalorder %s4878_s1, %s4878_s1 }
  0x1f   :  { %p4885_p0 = por %p4884_p13, %p4883_p12 }
  0x21   :  { %p4886_p1 = pnand %p4885_p0, %p4879_p11 }
  0x23   :  { %4889 = shalt.err (!%p4886_p1)
}
  0x24   :  { %24 = dma.hbm_to_vmem [thread:$0]  %s6588_s0, 128, %s22_s8, [#allocation3]  }
  0x25   :  { %s4890_s22 = scalar_lea.hbm %s6590_s2, 1024 }
  0x26   :  { %p4891_p2 = scmp.ne.s32.totalorder %s6590_s2, %s4890_s22  ;;  %p4894_p3 = scmp.lt.u32.totalorder %s4890_s22, %s6590_s2 }
  0x28   :  { %p4896_p4 = pnand %p4894_p3, %p4891_p2 }
  0x2a   :  { %4899 = shalt.err (!%p4896_p4)
}
  0x2b   :  { %s4900_s27 = scalar_lea.vmem %s43_s10, 1024  ;;  %p4905_p6 = scmp.lt.s32.totalorder %s43_s10, %s43_s10 }
  0x2c   :  { %p4901_p5 = scmp.ne.s32.totalorder %s43_s10, %s4900_s27  ;;  %p4906_p7 = scmp.lt.s32.totalorder %s4900_s27, %s4900_s27 }
  0x2e   :  { %p4907_p8 = por %p4906_p7, %p4905_p6 }
  0x30   :  { %p4908_p9 = pnand %p4907_p8, %p4901_p5 }
  0x32   :  { %4911 = shalt.err (!%p4908_p9)
}
  0x33   :  { %48 = dma.hbm_to_vmem [thread:$0]  %s6590_s2, 1024, %s43_s10, [#allocation6], %s4965_s28, %s4965_s28, %s4966_s29  }
  0x34   :  { %4956 = dma.done.wait [#allocation3], 128  }
  0x35   :  { %4957 = vsyncadd [#allocation3], 4294967168 }
  0x36   :  { %4958 = dma.done.wait [#allocation6], 9216  }
  0x37   :  { %4959 = vsyncadd [#allocation6], 4294958080  ;;  %v4512_v0 = vld [vmem:[#allocation7] sm:$0xff]   ;;  %v4513_v1 = vld [vmem:[#allocation7 + $0x8] sm:$0xff]   ;;  %vm2059_vm0 = vcmask 130112   ;;  %vm2066_vm1 = vcmask 195712  }
  0x38   :  { %4343 = vmatprep.subr.bf16.mxu0 %v4512_v0  ;;  %4487 = vmatprep.subr.bf16.mxu1 %v4512_v0  ;;  %v4514_v2 = vld [vmem:[#allocation7 + $0x10] sm:$0xff]   ;;  %v4515_v3 = vld [vmem:[#allocation7 + $0x18] sm:$0xff]   ;;  %v4520_v4 = vld [vmem:[#allocation5] sm:$0xff]   ;;  %vm2073_vm2 = vcmask 261312   ;;  %vm2080_vm3 = vcmask 326912   ;;  %vm2087_vm4 = vcmask 392512  }
  0x39   :  { %4344 = vmatpush3.bf16.msra.mxu0 %v4512_v0  ;;  %4495 = vmatpush3.bf16.msra.mxu1 %v4512_v0  ;;  %v4521_v5 = vld [vmem:[#allocation5 + $0x100] sm:$0xff]   ;;  %v4517_v7 = vld [vmem:[#allocation7 + $0x28] sm:$0xff]   ;;  %v4518_v8 = vld [vmem:[#allocation7 + $0x30] sm:$0xff]   ;;  %vm2094_vm5 = vcmask 458112   ;;  %vm2101_vm6 = vcmask 523712   ;;  %vm2108_vm7 = vcmask 589312  }
  0x3a   :  { %4345 = vmatprep.subr.bf16.mxu0 %v4513_v1  ;;  %4488 = vmatprep.subr.bf16.mxu1 %v4513_v1  ;;  %v4516_v6 = vld [vmem:[#allocation7 + $0x20] sm:$0xff]   ;;  %v4519_v9 = vld [vmem:[#allocation7 + $0x38] sm:$0xff]   ;;  %v4522_v10 = vld [vmem:[#allocation5 + $0x8] sm:$0xff]   ;;  %vm2115_vm8 = vcmask 654912   ;;  %vm2122_vm9 = vcmask 720512   ;;  %vm2129_vm10 = vcmask 786112  }
  0x3b   :  { %4359 = vmatprep.mubr.bf16.mxu0 %v4520_v4  ;;  %4423 = vmatprep.mubr.bf16.mxu1 %v4521_v5  ;;  %v4523_v11 = vld [vmem:[#allocation5 + $0x108] sm:$0xff]   ;;  %v4524_v12 = vld [vmem:[#allocation5 + $0x10] sm:$0xff]   ;;  %v4525_v14 = vld [vmem:[#allocation5 + $0x18] sm:$0xff]   ;;  %vm2136_vm11 = vcmask 851712   ;;  %vm2143_vm12 = vcmask 917312   ;;  %vm2150_vm13 = vcmask 982912  }
  0x3c   :  { %v4526_v13 = vld [vmem:[#allocation5 + $0x110] sm:$0xff]   ;;  %v4527_v15 = vld [vmem:[#allocation5 + $0x118] sm:$0xff]   ;;  %v4528_v16 = vld [vmem:[#allocation5 + $0x20] sm:$0xff]   ;;  %vm2157_vm14 = vcmask 1048512   ;;  %vm2712_vm15 = vcmask 1041409  }
  0x3d   :  { %4346 = vmatpush3.bf16.msra.mxu0 %v4513_v1  ;;  %4496 = vmatpush3.bf16.msra.mxu1 %v4513_v1  ;;  %v4530_v17 = vld [vmem:[#allocation5 + $0x120] sm:$0xff]   ;;  %v4529_v18 = vld [vmem:[#allocation5 + $0x28] sm:$0xff]   ;;  %v4532_v20 = vld [vmem:[#allocation5 + $0x30] sm:$0xff]  }
  0x3e   :  { %4347 = vmatprep.subr.bf16.mxu0 %v4514_v2  ;;  %4489 = vmatprep.subr.bf16.mxu1 %v4514_v2  ;;  %v4531_v19 = vld [vmem:[#allocation5 + $0x128] sm:$0xff]   ;;  %v4534_v21 = vld [vmem:[#allocation5 + $0x130] sm:$0xff]   ;;  %v4533_v22 = vld [vmem:[#allocation5 + $0x38] sm:$0xff]  }
  0x3f   :  { %v4535_v23 = vld [vmem:[#allocation5 + $0x138] sm:$0xff]   ;;  %v4536_v24 = vld [vmem:[#allocation5 + $0x140] sm:$0xff]   ;;  %v4537_v26 = vld [vmem:[#allocation5 + $0x148] sm:$0xff]  }
  0x40   :  { %v4538_v25 = vld [vmem:[#allocation5 + $0x40] sm:$0xff]   ;;  %v4539_v27 = vld [vmem:[#allocation5 + $0x48] sm:$0xff]   ;;  %v4540_v28 = vld [vmem:[#allocation5 + $0x150] sm:$0xff]  }
  0x41   :  { %4348 = vmatpush3.bf16.msra.mxu0 %v4514_v2  ;;  %4497 = vmatpush3.bf16.msra.mxu1 %v4514_v2  ;;  %v4542_v29 = vld [vmem:[#allocation5 + $0x50] sm:$0xff]   ;;  %v4541_v30 = vld [vmem:[#allocation5 + $0x158] sm:$0xff]   ;;  %v4544_v32 = vld [vmem:[#allocation5 + $0x160] sm:$0xff]  }
  0x42   :  { %4349 = vmatprep.subr.bf16.mxu0 %v4515_v3  ;;  %4490 = vmatprep.subr.bf16.mxu1 %v4515_v3  ;;  %v4543_v31 = vld [vmem:[#allocation5 + $0x58] sm:$0xff]   ;;  %v4546_v33 = vld [vmem:[#allocation5 + $0x60] sm:$0xff]   ;;  %v4545_v34 = vld [vmem:[#allocation5 + $0x168] sm:$0xff]  }
  0x43   :  { %v4547_v35 = vld [vmem:[#allocation5 + $0x68] sm:$0xff]   ;;  %v4548_v36 = vld [vmem:[#allocation5 + $0x170] sm:$0xff]   ;;  %v4549_v38 = vld [vmem:[#allocation5 + $0x178] sm:$0xff]  }
  0x44   :  { %v4550_v37 = vld [vmem:[#allocation5 + $0x70] sm:$0xff]   ;;  %v4551_v39 = vld [vmem:[#allocation5 + $0x78] sm:$0xff]   ;;  %v4552_v40 = vld [vmem:[#allocation5 + $0x180] sm:$0xff]  }
  0x45   :  { %4350 = vmatpush3.bf16.msra.mxu0 %v4515_v3  ;;  %4498 = vmatpush3.bf16.msra.mxu1 %v4515_v3  ;;  %v4554_v41 = vld [vmem:[#allocation5 + $0x80] sm:$0xff]   ;;  %v4553_v42 = vld [vmem:[#allocation5 + $0x188] sm:$0xff]   ;;  %v4556_v44 = vld [vmem:[#allocation5 + $0x90] sm:$0xff]  }
  0x46   :  { %4351 = vmatprep.subr.bf16.mxu0 %v4516_v6  ;;  %4491 = vmatprep.subr.bf16.mxu1 %v4516_v6  ;;  %v4555_v43 = vld [vmem:[#allocation5 + $0x88] sm:$0xff]   ;;  %v4558_v45 = vld [vmem:[#allocation5 + $0x190] sm:$0xff]   ;;  %v4557_v46 = vld [vmem:[#allocation5 + $0x98] sm:$0xff]  }
  0x47   :  { %v4559_v47 = vld [vmem:[#allocation5 + $0x198] sm:$0xff]   ;;  %v4560_v48 = vld [vmem:[#allocation5 + $0xa0] sm:$0xff]   ;;  %v4561_v50 = vld [vmem:[#allocation5 + $0xa8] sm:$0xff]  }
  0x48   :  { %v4562_v49 = vld [vmem:[#allocation5 + $0x1a0] sm:$0xff]   ;;  %v4563_v51 = vld [vmem:[#allocation5 + $0x1a8] sm:$0xff]   ;;  %v4564_v52 = vld [vmem:[#allocation5 + $0x1b0] sm:$0xff]  }
  0x49   :  { %4352 = vmatpush3.bf16.msra.mxu0 %v4516_v6  ;;  %4499 = vmatpush3.bf16.msra.mxu1 %v4516_v6  ;;  %v4566_v53 = vld [vmem:[#allocation5 + $0xb0] sm:$0xff]   ;;  %v4565_v54 = vld [vmem:[#allocation5 + $0x1b8] sm:$0xff]   ;;  %v4568_v56 = vld [vmem:[#allocation5 + $0x1c0] sm:$0xff]  }
  0x4a   :  { %4353 = vmatprep.subr.bf16.mxu0 %v4517_v7  ;;  %4492 = vmatprep.subr.bf16.mxu1 %v4517_v7  ;;  %v4567_v55 = vld [vmem:[#allocation5 + $0xb8] sm:$0xff]   ;;  %v4570_v57 = vld [vmem:[#allocation5 + $0xc0] sm:$0xff]   ;;  %v4569_v58 = vld [vmem:[#allocation5 + $0x1c8] sm:$0xff]  }
  0x4b   :  { %v4571_v59 = vld [vmem:[#allocation5 + $0xc8] sm:$0xff]   ;;  %v4572_v60 = vld [vmem:[#allocation5 + $0x1d0] sm:$0xff]   ;;  %v4573_v62 = vld [vmem:[#allocation5 + $0x1d8] sm:$0xff]  }
  0x4c   :  { %v4574_v61 = vld [vmem:[#allocation5 + $0xd0] sm:$0xff]   ;;  %v4575_v63 = vld [vmem:[#allocation5 + $0xd8] sm:$0xff]   ;;  %v4577_v0 = vld [vmem:[#allocation5 + $0x1e0] sm:$0xff]  }
  0x4d   :  { %4354 = vmatpush3.bf16.msra.mxu0 %v4517_v7  ;;  %4500 = vmatpush3.bf16.msra.mxu1 %v4517_v7  ;;  %v4579_v1 = vld [vmem:[#allocation5 + $0xe0] sm:$0xff]   ;;  %v4578_v2 = vld [vmem:[#allocation5 + $0x1e8] sm:$0xff]   ;;  %v4581_v4 = vld [vmem:[#allocation5 + $0x1f0] sm:$0xff]  }
  0x4e   :  { %4355 = vmatprep.subr.bf16.mxu0 %v4518_v8  ;;  %4493 = vmatprep.subr.bf16.mxu1 %v4518_v8  ;;  %v4580_v3 = vld [vmem:[#allocation5 + $0xe8] sm:$0xff]   ;;  %v4583_v5 = vld [vmem:[#allocation5 + $0xf0] sm:$0xff]   ;;  %v4582_v6 = vld [vmem:[#allocation5 + $0x1f8] sm:$0xff]  }
  0x4f   :  { %v4584_v7 = vld [vmem:[#allocation5 + $0xf8] sm:$0xff]  }
  0x51   :  { %4356 = vmatpush3.bf16.msra.mxu0 %v4518_v8  ;;  %4501 = vmatpush3.bf16.msra.mxu1 %v4518_v8  ;;  %v4969_v8 = vmov 1966171168  }
  0x52   :  { %4357 = vmatprep.subr.bf16.mxu0 %v4519_v9  ;;  %4494 = vmatprep.subr.bf16.mxu1 %v4519_v9 }
  0x55   :  { %4358 = vmatpush3.bf16.msra.mxu0 %v4519_v9  ;;  %4502 = vmatpush3.bf16.msra.mxu1 %v4519_v9  ;;  %v65_v9 = vunpack.c.l.s4 %v4969_v8 }
  0x58   :  { %4360 = vmatmul.mubr.bf16.vlgmr.msra.gmra.mrb[0].mxu0 %v4522_v10  ;;  %4424 = vmatmul.mubr.bf16.vlgmr.msra.gmra.mrb[0].mxu1 %v4523_v11  ;;  %v6594_v10 = vlaneseq  ;;  %v66_v11 = vunpack.c.0.s8 %v65_v9 }
  0x59   :  { %4363 = vmatprep.mubr.bf16.mxu0 %v4524_v12  ;;  %4427 = vmatprep.mubr.bf16.mxu1 %v4526_v13  ;;  %v61_v13 = vld [vmem:[#allocation2] sm:$0xff] }
  0x5a   :  { %v5045_v12 = vshrl.u32 %v6594_v10, 7 }
  0x5c   :  { %6599 = vst [vmem:[#allocation15_spill] sm:$0xff] %v5045_v12 }
  0x60   :  { %4364 = vmatmul.mubr.bf16.gmra.mrb[4].mxu0 %v4525_v14  ;;  %4428 = vmatmul.mubr.bf16.gmra.mrb[4].mxu1 %v4527_v15  ;;  %v5048_v14 = vsub.s32 %v66_v11, %v5045_v12  ;;  %v63_v15 = vcombine.high %v61_v13, %v61_v13 }
  0x61   :  { %4367 = vmatprep.mubr.bf16.mxu0 %v4528_v16  ;;  %4431 = vmatprep.mubr.bf16.mxu1 %v4530_v17 }
  0x62   :  { %v5051_v16 = vrot.slane %v61_v13, %v5048_v14  ;;  %v5054_v17 = vrot.slane %v63_v15, %v5048_v14 }
  0x64   :  { %v79_v13 = vcombine.high %v5054_v17, %v5054_v17 }
  0x68   :  { %4368 = vmatmul.mubr.bf16.gmra.mrb[8].mxu0 %v4529_v18  ;;  %4432 = vmatmul.mubr.bf16.gmra.mrb[8].mxu1 %v4531_v19  ;;  %v5058_v18 = vrot.slane %v5051_v16, %v5048_v14  ;;  %v5061_v19 = vsub.s32 0, %v5045_v12 }
  0x69   :  { %4371 = vmatprep.mubr.bf16.mxu0 %v4532_v20  ;;  %4435 = vmatprep.mubr.bf16.mxu1 %v4534_v21  ;;  %v5065_v20 = vrot.slane %v5054_v17, %v5048_v14 }
  0x6a   :  { %6600 = vst [vmem:[#allocation16_spill] sm:$0xff] %v5061_v19  ;;  %v5069_v21 = vrot.slane %v5058_v18, %v5061_v19 }
  0x70   :  { %4372 = vmatmul.mubr.bf16.gmra.mrb[12].mxu0 %v4533_v22  ;;  %4436 = vmatmul.mubr.bf16.gmra.mrb[12].mxu1 %v4535_v23  ;;  %v5073_v22 = vrot.slane %v5065_v20, %v5061_v19 }
  0x71   :  { %4439 = vmatprep.mubr.bf16.mxu1 %v4536_v24  ;;  %4375 = vmatprep.mubr.bf16.mxu0 %v4538_v25 }
  0x78   :  { %4440 = vmatmul.mubr.bf16.gmra.mrb[16].mxu1 %v4537_v26  ;;  %4376 = vmatmul.mubr.bf16.gmra.mrb[16].mxu0 %v4539_v27 }
  0x79   :  { %4443 = vmatprep.mubr.bf16.mxu1 %v4540_v28  ;;  %4379 = vmatprep.mubr.bf16.mxu0 %v4542_v29 }
  0x80   :  { %4444 = vmatmul.mubr.bf16.gmra.mrb[20].mxu1 %v4541_v30  ;;  %4380 = vmatmul.mubr.bf16.gmra.mrb[20].mxu0 %v4543_v31 }
  0x81   :  { %4447 = vmatprep.mubr.bf16.mxu1 %v4544_v32  ;;  %4383 = vmatprep.mubr.bf16.mxu0 %v4546_v33 }
  0x88   :  { %4448 = vmatmul.mubr.bf16.gmra.mrb[24].mxu1 %v4545_v34  ;;  %4384 = vmatmul.mubr.bf16.gmra.mrb[24].mxu0 %v4547_v35 }
  0x89   :  { %4451 = vmatprep.mubr.bf16.mxu1 %v4548_v36  ;;  %4387 = vmatprep.mubr.bf16.mxu0 %v4550_v37 }
  0x90   :  { %4452 = vmatmul.mubr.bf16.gmra.mrb[28].mxu1 %v4549_v38  ;;  %4388 = vmatmul.mubr.bf16.gmra.mrb[28].mxu0 %v4551_v39 }
  0x91   :  { %4455 = vmatprep.mubr.bf16.mxu1 %v4552_v40  ;;  %4391 = vmatprep.mubr.bf16.mxu0 %v4554_v41 }
  0x98   :  { %4456 = vmatmul.mubr.bf16.gmra.mrb[32].mxu1 %v4553_v42  ;;  %4392 = vmatmul.mubr.bf16.gmra.mrb[32].mxu0 %v4555_v43 }
  0x99   :  { %4395 = vmatprep.mubr.bf16.mxu0 %v4556_v44  ;;  %4459 = vmatprep.mubr.bf16.mxu1 %v4558_v45 }
  0xa0   :  { %4396 = vmatmul.mubr.bf16.gmra.mrb[36].mxu0 %v4557_v46  ;;  %4460 = vmatmul.mubr.bf16.gmra.mrb[36].mxu1 %v4559_v47  ;;  %v5090_v47 = vld [vmem:[%s6591_s3] ss:$0 sm:$0xff] }
  0xa1   :  { %4399 = vmatprep.mubr.bf16.mxu0 %v4560_v48  ;;  %4463 = vmatprep.mubr.bf16.mxu1 %v4562_v49 }
  0xa8   :  { %4400 = vmatmul.mubr.bf16.gmra.mrb[40].mxu0 %v4561_v50  ;;  %4464 = vmatmul.mubr.bf16.gmra.mrb[40].mxu1 %v4563_v51 }
  0xa9   :  { %4467 = vmatprep.mubr.bf16.mxu1 %v4564_v52  ;;  %4403 = vmatprep.mubr.bf16.mxu0 %v4566_v53 }
  0xb0   :  { %4468 = vmatmul.mubr.bf16.gmra.mrb[44].mxu1 %v4565_v54  ;;  %4404 = vmatmul.mubr.bf16.gmra.mrb[44].mxu0 %v4567_v55 }
  0xb1   :  { %4471 = vmatprep.mubr.bf16.mxu1 %v4568_v56  ;;  %4407 = vmatprep.mubr.bf16.mxu0 %v4570_v57 }
  0xb8   :  { %4472 = vmatmul.mubr.bf16.gmra.mrb[48].mxu1 %v4569_v58  ;;  %4408 = vmatmul.mubr.bf16.gmra.mrb[48].mxu0 %v4571_v59 }
  0xb9   :  { %4475 = vmatprep.mubr.bf16.mxu1 %v4572_v60  ;;  %4411 = vmatprep.mubr.bf16.mxu0 %v4574_v61 }
  0xc0   :  { %4476 = vmatmul.mubr.bf16.gmra.mrb[52].mxu1 %v4573_v62  ;;  %4412 = vmatmul.mubr.bf16.gmra.mrb[52].mxu0 %v4575_v63 }
  0xc1   :  { %4479 = vmatprep.mubr.bf16.mxu1 %v4577_v0  ;;  %4415 = vmatprep.mubr.bf16.mxu0 %v4579_v1 }
  0xc8   :  { %4480 = vmatmul.mubr.bf16.gmra.mrb[56].mxu1 %v4578_v2  ;;  %4416 = vmatmul.mubr.bf16.gmra.mrb[56].mxu0 %v4580_v3 }
  0xc9   :  { %4483 = vmatprep.mubr.bf16.mxu1 %v4581_v4  ;;  %4419 = vmatprep.mubr.bf16.mxu0 %v4583_v5 }
  0xd0   :  { %4484 = vmatmul.mubr.bf16.gmra.mrb[60].mxu1 %v4582_v6  ;;  %4420 = vmatmul.mubr.bf16.gmra.mrb[60].mxu0 %v4584_v7 }
 0x12b   :  { %v4361_v23 = vpop.f32.mrb[0].mxu0  ;;  %v4425_v24 = vpop.f32.mrb[0].mxu1 }
 0x12c   :  { %v1276_v25 = vadd.f32 %v4361_v23, %v5069_v21  ;;  %v1340_v26 = vadd.f32 %v4425_v24, %v5073_v22  ;;  %v723_v27 = vpop.f32.mrb[1].mxu0  ;;  %v979_v28 = vpop.f32.mrb[1].mxu1 }
 0x12d   :  { %v1274_v29 = vadd.f32 %v5069_v21, %v723_v27  ;;  %v4362_v30 = vpop.f32.mrb[2].mxu0  ;;  %v4426_v31 = vpop.f32.mrb[2].mxu1  ;;  %v1338_v36 = vadd.f32 %v5073_v22, %v979_v28 }
 0x12e   :  { %4585 = vtanh.f32 %v1276_v25  ;;  %v1277_v32 = vadd.f32 %v4362_v30, %v5069_v21  ;;  %v726_v33 = vpop.f32.mrb[3].mxu0  ;;  %v982_v34 = vpop.f32.mrb[3].mxu1  ;;  %v1341_v35 = vadd.f32 %v4426_v31, %v5073_v22 }
 0x12f   :  { %4587 = vtanh.f32 %v1340_v26  ;;  %v1339_v39 = vadd.f32 %v5073_v22, %v982_v34  ;;  %v1275_v42 = vadd.f32 %v5069_v21, %v726_v33 }
 0x130   :  { %4589 = vtanh.f32 %v1274_v29 }
 0x131   :  { %4591 = vtanh.f32 %v1277_v32 }
 0x132   :  { %4593 = vtanh.f32 %v1341_v35 }
 0x133   :  { %v4365_v37 = vpop.f32.mrb[4].mxu0  ;;  %v4429_v38 = vpop.f32.mrb[4].mxu1  ;;  %4595 = vtanh.f32 %v1338_v36 }
 0x134   :  { %v739_v40 = vpop.f32.mrb[5].mxu0  ;;  %v995_v41 = vpop.f32.mrb[5].mxu1  ;;  %4597 = vtanh.f32 %v1339_v39  ;;  %v1280_v51 = vadd.f32 %v4365_v37, %v5069_v21  ;;  %v1344_v61 = vadd.f32 %v4429_v38, %v5073_v22 }
 0x135   :  { %v4366_v43 = vpop.f32.mrb[6].mxu0  ;;  %v5083_v44 = vpop.f32.mrb[6].mxu1  ;;  %4599 = vtanh.f32 %v1275_v42  ;;  %v1278_v7 = vadd.f32 %v5069_v21, %v739_v40  ;;  %v1342_v23 = vadd.f32 %v5073_v22, %v995_v41  ;;  %v5138_v40 = vrot.slane %v79_v13, %v5048_v14 }
 0x136   :  { %v742_v45 = vpop.f32.mrb[7].mxu0  ;;  %v5085_v46 = vpop.f32.mrb[7].mxu1  ;;  %v1281_v49 = vadd.f32 %v4366_v43, %v5069_v21 }
 0x137   :  { %v1279_v58 = vadd.f32 %v5069_v21, %v742_v45  ;;  %v1345_v45 = vadd.f32 %v5083_v44, %v5073_v22  ;;  %v78_v44 = vcombine.high %v5051_v16, %v5051_v16 }
 0x138   :  { %v4586_v48 = vpop.eup %4585  ;;  %4601 = vtanh.f32 %v1281_v49 }
 0x139   :  { %v4588_v50 = vpop.eup %4587  ;;  %v1538_v52 = vmul.f32 %v4586_v48, %v5090_v47  ;;  %4603 = vtanh.f32 %v1280_v51  ;;  %v5150_v51 = vrot.slane %v5138_v40, %v5061_v19 }
 0x13a   :  { %v1602_v53 = vmul.f32 %v4588_v50, %v5090_v47  ;;  %v4590_v54 = vpop.eup %4589  ;;  %4605 = vtanh.f32 %v1279_v58 }
 0x13b   :  { %1668 = vadd.xlane.f32.xlu1 %v1538_v52  ;;  %v5096_v55 = vpop.f32.mrb[8].mxu0  ;;  %v5098_v56 = vpop.f32.mrb[8].mxu1  ;;  %v1536_v2 = vmul.f32 %v4590_v54, %v5090_v47  ;;  %4607 = vtanh.f32 %v1344_v61 }
 0x13c   :  { %v4592_v57 = vpop.eup %4591  ;;  %1796 = vadd.xlane.f32.xlu0 %v1602_v53  ;;  %v5101_v59 = vpop.f32.mrb[9].mxu0 }
 0x13d   :  { %v5103_v60 = vpop.f32.mrb[9].mxu1  ;;  %v1539_v62 = vmul.f32 %v4592_v57, %v5090_v47  ;;  %v4370_v63 = vpop.f32.mrb[10].mxu0 }
 0x13e   :  { %v5107_v0 = vpop.f32.mrb[10].mxu1  ;;  %v4594_v1 = vpop.eup %4593  ;;  %v1285_v6 = vadd.f32 %v4370_v63, %v5069_v21 }
 0x13f   :  { %v758_v3 = vpop.f32.mrb[11].mxu0  ;;  %v5110_v4 = vpop.f32.mrb[11].mxu1  ;;  %1670 = vadd.xlane.f32.xlu1 %v1539_v62  ;;  %v1603_v8 = vmul.f32 %v4594_v1, %v5090_v47  ;;  %v1343_v62 = vadd.f32 %v5073_v22, %v5085_v46  ;;  %v1284_v46 = vadd.f32 %v5096_v55, %v5069_v21 }
 0x140   :  { %v4596_v5 = vpop.eup %4595  ;;  %1664 = vadd.xlane.f32.xlu0 %v1536_v2  ;;  %4609 = vtanh.f32 %v1285_v6  ;;  %v1283_v26 = vadd.f32 %v5069_v21, %v758_v3 }
 0x141   :  { %v4598_v9 = vpop.eup %4597  ;;  %v1600_v11 = vmul.f32 %v4596_v5, %v5090_v47  ;;  %4611 = vtanh.f32 %v1278_v7 }
 0x142   :  { %v4600_v15 = vpop.eup %4599  ;;  %v1601_v31 = vmul.f32 %v4598_v9, %v5090_v47  ;;  %4613 = vtanh.f32 %v1283_v26  ;;  %v5169_v9 = vrot.slane %v78_v44, %v5048_v14 }
 0x143   :  { %1798 = vadd.xlane.f32.xlu1 %v1603_v8  ;;  %v4373_v24 = vpop.f32.mrb[12].mxu0  ;;  %v4437_v25 = vpop.f32.mrb[12].mxu1  ;;  %v1537_v36 = vmul.f32 %v4600_v15, %v5090_v47  ;;  %4615 = vtanh.f32 %v1342_v23 }
 0x144   :  { %1792 = vadd.xlane.f32.xlu0 %v1600_v11  ;;  %v5121_v27 = vadd.f32 %v4373_v24, %v5069_v21  ;;  %v771_v28 = vpop.f32.mrb[13].mxu0  ;;  %v5124_v29 = vadd.f32 %v4437_v25, %v5073_v22  ;;  %v1027_v30 = vpop.f32.mrb[13].mxu1  ;;  %v5180_v14 = vrot.slane %v5169_v9, %v5061_v19 }
 0x145   :  { %v5127_v17 = vadd.f32 %v5069_v21, %v771_v28  ;;  %v4374_v32 = vpop.f32.mrb[14].mxu0  ;;  %v5131_v33 = vadd.f32 %v5073_v22, %v1027_v30  ;;  %v4438_v34 = vpop.f32.mrb[14].mxu1  ;;  %v1348_v30 = vadd.f32 %v5098_v56, %v5073_v22  ;;  %v1282_v56 = vadd.f32 %v5069_v21, %v5101_v59 }
 0x146   :  { %v4602_v35 = vpop.eup %4601  ;;  %v774_v37 = vpop.f32.mrb[15].mxu0  ;;  %v5135_v38 = vadd.f32 %v4438_v34, %v5073_v22  ;;  %v1289_v43 = vadd.f32 %v4374_v32, %v5069_v21 }
 0x147   :  { %v1030_v39 = vpop.f32.mrb[15].mxu1  ;;  %v4604_v41 = vpop.eup %4603  ;;  %1794 = vadd.xlane.f32.xlu1 %v1601_v31  ;;  %v1543_v48 = vmul.f32 %v4602_v35, %v5090_v47  ;;  %v1287_v57 = vadd.f32 %v5069_v21, %v774_v37 }
 0x148   :  { %v5141_v42 = vadd.f32 %v5073_v22, %v1030_v39  ;;  %1666 = vadd.xlane.f32.xlu0 %v1537_v36  ;;  %v4606_v49 = vpop.eup %4605  ;;  %v1542_v50 = vmul.f32 %v4604_v41, %v5090_v47  ;;  %4617 = vtanh.f32 %v1289_v43 }
 0x149   :  { %v4608_v52 = vpop.eup %4607  ;;  %4619 = vtanh.f32 %v1345_v45  ;;  %v1541_v63 = vmul.f32 %v4606_v49, %v5090_v47 }
 0x14a   :  { %v4610_v3 = vpop.eup %4609  ;;  %v1606_v5 = vmul.f32 %v4608_v52, %v5090_v47  ;;  %4621 = vtanh.f32 %v1287_v57 }
 0x14b   :  { %1678 = vadd.xlane.f32.xlu1 %v1543_v48  ;;  %v4441_v53 = vpop.f32.mrb[16].mxu1  ;;  %v5152_v54 = vpop.f32.mrb[16].mxu0  ;;  %4623 = vtanh.f32 %v1343_v62  ;;  %v1547_v11 = vmul.f32 %v4610_v3, %v5090_v47  ;;  %v1346_v62 = vadd.f32 %v5073_v22, %v5103_v60 }
 0x14c   :  { %1676 = vadd.xlane.f32.xlu0 %v1542_v50  ;;  %v1043_v58 = vpop.f32.mrb[17].mxu1  ;;  %v5157_v61 = vpop.f32.mrb[17].mxu0  ;;  %v1356_v6 = vadd.f32 %v4441_v53, %v5150_v51 }
 0x14d   :  { %v5162_v1 = vpop.f32.mrb[18].mxu1  ;;  %v4378_v2 = vpop.f32.mrb[18].mxu0  ;;  %v1354_v26 = vadd.f32 %v5150_v51, %v1043_v58 }
 0x14e   :  { %v5166_v7 = vpop.f32.mrb[19].mxu1  ;;  %v790_v8 = vpop.f32.mrb[19].mxu0  ;;  %4625 = vtanh.f32 %v1356_v6  ;;  %v1293_v43 = vadd.f32 %v4378_v2, %v5180_v14 }
 0x14f   :  { %v4612_v16 = vpop.eup %4611  ;;  %1674 = vadd.xlane.f32.xlu1 %v1541_v63  ;;  %4627 = vtanh.f32 %v1284_v46  ;;  %v1291_v58 = vadd.f32 %v5180_v14, %v790_v8 }
 0x150   :  { %1804 = vadd.xlane.f32.xlu0 %v1606_v5  ;;  %v4614_v13 = vpop.eup %4613  ;;  %v1540_v15 = vmul.f32 %v4612_v16, %v5090_v47  ;;  %4629 = vtanh.f32 %v1354_v26 }
 0x151   :  { %v4616_v23 = vpop.eup %4615  ;;  %v1545_v31 = vmul.f32 %v4614_v13, %v5090_v47  ;;  %4631 = vtanh.f32 %v1348_v30  ;;  %v1349_v13 = vadd.f32 %v5107_v0, %v5073_v22 }
 0x152   :  { %v4618_v35 = vpop.eup %4617  ;;  %v1604_v36 = vmul.f32 %v4616_v23, %v5090_v47  ;;  %4633 = vtanh.f32 %v1293_v43 }
 0x153   :  { %1686 = vadd.xlane.f32.xlu1 %v1547_v11  ;;  %v4445_v24 = vpop.f32.mrb[20].mxu1  ;;  %v5175_v25 = vpop.f32.mrb[20].mxu0  ;;  %v1551_v45 = vmul.f32 %v4618_v35, %v5090_v47  ;;  %4635 = vtanh.f32 %v1282_v56 }
 0x154   :  { %1672 = vadd.xlane.f32.xlu0 %v1540_v15  ;;  %v1059_v28 = vpop.f32.mrb[21].mxu1  ;;  %v5182_v55 = vpop.f32.mrb[21].mxu0  ;;  %v1360_v8 = vadd.f32 %v4445_v24, %v5150_v51  ;;  %4637 = vtanh.f32 %v1291_v58 }
 0x155   :  { %v5187_v32 = vpop.f32.mrb[22].mxu1  ;;  %v5189_v34 = vpop.f32.mrb[22].mxu0  ;;  %4639 = vtanh.f32 %v1346_v62  ;;  %v1358_v35 = vadd.f32 %v5150_v51, %v1059_v28 }
 0x156   :  { %v5192_v37 = vpop.f32.mrb[23].mxu1  ;;  %v5194_v39 = vpop.f32.mrb[23].mxu0  ;;  %4641 = vtanh.f32 %v1360_v8 }
 0x157   :  { %v4620_v41 = vpop.eup %4619  ;;  %1682 = vadd.xlane.f32.xlu1 %v1545_v31  ;;  %v1347_v31 = vadd.f32 %v5073_v22, %v5110_v4  ;;  %4643 = vtanh.f32 %v1349_v13 }
 0x158   :  { %1800 = vadd.xlane.f32.xlu0 %v1604_v36  ;;  %v4622_v48 = vpop.eup %4621  ;;  %v1607_v49 = vmul.f32 %v4620_v41, %v5090_v47  ;;  %4645 = vtanh.f32 %v1358_v35 }
 0x159   :  { %v4624_v50 = vpop.eup %4623  ;;  %v1549_v63 = vmul.f32 %v4622_v48, %v5090_v47  ;;  %4647 = vtanh.f32 %v1347_v31 }
 0x15a   :  { %v4626_v57 = vpop.eup %4625  ;;  %v1605_v6 = vmul.f32 %v4624_v50, %v5090_v47 }
 0x15b   :  { %1694 = vadd.xlane.f32.xlu1 %v1551_v45  ;;  %v5201_v52 = vpop.f32.mrb[24].mxu1  ;;  %v4385_v53 = vpop.f32.mrb[24].mxu0  ;;  %v1618_v60 = vmul.f32 %v4626_v57, %v5090_v47 }
 0x15c   :  { %1806 = vadd.xlane.f32.xlu0 %v1607_v49  ;;  %v5204_v44 = vpop.f32.mrb[25].mxu1  ;;  %v5207_v21 = vadd.f32 %v4385_v53, %v5180_v14  ;;  %v819_v59 = vpop.f32.mrb[25].mxu0 }
 0x15d   :  { %v5212_v2 = vpop.f32.mrb[26].mxu1  ;;  %v5215_v3 = vadd.f32 %v5180_v14, %v819_v59  ;;  %v5217_v5 = vpop.f32.mrb[26].mxu0 }
 0x15e   :  { %v5221_v16 = vpop.f32.mrb[27].mxu1  ;;  %v5223_v46 = vpop.f32.mrb[27].mxu0 }
 0x15f   :  { %v4628_v11 = vpop.eup %4627  ;;  %1690 = vadd.xlane.f32.xlu1 %v1549_v63 }
 0x160   :  { %1802 = vadd.xlane.f32.xlu0 %v1605_v6  ;;  %v4630_v15 = vpop.eup %4629  ;;  %v1546_v23 = vmul.f32 %v4628_v11, %v5090_v47  ;;  %v1297_v6 = vadd.f32 %v5189_v34, %v5180_v14 }
 0x161   :  { %v4632_v26 = vpop.eup %4631  ;;  %v1616_v56 = vmul.f32 %v4630_v15, %v5090_v47 }
 0x162   :  { %v4634_v28 = vpop.eup %4633  ;;  %v1610_v49 = vmul.f32 %v4632_v26, %v5090_v47  ;;  %4649 = vtanh.f32 %v1297_v6  ;;  %v1359_v6 = vadd.f32 %v5150_v51, %v5192_v37  ;;  %v1364_v37 = vadd.f32 %v5201_v52, %v5150_v51 }
 0x163   :  { %1828 = vadd.xlane.f32.xlu1 %v1618_v60  ;;  %v4453_v24 = vpop.f32.mrb[28].mxu1  ;;  %v4389_v30 = vpop.f32.mrb[28].mxu0  ;;  %v1555_v8 = vmul.f32 %v4634_v28, %v5090_v47  ;;  %4651 = vtanh.f32 %v5121_v27  ;;  %v1295_v27 = vadd.f32 %v5180_v14, %v5194_v39 }
 0x164   :  { %1684 = vadd.xlane.f32.xlu0 %v1546_v23  ;;  %v5233_v36 = vadd.f32 %v4453_v24, %v5150_v51  ;;  %v1091_v41 = vpop.f32.mrb[29].mxu1  ;;  %v5236_v0 = vadd.f32 %v4389_v30, %v5180_v14  ;;  %v835_v43 = vpop.f32.mrb[29].mxu0  ;;  %v1361_v24 = vadd.f32 %v5187_v32, %v5150_v51 }
 0x165   :  { %v5240_v45 = vadd.f32 %v5150_v51, %v1091_v41  ;;  %v4454_v48 = vpop.f32.mrb[30].mxu1  ;;  %v5243_v22 = vadd.f32 %v5180_v14, %v835_v43  ;;  %v4390_v4 = vpop.f32.mrb[30].mxu0 }
 0x166   :  { %v5247_v50 = vadd.f32 %v4454_v48, %v5150_v51  ;;  %v1094_v53 = vpop.f32.mrb[31].mxu1  ;;  %v5250_v57 = vadd.f32 %v4390_v4, %v5180_v14  ;;  %v838_v58 = vpop.f32.mrb[31].mxu0  ;;  %4653 = vtanh.f32 %v1361_v24 }
 0x167   :  { %v4636_v59 = vpop.eup %4635  ;;  %1824 = vadd.xlane.f32.xlu1 %v1616_v56  ;;  %v5253_v62 = vadd.f32 %v5150_v51, %v1094_v53  ;;  %v5256_v63 = vadd.f32 %v5180_v14, %v838_v58  ;;  %4655 = vtanh.f32 %v5124_v29 }
 0x168   :  { %1812 = vadd.xlane.f32.xlu0 %v1610_v49  ;;  %v4638_v11 = vpop.eup %4637  ;;  %v1544_v60 = vmul.f32 %v4636_v59, %v5090_v47  ;;  %4657 = vtanh.f32 %v1295_v27 }
 0x169   :  { %v4640_v13 = vpop.eup %4639  ;;  %v1553_v31 = vmul.f32 %v4638_v11, %v5090_v47  ;;  %4659 = vtanh.f32 %v5127_v17  ;;  %v109_v17 = vcombine.high %v5065_v20, %v5065_v20 }
 0x16a   :  { %v4642_v26 = vpop.eup %4641  ;;  %v1608_v43 = vmul.f32 %v4640_v13, %v5090_v47  ;;  %4661 = vtanh.f32 %v1359_v6 }
 0x16b   :  { %1702 = vadd.xlane.f32.xlu1 %v1555_v8  ;;  %v5262_v15 = vpop.f32.mrb[32].mxu1  ;;  %v5264_v23 = vpop.f32.mrb[32].mxu0  ;;  %v1622_v4 = vmul.f32 %v4642_v26, %v5090_v47  ;;  %4663 = vtanh.f32 %v5131_v33  ;;  %v5323_v20 = vrot.slane %v109_v17, %v5061_v19 }
 0x16c   :  { %1680 = vadd.xlane.f32.xlu0 %v1544_v60  ;;  %v5268_v30 = vpop.f32.mrb[33].mxu1  ;;  %v5270_v34 = vpop.f32.mrb[33].mxu0  ;;  %4665 = vtanh.f32 %v1364_v37 }
 0x16d   :  { %v5274_v35 = vpop.f32.mrb[34].mxu1  ;;  %v5276_v41 = vpop.f32.mrb[34].mxu0  ;;  %4667 = vtanh.f32 %v5135_v38 }
 0x16e   :  { %v5279_v56 = vpop.f32.mrb[35].mxu1  ;;  %v5281_v48 = vpop.f32.mrb[35].mxu0 }
 0x16f   :  { %v4644_v32 = vpop.eup %4643  ;;  %1698 = vadd.xlane.f32.xlu1 %v1553_v31 }
 0x170   :  { %1808 = vadd.xlane.f32.xlu0 %v1608_v43  ;;  %v4646_v28 = vpop.eup %4645  ;;  %v1611_v49 = vmul.f32 %v4644_v32, %v5090_v47 }
 0x171   :  { %v4648_v53 = vpop.eup %4647  ;;  %v1620_v29 = vmul.f32 %v4646_v28, %v5090_v47 }
 0x172   :  { %v4650_v13 = vpop.eup %4649  ;;  %v1609_v26 = vmul.f32 %v4648_v53, %v5090_v47  ;;  %v1362_v53 = vadd.f32 %v5150_v51, %v5204_v44  ;;  %v108_v44 = vcombine.high %v5058_v18, %v5058_v18  ;;  %v1292_v18 = vadd.f32 %v5152_v54, %v5180_v14 }
 0x173   :  { %1836 = vadd.xlane.f32.xlu1 %v1622_v4  ;;  %v5288_v58 = vpop.f32.mrb[36].mxu0  ;;  %v5290_v59 = vpop.f32.mrb[36].mxu1  ;;  %v1559_v32 = vmul.f32 %v4650_v13, %v5090_v47  ;;  %v1365_v54 = vadd.f32 %v5212_v2, %v5150_v51 }
 0x174   :  { %1814 = vadd.xlane.f32.xlu0 %v1611_v49  ;;  %v5294_v8 = vpop.f32.mrb[37].mxu0  ;;  %v5296_v39 = vpop.f32.mrb[37].mxu1  ;;  %4669 = vtanh.f32 %v1362_v53 }
 0x175   :  { %v5300_v11 = vpop.f32.mrb[38].mxu0  ;;  %v5302_v60 = vpop.f32.mrb[38].mxu1  ;;  %4671 = vtanh.f32 %v5141_v42  ;;  %v1290_v42 = vadd.f32 %v5180_v14, %v5157_v61 }
 0x176   :  { %v5307_v24 = vpop.f32.mrb[39].mxu0  ;;  %v5309_v31 = vpop.f32.mrb[39].mxu1 }
 0x177   :  { %v4652_v43 = vpop.eup %4651  ;;  %1832 = vadd.xlane.f32.xlu1 %v1620_v29 }
 0x178   :  { %1810 = vadd.xlane.f32.xlu0 %v1609_v26  ;;  %v4654_v4 = vpop.eup %4653  ;;  %v1550_v27 = vmul.f32 %v4652_v43, %v5090_v47 }
 0x179   :  { %v4656_v52 = vpop.eup %4655  ;;  %v1623_v29 = vmul.f32 %v4654_v4, %v5090_v47  ;;  %v1301_v4 = vadd.f32 %v5217_v5, %v5180_v14 }
 0x17a   :  { %v4658_v37 = vpop.eup %4657  ;;  %v1614_v43 = vmul.f32 %v4656_v52, %v5090_v47 }
 0x17b   :  { %1710 = vadd.xlane.f32.xlu1 %v1559_v32  ;;  %v5316_v28 = vpop.f32.mrb[40].mxu0  ;;  %v5318_v49 = vpop.f32.mrb[40].mxu1  ;;  %v1557_v52 = vmul.f32 %v4658_v37, %v5090_v47  ;;  %4673 = vtanh.f32 %v1301_v4 }
 0x17c   :  { %1692 = vadd.xlane.f32.xlu0 %v1550_v27  ;;  %v5325_v33 = vpop.f32.mrb[41].mxu0  ;;  %v5327_v6 = vpop.f32.mrb[41].mxu1  ;;  %4675 = vtanh.f32 %v1292_v18 }
 0x17d   :  { %6601 = vst [vmem:[#allocation17_spill] sm:$0xff] %v5325_v33  ;;  %6602 = vst [vmem:[#allocation18_spill] sm:$0xff] %v5327_v6  ;;  %v5331_v13 = vpop.f32.mrb[42].mxu0  ;;  %v4466_v26 = vpop.f32.mrb[42].mxu1  ;;  %4677 = vtanh.f32 %v1365_v54  ;;  %v1363_v54 = vadd.f32 %v5150_v51, %v5221_v16 }
 0x17e   :  { %v5336_v32 = vpop.f32.mrb[43].mxu0  ;;  %v5339_v17 = vadd.f32 %v4466_v26, %v5323_v20  ;;  %v1142_v27 = vpop.f32.mrb[43].mxu1  ;;  %4679 = vtanh.f32 %v1290_v42 }
 0x17f   :  { %v4660_v10 = vpop.eup %4659  ;;  %1838 = vadd.xlane.f32.xlu1 %v1623_v29  ;;  %v5342_v38 = vadd.f32 %v5323_v20, %v1142_v27  ;;  %v5352_v29 = vrot.slane %v108_v44, %v5061_v19 }
 0x180   :  { %6603 = vst [vmem:[#allocation19_spill] sm:$0xff] %v5339_v17  ;;  %1820 = vadd.xlane.f32.xlu0 %v1614_v43  ;;  %v4662_v26 = vpop.eup %4661  ;;  %v1548_v17 = vmul.f32 %v4660_v10, %v5090_v47 }
 0x181   :  { %6604 = vst [vmem:[#allocation20_spill] sm:$0xff] %v5342_v38  ;;  %v4664_v27 = vpop.eup %4663  ;;  %v1621_v44 = vmul.f32 %v4662_v26, %v5090_v47 }
 0x182   :  { %v4666_v38 = vpop.eup %4665  ;;  %v1612_v2 = vmul.f32 %v4664_v27, %v5090_v47 }
 0x183   :  { %1706 = vadd.xlane.f32.xlu1 %v1557_v52  ;;  %v5354_v53 = vpop.f32.mrb[44].mxu1  ;;  %v4405_v43 = vpop.f32.mrb[44].mxu0  ;;  %v1626_v18 = vmul.f32 %v4666_v38, %v5090_v47 }
 0x184   :  { %1688 = vadd.xlane.f32.xlu0 %v1548_v17  ;;  %v1155_v5 = vpop.f32.mrb[45].mxu1  ;;  %v5361_v10 = vadd.f32 %v4405_v43, %v5352_v29  ;;  %v899_v37 = vpop.f32.mrb[45].mxu0 }
 0x185   :  { %v5365_v52 = vadd.f32 %v5323_v20, %v1155_v5  ;;  %v5367_v6 = vpop.f32.mrb[46].mxu1  ;;  %v5370_v61 = vadd.f32 %v5352_v29, %v899_v37  ;;  %v5372_v33 = vpop.f32.mrb[46].mxu0  ;;  %v1299_v5 = vadd.f32 %v5180_v14, %v5223_v46  ;;  %v1357_v37 = vadd.f32 %v5162_v1, %v5150_v51 }
 0x186   :  { %v1158_v17 = vpop.f32.mrb[47].mxu1  ;;  %v5375_v4 = vpop.f32.mrb[47].mxu0  ;;  %v1355_v1 = vadd.f32 %v5150_v51, %v5166_v7  ;;  %v1296_v51 = vadd.f32 %v5175_v25, %v5180_v14  ;;  %v1294_v25 = vadd.f32 %v5180_v14, %v5182_v55  ;;  %v111_v55 = vcombine.high %v5138_v40, %v5138_v40 }
 0x187   :  { %6605 = vst [vmem:[#allocation21_spill] sm:$0xff] %v5365_v52  ;;  %6606 = vst [vmem:[#allocation22_spill] sm:$0xff] %v5370_v61  ;;  %v4668_v43 = vpop.eup %4667  ;;  %1834 = vadd.xlane.f32.xlu1 %v1621_v44  ;;  %v5379_v26 = vadd.f32 %v5323_v20, %v1158_v17  ;;  %4681 = vtanh.f32 %v1299_v5 }
 0x188   :  { %1816 = vadd.xlane.f32.xlu0 %v1612_v2  ;;  %v4670_v27 = vpop.eup %4669  ;;  %v1615_v52 = vmul.f32 %v4668_v43, %v5090_v47  ;;  %4683 = vtanh.f32 %v1357_v37 }
 0x189   :  { %6607 = vst [vmem:[#allocation23_spill] sm:$0xff] %v5379_v26  ;;  %v4672_v61 = vpop.eup %4671  ;;  %v1624_v42 = vmul.f32 %v4670_v27, %v5090_v47  ;;  %4685 = vtanh.f32 %v1363_v54 }
 0x18a   :  { %4687 = vtanh.f32 %v1355_v1 }
 0x18b   :  { %1844 = vadd.xlane.f32.xlu1 %v1626_v18  ;;  %v5386_v44 = vpop.f32.mrb[48].mxu1  ;;  %v5388_v38 = vpop.f32.mrb[48].mxu0  ;;  %4689 = vtanh.f32 %v5233_v36 }
 0x18c   :  { %6608 = vst [vmem:[#allocation24_spill] sm:$0xff] %v5388_v38  ;;  %1822 = vadd.xlane.f32.xlu0 %v1615_v52  ;;  %v5392_v46 = vpop.f32.mrb[49].mxu1  ;;  %v5394_v2 = vpop.f32.mrb[49].mxu0  ;;  %v1613_v38 = vmul.f32 %v4672_v61, %v5090_v47  ;;  %4691 = vtanh.f32 %v1296_v51 }
 0x18d   :  { %6609 = vst [vmem:[#allocation25_spill] sm:$0xff] %v5392_v46  ;;  %6610 = vst [vmem:[#allocation26_spill] sm:$0xff] %v5394_v2  ;;  %v5399_v17 = vpop.f32.mrb[50].mxu1  ;;  %v5401_v43 = vpop.f32.mrb[50].mxu0  ;;  %4693 = vtanh.f32 %v5240_v45 }
 0x18e   :  { %v4674_v18 = vpop.eup %4673  ;;  %v5404_v16 = vpop.f32.mrb[51].mxu1  ;;  %4695 = vtanh.f32 %v1294_v25 }
 0x18f   :  { %v5406_v52 = vpop.f32.mrb[51].mxu0  ;;  %v4676_v5 = vpop.eup %4675  ;;  %1840 = vadd.xlane.f32.xlu1 %v1624_v42  ;;  %v1563_v7 = vmul.f32 %v4674_v18, %v5090_v47  ;;  %4697 = vtanh.f32 %v5250_v57  ;;  %v110_v57 = vcombine.high %v5169_v9, %v5169_v9  ;;  %v1372_v9 = vadd.f32 %v5262_v15, %v5323_v20 }
 0x190   :  { %1818 = vadd.xlane.f32.xlu0 %v1613_v38  ;;  %v4678_v37 = vpop.eup %4677  ;;  %v1554_v27 = vmul.f32 %v4676_v5, %v5090_v47  ;;  %4699 = vtanh.f32 %v5207_v21 }
 0x191   :  { %v4680_v61 = vpop.eup %4679  ;;  %v1627_v1 = vmul.f32 %v4678_v37, %v5090_v47  ;;  %4701 = vtanh.f32 %v5256_v63 }
 0x192   :  { %v4682_v18 = vpop.eup %4681  ;;  %v1552_v5 = vmul.f32 %v4680_v61, %v5090_v47  ;;  %4703 = vtanh.f32 %v5215_v3 }
 0x193   :  { %1718 = vadd.xlane.f32.xlu1 %v1563_v7  ;;  %v5413_v46 = vpop.f32.mrb[52].mxu1  ;;  %v5415_v2 = vpop.f32.mrb[52].mxu0  ;;  %v1561_v14 = vmul.f32 %v4682_v18, %v5090_v47  ;;  %4705 = vtanh.f32 %v5253_v62 }
 0x194   :  { %6611 = vst [vmem:[#allocation27_spill] sm:$0xff] %v5415_v2  ;;  %1700 = vadd.xlane.f32.xlu0 %v1554_v27  ;;  %v5417_v54 = vpop.f32.mrb[53].mxu1  ;;  %v5419_v38 = vpop.f32.mrb[53].mxu0  ;;  %4707 = vtanh.f32 %v5236_v0 }
 0x195   :  { %6612 = vst [vmem:[#allocation28_spill] sm:$0xff] %v5419_v38  ;;  %v5424_v36 = vpop.f32.mrb[54].mxu1  ;;  %v5426_v42 = vpop.f32.mrb[54].mxu0  ;;  %4709 = vtanh.f32 %v1372_v9  ;;  %v1309_v9 = vadd.f32 %v5276_v41, %v5352_v29 }
 0x196   :  { %v5429_v7 = vpop.f32.mrb[55].mxu1  ;;  %v5431_v27 = vpop.f32.mrb[55].mxu0  ;;  %4711 = vtanh.f32 %v5243_v22 }
 0x197   :  { %6613 = vst [vmem:[#allocation29_spill] sm:$0xff] %v5429_v7  ;;  %v4684_v2 = vpop.eup %4683  ;;  %1846 = vadd.xlane.f32.xlu1 %v1627_v1  ;;  %4713 = vtanh.f32 %v1309_v9 }
 0x198   :  { %1696 = vadd.xlane.f32.xlu0 %v1552_v5  ;;  %v4686_v51 = vpop.eup %4685  ;;  %v1619_v37 = vmul.f32 %v4684_v2, %v5090_v47  ;;  %v5450_v2 = vrot.slane %v111_v55, %v5061_v19  ;;  %4715 = vtanh.f32 %v5247_v50  ;;  %v1306_v50 = vadd.f32 %v5352_v29, %v5270_v34 }
 0x199   :  { %v4688_v38 = vpop.eup %4687  ;;  %v1625_v40 = vmul.f32 %v4686_v51, %v5090_v47 }
 0x19a   :  { %v4690_v26 = vpop.eup %4689  ;;  %v1617_v5 = vmul.f32 %v4688_v38, %v5090_v47 }
 0x19b   :  { %1714 = vadd.xlane.f32.xlu1 %v1561_v14  ;;  %v5438_v61 = vpop.f32.mrb[56].mxu1  ;;  %v5440_v7 = vpop.f32.mrb[56].mxu0  ;;  %v1630_v21 = vmul.f32 %v4690_v26, %v5090_v47 }
 0x19c   :  { %6614 = vst [vmem:[#allocation30_spill] sm:$0xff] %v5440_v7  ;;  %1830 = vadd.xlane.f32.xlu0 %v1619_v37  ;;  %v5443_v45 = vpop.f32.mrb[57].mxu1  ;;  %v5445_v25 = vpop.f32.mrb[57].mxu0  ;;  %v5471_v7 = vrot.slane %v110_v57, %v5061_v19 }
 0x19d   :  { %6615 = vst [vmem:[#allocation31_spill] sm:$0xff] %v5445_v25  ;;  %v5452_v1 = vpop.f32.mrb[58].mxu1  ;;  %v5454_v18 = vpop.f32.mrb[58].mxu0 }
 0x19e   :  { %v1206_v14 = vpop.f32.mrb[59].mxu1  ;;  %v5459_v37 = vpop.f32.mrb[59].mxu0 }
 0x19f   :  { %6616 = vst [vmem:[#allocation32_spill] sm:$0xff] %v5459_v37  ;;  %v4692_v25 = vpop.eup %4691  ;;  %1842 = vadd.xlane.f32.xlu1 %v1625_v40  ;;  %v5463_v51 = vadd.f32 %v5450_v2, %v1206_v14 }
 0x1a0   :  { %1826 = vadd.xlane.f32.xlu0 %v1617_v5  ;;  %v4694_v55 = vpop.eup %4693  ;;  %v1558_v38 = vmul.f32 %v4692_v25, %v5090_v47 }
 0x1a1   :  { %v4696_v40 = vpop.eup %4695  ;;  %v1628_v15 = vmul.f32 %v4694_v55, %v5090_v47 }
 0x1a3   :  { %1852 = vadd.xlane.f32.xlu1 %v1630_v21  ;;  %v4485_v26 = vpop.f32.mrb[60].mxu1  ;;  %v4421_v37 = vpop.f32.mrb[60].mxu0 }
 0x1a4   :  { %1708 = vadd.xlane.f32.xlu0 %v1558_v38  ;;  %v5475_v63 = vadd.f32 %v4485_v26, %v5450_v2  ;;  %v1219_v3 = vpop.f32.mrb[61].mxu1  ;;  %v5478_v5 = vadd.f32 %v4421_v37, %v5471_v7  ;;  %v963_v25 = vpop.f32.mrb[61].mxu0  ;;  %v1556_v26 = vmul.f32 %v4696_v40, %v5090_v47 }
 0x1a5   :  { %v5483_v57 = vadd.f32 %v5450_v2, %v1219_v3  ;;  %v4486_v14 = vpop.f32.mrb[62].mxu1  ;;  %v5486_v21 = vadd.f32 %v5471_v7, %v963_v25  ;;  %v4422_v62 = vpop.f32.mrb[62].mxu0 }
 0x1a6   :  { %6617 = vst [vmem:[#allocation33_spill] sm:$0xff] %v5475_v63  ;;  %v4698_v38 = vpop.eup %4697  ;;  %v5490_v37 = vadd.f32 %v4486_v14, %v5450_v2  ;;  %v1222_v19 = vpop.f32.mrb[63].mxu1  ;;  %v5493_v0 = vadd.f32 %v4422_v62, %v5471_v7 }
 0x1a7   :  { %v966_v55 = vpop.f32.mrb[63].mxu0  ;;  %v4700_v63 = vpop.eup %4699  ;;  %1848 = vadd.xlane.f32.xlu1 %v1628_v15  ;;  %v5496_v3 = vadd.f32 %v5450_v2, %v1222_v19  ;;  %v1567_v40 = vmul.f32 %v4698_v38, %v5090_v47  ;;  %v1307_v19 = vadd.f32 %v5352_v29, %v5281_v48  ;;  %v1308_v15 = vadd.f32 %v5264_v23, %v5352_v29 }
 0x1a8   :  { %6618 = vst [vmem:[#allocation34_spill] sm:$0xff] %v5490_v37  ;;  %v5499_v25 = vadd.f32 %v5471_v7, %v966_v55  ;;  %1704 = vadd.xlane.f32.xlu0 %v1556_v26  ;;  %v4702_v14 = vpop.eup %4701  ;;  %v1562_v62 = vmul.f32 %v4700_v63, %v5090_v47  ;;  %v1371_v55 = vadd.f32 %v5323_v20, %v5279_v56 }
 0x1a9   :  { %v4704_v37 = vpop.eup %4703  ;;  %v1565_v41 = vmul.f32 %v4702_v14, %v5090_v47  ;;  %4717 = vtanh.f32 %v1307_v19  ;;  %v1370_v56 = vadd.f32 %v5323_v20, %v5268_v30  ;;  %v1311_v19 = vadd.f32 %v5352_v29, %v5307_v24 }
 0x1aa   :  { %v4706_v22 = vpop.eup %4705  ;;  %v1560_v38 = vmul.f32 %v4704_v37, %v5090_v47  ;;  %4719 = vtanh.f32 %v1308_v15  ;;  %v1373_v15 = vadd.f32 %v5274_v35, %v5323_v20  ;;  %v1312_v24 = vadd.f32 %v5288_v58, %v5352_v29 }
 0x1ab   :  { %1726 = vadd.xlane.f32.xlu1 %v1567_v40  ;;  %v4708_v26 = vpop.eup %4707  ;;  %v1629_v48 = vmul.f32 %v4706_v22, %v5090_v47  ;;  %4721 = vtanh.f32 %v1371_v55  ;;  %v1313_v40 = vadd.f32 %v5300_v11, %v5352_v29 }
 0x1ac   :  { %1716 = vadd.xlane.f32.xlu0 %v1562_v62  ;;  %v4710_v63 = vpop.eup %4709  ;;  %v1566_v23 = vmul.f32 %v4708_v26, %v5090_v47  ;;  %4723 = vtanh.f32 %v1306_v50  ;;  %v1315_v50 = vadd.f32 %v5352_v29, %v5336_v32 }
 0x1ad   :  { %v4712_v9 = vpop.eup %4711  ;;  %v1634_v37 = vmul.f32 %v4710_v63, %v5090_v47  ;;  %4725 = vtanh.f32 %v1313_v40  ;;  %v1310_v40 = vadd.f32 %v5352_v29, %v5294_v8  ;;  %v1374_v8 = vadd.f32 %v5323_v20, %v5296_v39 }
 0x1ae   :  { %v4714_v14 = vpop.eup %4713  ;;  %v1564_v34 = vmul.f32 %v4712_v9, %v5090_v47  ;;  %4727 = vtanh.f32 %v1370_v56  ;;  %v1384_v9 = vadd.f32 %v5354_v53, %v5323_v20  ;;  %v1321_v53 = vadd.f32 %v5372_v33, %v5352_v29 }
 0x1af   :  { %1722 = vadd.xlane.f32.xlu1 %v1565_v41  ;;  %v4716_v62 = vpop.eup %4715  ;;  %v1571_v11 = vmul.f32 %v4714_v14, %v5090_v47  ;;  %4729 = vtanh.f32 %v1311_v19  ;;  %v1385_v39 = vadd.f32 %v5367_v6, %v5323_v20 }
 0x1b0   :  { %1712 = vadd.xlane.f32.xlu0 %v1560_v38  ;;  %v1631_v30 = vmul.f32 %v4716_v62, %v5090_v47  ;;  %v1317_v38 = vadd.f32 %v5331_v13, %v5352_v29  ;;  %4731 = vtanh.f32 %v1373_v15  ;;  %v1376_v13 = vadd.f32 %v5290_v59, %v5323_v20 }
 0x1b2   :  { %4733 = vtanh.f32 %v1317_v38 }
 0x1b3   :  { %1850 = vadd.xlane.f32.xlu1 %v1629_v48  ;;  %v4718_v41 = vpop.eup %4717  ;;  %4735 = vtanh.f32 %v1312_v24 }
 0x1b4   :  { %1724 = vadd.xlane.f32.xlu0 %v1566_v23  ;;  %v4720_v22 = vpop.eup %4719  ;;  %v1569_v26 = vmul.f32 %v4718_v41, %v5090_v47  ;;  %4737 = vtanh.f32 %v1315_v50 }
 0x1b5   :  { %v4722_v63 = vpop.eup %4721  ;;  %v1570_v35 = vmul.f32 %v4720_v22, %v5090_v47  ;;  %4739 = vtanh.f32 %v1376_v13 }
 0x1b6   :  { %v4724_v55 = vpop.eup %4723  ;;  %v1633_v48 = vmul.f32 %v4722_v63, %v5090_v47  ;;  %4741 = vtanh.f32 %v1384_v9 }
 0x1b7   :  { %1860 = vadd.xlane.f32.xlu1 %v1634_v37  ;;  %v4726_v23 = vpop.eup %4725  ;;  %v1568_v58 = vmul.f32 %v4724_v55, %v5090_v47  ;;  %4743 = vtanh.f32 %v1310_v40 }
 0x1b8   :  { %1720 = vadd.xlane.f32.xlu0 %v1564_v34  ;;  %v4728_v37 = vpop.eup %4727  ;;  %v1575_v32 = vmul.f32 %v4726_v23, %v5090_v47  ;;  %4745 = vtanh.f32 %v1321_v53  ;;  %v1319_v23 = vadd.f32 %v5352_v29, %v5375_v4 }
 0x1b9   :  { %v4730_v56 = vpop.eup %4729  ;;  %v1632_v59 = vmul.f32 %v4728_v37, %v5090_v47  ;;  %4747 = vtanh.f32 %v1374_v8  ;;  %v1316_v8 = vadd.f32 %v5316_v28, %v5352_v29 }
 0x1ba   :  { %v4732_v14 = vpop.eup %4731  ;;  %v1573_v19 = vmul.f32 %v4730_v56, %v5090_v47  ;;  %v1377_v47 = vadd.f32 %v5302_v60, %v5323_v20  ;;  %4749 = vtanh.f32 %v1385_v39 }
 0x1bb   :  { %1734 = vadd.xlane.f32.xlu1 %v1571_v11  ;;  %v6619_v11 = vlaneseq }
 0x1bc   :  { %1854 = vadd.xlane.f32.xlu0 %v1631_v30  ;;  %v4734_v15 = vpop.eup %4733  ;;  %v5564_v30 = vld [vmem:[%s6591_s3] ss:$0 sm:$0xff]  ;;  %4751 = vtanh.f32 %v1377_v47  ;;  %s4970_s3 = smov [#allocation9]  }
 0x1bd   :  { %v5559_v41 = vand.u32 127, %v6619_v11  ;;  %v1635_v33 = vmul.f32 %v5564_v30, %v4732_v14  ;;  %v4736_v22 = vpop.eup %4735  ;;  %v1388_v14 = vadd.f32 %v5386_v44, %v5450_v2  ;;  %4753 = vtanh.f32 %v1319_v23  ;;  %s3865_s7 = sshll.u32 %s4970_s3, 4  ;;  %s3866_s7 = int_to_ptr.vmem [resolvable:$true] %s3865_s7 }
 0x1be   :  { %v1574_v50 = vmul.f32 %v5564_v30, %v4736_v22  ;;  %s4912_s8 = scalar_lea.vmem %s3866_s7, 128  ;;  %p4917_p11 = scmp.lt.s32.totalorder %s3866_s7, %s3866_s7 }
 0x1bf   :  { %1730 = vadd.xlane.f32.xlu1 %v1569_v26  ;;  %6620 = vst [vmem:[#allocation35_spill] sm:$0xff] %v5559_v41  ;;  %v1579_v26 = vmul.f32 %v5564_v30, %v4734_v15  ;;  %v2054_v63 = vadd.s32 4294967288, %v5559_v41  ;;  %v2061_v55 = vadd.s32 4294967280, %v5559_v41  ;;  %v2068_v6 = vadd.s32 4294967272, %v5559_v41  ;;  %p4913_p10 = scmp.ne.s32.totalorder %s3866_s7, %s4912_s8  ;;  %p4918_p12 = scmp.lt.s32.totalorder %s4912_s8, %s4912_s8 }
 0x1c0   :  { %1732 = vadd.xlane.f32.xlu0 %v1570_v35  ;;  %v4738_v35 = vpop.eup %4737 }
 0x1c1   :  { %v4740_v13 = vpop.eup %4739  ;;  %v1577_v37 = vmul.f32 %v5564_v30, %v4738_v35  ;;  %v5584_v40 = vsub.s32 %v2054_v63, %v5045_v12  ;;  %v5587_v56 = vsub.s32 %v2061_v55, %v5045_v12  ;;  %v1380_v63 = vadd.f32 %v5318_v49, %v5323_v20  ;;  %p4919_p13 = por %p4918_p12, %p4917_p11 }
 0x1c2   :  { %v1638_v4 = vmul.f32 %v5564_v30, %v4740_v13 }
 0x1c3   :  { %1858 = vadd.xlane.f32.xlu1 %v1633_v48  ;;  %v4742_v48 = vpop.eup %4741  ;;  %p4920_p0 = pnand %p4919_p13, %p4913_p10 }
 0x1c4   :  { %1728 = vadd.xlane.f32.xlu0 %v1568_v58  ;;  %v1375_v58 = vadd.f32 %v5323_v20, %v5309_v31  ;;  %v5597_v31 = vsub.s32 %v2068_v6, %v5045_v12  ;;  %v1646_v53 = vmul.f32 %v5564_v30, %v4742_v48  ;;  %v1325_v6 = vadd.f32 %v5401_v43, %v5471_v7 }
 0x1c6   :  { %4755 = vtanh.f32 %v1375_v58 }
 0x1c7   :  { %1742 = vadd.xlane.f32.xlu1 %v1575_v32  ;;  %v4744_v32 = vpop.eup %4743  ;;  %4757 = vtanh.f32 %v1388_v14  ;;  %v2096_v14 = vadd.s32 4294967240, %v5559_v41 }
 0x1c8   :  { %1856 = vadd.xlane.f32.xlu0 %v1632_v59  ;;  %v5551_v34 = vpop.xlane.xlu1 %1668  ;;  %v5591_v59 = vsub.s32 %v5559_v41, %v5045_v12  ;;  %v4746_v22 = vpop.eup %4745  ;;  %4759 = vtanh.f32 %v1316_v8 }
 0x1c9   :  { %v5555_v62 = vpop.xlane.xlu0 %1796  ;;  %v2065_v35 = vrot.slane %v5551_v34, %v5587_v56  ;;  %v1583_v23 = vmul.f32 %v5564_v30, %v4746_v22  ;;  %4761 = vtanh.f32 %v1325_v6 }
 0x1ca   :  { %v2408_v39 = vrot.slane %v5555_v62, %v5587_v56  ;;  %4763 = vtanh.f32 %v1380_v63  ;;  %v1323_v63 = vadd.f32 %v5471_v7, %v5406_v52 }
 0x1cb   :  { %1738 = vadd.xlane.f32.xlu1 %v1573_v19 }
 0x1cc   :  { %1862 = vadd.xlane.f32.xlu0 %v1635_v33  ;;  %v5569_v38 = vpop.xlane.xlu1 %1670  ;;  %v1572_v33 = vmul.f32 %v5564_v30, %v4744_v32  ;;  %v2082_v32 = vadd.s32 4294967256, %v5559_v41 }
 0x1cd   :  { %v1665_v24 = vpop.xlane.xlu0 %1664  ;;  %v2072_v62 = vrot.slane %v5569_v38, %v5597_v31 }
 0x1ce   :  { %v2053_v47 = vrot.slane %v1665_v24, %v5591_v59 }
 0x1cf   :  { %1750 = vadd.xlane.f32.xlu1 %v1579_v26  ;;  %v4748_v26 = vpop.eup %4747 }
 0x1d0   :  { %1740 = vadd.xlane.f32.xlu0 %v1574_v50  ;;  %v1799_v60 = vpop.xlane.xlu1 %1798  ;;  %v4750_v38 = vpop.eup %4749  ;;  %v1636_v58 = vmul.f32 %v5564_v30, %v4748_v26 }
 0x1d1   :  { %v1793_v9 = vpop.xlane.xlu0 %1792  ;;  %v2413_v55 = vrot.slane %v1799_v60, %v5597_v31  ;;  %v4752_v43 = vpop.eup %4751 }
 0x1d2   :  { %v2399_v15 = vrot.slane %v1793_v9, %v5591_v59  ;;  %v1639_v22 = vmul.f32 %v5564_v30, %v4752_v43 }
 0x1d3   :  { %1746 = vadd.xlane.f32.xlu1 %v1577_v37  ;;  %v2075_v37 = vadd.s32 4294967264, %v5559_v41 }
 0x1d4   :  { %1868 = vadd.xlane.f32.xlu0 %v1638_v4  ;;  %v1795_v19 = vpop.xlane.xlu1 %1794  ;;  %v1389_v4 = vadd.f32 %v5399_v17, %v5450_v2 }
 0x1d5   :  { %v2403_v44 = vrot.slane %v1795_v19, %v5584_v40  ;;  %v1667_v11 = vpop.xlane.xlu0 %1666  ;;  %v6621_v19 = vld [vmem:[#allocation17_spill] sm:$0xff]  ;;  %v5645_v17 = vsub.s32 %v2075_v37, %v5045_v12 }
 0x1d6   :  { %v2058_v28 = vrot.slane %v1667_v11, %v5584_v40  ;;  %v1647_v11 = vmul.f32 %v5564_v30, %v4750_v38  ;;  %4765 = vtanh.f32 %v1389_v4 }
 0x1d7   :  { %v2404_v50 = vsel %vm2059_vm0, %v2403_v44, %v2399_v15  ;;  %1884 = vadd.xlane.f32.xlu1 %v1646_v53  ;;  %v2089_v53 = vadd.s32 4294967248, %v5559_v41  ;;  %v1314_v15 = vadd.f32 %v5352_v29, %v6621_v19  ;;  %v5651_v29 = vsub.s32 %v2096_v14, %v5045_v12 }
 0x1d8   :  { %v2409_v24 = vsel %vm2066_vm1, %v2408_v39, %v2404_v50  ;;  %v2060_v13 = vsel %vm2059_vm0, %v2058_v28, %v2053_v47  ;;  %1736 = vadd.xlane.f32.xlu0 %v1572_v33  ;;  %v5621_v49 = vpop.xlane.xlu1 %1678  ;;  %v4754_v33 = vpop.eup %4753  ;;  %v5648_v47 = vsub.s32 %v2082_v32, %v5045_v12 }
 0x1d9   :  { %v2067_v34 = vsel %vm2066_vm1, %v2065_v35, %v2060_v13  ;;  %v5624_v48 = vpop.xlane.xlu0 %1676  ;;  %v5628_v60 = vsel %vm2073_vm2, %v2413_v55, %v2409_v24  ;;  %v4756_v39 = vpop.eup %4755  ;;  %v5654_v26 = vsub.s32 %v2089_v53, %v5045_v12  ;;  %4767 = vtanh.f32 %v1314_v15  ;;  %v6622_v55 = vld [vmem:[#allocation18_spill] sm:$0xff] }
 0x1da   :  { %v2074_v9 = vsel %vm2073_vm2, %v2072_v62, %v2067_v34  ;;  %v4758_v28 = vpop.eup %4757  ;;  %v1378_v50 = vadd.f32 %v5323_v20, %v6622_v55  ;;  %v1581_v24 = vmul.f32 %v5564_v30, %v4754_v33  ;;  %v1637_v6 = vmul.f32 %v5564_v30, %v4756_v39 }
 0x1db   :  { %1758 = vadd.xlane.f32.xlu1 %v1583_v23  ;;  %v4760_v34 = vpop.eup %4759  ;;  %v1650_v52 = vmul.f32 %v5564_v30, %v4758_v28  ;;  %v1387_v20 = vadd.f32 %v5450_v2, %v5404_v16  ;;  %v2093_v38 = vrot.slane %v5624_v48, %v5654_v26  ;;  %4769 = vtanh.f32 %v1323_v63 }
 0x1dc   :  { %1864 = vadd.xlane.f32.xlu0 %v1636_v58  ;;  %v1675_v8 = vpop.xlane.xlu1 %1674  ;;  %4771 = vtanh.f32 %v1378_v50  ;;  %v2100_v43 = vrot.slane %v5621_v49, %v5651_v29  ;;  %v4762_v14 = vpop.eup %4761  ;;  %v1578_v16 = vmul.f32 %v5564_v30, %v4760_v34  ;;  %v1392_v48 = vadd.f32 %v5413_v46, %v5450_v2 }
 0x1dd   :  { %v5640_v44 = vpop.xlane.xlu0 %1804  ;;  %v2086_v23 = vrot.slane %v1675_v8, %v5648_v47  ;;  %v4764_v8 = vpop.eup %4763  ;;  %4773 = vtanh.f32 %v1387_v20  ;;  %v1390_v63 = vadd.f32 %v5450_v2, %v5417_v54  ;;  %v1329_v20 = vadd.f32 %v5426_v42, %v5471_v7 }
 0x1de   :  { %v1642_v39 = vmul.f32 %v5564_v30, %v4764_v8 }
 0x1df   :  { %1886 = vadd.xlane.f32.xlu1 %v1647_v11  ;;  %v6623_v11 = vld [vmem:[#allocation19_spill] sm:$0xff] }
 0x1e0   :  { %1870 = vadd.xlane.f32.xlu0 %v1639_v22  ;;  %v5658_v35 = vpop.xlane.xlu1 %1686  ;;  %4775 = vtanh.f32 %v6623_v11  ;;  %v1587_v22 = vmul.f32 %v5564_v30, %v4762_v14  ;;  %v4766_v46 = vpop.eup %4765  ;;  %v2103_v14 = vadd.s32 4294967232, %v5559_v41  ;;  %v2124_v11 = vadd.s32 4294967208, %v5559_v41 }
 0x1e1   :  { %v1673_v62 = vpop.xlane.xlu0 %1672  ;;  %4777 = vtanh.f32 %v1392_v48  ;;  %v2110_v48 = vadd.s32 4294967224, %v5559_v41 }
 0x1e2   :  { %v2079_v13 = vrot.slane %v1673_v62, %v5645_v17  ;;  %v1651_v62 = vmul.f32 %v5564_v30, %v4766_v46 }
 0x1e3   :  { %1754 = vadd.xlane.f32.xlu1 %v1581_v24  ;;  %v4768_v28 = vpop.eup %4767 }
 0x1e4   :  { %v2081_v58 = vsel %vm2080_vm3, %v2079_v13, %v2074_v9  ;;  %1866 = vadd.xlane.f32.xlu0 %v1637_v6  ;;  %v5672_v37 = vpop.xlane.xlu1 %1682  ;;  %v1576_v6 = vmul.f32 %v5564_v30, %v4768_v28  ;;  %v5730_v28 = vsub.s32 %v2110_v48, %v5045_v12 }
 0x1e5   :  { %v2088_v32 = vsel %vm2087_vm4, %v2086_v23, %v2081_v58  ;;  %v1801_v4 = vpop.xlane.xlu0 %1800  ;;  %v4770_v24 = vpop.eup %4769  ;;  %v2428_v23 = vrot.slane %v5640_v44, %v5654_v26 }
 0x1e6   :  { %v2418_v53 = vrot.slane %v1801_v4, %v5645_v17  ;;  %v2095_v9 = vsel %vm2094_vm5, %v2093_v38, %v2088_v32  ;;  %v4772_v34 = vpop.eup %4771  ;;  %v1585_v32 = vmul.f32 %v5564_v30, %v4770_v24  ;;  %v6626_v24 = vld [vmem:[#allocation21_spill] sm:$0xff] }
 0x1e7   :  { %1892 = vadd.xlane.f32.xlu1 %v1650_v52  ;;  %v5683_v19 = vsel %vm2101_vm6, %v2100_v43, %v2095_v9  ;;  %v4774_v44 = vpop.eup %4773  ;;  %v1640_v4 = vmul.f32 %v5564_v30, %v4772_v34  ;;  %v2117_v9 = vadd.s32 4294967216, %v5559_v41 }
 0x1e8   :  { %v2419_v49 = vsel %vm2080_vm3, %v2418_v53, %v5628_v60  ;;  %1748 = vadd.xlane.f32.xlu0 %v1578_v16  ;;  %v5687_v15 = vpop.xlane.xlu1 %1694  ;;  %v6624_v60 = vld [vmem:[#allocation20_spill] sm:$0xff] }
 0x1e9   :  { %v1807_v33 = vpop.xlane.xlu0 %1806  ;;  %4779 = vtanh.f32 %v6624_v60  ;;  %v5734_v60 = vsub.s32 %v2117_v9, %v5045_v12 }
 0x1ea   :  { %v2433_v54 = vrot.slane %v1807_v33, %v5651_v29  ;;  %4781 = vtanh.f32 %v1390_v63  ;;  %v4776_v16 = vpop.eup %4775 }
 0x1eb   :  { %1766 = vadd.xlane.f32.xlu1 %v1587_v22  ;;  %4783 = vtanh.f32 %v5361_v10  ;;  %v4778_v42 = vpop.eup %4777  ;;  %v1393_v10 = vadd.f32 %v5424_v36, %v5450_v2  ;;  %v1649_v22 = vmul.f32 %v5564_v30, %v4774_v44  ;;  %v1643_v46 = vmul.f32 %v5564_v30, %v4776_v16  ;;  %v6629_v16 = vld [vmem:[#allocation24_spill] sm:$0xff] }
 0x1ec   :  { %1876 = vadd.xlane.f32.xlu0 %v1642_v39  ;;  %v5694_v55 = vpop.xlane.xlu1 %1690  ;;  %4785 = vtanh.f32 %v1329_v20  ;;  %v5727_v39 = vsub.s32 %v2103_v14, %v5045_v12  ;;  %v1654_v63 = vmul.f32 %v5564_v30, %v4778_v42  ;;  %v6627_v20 = vld [vmem:[#allocation23_spill] sm:$0xff]  ;;  %v1324_v48 = vadd.f32 %v6629_v16, %v5471_v7 }
 0x1ed   :  { %v1803_v50 = vpop.xlane.xlu0 %1802 }
 0x1ee   :  { %v2423_v13 = vrot.slane %v1803_v50, %v5648_v47  ;;  %v1327_v50 = vadd.f32 %v5471_v7, %v5431_v27  ;;  %v2114_v27 = vrot.slane %v5672_v37, %v5730_v28 }
 0x1ef   :  { %1894 = vadd.xlane.f32.xlu1 %v1651_v62 }
 0x1f0   :  { %v2424_v52 = vsel %vm2087_vm4, %v2423_v13, %v2419_v49  ;;  %1744 = vadd.xlane.f32.xlu0 %v1576_v6  ;;  %v5706_v38 = vpop.xlane.xlu1 %1828  ;;  %v6625_v49 = vld [vmem:[#allocation22_spill] sm:$0xff]  ;;  %v5742_v13 = vsub.s32 %v2124_v11, %v5045_v12 }
 0x1f1   :  { %v2429_v58 = vsel %vm2094_vm5, %v2428_v23, %v2424_v52  ;;  %v1685_v43 = vpop.xlane.xlu0 %1684  ;;  %4787 = vtanh.f32 %v6625_v49 }
 0x1f2   :  { %v2434_v53 = vsel %vm2101_vm6, %v2433_v54, %v2429_v58  ;;  %4789 = vtanh.f32 %v1393_v10  ;;  %v6628_v58 = vld [vmem:[#allocation29_spill] sm:$0xff]  ;;  %v2121_v44 = vrot.slane %v1685_v43, %v5734_v60  ;;  %v2128_v37 = vrot.slane %v5658_v35, %v5742_v13 }
 0x1f3   :  { %1762 = vadd.xlane.f32.xlu1 %v1585_v32  ;;  %v4780_v36 = vpop.eup %4779  ;;  %4791 = vtanh.f32 %v6626_v24  ;;  %v1391_v32 = vadd.f32 %v5450_v2, %v6628_v58 }
 0x1f4   :  { %1872 = vadd.xlane.f32.xlu0 %v1640_v4  ;;  %v5718_v8 = vpop.xlane.xlu1 %1824  ;;  %v4782_v34 = vpop.eup %4781  ;;  %v1641_v54 = vmul.f32 %v5564_v30, %v4780_v36  ;;  %4793 = vtanh.f32 %v6627_v20 }
 0x1f5   :  { %v5722_v33 = vpop.xlane.xlu0 %1812  ;;  %v4784_v52 = vpop.eup %4783  ;;  %4795 = vtanh.f32 %v1327_v50  ;;  %v1652_v9 = vmul.f32 %v5564_v30, %v4782_v34  ;;  %v6630_v50 = vld [vmem:[#allocation26_spill] sm:$0xff] }
 0x1f6   :  { %v4786_v49 = vpop.eup %4785  ;;  %v1582_v11 = vmul.f32 %v5564_v30, %v4784_v52  ;;  %4797 = vtanh.f32 %v1391_v32  ;;  %v1322_v24 = vadd.f32 %v5471_v7, %v6630_v50  ;;  %v1394_v52 = vadd.f32 %v5450_v2, %v5443_v45 }
 0x1f7   :  { %1890 = vadd.xlane.f32.xlu1 %v1649_v22  ;;  %4799 = vtanh.f32 %v1324_v48 }
 0x1f8   :  { %1878 = vadd.xlane.f32.xlu0 %v1643_v46  ;;  %v5738_v62 = vpop.xlane.xlu1 %1702 }
 0x1f9   :  { %v1681_v6 = vpop.xlane.xlu0 %1680 }
 0x1fa   :  { %v2107_v23 = vrot.slane %v1681_v6, %v5727_v39 }
 0x1fb   :  { %1900 = vadd.xlane.f32.xlu1 %v1654_v63  ;;  %v4788_v46 = vpop.eup %4787 }
 0x1fc   :  { %v2109_v4 = vsel %vm2108_vm7, %v2107_v23, %v5683_v19  ;;  %1874 = vadd.xlane.f32.xlu0 %v1641_v54  ;;  %v5754_v14 = vpop.xlane.xlu1 %1698  ;;  %v1396_v19 = vadd.f32 %v5438_v61, %v5450_v2  ;;  %v1591_v61 = vmul.f32 %v5564_v30, %v4786_v49  ;;  %v4790_v34 = vpop.eup %4789  ;;  %v1580_v23 = vmul.f32 %v5564_v30, %v4788_v46  ;;  %v6632_v49 = vld [vmem:[#allocation27_spill] sm:$0xff] }
 0x1fd   :  { %v2116_v42 = vsel %vm2115_vm8, %v2114_v27, %v2109_v4  ;;  %v1809_v10 = vpop.xlane.xlu0 %1808  ;;  %v4792_v54 = vpop.eup %4791  ;;  %v6631_v27 = vld [vmem:[#allocation25_spill] sm:$0xff] }
 0x1fe   :  { %v2438_v43 = vrot.slane %v1809_v10, %v5727_v39  ;;  %v2123_v22 = vsel %vm2122_vm9, %v2121_v44, %v2116_v42  ;;  %4801 = vtanh.f32 %v1396_v19  ;;  %v4794_v20 = vpop.eup %4793  ;;  %v1386_v58 = vadd.f32 %v5450_v2, %v6631_v27 }
 0x1ff   :  { %1896 = vadd.xlane.f32.xlu1 %v1652_v9  ;;  %v5768_v36 = vsel %vm2129_vm10, %v2128_v37, %v2123_v22  ;;  %4803 = vtanh.f32 %v1322_v24  ;;  %v1655_v44 = vmul.f32 %v5564_v30, %v4790_v34  ;;  %v4796_v4 = vpop.eup %4795  ;;  %v1644_v48 = vmul.f32 %v5564_v30, %v4792_v54 }
 0x200   :  { %v2439_v35 = vsel %vm2108_vm7, %v2438_v43, %v2434_v53  ;;  %1756 = vadd.xlane.f32.xlu0 %v1582_v11  ;;  %v5771_v63 = vpop.xlane.xlu1 %1836  ;;  %v2448_v37 = vrot.slane %v5722_v33, %v5734_v60  ;;  %4805 = vtanh.f32 %v1394_v52  ;;  %v1333_v10 = vadd.f32 %v5454_v18, %v5471_v7  ;;  %v4798_v22 = vpop.eup %4797  ;;  %v6633_v52 = vld [vmem:[#allocation28_spill] sm:$0xff] }
 0x201   :  { %v1815_v6 = vpop.xlane.xlu0 %1814  ;;  %4807 = vtanh.f32 %v1386_v58  ;;  %v1328_v43 = vadd.f32 %v6632_v49, %v5471_v7  ;;  %v1589_v33 = vmul.f32 %v5564_v30, %v4796_v4  ;;  %v1645_v46 = vmul.f32 %v5564_v30, %v4794_v20  ;;  %v4800_v18 = vpop.eup %4799 }
 0x202   :  { %v2453_v45 = vrot.slane %v1815_v6, %v5742_v13  ;;  %v2138_v24 = vadd.s32 4294967192, %v5559_v41  ;;  %4809 = vtanh.f32 %v1333_v10  ;;  %v2145_v34 = vadd.s32 4294967184, %v5559_v41  ;;  %v6635_v10 = vld [vmem:[#allocation30_spill] sm:$0xff] }
 0x203   :  { %1774 = vadd.xlane.f32.xlu1 %v1591_v61  ;;  %v1397_v61 = vadd.f32 %v5452_v1, %v5450_v2  ;;  %v2152_v54 = vadd.s32 4294967176, %v5559_v41  ;;  %4811 = vtanh.f32 %v1328_v43  ;;  %v1326_v20 = vadd.f32 %v5471_v7, %v6633_v52 }
 0x204   :  { %1752 = vadd.xlane.f32.xlu0 %v1580_v23  ;;  %v5779_v53 = vpop.xlane.xlu1 %1832  ;;  %v1653_v58 = vmul.f32 %v5564_v30, %v4798_v22  ;;  %v1332_v49 = vadd.f32 %v6635_v10, %v5471_v7 }
 0x205   :  { %v1811_v32 = vpop.xlane.xlu0 %1810  ;;  %4813 = vtanh.f32 %v1397_v61 }
 0x206   :  { %v2443_v16 = vrot.slane %v1811_v32, %v5730_v28  ;;  %v1586_v32 = vmul.f32 %v5564_v30, %v4800_v18  ;;  %4815 = vtanh.f32 %v1326_v20  ;;  %v6636_v18 = vld [vmem:[#allocation31_spill] sm:$0xff] }
 0x207   :  { %1902 = vadd.xlane.f32.xlu1 %v1655_v44  ;;  %v5820_v44 = vsub.s32 %v2138_v24, %v5045_v12  ;;  %v1330_v24 = vadd.f32 %v5471_v7, %v6636_v18 }
 0x208   :  { %v2444_v42 = vsel %vm2115_vm8, %v2443_v16, %v2439_v35  ;;  %1880 = vadd.xlane.f32.xlu0 %v1644_v48  ;;  %v5792_v9 = vpop.xlane.xlu1 %1710  ;;  %v2131_v35 = vadd.s32 4294967200, %v5559_v41  ;;  %v4802_v6 = vpop.eup %4801  ;;  %v5824_v16 = vsub.s32 %v2145_v34, %v5045_v12  ;;  %v6634_v48 = vld [vmem:[#allocation32_spill] sm:$0xff] }
 0x209   :  { %v2449_v11 = vsel %vm2122_vm9, %v2448_v37, %v2444_v42  ;;  %v1693_v19 = vpop.xlane.xlu0 %1692  ;;  %v4804_v1 = vpop.eup %4803  ;;  %v1658_v4 = vmul.f32 %v5564_v30, %v4802_v6  ;;  %v1331_v37 = vadd.f32 %v5471_v7, %v6634_v48  ;;  %v5831_v42 = vsub.s32 %v2152_v54, %v5045_v12 }
 0x20a   :  { %v5801_v50 = vsel %vm2129_vm10, %v2453_v45, %v2449_v11  ;;  %v5817_v2 = vsub.s32 %v2131_v35, %v5045_v12  ;;  %v4806_v11 = vpop.eup %4805  ;;  %v1584_v22 = vmul.f32 %v5564_v30, %v4804_v1  ;;  %v2142_v35 = vrot.slane %v5694_v55, %v5820_v44 }
 0x20b   :  { %1770 = vadd.xlane.f32.xlu1 %v1589_v33  ;;  %v2149_v6 = vrot.slane %v1693_v19, %v5824_v16  ;;  %4817 = vtanh.f32 %v1331_v37  ;;  %v2156_v54 = vrot.slane %v5687_v15, %v5831_v42  ;;  %v1656_v20 = vmul.f32 %v5564_v30, %v4806_v11 }
 0x20c   :  { %1882 = vadd.xlane.f32.xlu0 %v1645_v46  ;;  %v5807_v23 = vpop.xlane.xlu1 %1838  ;;  %v4808_v46 = vpop.eup %4807  ;;  %4819 = vtanh.f32 %v1332_v49 }
 0x20d   :  { %v5812_v27 = vpop.xlane.xlu0 %1820  ;;  %v4810_v7 = vpop.eup %4809  ;;  %4821 = vtanh.f32 %v5463_v51 }
 0x20e   :  { %4823 = vtanh.f32 %v1330_v24 }
 0x20f   :  { %1898 = vadd.xlane.f32.xlu1 %v1653_v58  ;;  %v1648_v58 = vmul.f32 %v5564_v30, %v4808_v46  ;;  %4825 = vtanh.f32 %v5483_v57 }
 0x210   :  { %1764 = vadd.xlane.f32.xlu0 %v1586_v32  ;;  %v5828_v45 = vpop.xlane.xlu1 %1706  ;;  %v4812_v32 = vpop.eup %4811  ;;  %4827 = vtanh.f32 %v5478_v5 }
 0x211   :  { %v1689_v43 = vpop.xlane.xlu0 %1688  ;;  %v4814_v48 = vpop.eup %4813  ;;  %v1590_v37 = vmul.f32 %v5564_v30, %v4812_v32  ;;  %4829 = vtanh.f32 %v5493_v0  ;;  %v6637_v32 = vld [vmem:[#allocation34_spill] sm:$0xff] }
 0x212   :  { %v2135_v33 = vrot.slane %v1689_v43, %v5817_v2  ;;  %v4816_v10 = vpop.eup %4815  ;;  %v1659_v43 = vmul.f32 %v5564_v30, %v4814_v48  ;;  %4831 = vtanh.f32 %v5486_v21  ;;  %v6638_v48 = vld [vmem:[#allocation33_spill] sm:$0xff] }
 0x213   :  { %1908 = vadd.xlane.f32.xlu1 %v1658_v4  ;;  %v1595_v4 = vmul.f32 %v5564_v30, %v4810_v7  ;;  %4833 = vtanh.f32 %v5499_v25 }
 0x214   :  { %v2137_v61 = vsel %vm2136_vm11, %v2135_v33, %v5768_v36  ;;  %1760 = vadd.xlane.f32.xlu0 %v1584_v22  ;;  %v5844_v34 = vpop.xlane.xlu1 %1834  ;;  %v1588_v33 = vmul.f32 %v5564_v30, %v4816_v10  ;;  %4835 = vtanh.f32 %v5496_v3 }
 0x215   :  { %v2144_v55 = vsel %vm2143_vm12, %v2142_v35, %v2137_v61  ;;  %v5849_v52 = vpop.xlane.xlu0 %1816  ;;  %v4818_v11 = vpop.eup %4817  ;;  %4837 = vtanh.f32 %v6637_v32 }
 0x216   :  { %v2151_v19 = vsel %vm2150_vm13, %v2149_v6, %v2144_v55  ;;  %v4820_v22 = vpop.eup %4819  ;;  %v1593_v46 = vmul.f32 %v5564_v30, %v4818_v11  ;;  %v2166_v55 = vrot.slane %v5754_v14, %v5584_v40  ;;  %4839 = vtanh.f32 %v6638_v48 }
 0x217   :  { %v5855_v36 = vsel %vm2157_vm14, %v2156_v54, %v2151_v19  ;;  %1904 = vadd.xlane.f32.xlu1 %v1656_v20  ;;  %v4822_v35 = vpop.eup %4821  ;;  %v1594_v18 = vmul.f32 %v5564_v30, %v4820_v22 }
 0x218   :  { %1888 = vadd.xlane.f32.xlu0 %v1648_v58  ;;  %v5858_v15 = vpop.xlane.xlu1 %1844  ;;  %v4824_v24 = vpop.eup %4823  ;;  %v1657_v21 = vmul.f32 %v5564_v30, %v4822_v35  ;;  %v2176_v58 = vrot.slane %v5738_v62, %v5597_v31  ;;  %v2478_v35 = vrot.slane %v5718_v8, %v5591_v59 }
 0x219   :  { %v5860_v1 = vpop.xlane.xlu0 %1822  ;;  %v4826_v6 = vpop.eup %4825  ;;  %v1592_v7 = vmul.f32 %v5564_v30, %v4824_v24 }
 0x21a   :  { %v4828_v0 = vpop.eup %4827  ;;  %v1660_v25 = vmul.f32 %v5564_v30, %v4826_v6 }
 0x21b   :  { %1782 = vadd.xlane.f32.xlu1 %v1595_v4  ;;  %v1598_v14 = vmul.f32 %v5564_v30, %v4828_v0  ;;  %v2487_v0 = vrot.slane %v5706_v38, %v5587_v56  ;;  %v2502_v38 = vrot.slane %v5844_v34, %v5648_v47 }
 0x21c   :  { %1772 = vadd.xlane.f32.xlu0 %v1590_v37  ;;  %v5866_v49 = vpop.xlane.xlu1 %1840 }
 0x21d   :  { %v5868_v51 = vpop.xlane.xlu0 %1818 }
 0x21f   :  { %1910 = vadd.xlane.f32.xlu1 %v1659_v43  ;;  %v4830_v43 = vpop.eup %4829 }
 0x220   :  { %1768 = vadd.xlane.f32.xlu0 %v1588_v33  ;;  %v5873_v57 = vpop.xlane.xlu1 %1718  ;;  %v4832_v33 = vpop.eup %4831 }
 0x221   :  { %v1701_v5 = vpop.xlane.xlu0 %1700  ;;  %v1596_v24 = vmul.f32 %v5564_v30, %v4832_v33 }
 0x222   :  { %v2171_v19 = vrot.slane %v1701_v5, %v5587_v56  ;;  %v1599_v5 = vmul.f32 %v5564_v30, %v4830_v43 }
 0x223   :  { %1778 = vadd.xlane.f32.xlu1 %v1593_v46  ;;  %v4834_v46 = vpop.eup %4833 }
 0x224   :  { %1780 = vadd.xlane.f32.xlu0 %v1594_v18  ;;  %v5879_v61 = vpop.xlane.xlu1 %1846  ;;  %v4836_v6 = vpop.eup %4835 }
 0x225   :  { %v1697_v54 = vpop.xlane.xlu0 %1696  ;;  %v1661_v32 = vmul.f32 %v5564_v30, %v4836_v6 }
 0x226   :  { %v2162_v20 = vrot.slane %v1697_v54, %v5591_v59 }
 0x227   :  { %1906 = vadd.xlane.f32.xlu1 %v1657_v21 }
 0x228   :  { %v2167_v3 = vsel %vm2059_vm0, %v2166_v55, %v2162_v20  ;;  %1776 = vadd.xlane.f32.xlu0 %v1592_v7  ;;  %v5893_v4 = vpop.xlane.xlu1 %1714  ;;  %v2497_v20 = vrot.slane %v5779_v53, %v5645_v17 }
 0x229   :  { %v2172_v37 = vsel %vm2066_vm1, %v2171_v19, %v2167_v3  ;;  %v1831_v10 = vpop.xlane.xlu0 %1830  ;;  %v1597_v19 = vmul.f32 %v5564_v30, %v4834_v46 }
 0x22a   :  { %v2177_v11 = vsel %vm2073_vm2, %v2176_v58, %v2172_v37  ;;  %v2492_v54 = vrot.slane %v1831_v10, %v5597_v31 }
 0x22b   :  { %1912 = vadd.xlane.f32.xlu1 %v1660_v25  ;;  %v4838_v25 = vpop.eup %4837 }
 0x22c   :  { %1788 = vadd.xlane.f32.xlu0 %v1598_v14  ;;  %v5899_v62 = vpop.xlane.xlu1 %1842  ;;  %v4840_v3 = vpop.eup %4839  ;;  %v2507_v14 = vrot.slane %v5771_v63, %v5654_v26  ;;  %v1663_v43 = vmul.f32 %v5564_v30, %v4838_v25  ;;  %v2186_v63 = vrot.slane %v5828_v45, %v5648_v47  ;;  %v2206_v45 = vrot.slane %v5893_v4, %v5730_v28 }
 0x22d   :  { %v1827_v22 = vpop.xlane.xlu0 %1826 }
 0x22e   :  { %v2482_v18 = vrot.slane %v1827_v22, %v5584_v40  ;;  %v1662_v22 = vmul.f32 %v5564_v30, %v4840_v3 }
 0x22f   :  { %1790 = vadd.xlane.f32.xlu1 %v1599_v5 }
 0x230   :  { %v2483_v21 = vsel %vm2059_vm0, %v2482_v18, %v2478_v35  ;;  %1784 = vadd.xlane.f32.xlu0 %v1596_v24  ;;  %v5910_v55 = vpop.xlane.xlu1 %1852 }
 0x231   :  { %v2488_v8 = vsel %vm2066_vm1, %v2487_v0, %v2483_v21  ;;  %v1709_v7 = vpop.xlane.xlu0 %1708 }
 0x232   :  { %v2493_v58 = vsel %vm2073_vm2, %v2492_v54, %v2488_v8  ;;  %v2191_v24 = vrot.slane %v1709_v7, %v5654_v26  ;;  %v2196_v54 = vrot.slane %v5792_v9, %v5651_v29 }
 0x233   :  { %v2498_v48 = vsel %vm2080_vm3, %v2497_v20, %v2493_v58  ;;  %1786 = vadd.xlane.f32.xlu1 %v1597_v19  ;;  %v2216_v58 = vrot.slane %v5873_v57, %v5742_v13 }
 0x234   :  { %v2503_v53 = vsel %vm2087_vm4, %v2502_v38, %v2498_v48  ;;  %1914 = vadd.xlane.f32.xlu0 %v1661_v32  ;;  %v5924_v37 = vpop.xlane.xlu1 %1848 }
 0x235   :  { %6639 = vst [vmem:[#allocation17_spill] sm:$0xff] %v5924_v37  ;;  %v5927_v10 = vsel %vm2094_vm5, %v2507_v14, %v2503_v53  ;;  %v1705_v34 = vpop.xlane.xlu0 %1704 }
 0x236   :  { %v2181_v33 = vrot.slane %v1705_v34, %v5645_v17 }
 0x237   :  { %1918 = vadd.xlane.f32.xlu1 %v1663_v43 }
 0x238   :  { %v2182_v5 = vsel %vm2080_vm3, %v2181_v33, %v2177_v11  ;;  %1916 = vadd.xlane.f32.xlu0 %v1662_v22  ;;  %v1727_v46 = vpop.xlane.xlu1 %1726 }
 0x239   :  { %v2187_v35 = vsel %vm2087_vm4, %v2186_v63, %v2182_v5  ;;  %v1717_v18 = vpop.xlane.xlu0 %1716  ;;  %v2236_v43 = vrot.slane %v1727_v46, %v5831_v42 }
 0x23a   :  { %v2192_v6 = vsel %vm2094_vm5, %v2191_v24, %v2187_v35  ;;  %v2211_v25 = vrot.slane %v1717_v18, %v5734_v60 }
 0x23b   :  { %v2197_v11 = vsel %vm2101_vm6, %v2196_v54, %v2192_v6 }
 0x23c   :  { %v1723_v0 = vpop.xlane.xlu1 %1722 }
 0x23d   :  { %v1713_v30 = vpop.xlane.xlu0 %1712  ;;  %v2226_v3 = vrot.slane %v1723_v0, %v5820_v44 }
 0x23e   :  { %v2201_v21 = vrot.slane %v1713_v30, %v5727_v39 }
 0x240   :  { %v2202_v20 = vsel %vm2108_vm7, %v2201_v21, %v2197_v11  ;;  %v5945_v8 = vpop.xlane.xlu1 %1850 }
 0x241   :  { %6640 = vst [vmem:[#allocation18_spill] sm:$0xff] %v5945_v8  ;;  %v2207_v7 = vsel %vm2115_vm8, %v2206_v45, %v2202_v20  ;;  %v1725_v19 = vpop.xlane.xlu0 %1724 }
 0x242   :  { %v2212_v38 = vsel %vm2122_vm9, %v2211_v25, %v2207_v7  ;;  %v2231_v48 = vrot.slane %v1725_v19, %v5824_v16 }
 0x243   :  { %v2217_v14 = vsel %vm2129_vm10, %v2216_v58, %v2212_v38 }
 0x244   :  { %v5950_v9 = vpop.xlane.xlu1 %1860 }
 0x245   :  { %v1721_v32 = vpop.xlane.xlu0 %1720 }
 0x246   :  { %v2221_v4 = vrot.slane %v1721_v32, %v5817_v2 }
 0x248   :  { %v2222_v53 = vsel %vm2136_vm11, %v2221_v4, %v2217_v14  ;;  %v5959_v34 = vpop.xlane.xlu1 %1734 }
 0x249   :  { %v2227_v33 = vsel %vm2143_vm12, %v2226_v3, %v2222_v53  ;;  %v5963_v22 = vpop.xlane.xlu0 %1854 }
 0x24a   :  { %6641 = vst [vmem:[#allocation19_spill] sm:$0xff] %v5963_v22  ;;  %v2232_v57 = vsel %vm2150_vm13, %v2231_v48, %v2227_v33 }
 0x24b   :  { %v2237_v63 = vsel %vm2157_vm14, %v2236_v43, %v2232_v57 }
 0x24c   :  { %v5969_v5 = vsel %vm2712_vm15, %v2237_v63, %v5855_v36  ;;  %v1731_v35 = vpop.xlane.xlu1 %1730 }
 0x24d   :  { %6642 = vst [vmem:[#allocation20_spill] sm:$0xff] %v5969_v5  ;;  %v1733_v18 = vpop.xlane.xlu0 %1732 }
 0x250   :  { %v5971_v24 = vpop.xlane.xlu1 %1858 }
 0x251   :  { %v1729_v6 = vpop.xlane.xlu0 %1728 }
 0x252   :  { %v2241_v37 = vrot.slane %v1729_v6, %v5591_v59 }
 0x254   :  { %v5973_v0 = vpop.xlane.xlu1 %1742 }
 0x255   :  { %v5975_v46 = vpop.xlane.xlu0 %1856 }
 0x258   :  { %v1739_v54 = vpop.xlane.xlu1 %1738 }
 0x259   :  { %v5977_v30 = vpop.xlane.xlu0 %1862 }
 0x25c   :  { %v5979_v21 = vpop.xlane.xlu1 %1750 }
 0x25d   :  { %6643 = vst [vmem:[#allocation22_spill] sm:$0xff] %v5979_v21  ;;  %v5981_v45 = vpop.xlane.xlu0 %1740 }
 0x260   :  { %v5983_v11 = vpop.xlane.xlu1 %1746 }
 0x261   :  { %v5985_v36 = vpop.xlane.xlu0 %1868 }
 0x264   :  { %v5987_v20 = vpop.xlane.xlu1 %1884 }
 0x265   :  { %6644 = vst [vmem:[#allocation21_spill] sm:$0xff] %v5987_v20  ;;  %v1737_v7 = vpop.xlane.xlu0 %1736 }
 0x266   :  { %v2260_v21 = vrot.slane %v1737_v7, %v5645_v17 }
 0x268   :  { %v5989_v19 = vpop.xlane.xlu1 %1758 }
 0x269   :  { %6645 = vst [vmem:[#allocation23_spill] sm:$0xff] %v5989_v19  ;;  %v5991_v25 = vpop.xlane.xlu0 %1864 }
 0x26c   :  { %v5993_v38 = vpop.xlane.xlu1 %1886 }
 0x26d   :  { %6646 = vst [vmem:[#allocation29_spill] sm:$0xff] %v5993_v38  ;;  %v5995_v58 = vpop.xlane.xlu0 %1870 }
 0x26e   :  { %6647 = vst [vmem:[#allocation24_spill] sm:$0xff] %v5995_v58 }
 0x270   :  { %v5997_v32 = vpop.xlane.xlu1 %1754 }
 0x271   :  { %6648 = vst [vmem:[#allocation26_spill] sm:$0xff] %v5997_v32  ;;  %v5999_v4 = vpop.xlane.xlu0 %1866 }
 0x274   :  { %v6001_v3 = vpop.xlane.xlu1 %1892 }
 0x275   :  { %v6003_v14 = vpop.xlane.xlu0 %1748 }
 0x278   :  { %v6005_v48 = vpop.xlane.xlu1 %1766 }
 0x279   :  { %v6007_v53 = vpop.xlane.xlu0 %1876 }
 0x27a   :  { %6649 = vst [vmem:[#allocation25_spill] sm:$0xff] %v6007_v53 }
 0x27c   :  { %v6009_v43 = vpop.xlane.xlu1 %1894 }
 0x27d   :  { %v6011_v33 = vpop.xlane.xlu0 %1744 }
 0x280   :  { %v1763_v57 = vpop.xlane.xlu1 %1762 }
 0x281   :  { %v6013_v63 = vpop.xlane.xlu0 %1872 }
 0x282   :  { %6650 = vst [vmem:[#allocation27_spill] sm:$0xff] %v6013_v63 }
 0x284   :  { %v1891_v12 = vpop.xlane.xlu1 %1890 }
 0x285   :  { %v6015_v41 = vpop.xlane.xlu0 %1878 }
 0x286   :  { %6651 = vst [vmem:[#allocation28_spill] sm:$0xff] %v6015_v41 }
 0x288   :  { %v6017_v38 = vpop.xlane.xlu1 %1900 }
 0x289   :  { %6652 = vst [vmem:[#allocation32_spill] sm:$0xff] %v6017_v38  ;;  %v6019_v5 = vpop.xlane.xlu0 %1874 }
 0x28a   :  { %6653 = vst [vmem:[#allocation30_spill] sm:$0xff] %v6019_v5  ;;  %v2245_v5 = vrot.slane %v1731_v35, %v5584_v40  ;;  %v2255_v35 = vrot.slane %v5959_v34, %v5597_v31  ;;  %v2512_v34 = vrot.slane %v5807_v23, %v5651_v29  ;;  %v2517_v23 = vrot.slane %v5866_v49, %v5727_v39 }
 0x28c   :  { %v6021_v20 = vpop.xlane.xlu1 %1896  ;;  %v2246_v58 = vsel %vm2059_vm0, %v2245_v5, %v2241_v37 }
 0x28d   :  { %v6023_v22 = vpop.xlane.xlu0 %1756 }
 0x28e   :  { %6654 = vst [vmem:[#allocation31_spill] sm:$0xff] %v6023_v22  ;;  %v2250_v22 = vrot.slane %v1733_v18, %v5587_v56 }
 0x290   :  { %v6025_v19 = vpop.xlane.xlu1 %1774  ;;  %v2251_v6 = vsel %vm2066_vm1, %v2250_v22, %v2246_v58  ;;  %v2265_v22 = vrot.slane %v1739_v54, %v5648_v47  ;;  %v2527_v58 = vrot.slane %v5858_v15, %v5734_v60  ;;  %v2473_v54 = vrot.slane %v5860_v1, %v5831_v42 }
 0x291   :  { %6655 = vst [vmem:[#allocation34_spill] sm:$0xff] %v6025_v19  ;;  %v6027_v53 = vpop.xlane.xlu0 %1752  ;;  %v2256_v18 = vsel %vm2073_vm2, %v2255_v35, %v2251_v6  ;;  %v2640_v6 = vrot.slane %v1891_v12, %v5584_v40  ;;  %v2270_v35 = vrot.slane %v5981_v45, %v5654_v26  ;;  %v2645_v12 = vrot.slane %v6001_v3, %v5587_v56 }
 0x292   :  { %6656 = vst [vmem:[#allocation33_spill] sm:$0xff] %v6027_v53  ;;  %v2261_v53 = vsel %vm2080_vm3, %v2260_v21, %v2256_v18 }
 0x293   :  { %v2266_v21 = vsel %vm2087_vm4, %v2265_v22, %v2261_v53  ;;  %v2557_v53 = vrot.slane %v5975_v46, %v5591_v59  ;;  %v2275_v46 = vrot.slane %v5973_v0, %v5651_v29 }
 0x294   :  { %v6029_v8 = vpop.xlane.xlu1 %1902  ;;  %v2271_v45 = vsel %vm2094_vm5, %v2270_v35, %v2266_v21  ;;  %v2581_v21 = vrot.slane %v5999_v4, %v5648_v47 }
 0x295   :  { %6657 = vst [vmem:[#allocation36_spill] sm:$0xff] %v6029_v8  ;;  %v6031_v32 = vpop.xlane.xlu0 %1880  ;;  %v2458_v8 = vrot.slane %v5849_v52, %v5817_v2  ;;  %v2276_v0 = vsel %vm2101_vm6, %v2275_v46, %v2271_v45  ;;  %v6661_v46 = vld [vmem:[#allocation22_spill] sm:$0xff] }
 0x296   :  { %6658 = vst [vmem:[#allocation37_spill] sm:$0xff] %v6031_v32  ;;  %v2463_v32 = vrot.slane %v5868_v51, %v5820_v44  ;;  %v2468_v51 = vrot.slane %v5812_v27, %v5824_v16 }
 0x297   :  { %v2459_v5 = vsel %vm2136_vm11, %v2458_v8, %v5801_v50 }
 0x298   :  { %v6034_v63 = vpop.xlane.xlu1 %1770  ;;  %v2464_v52 = vsel %vm2143_vm12, %v2463_v32, %v2459_v5  ;;  %v2513_v5 = vsel %vm2101_vm6, %v2512_v34, %v5927_v10  ;;  %v2522_v34 = vrot.slane %v5899_v62, %v5730_v28  ;;  %v2576_v62 = vrot.slane %v5991_v25, %v5645_v17  ;;  %v6665_v15 = vld [vmem:[#allocation34_spill] sm:$0xff] }
 0x299   :  { %v6036_v41 = vpop.xlane.xlu0 %1882  ;;  %v2469_v32 = vsel %vm2150_vm13, %v2468_v51, %v2464_v52  ;;  %v2518_v22 = vsel %vm2108_vm7, %v2517_v23, %v2513_v5 }
 0x29a   :  { %6659 = vst [vmem:[#allocation38_spill] sm:$0xff] %v6036_v41  ;;  %v6089_v49 = vsel %vm2157_vm14, %v2473_v54, %v2469_v32  ;;  %v2523_v25 = vsel %vm2115_vm8, %v2522_v34, %v2518_v22  ;;  %v6663_v34 = vld [vmem:[#allocation24_spill] sm:$0xff] }
 0x29c   :  { %v6040_v38 = vpop.xlane.xlu1 %1898 }
 0x29d   :  { %v1765_v19 = vpop.xlane.xlu0 %1764  ;;  %v2660_v5 = vrot.slane %v6040_v38, %v5648_v47 }
 0x29e   :  { %v2329_v3 = vrot.slane %v1765_v19, %v5587_v56 }
 0x2a0   :  { %v6051_v41 = vpop.xlane.xlu1 %1908 }
 0x2a1   :  { %v1761_v37 = vpop.xlane.xlu0 %1760 }
 0x2a2   :  { %v2320_v50 = vrot.slane %v1761_v37, %v5591_v59  ;;  %v2324_v37 = vrot.slane %v1763_v57, %v5584_v40  ;;  %v2280_v57 = vrot.slane %v6011_v33, %v5727_v39  ;;  %v2566_v33 = vrot.slane %v5950_v9, %v5587_v56 }
 0x2a3   :  { %v2334_v56 = vrot.slane %v6005_v48, %v5597_v31  ;;  %v2344_v48 = vrot.slane %v6034_v63, %v5648_v47  ;;  %v6660_v47 = vld [vmem:[#allocation33_spill] sm:$0xff] }
 0x2a4   :  { %v6061_v7 = vpop.xlane.xlu1 %1904  ;;  %v2325_v10 = vsel %vm2059_vm0, %v2324_v37, %v2320_v50  ;;  %v2650_v50 = vrot.slane %v6009_v43, %v5597_v31  ;;  %v2281_v9 = vsel %vm2108_vm7, %v2280_v57, %v2276_v0  ;;  %v2290_v37 = vrot.slane %v6003_v14, %v5734_v60 }
 0x2a5   :  { %v1889_v8 = vpop.xlane.xlu0 %1888  ;;  %v2330_v19 = vsel %vm2066_vm1, %v2329_v3, %v2325_v10  ;;  %v2586_v10 = vrot.slane %v5985_v36, %v5654_v26  ;;  %v2300_v38 = vrot.slane %v6660_v47, %v5817_v2  ;;  %v2295_v3 = vrot.slane %v6661_v46, %v5742_v13  ;;  %v6672_v47 = vld [vmem:[#allocation31_spill] sm:$0xff]  ;;  %v6674_v46 = vld [vmem:[#allocation28_spill] sm:$0xff] }
 0x2a6   :  { %v2636_v27 = vrot.slane %v1889_v8, %v5591_v59  ;;  %v2561_v59 = vrot.slane %v5971_v24, %v5584_v40  ;;  %v2571_v24 = vrot.slane %v5977_v30, %v5597_v31  ;;  %v2285_v30 = vrot.slane %v5983_v11, %v5730_v28 }
 0x2a7   :  { %v2335_v54 = vsel %vm2073_vm2, %v2334_v56, %v2330_v19  ;;  %v6666_v19 = vld [vmem:[#allocation30_spill] sm:$0xff] }
 0x2a8   :  { %v2641_v18 = vsel %vm2059_vm0, %v2640_v6, %v2636_v27  ;;  %v6086_v1 = vpop.xlane.xlu1 %1782  ;;  %v2562_v40 = vsel %vm2059_vm0, %v2561_v59, %v2557_v53  ;;  %v2655_v6 = vrot.slane %v6021_v20, %v5645_v17  ;;  %v2286_v11 = vsel %vm2115_vm8, %v2285_v30, %v2281_v9  ;;  %v6667_v30 = vld [vmem:[#allocation36_spill] sm:$0xff] }
 0x2a9   :  { %v1773_v52 = vpop.xlane.xlu0 %1772  ;;  %v2646_v51 = vsel %vm2066_vm1, %v2645_v12, %v2641_v18  ;;  %v2567_v31 = vsel %vm2066_vm1, %v2566_v33, %v2562_v40  ;;  %v2532_v12 = vrot.slane %v5879_v61, %v5742_v13  ;;  %v2547_v18 = vrot.slane %v5910_v55, %v5824_v16  ;;  %v6664_v40 = vld [vmem:[#allocation27_spill] sm:$0xff] }
 0x2aa   :  { %v2651_v43 = vsel %vm2073_vm2, %v2650_v50, %v2646_v51  ;;  %v2572_v23 = vsel %vm2073_vm2, %v2571_v24, %v2567_v31  ;;  %v2349_v57 = vrot.slane %v1773_v52, %v5654_v26  ;;  %v2291_v14 = vsel %vm2122_vm9, %v2290_v37, %v2286_v11  ;;  %v6662_v52 = vld [vmem:[#allocation32_spill] sm:$0xff]  ;;  %v6669_v31 = vld [vmem:[#allocation26_spill] sm:$0xff] }
 0x2ab   :  { %v2656_v4 = vsel %vm2080_vm3, %v2655_v6, %v2651_v43  ;;  %v2528_v61 = vsel %vm2122_vm9, %v2527_v58, %v2523_v25  ;;  %v2665_v51 = vrot.slane %v6662_v52, %v5654_v26  ;;  %v2591_v33 = vrot.slane %v6663_v34, %v5651_v29 }
 0x2ac   :  { %v6113_v8 = vpop.xlane.xlu1 %1910  ;;  %v2661_v59 = vsel %vm2087_vm4, %v2660_v5, %v2656_v4  ;;  %v2596_v24 = vrot.slane %v6664_v40, %v5727_v39  ;;  %v2354_v58 = vrot.slane %v6665_v15, %v5651_v29  ;;  %v2296_v26 = vsel %vm2129_vm10, %v2295_v3, %v2291_v14  ;;  %v6676_v40 = vld [vmem:[#allocation38_spill] sm:$0xff] }
 0x2ad   :  { %v1769_v32 = vpop.xlane.xlu0 %1768  ;;  %v2666_v56 = vsel %vm2094_vm5, %v2665_v51, %v2661_v59  ;;  %v2533_v43 = vsel %vm2129_vm10, %v2532_v12, %v2528_v61  ;;  %vm2714_vm0 = vcmask 1042434   ;;  %vm2716_vm1 = vcmask 1043459   ;;  %v6673_v59 = vld [vmem:[#allocation23_spill] sm:$0xff] }
 0x2ae   :  { %v2339_v27 = vrot.slane %v1769_v32, %v5645_v17  ;;  %v2577_v17 = vsel %vm2080_vm3, %v2576_v62, %v2572_v23  ;;  %v2601_v62 = vrot.slane %v6666_v19, %v5730_v28  ;;  %v2301_v32 = vsel %vm2136_vm11, %v2300_v38, %v2296_v26  ;;  %v6677_v19 = vld [vmem:[#allocation19_spill] sm:$0xff] }
 0x2af   :  { %v2582_v45 = vsel %vm2087_vm4, %v2581_v21, %v2577_v17  ;;  %v2670_v21 = vrot.slane %v6667_v30, %v5651_v29  ;;  %v2315_v61 = vrot.slane %v6673_v59, %v5831_v42  ;;  %v2611_v3 = vrot.slane %v6674_v46, %v5742_v13 }
 0x2b0   :  { %v2340_v35 = vsel %vm2080_vm3, %v2339_v27, %v2335_v54  ;;  %v1779_v20 = vpop.xlane.xlu1 %1778  ;;  %v2587_v50 = vsel %vm2094_vm5, %v2586_v10, %v2582_v45  ;;  %v6668_v27 = vld [vmem:[#allocation17_spill] sm:$0xff]  ;;  %v2675_v45 = vrot.slane %v6061_v7, %v5727_v39  ;;  %v2685_v15 = vrot.slane %v6051_v41, %v5734_v60 }
 0x2b1   :  { %v2345_v63 = vsel %vm2087_vm4, %v2344_v48, %v2340_v35  ;;  %v1781_v53 = vpop.xlane.xlu0 %1780  ;;  %v2537_v25 = vrot.slane %v6668_v27, %v5817_v2  ;;  %v2305_v48 = vrot.slane %v6669_v31, %v5820_v44  ;;  %v2592_v54 = vsel %vm2101_vm6, %v2591_v33, %v2587_v50 }
 0x2b2   :  { %v2350_v36 = vsel %vm2094_vm5, %v2349_v57, %v2345_v63  ;;  %v2597_v4 = vsel %vm2108_vm7, %v2596_v24, %v2592_v54  ;;  %v2364_v35 = vrot.slane %v1779_v20, %v5730_v28  ;;  %v2671_v29 = vsel %vm2101_vm6, %v2670_v21, %v2666_v56  ;;  %v6670_v57 = vld [vmem:[#allocation18_spill] sm:$0xff]  ;;  %v6671_v20 = vld [vmem:[#allocation25_spill] sm:$0xff] }
 0x2b3   :  { %v2355_v6 = vsel %vm2101_vm6, %v2354_v58, %v2350_v36  ;;  %v2538_v5 = vsel %vm2136_vm11, %v2537_v25, %v2533_v43  ;;  %v2602_v63 = vsel %vm2115_vm8, %v2601_v62, %v2597_v4  ;;  %v2306_v12 = vsel %vm2143_vm12, %v2305_v48, %v2301_v32  ;;  %v6675_v36 = vld [vmem:[#allocation37_spill] sm:$0xff] }
 0x2b4   :  { %v1907_v22 = vpop.xlane.xlu1 %1906  ;;  %v2542_v10 = vrot.slane %v6670_v57, %v5820_v44  ;;  %v2606_v14 = vrot.slane %v6671_v20, %v5734_v60  ;;  %v2676_v7 = vsel %vm2108_vm7, %v2675_v45, %v2671_v29  ;;  %v2616_v34 = vrot.slane %v6675_v36, %v5817_v2  ;;  %v6678_v56 = vld [vmem:[#allocation21_spill] sm:$0xff]  ;;  %v6682_v36 = vld [vmem:[#allocation16_spill] sm:$0xff] }
 0x2b5   :  { %v1777_v0 = vpop.xlane.xlu0 %1776  ;;  %v2680_v17 = vrot.slane %v1907_v22, %v5730_v28  ;;  %v2310_v28 = vrot.slane %v6672_v47, %v5824_v16  ;;  %v2621_v24 = vrot.slane %v6676_v40, %v5820_v44  ;;  %v2552_v62 = vrot.slane %v6677_v19, %v5831_v42 }
 0x2b6   :  { %v2359_v9 = vrot.slane %v1777_v0, %v5727_v39  ;;  %v2369_v39 = vrot.slane %v1781_v53, %v5734_v60  ;;  %v2607_v51 = vsel %vm2122_vm9, %v2606_v14, %v2602_v63  ;;  %v2543_v0 = vsel %vm2143_vm12, %v2542_v10, %v2538_v5 }
 0x2b7   :  { %v2311_v22 = vsel %vm2150_vm13, %v2310_v28, %v2306_v12  ;;  %v2681_v33 = vsel %vm2115_vm8, %v2680_v17, %v2676_v7  ;;  %v2374_v26 = vrot.slane %v6086_v1, %v5742_v13  ;;  %vm2718_vm2 = vcmask 1044484   ;;  %v6679_v17 = vld [vmem:[#allocation20_spill] sm:$0xff]  ;;  %v6680_v12 = vld [vmem:[#allocation29_spill] sm:$0xff] }
 0x2b8   :  { %v2360_v23 = vsel %vm2108_vm7, %v2359_v9, %v2355_v6  ;;  %v6187_v11 = vpop.xlane.xlu1 %1912  ;;  %v2626_v9 = vrot.slane %v6678_v56, %v5824_v16  ;;  %v2316_v43 = vsel %vm2157_vm14, %v2315_v61, %v2311_v22  ;;  %v2612_v41 = vsel %vm2129_vm10, %v2611_v3, %v2607_v51 }
 0x2b9   :  { %v1789_v37 = vpop.xlane.xlu0 %1788  ;;  %v2365_v38 = vsel %vm2115_vm8, %v2364_v35, %v2360_v23  ;;  %v2686_v60 = vsel %vm2122_vm9, %v2685_v15, %v2681_v33  ;;  %v2617_v30 = vsel %vm2136_vm11, %v2616_v34, %v2612_v41  ;;  %v2690_v21 = vrot.slane %v6113_v8, %v5742_v13  ;;  %v6683_v33 = vld [vmem:[#allocation15_spill] sm:$0xff] }
 0x2ba   :  { %v2370_v53 = vsel %vm2122_vm9, %v2369_v39, %v2365_v38  ;;  %v2622_v25 = vsel %vm2143_vm12, %v2621_v24, %v2617_v30  ;;  %v2695_v31 = vrot.slane %v6187_v11, %v5817_v2  ;;  %v2389_v48 = vrot.slane %v1789_v37, %v5824_v16  ;;  %v6681_v38 = vld [vmem:[#allocation35_spill] sm:$0xff] }
 0x2bb   :  { %v2375_v6 = vsel %vm2129_vm10, %v2374_v26, %v2370_v53  ;;  %v2691_v23 = vsel %vm2129_vm10, %v2690_v21, %v2686_v60  ;;  %v2548_v35 = vsel %vm2150_vm13, %v2547_v18, %v2543_v0  ;;  %vm2720_vm3 = vcmask 1045509  }
 0x2bc   :  { %v1791_v52 = vpop.xlane.xlu1 %1790  ;;  %vm2722_vm4 = vcmask 1046534   ;;  %v2627_v11 = vsel %vm2150_vm13, %v2626_v9, %v2622_v25  ;;  %v2715_v37 = vsel %vm2714_vm0, %v2316_v43, %v6679_v17  ;;  %v2631_v55 = vrot.slane %v6680_v12, %v5831_v42 }
 0x2bd   :  { %v1785_v50 = vpop.xlane.xlu0 %1784  ;;  %v2394_v4 = vrot.slane %v1791_v52, %v5831_v42  ;;  %v2696_v18 = vsel %vm2136_vm11, %v2695_v31, %v2691_v23  ;;  %v2553_v10 = vsel %vm2157_vm14, %v2552_v62, %v2548_v35  ;;  %vm2724_vm5 = vcmask 1047559  }
 0x2be   :  { %v2379_v58 = vrot.slane %v1785_v50, %v5817_v2  ;;  %v2632_v47 = vsel %vm2157_vm14, %v2631_v55, %v2627_v11  ;;  %vm2729_vm6 = vcmp.lt.s32.totalorder %v6681_v38, 8  ;;  %v3068_v50 = vsub.s32 1, %v6683_v33  ;;  %v4216_v55 = vld [vmem:[#allocation5 + $0x48] sm:$0xff]  }
 0x2bf   :  { %v3135_v24 = vsub.s32 2, %v6683_v33  ;;  %v3202_v53 = vsub.s32 3, %v6683_v33  ;;  %v3269_v62 = vsub.s32 4, %v6683_v33  ;;  %v3336_v25 = vsub.s32 5, %v6683_v33 }
 0x2c0   :  { %v1787_v32 = vpop.xlane.xlu1 %1786  ;;  %v2380_v54 = vsel %vm2136_vm11, %v2379_v58, %v2375_v6 }
 0x2c1   :  { %v2384_v1 = vrot.slane %v1787_v32, %v5820_v44  ;;  %v1915_v27 = vpop.xlane.xlu0 %1914 }
 0x2c2   :  { %v2700_v8 = vrot.slane %v1915_v27, %v5820_v44  ;;  %v3953_v27 = vld [vmem:[#allocation5] sm:$0xff]  }
 0x2c3   :  { %v2385_v13 = vsel %vm2143_vm12, %v2384_v1, %v2380_v54  ;;  %v4208_v54 = vld [vmem:[#allocation5 + $0x8] sm:$0xff]   ;;  %v3955_v23 = vunpack.c.h.bf16 %v3953_v27 }
 0x2c4   :  { %v2390_v29 = vsel %vm2150_vm13, %v2389_v48, %v2385_v13  ;;  %v1919_v2 = vpop.xlane.xlu1 %1918  ;;  %v2701_v14 = vsel %vm2143_vm12, %v2700_v8, %v2696_v18  ;;  %v3403_v13 = vsub.s32 6, %v6683_v33  ;;  %v3958_v35 = vunpack.c.l.bf16 %v4208_v54 }
 0x2c5   :  { %v2395_v5 = vsel %vm2157_vm14, %v2394_v4, %v2390_v29  ;;  %v2710_v63 = vrot.slane %v1919_v2, %v5831_v42  ;;  %v1917_v44 = vpop.xlane.xlu0 %1916  ;;  %v3954_v4 = vunpack.c.l.bf16 %v3953_v27 }
 0x2c6   :  { %v2717_v45 = vsel %vm2716_vm1, %v2395_v5, %v2715_v37  ;;  %v2705_v57 = vrot.slane %v1917_v44, %v5824_v16  ;;  %v3959_v37 = vunpack.c.h.bf16 %v4208_v54  ;;  %v4215_v5 = vld [vmem:[#allocation5 + $0x40] sm:$0xff]  }
 0x2c7   :  { %v2719_v20 = vsel %vm2718_vm2, %v6089_v49, %v2717_v45  ;;  %v4209_v45 = vld [vmem:[#allocation5 + $0x10] sm:$0xff]  }
 0x2c8   :  { %v2721_v28 = vsel %vm2720_vm3, %v2553_v10, %v2719_v20  ;;  %v2706_v42 = vsel %vm2150_vm13, %v2705_v57, %v2701_v14  ;;  %v3986_v57 = vunpack.c.l.bf16 %v4215_v5  ;;  %v3987_v10 = vunpack.c.h.bf16 %v4215_v5 }
 0x2c9   :  { %v2723_v59 = vsel %vm2722_vm4, %v2632_v47, %v2721_v28  ;;  %v2711_v16 = vsel %vm2157_vm14, %v2710_v63, %v2706_v42  ;;  %v3990_v47 = vunpack.c.l.bf16 %v4216_v55  ;;  %v3470_v28 = vsub.s32 7, %v6683_v33 }
 0x2ca   :  { %v2725_v61 = vsel %vm2724_vm5, %v2711_v16, %v2723_v59  ;;  %v3962_v38 = vunpack.c.l.bf16 %v4209_v45  ;;  %v4217_v16 = vld [vmem:[#allocation5 + $0x50] sm:$0xff]  }
 0x2cb   :  { %v2730_v46 = vsel %vm2729_vm6, %v2725_v61, -inf }
 0x2cc   :  { %2731 = vmax.xlane.f32.xlu0 %v2730_v46 }
 0x359   :  { %v2732_v49 = vpop.xlane.xlu0 %2731 }
 0x35a   :  { %v2733_v3 = vsub.f32 %v2730_v46, %v2732_v49 }
 0x35c   :  { %v2734_v39 = vmul.f32 1.442695, %v2733_v3  ;;  %v3991_v3 = vunpack.c.h.bf16 %v4216_v55 }
 0x35e   :  { %4841 = vpow2.f32 %v2734_v39 }
 0x368   :  { %v4842_v7 = vpop.eup %4841 }
 0x369   :  { %2736 = vadd.xlane.f32.xlu1 %v4842_v7 }
 0x3f6   :  { %v2737_v52 = vpop.xlane.xlu1 %2736 }
 0x3f7   :  { %4843 = vrcp.f32 %v2737_v52 }
 0x401   :  { %v4844_v51 = vpop.eup %4843 }
 0x402   :  { %v6272_v22 = vmul.f32 %v4844_v51, %v4842_v7  ;;  %v3963_v7 = vunpack.c.h.bf16 %v4209_v45 }
 0x404   :  { %v3002_v34 = vrot.slane %v6272_v22, %v6682_v36  ;;  %2740 = vst [vmem:[#allocation9] sm:$0xff] %v6272_v22  ;;  %v3069_v40 = vrot.slane %v6272_v22, %v3068_v50  ;;  %v3136_v15 = vrot.slane %v6272_v22, %v3135_v24  ;;  %v3203_v58 = vrot.slane %v6272_v22, %v3202_v53 }
 0x405   :  { %v6287_v9 = vrot.slane %v6272_v22, %v3269_v62  ;;  %v6318_v8 = vrot.slane %v6272_v22, %v3336_v25  ;;  %v6325_v63 = vrot.slane %v6272_v22, %v3403_v13  ;;  %v3994_v36 = vunpack.c.l.bf16 %v4217_v16 }
 0x406   :  { %3008 = vbcast.lane.b32.xlu1 %v3002_v34, 264  ;;  %3004 = vbcast.lane.b32.xlu0 %v3002_v34, 256 }
 0x40a   :  { %3012 = vbcast.lane.b32.xlu1 %v3002_v34, 272  ;;  %3020 = vbcast.lane.b32.xlu0 %v3002_v34, 288 }
 0x40e   :  { %3016 = vbcast.lane.b32.xlu1 %v3002_v34, 280  ;;  %3028 = vbcast.lane.b32.xlu0 %v3002_v34, 304 }
 0x412   :  { %3024 = vbcast.lane.b32.xlu1 %v3002_v34, 296  ;;  %3036 = vbcast.lane.b32.xlu0 %v3002_v34, 320 }
 0x416   :  { %3032 = vbcast.lane.b32.xlu1 %v3002_v34, 312  ;;  %3044 = vbcast.lane.b32.xlu0 %v3002_v34, 336 }
 0x41a   :  { %3040 = vbcast.lane.b32.xlu1 %v3002_v34, 328  ;;  %3052 = vbcast.lane.b32.xlu0 %v3002_v34, 352 }
 0x41e   :  { %3048 = vbcast.lane.b32.xlu1 %v3002_v34, 344  ;;  %3060 = vbcast.lane.b32.xlu0 %v3002_v34, 368 }
 0x422   :  { %3056 = vbcast.lane.b32.xlu1 %v3002_v34, 360  ;;  %3071 = vbcast.lane.b32.xlu0 %v3069_v40, 256 }
 0x426   :  { %3064 = vbcast.lane.b32.xlu1 %v3002_v34, 376  ;;  %3079 = vbcast.lane.b32.xlu0 %v3069_v40, 272  ;;  %v6335_v34 = vrot.slane %v6272_v22, %v3470_v28 }
 0x42a   :  { %3075 = vbcast.lane.b32.xlu1 %v3069_v40, 264  ;;  %3087 = vbcast.lane.b32.xlu0 %v3069_v40, 288 }
 0x42e   :  { %3083 = vbcast.lane.b32.xlu1 %v3069_v40, 280  ;;  %3095 = vbcast.lane.b32.xlu0 %v3069_v40, 304 }
 0x432   :  { %3091 = vbcast.lane.b32.xlu1 %v3069_v40, 296  ;;  %3103 = vbcast.lane.b32.xlu0 %v3069_v40, 320 }
 0x436   :  { %3099 = vbcast.lane.b32.xlu1 %v3069_v40, 312  ;;  %3111 = vbcast.lane.b32.xlu0 %v3069_v40, 336 }
 0x43a   :  { %3107 = vbcast.lane.b32.xlu1 %v3069_v40, 328  ;;  %3119 = vbcast.lane.b32.xlu0 %v3069_v40, 352 }
 0x43e   :  { %3115 = vbcast.lane.b32.xlu1 %v3069_v40, 344  ;;  %3127 = vbcast.lane.b32.xlu0 %v3069_v40, 368 }
 0x442   :  { %3123 = vbcast.lane.b32.xlu1 %v3069_v40, 360  ;;  %3138 = vbcast.lane.b32.xlu0 %v3136_v15, 256 }
 0x446   :  { %3131 = vbcast.lane.b32.xlu1 %v3069_v40, 376  ;;  %3146 = vbcast.lane.b32.xlu0 %v3136_v15, 272  ;;  %v4218_v40 = vld [vmem:[#allocation5 + $0x58] sm:$0xff]  }
 0x447   :  { %v3998_v22 = vunpack.c.l.bf16 %v4218_v40  ;;  %v3999_v13 = vunpack.c.h.bf16 %v4218_v40  ;;  %v4212_v40 = vld [vmem:[#allocation5 + $0x28] sm:$0xff]  }
 0x44a   :  { %3142 = vbcast.lane.b32.xlu1 %v3136_v15, 264  ;;  %3154 = vbcast.lane.b32.xlu0 %v3136_v15, 288 }
 0x44e   :  { %3150 = vbcast.lane.b32.xlu1 %v3136_v15, 280  ;;  %3162 = vbcast.lane.b32.xlu0 %v3136_v15, 304 }
 0x452   :  { %3158 = vbcast.lane.b32.xlu1 %v3136_v15, 296  ;;  %3170 = vbcast.lane.b32.xlu0 %v3136_v15, 320 }
 0x456   :  { %3166 = vbcast.lane.b32.xlu1 %v3136_v15, 312  ;;  %3178 = vbcast.lane.b32.xlu0 %v3136_v15, 336 }
 0x45a   :  { %3174 = vbcast.lane.b32.xlu1 %v3136_v15, 328  ;;  %3186 = vbcast.lane.b32.xlu0 %v3136_v15, 352 }
 0x45e   :  { %3182 = vbcast.lane.b32.xlu1 %v3136_v15, 344  ;;  %3194 = vbcast.lane.b32.xlu0 %v3136_v15, 368 }
 0x462   :  { %3190 = vbcast.lane.b32.xlu1 %v3136_v15, 360  ;;  %3205 = vbcast.lane.b32.xlu0 %v3203_v58, 256 }
 0x466   :  { %3198 = vbcast.lane.b32.xlu1 %v3136_v15, 376  ;;  %3213 = vbcast.lane.b32.xlu0 %v3203_v58, 272  ;;  %v4210_v15 = vld [vmem:[#allocation5 + $0x18] sm:$0xff]  }
 0x467   :  { %v3966_v27 = vunpack.c.l.bf16 %v4210_v15 }
 0x46a   :  { %3209 = vbcast.lane.b32.xlu1 %v3203_v58, 264  ;;  %3221 = vbcast.lane.b32.xlu0 %v3203_v58, 288 }
 0x46e   :  { %3217 = vbcast.lane.b32.xlu1 %v3203_v58, 280  ;;  %3229 = vbcast.lane.b32.xlu0 %v3203_v58, 304 }
 0x472   :  { %3225 = vbcast.lane.b32.xlu1 %v3203_v58, 296  ;;  %3237 = vbcast.lane.b32.xlu0 %v3203_v58, 320 }
 0x476   :  { %3233 = vbcast.lane.b32.xlu1 %v3203_v58, 312  ;;  %3245 = vbcast.lane.b32.xlu0 %v3203_v58, 336 }
 0x478   :  { %v3009_v0 = vpop.permute.xlu1 %3008  ;;  %v3005_v19 = vpop.permute.xlu0 %3004 }
 0x479   :  { %v3536_v11 = vmul.f32 %v3955_v23, %v3009_v0  ;;  %v3535_v17 = vmul.f32 %v3954_v4, %v3005_v19  ;;  %v3995_v0 = vunpack.c.h.bf16 %v4217_v16 }
 0x47a   :  { %3241 = vbcast.lane.b32.xlu1 %v3203_v58, 328  ;;  %3253 = vbcast.lane.b32.xlu0 %v3203_v58, 352 }
 0x47b   :  { %v3663_v20 = vadd.f32 %v3536_v11, %v3535_v17 }
 0x47c   :  { %v3013_v26 = vpop.permute.xlu1 %3012  ;;  %v6284_v56 = vpop.permute.xlu0 %3020 }
 0x47d   :  { %v3537_v44 = vmul.f32 %v3958_v35, %v3013_v26  ;;  %v3539_v33 = vmul.f32 %v3962_v38, %v6284_v56  ;;  %v4219_v56 = vld [vmem:[#allocation5 + $0x60] sm:$0xff]  }
 0x47e   :  { %3249 = vbcast.lane.b32.xlu1 %v3203_v58, 344  ;;  %3261 = vbcast.lane.b32.xlu0 %v3203_v58, 368  ;;  %v4002_v17 = vunpack.c.l.bf16 %v4219_v56 }
 0x47f   :  { %v3664_v42 = vadd.f32 %v3663_v20, %v3537_v44  ;;  %v4220_v44 = vld [vmem:[#allocation5 + $0x68] sm:$0xff]  }
 0x480   :  { %v3017_v43 = vpop.permute.xlu1 %3016  ;;  %v6289_v41 = vpop.permute.xlu0 %3028 }
 0x481   :  { %v3538_v14 = vmul.f32 %v3959_v37, %v3017_v43  ;;  %v3541_v37 = vmul.f32 %v3966_v27, %v6289_v41  ;;  %v4221_v41 = vld [vmem:[#allocation5 + $0x70] sm:$0xff]  }
 0x482   :  { %3257 = vbcast.lane.b32.xlu1 %v3203_v58, 360  ;;  %3272 = vbcast.lane.b32.xlu0 %v6287_v9, 256 }
 0x483   :  { %v3665_v39 = vadd.f32 %v3664_v42, %v3538_v14  ;;  %v4006_v42 = vunpack.c.l.bf16 %v4220_v44 }
 0x484   :  { %v6292_v60 = vpop.permute.xlu1 %3024  ;;  %v6294_v32 = vpop.permute.xlu0 %3036 }
 0x485   :  { %v3540_v19 = vmul.f32 %v3963_v7, %v6292_v60  ;;  %v3666_v62 = vadd.f32 %v3665_v39, %v3539_v33  ;;  %v4222_v33 = vld [vmem:[#allocation5 + $0x78] sm:$0xff]  }
 0x486   :  { %3265 = vbcast.lane.b32.xlu1 %v3203_v58, 376  ;;  %3280 = vbcast.lane.b32.xlu0 %v6287_v9, 272 }
 0x487   :  { %v3667_v35 = vadd.f32 %v3666_v62, %v3540_v19 }
 0x488   :  { %v6297_v30 = vpop.permute.xlu1 %3032  ;;  %v6299_v21 = vpop.permute.xlu0 %3044 }
 0x489   :  { %v3668_v14 = vadd.f32 %v3667_v35, %v3541_v37 }
 0x48a   :  { %3276 = vbcast.lane.b32.xlu1 %v6287_v9, 264  ;;  %3288 = vbcast.lane.b32.xlu0 %v6287_v9, 288 }
 0x48c   :  { %v6303_v6 = vpop.permute.xlu1 %3040  ;;  %v6305_v1 = vpop.permute.xlu0 %3052 }
 0x48e   :  { %3284 = vbcast.lane.b32.xlu1 %v6287_v9, 280  ;;  %3296 = vbcast.lane.b32.xlu0 %v6287_v9, 304 }
 0x490   :  { %v6310_v31 = vpop.permute.xlu1 %3048  ;;  %v6312_v48 = vpop.permute.xlu0 %3060 }
 0x492   :  { %3292 = vbcast.lane.b32.xlu1 %v6287_v9, 296  ;;  %3304 = vbcast.lane.b32.xlu0 %v6287_v9, 320 }
 0x494   :  { %v6320_v29 = vpop.permute.xlu1 %3056  ;;  %v3072_v2 = vpop.permute.xlu0 %3071 }
 0x495   :  { %v3551_v46 = vmul.f32 %v3986_v57, %v3072_v2  ;;  %v3967_v2 = vunpack.c.h.bf16 %v4210_v15 }
 0x496   :  { %3300 = vbcast.lane.b32.xlu1 %v6287_v9, 312  ;;  %3339 = vbcast.lane.b32.xlu0 %v6318_v8, 256 }
 0x497   :  { %v3542_v20 = vmul.f32 %v3967_v2, %v6297_v30 }
 0x498   :  { %v6327_v12 = vpop.permute.xlu1 %3064  ;;  %v3080_v18 = vpop.permute.xlu0 %3079 }
 0x499   :  { %v3553_v52 = vmul.f32 %v3990_v47, %v3080_v18  ;;  %v4211_v18 = vld [vmem:[#allocation5 + $0x20] sm:$0xff]  }
 0x49a   :  { %3308 = vbcast.lane.b32.xlu1 %v6287_v9, 328  ;;  %3406 = vbcast.lane.b32.xlu0 %v6325_v63, 256  ;;  %v3970_v38 = vunpack.c.l.bf16 %v4211_v18  ;;  %v3971_v39 = vunpack.c.h.bf16 %v4211_v18 }
 0x49c   :  { %v3076_v59 = vpop.permute.xlu1 %3075  ;;  %v3088_v61 = vpop.permute.xlu0 %3087 }
 0x49d   :  { %v3552_v49 = vmul.f32 %v3987_v10, %v3076_v59  ;;  %v3555_v26 = vmul.f32 %v3994_v36, %v3088_v61  ;;  %v4003_v10 = vunpack.c.h.bf16 %v4219_v56  ;;  %v4015_v56 = vunpack.c.h.bf16 %v4222_v33 }
 0x49e   :  { %3343 = vbcast.lane.b32.xlu1 %v6318_v8, 264  ;;  %3347 = vbcast.lane.b32.xlu0 %v6318_v8, 272 }
 0x49f   :  { %v3684_v51 = vadd.f32 %v3552_v49, %v3551_v46  ;;  %v4007_v49 = vunpack.c.h.bf16 %v4220_v44 }
 0x4a0   :  { %v3084_v50 = vpop.permute.xlu1 %3083  ;;  %v3096_v24 = vpop.permute.xlu0 %3095 }
 0x4a1   :  { %v3554_v53 = vmul.f32 %v3991_v3, %v3084_v50  ;;  %v3685_v58 = vadd.f32 %v3684_v51, %v3553_v52  ;;  %v3557_v60 = vmul.f32 %v3998_v22, %v3096_v24  ;;  %v3669_v3 = vadd.f32 %v3668_v14, %v3542_v20  ;;  %v4225_v14 = vld [vmem:[#allocation5 + $0x90] sm:$0xff]  }
 0x4a2   :  { %3410 = vbcast.lane.b32.xlu1 %v6325_v63, 264  ;;  %3477 = vbcast.lane.b32.xlu0 %v6335_v34, 264  ;;  %v4010_v52 = vunpack.c.l.bf16 %v4221_v41  ;;  %v3543_v51 = vmul.f32 %v3970_v38, %v6294_v32 }
 0x4a3   :  { %v3686_v43 = vadd.f32 %v3685_v58, %v3554_v53  ;;  %v4011_v53 = vunpack.c.h.bf16 %v4221_v41  ;;  %v3544_v58 = vmul.f32 %v3971_v39, %v6303_v6 }
 0x4a4   :  { %v3092_v25 = vpop.permute.xlu1 %3091  ;;  %v3104_v54 = vpop.permute.xlu0 %3103 }
 0x4a5   :  { %v3556_v23 = vmul.f32 %v3995_v0, %v3092_v25  ;;  %v3687_v4 = vadd.f32 %v3686_v43, %v3555_v26  ;;  %v3559_v47 = vmul.f32 %v4002_v17, %v3104_v54  ;;  %v3670_v0 = vadd.f32 %v3669_v3, %v3543_v51  ;;  %v4213_v17 = vld [vmem:[#allocation5 + $0x30] sm:$0xff]   ;;  %v4226_v3 = vld [vmem:[#allocation5 + $0x98] sm:$0xff]  }
 0x4a6   :  { %3473 = vbcast.lane.b32.xlu1 %v6335_v34, 256  ;;  %3351 = vbcast.lane.b32.xlu0 %v6318_v8, 280  ;;  %v4014_v26 = vunpack.c.l.bf16 %v4222_v33  ;;  %v3974_v43 = vunpack.c.l.bf16 %v4212_v40  ;;  %v3978_v20 = vunpack.c.l.bf16 %v4213_v17  ;;  %v3979_v41 = vunpack.c.h.bf16 %v4213_v17 }
 0x4a7   :  { %v3688_v11 = vadd.f32 %v3687_v4, %v3556_v23  ;;  %v3671_v54 = vadd.f32 %v3670_v0, %v3544_v58  ;;  %v3975_v23 = vunpack.c.h.bf16 %v4212_v40  ;;  %v4223_v4 = vld [vmem:[#allocation5 + $0x80] sm:$0xff]   ;;  %v4027_v51 = vunpack.c.h.bf16 %v4225_v14 }
 0x4a8   :  { %v3100_v5 = vpop.permute.xlu1 %3099  ;;  %v3112_v55 = vpop.permute.xlu0 %3111  ;;  %v3545_v35 = vmul.f32 %v3974_v43, %v6299_v21  ;;  %v4018_v37 = vunpack.c.l.bf16 %v4223_v4 }
 0x4a9   :  { %v3558_v45 = vmul.f32 %v3999_v13, %v3100_v5  ;;  %v3689_v57 = vadd.f32 %v3688_v11, %v3557_v60  ;;  %v3561_v30 = vmul.f32 %v4006_v42, %v3112_v55  ;;  %v4224_v60 = vld [vmem:[#allocation5 + $0x88] sm:$0xff]   ;;  %v4019_v55 = vunpack.c.h.bf16 %v4223_v4 }
 0x4aa   :  { %3414 = vbcast.lane.b32.xlu1 %v6325_v63, 272  ;;  %3418 = vbcast.lane.b32.xlu0 %v6325_v63, 280  ;;  %v3546_v18 = vmul.f32 %v3975_v23, %v6310_v31  ;;  %v4023_v38 = vunpack.c.h.bf16 %v4224_v60 }
 0x4ab   :  { %v3690_v28 = vadd.f32 %v3689_v57, %v3558_v45  ;;  %v3672_v45 = vadd.f32 %v3671_v54, %v3545_v35 }
 0x4ac   :  { %v3108_v59 = vpop.permute.xlu1 %3107  ;;  %v3120_v16 = vpop.permute.xlu0 %3119 }
 0x4ad   :  { %v3560_v61 = vmul.f32 %v4003_v10, %v3108_v59  ;;  %v3691_v46 = vadd.f32 %v3690_v28, %v3559_v47  ;;  %v3563_v19 = vmul.f32 %v4010_v52, %v3120_v16  ;;  %v4022_v10 = vunpack.c.l.bf16 %v4224_v60 }
 0x4ae   :  { %3481 = vbcast.lane.b32.xlu1 %v6335_v34, 272  ;;  %3485 = vbcast.lane.b32.xlu0 %v6335_v34, 280  ;;  %v3673_v59 = vadd.f32 %v3672_v45, %v3546_v18 }
 0x4af   :  { %v3692_v7 = vadd.f32 %v3691_v46, %v3560_v61  ;;  %v4026_v61 = vunpack.c.l.bf16 %v4225_v14  ;;  %v3547_v46 = vmul.f32 %v3978_v20, %v6305_v1  ;;  %v4227_v1 = vld [vmem:[#allocation5 + $0xa0] sm:$0xff]   ;;  %v4230_v14 = vld [vmem:[#allocation5 + $0xb8] sm:$0xff]  }
 0x4b0   :  { %v3116_v36 = vpop.permute.xlu1 %3115  ;;  %v3128_v50 = vpop.permute.xlu0 %3127 }
 0x4b1   :  { %v3562_v24 = vmul.f32 %v4007_v49, %v3116_v36  ;;  %v3693_v15 = vadd.f32 %v3692_v7, %v3561_v30  ;;  %v3565_v6 = vmul.f32 %v4014_v26, %v3128_v50  ;;  %v4214_v30 = vld [vmem:[#allocation5 + $0x38] sm:$0xff]   ;;  %v3548_v36 = vmul.f32 %v3979_v41, %v6320_v29 }
 0x4b2   :  { %3355 = vbcast.lane.b32.xlu1 %v6318_v8, 288  ;;  %3359 = vbcast.lane.b32.xlu0 %v6318_v8, 296  ;;  %v3674_v33 = vadd.f32 %v3673_v59, %v3547_v46  ;;  %v3983_v43 = vunpack.c.h.bf16 %v4214_v30 }
 0x4b3   :  { %v3694_v62 = vadd.f32 %v3693_v15, %v3562_v24  ;;  %v4030_v24 = vunpack.c.l.bf16 %v4226_v3  ;;  %v3982_v15 = vunpack.c.l.bf16 %v4214_v30  ;;  %v4047_v30 = vunpack.c.h.bf16 %v4230_v14 }
 0x4b4   :  { %v3124_v22 = vpop.permute.xlu1 %3123  ;;  %v3139_v32 = vpop.permute.xlu0 %3138  ;;  %v3675_v26 = vadd.f32 %v3674_v33, %v3548_v36 }
 0x4b5   :  { %v3564_v27 = vmul.f32 %v4011_v53, %v3124_v22  ;;  %v3695_v25 = vadd.f32 %v3694_v62, %v3563_v19  ;;  %v3567_v28 = vmul.f32 %v4018_v37, %v3139_v32  ;;  %v4031_v62 = vunpack.c.h.bf16 %v4226_v3  ;;  %v4229_v37 = vld [vmem:[#allocation5 + $0xb0] sm:$0xff]  }
 0x4b6   :  { %3422 = vbcast.lane.b32.xlu1 %v6325_v63, 288  ;;  %3426 = vbcast.lane.b32.xlu0 %v6325_v63, 296  ;;  %v4034_v32 = vunpack.c.l.bf16 %v4227_v1 }
 0x4b7   :  { %v3696_v13 = vadd.f32 %v3695_v25, %v3564_v27  ;;  %v3549_v27 = vmul.f32 %v3982_v15, %v6312_v48 }
 0x4b8   :  { %v3132_v2 = vpop.permute.xlu1 %3131  ;;  %v3147_v11 = vpop.permute.xlu0 %3146 }
 0x4b9   :  { %v3566_v5 = vmul.f32 %v4015_v56, %v3132_v2  ;;  %v3697_v44 = vadd.f32 %v3696_v13, %v3565_v6  ;;  %v3569_v31 = vmul.f32 %v4022_v10, %v3147_v11  ;;  %v4228_v56 = vld [vmem:[#allocation5 + $0xa8] sm:$0xff]   ;;  %v4035_v6 = vunpack.c.h.bf16 %v4227_v1 }
 0x4ba   :  { %3489 = vbcast.lane.b32.xlu1 %v6335_v34, 288  ;;  %3493 = vbcast.lane.b32.xlu0 %v6335_v34, 296  ;;  %v3550_v13 = vmul.f32 %v3983_v43, %v6327_v12  ;;  %v3676_v35 = vadd.f32 %v3675_v26, %v3549_v27  ;;  %v4038_v11 = vunpack.c.l.bf16 %v4228_v56  ;;  %v4042_v10 = vunpack.c.l.bf16 %v4229_v37  ;;  %v4233_v43 = vld [vmem:[#allocation5 + $0xd0] sm:$0xff]  }
 0x4bb   :  { %v6359_v57 = vadd.f32 %v3697_v44, %v3566_v5 }
 0x4bc   :  { %v3143_v21 = vpop.permute.xlu1 %3142  ;;  %v3155_v47 = vpop.permute.xlu0 %3154  ;;  %v3677_v18 = vadd.f32 %v3676_v35, %v3550_v13 }
 0x4bd   :  { %v3568_v42 = vmul.f32 %v4019_v55, %v3143_v21  ;;  %v3571_v50 = vmul.f32 %v4026_v61, %v3155_v47  ;;  %v4039_v55 = vunpack.c.h.bf16 %v4228_v56  ;;  %v3699_v20 = vrot.slane %v6359_v57, 4 }
 0x4be   :  { %3363 = vbcast.lane.b32.xlu1 %v6318_v8, 304  ;;  %3367 = vbcast.lane.b32.xlu0 %v6318_v8, 312  ;;  %v3678_v59 = vrot.slane %v3677_v18, 4 }
 0x4bf   :  { %v3705_v16 = vadd.f32 %v3568_v42, %v3567_v28  ;;  %v3700_v61 = vadd.f32 %v3699_v20, %v6359_v57  ;;  %v4235_v20 = vld [vmem:[#allocation5 + $0xe0] sm:$0xff]  }
 0x4c0   :  { %v3151_v49 = vpop.permute.xlu1 %3150  ;;  %v3163_v39 = vpop.permute.xlu0 %3162 }
 0x4c1   :  { %v3570_v7 = vmul.f32 %v4023_v38, %v3151_v49  ;;  %v3706_v52 = vadd.f32 %v3705_v16, %v3569_v31  ;;  %v3573_v29 = vmul.f32 %v4030_v24, %v3163_v39  ;;  %v4043_v38 = vunpack.c.h.bf16 %v4229_v37 }
 0x4c2   :  { %3430 = vbcast.lane.b32.xlu1 %v6325_v63, 304  ;;  %3434 = vbcast.lane.b32.xlu0 %v6325_v63, 312  ;;  %v4046_v16 = vunpack.c.l.bf16 %v4230_v14  ;;  %v3701_v33 = vrot.slane %v3700_v61, 2 }
 0x4c3   :  { %v3707_v40 = vadd.f32 %v3706_v52, %v3570_v7  ;;  %v3679_v7 = vadd.f32 %v3678_v59, %v3677_v18  ;;  %v4231_v52 = vld [vmem:[#allocation5 + $0xc0] sm:$0xff]  }
 0x4c4   :  { %v3159_v53 = vpop.permute.xlu1 %3158  ;;  %v3171_v58 = vpop.permute.xlu0 %3170  ;;  %v4050_v15 = vunpack.c.l.bf16 %v4231_v52  ;;  %v4051_v1 = vunpack.c.h.bf16 %v4231_v52  ;;  %v4067_v52 = vunpack.c.h.bf16 %v4235_v20 }
 0x4c5   :  { %v3572_v0 = vmul.f32 %v4027_v51, %v3159_v53  ;;  %v3708_v19 = vadd.f32 %v3707_v40, %v3571_v50  ;;  %v3575_v2 = vmul.f32 %v4034_v32, %v3171_v58  ;;  %v4232_v40 = vld [vmem:[#allocation5 + $0xc8] sm:$0xff]   ;;  %v3680_v58 = vrot.slane %v3679_v7, 2 }
 0x4c6   :  { %3497 = vbcast.lane.b32.xlu1 %v6335_v34, 304  ;;  %3501 = vbcast.lane.b32.xlu0 %v6335_v34, 312 }
 0x4c7   :  { %v3709_v22 = vadd.f32 %v3708_v19, %v3572_v0  ;;  %v4054_v19 = vunpack.c.l.bf16 %v4232_v40  ;;  %v3681_v56 = vadd.f32 %v3680_v58, %v3679_v7 }
 0x4c8   :  { %v3167_v25 = vpop.permute.xlu1 %3166  ;;  %v3179_v54 = vpop.permute.xlu0 %3178 }
 0x4c9   :  { %v3574_v23 = vmul.f32 %v4031_v62, %v3167_v25  ;;  %v3710_v4 = vadd.f32 %v3709_v22, %v3573_v29  ;;  %v3577_v12 = vmul.f32 %v4038_v11, %v3179_v54  ;;  %v3702_v62 = vadd.f32 %v3701_v33, %v3700_v61 }
 0x4ca   :  { %3371 = vbcast.lane.b32.xlu1 %v6318_v8, 320  ;;  %3375 = vbcast.lane.b32.xlu0 %v6318_v8, 328  ;;  %v4055_v25 = vunpack.c.h.bf16 %v4232_v40  ;;  %v4237_v40 = vld [vmem:[#allocation5 + $0xf0] sm:$0xff]  }
 0x4cb   :  { %v3711_v60 = vadd.f32 %v3710_v4, %v3574_v23  ;;  %v3703_v13 = vrot.slane %v3702_v62, 1 }
 0x4cc   :  { %v3175_v17 = vpop.permute.xlu1 %3174  ;;  %v3187_v5 = vpop.permute.xlu0 %3186 }
 0x4cd   :  { %v3576_v48 = vmul.f32 %v4035_v6, %v3175_v17  ;;  %v3712_v44 = vadd.f32 %v3711_v60, %v3575_v2  ;;  %v3579_v41 = vmul.f32 %v4042_v10, %v3187_v5  ;;  %v4058_v6 = vunpack.c.l.bf16 %v4233_v43  ;;  %v4234_v2 = vld [vmem:[#allocation5 + $0xd8] sm:$0xff]  }
 0x4ce   :  { %3438 = vbcast.lane.b32.xlu1 %v6325_v63, 320  ;;  %3312 = vbcast.lane.b32.xlu0 %v6287_v9, 336  ;;  %v4059_v5 = vunpack.c.h.bf16 %v4233_v43 }
 0x4cf   :  { %v3713_v45 = vadd.f32 %v3712_v44, %v3576_v48  ;;  %v3682_v48 = vrot.slane %v3681_v56, 1 }
 0x4d0   :  { %v3183_v21 = vpop.permute.xlu1 %3182  ;;  %v3195_v47 = vpop.permute.xlu0 %3194 }
 0x4d1   :  { %v3578_v28 = vmul.f32 %v4039_v55, %v3183_v21  ;;  %v3714_v42 = vadd.f32 %v3713_v45, %v3577_v12  ;;  %v3581_v51 = vmul.f32 %v4046_v16, %v3195_v47  ;;  %v4062_v12 = vunpack.c.l.bf16 %v4234_v2 }
 0x4d2   :  { %3505 = vbcast.lane.b32.xlu1 %v6335_v34, 320  ;;  %3379 = vbcast.lane.b32.xlu0 %v6318_v8, 336  ;;  %v3704_v45 = vadd.f32 %v3703_v13, %v3702_v62  ;;  %v4066_v16 = vunpack.c.l.bf16 %v4235_v20  ;;  %v4238_v62 = vld [vmem:[#allocation5 + $0xf8] sm:$0xff]   ;;  %v4239_v13 = vld [vmem:[#allocation5 + $0x100] sm:$0xff]  }
 0x4d3   :  { %v3715_v31 = vadd.f32 %v3714_v42, %v3578_v28  ;;  %v4063_v42 = vunpack.c.h.bf16 %v4234_v2 }
 0x4d4   :  { %v3191_v46 = vpop.permute.xlu1 %3190  ;;  %v3206_v49 = vpop.permute.xlu0 %3205 }
 0x4d5   :  { %v3580_v3 = vmul.f32 %v4043_v38, %v3191_v46  ;;  %v3716_v39 = vadd.f32 %v3715_v31, %v3579_v41  ;;  %v3583_v22 = vmul.f32 %v4050_v15, %v3206_v49  ;;  %v3683_v38 = vadd.f32 %v3682_v48, %v3681_v56  ;;  %v4236_v49 = vld [vmem:[#allocation5 + $0xe8] sm:$0xff]  }
 0x4d6   :  { %3442 = vbcast.lane.b32.xlu1 %v6325_v63, 328  ;;  %3316 = vbcast.lane.b32.xlu0 %v6287_v9, 344  ;;  %v4070_v33 = vunpack.c.l.bf16 %v4236_v49 }
 0x4d7   :  { %v3717_v36 = vadd.f32 %v3716_v39, %v3580_v3  ;;  %v3839_v61 = vsel %vm2712_vm15, %v3704_v45, %v3683_v38  ;;  %v4241_v45 = vld [vmem:[#allocation5 + $0x110] sm:$0xff]  }
 0x4d8   :  { %v3199_v50 = vpop.permute.xlu1 %3198  ;;  %v3214_v24 = vpop.permute.xlu0 %3213  ;;  %v4090_v38 = vunpack.c.l.bf16 %v4241_v45 }
 0x4d9   :  { %v3582_v53 = vmul.f32 %v4047_v30, %v3199_v50  ;;  %v3718_v57 = vadd.f32 %v3717_v36, %v3581_v51  ;;  %v3585_v23 = vmul.f32 %v4054_v19, %v3214_v24 }
 0x4da   :  { %3509 = vbcast.lane.b32.xlu1 %v6335_v34, 328  ;;  %3383 = vbcast.lane.b32.xlu0 %v6318_v8, 344 }
 0x4db   :  { %v3719_v0 = vadd.f32 %v3718_v57, %v3582_v53  ;;  %v4071_v57 = vunpack.c.h.bf16 %v4236_v49 }
 0x4dc   :  { %v3210_v26 = vpop.permute.xlu1 %3209  ;;  %v3222_v29 = vpop.permute.xlu0 %3221 }
 0x4dd   :  { %v3720_v32 = vrot.slane %v3719_v0, 4  ;;  %v3584_v27 = vmul.f32 %v4051_v1, %v3210_v26  ;;  %v3587_v55 = vmul.f32 %v4058_v6, %v3222_v29  ;;  %v4079_v6 = vunpack.c.h.bf16 %v4238_v62 }
 0x4de   :  { %3446 = vbcast.lane.b32.xlu1 %v6325_v63, 336  ;;  %3320 = vbcast.lane.b32.xlu0 %v6287_v9, 352 }
 0x4df   :  { %v3721_v54 = vadd.f32 %v3720_v32, %v3719_v0  ;;  %v3726_v4 = vadd.f32 %v3584_v27, %v3583_v22  ;;  %v4074_v0 = vunpack.c.l.bf16 %v4237_v40  ;;  %v4075_v22 = vunpack.c.h.bf16 %v4237_v40 }
 0x4e0   :  { %v3218_v35 = vpop.permute.xlu1 %3217  ;;  %v3230_v60 = vpop.permute.xlu0 %3229 }
 0x4e1   :  { %v3722_v11 = vrot.slane %v3721_v54, 2  ;;  %v3586_v17 = vmul.f32 %v4055_v25, %v3218_v35  ;;  %v3727_v37 = vadd.f32 %v3726_v4, %v3585_v23  ;;  %v3589_v41 = vmul.f32 %v4062_v12, %v3230_v60 }
 0x4e2   :  { %3513 = vbcast.lane.b32.xlu1 %v6335_v34, 336  ;;  %3387 = vbcast.lane.b32.xlu0 %v6318_v8, 352  ;;  %v4078_v25 = vunpack.c.l.bf16 %v4238_v62 }
 0x4e3   :  { %v3723_v44 = vadd.f32 %v3722_v11, %v3721_v54  ;;  %v3728_v18 = vadd.f32 %v3727_v37, %v3586_v17  ;;  %v4240_v11 = vld [vmem:[#allocation5 + $0x108] sm:$0xff]   ;;  %v4082_v37 = vunpack.c.l.bf16 %v4239_v13 }
 0x4e4   :  { %v3226_v10 = vpop.permute.xlu1 %3225  ;;  %v3238_v21 = vpop.permute.xlu0 %3237 }
 0x4e5   :  { %v3724_v14 = vrot.slane %v3723_v44, 1  ;;  %v3588_v47 = vmul.f32 %v4059_v5, %v3226_v10  ;;  %v3729_v28 = vadd.f32 %v3728_v18, %v3587_v55  ;;  %v3591_v51 = vmul.f32 %v4066_v16, %v3238_v21 }
 0x4e6   :  { %3450 = vbcast.lane.b32.xlu1 %v6325_v63, 344  ;;  %3324 = vbcast.lane.b32.xlu0 %v6287_v9, 360  ;;  %v4086_v18 = vunpack.c.l.bf16 %v4240_v11 }
 0x4e7   :  { %v3725_v59 = vadd.f32 %v3724_v14, %v3723_v44  ;;  %v3730_v31 = vadd.f32 %v3729_v28, %v3588_v47  ;;  %v4083_v44 = vunpack.c.h.bf16 %v4239_v13  ;;  %v4087_v14 = vunpack.c.h.bf16 %v4240_v11 }
 0x4e8   :  { %v3234_v46 = vpop.permute.xlu1 %3233  ;;  %v3246_v3 = vpop.permute.xlu0 %3245 }
 0x4e9   :  { %v6391_v39 = vsel %vm2714_vm0, %v3725_v59, %v3839_v61  ;;  %v3590_v30 = vmul.f32 %v4063_v42, %v3234_v46  ;;  %v3731_v7 = vadd.f32 %v3730_v31, %v3589_v41  ;;  %v3593_v1 = vmul.f32 %v4070_v33, %v3246_v3  ;;  %v4242_v41 = vld [vmem:[#allocation5 + $0x118] sm:$0xff]  }
 0x4ea   :  { %3517 = vbcast.lane.b32.xlu1 %v6335_v34, 344  ;;  %3391 = vbcast.lane.b32.xlu0 %v6318_v8, 360  ;;  %v4091_v46 = vunpack.c.h.bf16 %v4241_v45  ;;  %v4095_v40 = vunpack.c.h.bf16 %v4242_v41 }
 0x4eb   :  { %v3732_v36 = vadd.f32 %v3731_v7, %v3590_v30  ;;  %v4094_v7 = vunpack.c.l.bf16 %v4242_v41 }
 0x4ec   :  { %v3242_v50 = vpop.permute.xlu1 %3241  ;;  %v3254_v24 = vpop.permute.xlu0 %3253 }
 0x4ed   :  { %v3592_v15 = vmul.f32 %v4067_v52, %v3242_v50  ;;  %v3733_v53 = vadd.f32 %v3732_v36, %v3591_v51  ;;  %v3595_v32 = vmul.f32 %v4074_v0, %v3254_v24  ;;  %v4243_v51 = vld [vmem:[#allocation5 + $0x120] sm:$0xff]  }
 0x4ee   :  { %3454 = vbcast.lane.b32.xlu1 %v6325_v63, 352  ;;  %3328 = vbcast.lane.b32.xlu0 %v6287_v9, 368 }
 0x4ef   :  { %v3734_v58 = vadd.f32 %v3733_v53, %v3592_v15 }
 0x4f0   :  { %v3250_v19 = vpop.permute.xlu1 %3249  ;;  %v3262_v26 = vpop.permute.xlu0 %3261 }
 0x4f1   :  { %v3594_v43 = vmul.f32 %v4071_v57, %v3250_v19  ;;  %v3735_v29 = vadd.f32 %v3734_v58, %v3593_v1  ;;  %v3597_v35 = vmul.f32 %v4078_v25, %v3262_v26  ;;  %v4098_v57 = vunpack.c.l.bf16 %v4243_v51  ;;  %v6411_v25 = vld [vmem:[#allocation5 + $0x148] sm:$0xff]  }
 0x4f2   :  { %3521 = vbcast.lane.b32.xlu1 %v6335_v34, 352  ;;  %3395 = vbcast.lane.b32.xlu0 %v6318_v8, 368  ;;  %v4099_v26 = vunpack.c.h.bf16 %v4243_v51 }
 0x4f3   :  { %v3736_v27 = vadd.f32 %v3735_v29, %v3594_v43  ;;  %v4247_v43 = vld [vmem:[#allocation5 + $0x140] sm:$0xff]  }
 0x4f4   :  { %v3258_v56 = vpop.permute.xlu1 %3257  ;;  %v3273_v54 = vpop.permute.xlu0 %3272 }
 0x4f5   :  { %v3596_v23 = vmul.f32 %v4075_v22, %v3258_v56  ;;  %v3737_v4 = vadd.f32 %v3736_v27, %v3595_v32  ;;  %v3599_v20 = vmul.f32 %v4082_v37, %v3273_v54 }
 0x4f6   :  { %3458 = vbcast.lane.b32.xlu1 %v6325_v63, 360  ;;  %3332 = vbcast.lane.b32.xlu0 %v6287_v9, 376 }
 0x4f7   :  { %v3738_v2 = vadd.f32 %v3737_v4, %v3596_v23  ;;  %v4115_v23 = vunpack.c.h.bf16 %v4247_v43  ;;  %v4255_v4 = vld [vmem:[#allocation5 + $0x180] sm:$0xff]  }
 0x4f8   :  { %v3266_v60 = vpop.permute.xlu1 %3265  ;;  %v3281_v17 = vpop.permute.xlu0 %3280 }
 0x4f9   :  { %v3598_v5 = vmul.f32 %v4079_v6, %v3266_v60  ;;  %v3739_v48 = vadd.f32 %v3738_v2, %v3597_v35  ;;  %v3601_v28 = vmul.f32 %v4086_v18, %v3281_v17 }
 0x4fa   :  { %3525 = vbcast.lane.b32.xlu1 %v6335_v34, 360  ;;  %3399 = vbcast.lane.b32.xlu0 %v6318_v8, 376 }
 0x4fb   :  { %v3740_v55 = vadd.f32 %v3739_v48, %v3598_v5 }
 0x4fc   :  { %v3277_v12 = vpop.permute.xlu1 %3276  ;;  %v3289_v10 = vpop.permute.xlu0 %3288 }
 0x4fd   :  { %v3741_v9 = vrot.slane %v3740_v55, 4  ;;  %v3600_v21 = vmul.f32 %v4083_v44, %v3277_v12  ;;  %v3603_v3 = vmul.f32 %v4090_v38, %v3289_v10 }
 0x4fe   :  { %3462 = vbcast.lane.b32.xlu1 %v6325_v63, 368  ;;  %3466 = vbcast.lane.b32.xlu0 %v6325_v63, 376 }
 0x4ff   :  { %v3742_v47 = vadd.f32 %v3741_v9, %v3740_v55  ;;  %v3747_v42 = vadd.f32 %v3600_v21, %v3599_v20 }
 0x500   :  { %v3285_v59 = vpop.permute.xlu1 %3284  ;;  %v3297_v8 = vpop.permute.xlu0 %3296 }
 0x501   :  { %v3743_v31 = vrot.slane %v3742_v47, 2  ;;  %v3602_v16 = vmul.f32 %v4087_v14, %v3285_v59  ;;  %v3748_v61 = vadd.f32 %v3747_v42, %v3601_v28  ;;  %v3605_v15 = vmul.f32 %v4094_v7, %v3297_v8 }
 0x502   :  { %3529 = vbcast.lane.b32.xlu1 %v6335_v34, 368 }
 0x503   :  { %v3744_v49 = vadd.f32 %v3743_v31, %v3742_v47  ;;  %v3749_v30 = vadd.f32 %v3748_v61, %v3602_v16 }
 0x504   :  { %v3293_v52 = vpop.permute.xlu1 %3292  ;;  %v3305_v63 = vpop.permute.xlu0 %3304 }
 0x505   :  { %v3745_v36 = vrot.slane %v3744_v49, 1  ;;  %v3604_v33 = vmul.f32 %v4091_v46, %v3293_v52  ;;  %v3750_v50 = vadd.f32 %v3749_v30, %v3603_v3  ;;  %v3607_v29 = vmul.f32 %v4098_v57, %v3305_v63 }
 0x506   :  { %3533 = vbcast.lane.b32.xlu1 %v6335_v34, 376  ;;  %v4114_v34 = vunpack.c.l.bf16 %v4247_v43 }
 0x507   :  { %v3746_v24 = vadd.f32 %v3745_v36, %v3744_v49  ;;  %v3751_v53 = vadd.f32 %v3750_v50, %v3604_v33 }
 0x508   :  { %v3301_v1 = vpop.permute.xlu1 %3300  ;;  %v3340_v58 = vpop.permute.xlu0 %3339 }
 0x509   :  { %v6409_v0 = vsel %vm2716_vm1, %v3746_v24, %v6391_v39  ;;  %v3606_v19 = vmul.f32 %v4095_v40, %v3301_v1  ;;  %v3752_v62 = vadd.f32 %v3751_v53, %v3605_v15  ;;  %v4118_v39 = vunpack.c.l.bf16 %v6411_v25 }
 0x50a   :  { %6684 = vst [vmem:[#allocation33_spill] sm:$0xff] %v6409_v0 }
 0x50b   :  { %v3753_v22 = vadd.f32 %v3752_v62, %v3606_v19 }
 0x50c   :  { %v3309_v32 = vpop.permute.xlu1 %3308  ;;  %v3407_v27 = vpop.permute.xlu0 %3406 }
 0x50d   :  { %v3608_v56 = vmul.f32 %v4099_v26, %v3309_v32  ;;  %v3754_v54 = vadd.f32 %v3753_v22, %v3607_v29 }
 0x50f   :  { %v6413_v6 = vadd.f32 %v3754_v54, %v3608_v56 }
 0x510   :  { %v3344_v13 = vpop.permute.xlu1 %3343  ;;  %v3348_v35 = vpop.permute.xlu0 %3347 }
 0x511   :  { %4923 = shalt.err (!%p4920_p0)
}
 0x512   :  { %s4924_s11 = scalar_lea.hbm %s6593_s5, 128 }
 0x513   :  { %p4925_p1 = scmp.ne.s32.totalorder %s6593_s5, %s4924_s11  ;;  %p4928_p2 = scmp.lt.u32.totalorder %s4924_s11, %s6593_s5 }
 0x515   :  { %p4930_p3 = pnand %p4928_p2, %p4925_p1 }
 0x517   :  { %4933 = shalt.err (!%p4930_p3)
}
 0x518   :  { %3868 = dma.vmem_to_hbm [thread:$0]  %s3866_s7, 128, %s6593_s5, [#allocation10]   ;;  %v3615_v2 = vmul.f32 %v4114_v34, %v3340_v58  ;;  %v4146_v60 = vunpack.c.l.bf16 %v4255_v4  ;;  %v3616_v11 = vmul.f32 %v4115_v23, %v3344_v13  ;;  %v4147_v17 = vunpack.c.h.bf16 %v4255_v4  ;;  %v4263_v37 = vld [vmem:[#allocation5 + $0x1c0] sm:$0xff]   ;;  %v3411_v44 = vpop.permute.xlu1 %3410  ;;  %v3478_v18 = vpop.permute.xlu0 %3477  ;;  %v6428_v9 = vld [vmem:[#allocation5 + $0x188] sm:$0xff]   ;;  %v4249_v62 = vld [vmem:[#allocation5 + $0x150] sm:$0xff]  }
 0x519   :  { %v3617_v48 = vmul.f32 %v4118_v39, %v3348_v35  ;;  %v4179_v55 = vunpack.c.h.bf16 %v4263_v37  ;;  %v4178_v20 = vunpack.c.l.bf16 %v4263_v37  ;;  %v4150_v38 = vunpack.c.l.bf16 %v6428_v9  ;;  %v4250_v56 = vld [vmem:[#allocation5 + $0x158] sm:$0xff]   ;;  %v4264_v54 = vld [vmem:[#allocation5 + $0x1c8] sm:$0xff]   ;;  %v4257_v4 = vld [vmem:[#allocation5 + $0x190] sm:$0xff]   ;;  %s4971_s5 = smov [#allocation8]  }
 0x51a   :  { %v3768_v5 = vadd.f32 %v3616_v11, %v3615_v2  ;;  %v3631_v12 = vmul.f32 %v4146_v60, %v3407_v27  ;;  %v3632_v10 = vmul.f32 %v4147_v17, %v3411_v44  ;;  %v4119_v29 = vunpack.c.h.bf16 %v6411_v25  ;;  %v6478_v60 = vld [vmem:[#allocation5 + $0x1d0] sm:$0xff]   ;;  %v6532_v0 = vld [vmem:[#allocation5 + $0x178] sm:$0xff]   ;;  %s3855_s1 = sshll.u32 %s4971_s5, 4  ;;  %s3856_s1 = int_to_ptr.vmem [resolvable:$true] %s3855_s1 }
 0x51b   :  { %v3648_v28 = vmul.f32 %v4179_v55, %v3478_v18  ;;  %v4122_v22 = vunpack.c.l.bf16 %v4249_v62  ;;  %v4123_v2 = vunpack.c.h.bf16 %v4249_v62  ;;  %v4126_v11 = vunpack.c.l.bf16 %v4250_v56  ;;  %v6483_v55 = vld [vmem:[#allocation5 + $0x1d8] sm:$0xff]   ;;  %s4934_s18 = scalar_lea.vmem %s3856_s1, 128  ;;  %p4939_p5 = scmp.lt.s32.totalorder %s3856_s1, %s3856_s1 }
 0x51c   :  { %v3769_v45 = vadd.f32 %v3768_v5, %v3617_v48  ;;  %v3789_v21 = vadd.f32 %v3632_v10, %v3631_v12  ;;  %v3474_v14 = vpop.permute.xlu1 %3473  ;;  %v3352_v47 = vpop.permute.xlu0 %3351  ;;  %v4151_v25 = vunpack.c.h.bf16 %v6428_v9  ;;  %v4182_v17 = vunpack.c.l.bf16 %v4264_v54  ;;  %v6481_v5 = vld [vmem:[#allocation5 + $0x198] sm:$0xff]   ;;  %p4935_p4 = scmp.ne.s32.totalorder %s3856_s1, %s4934_s18  ;;  %p4940_p6 = scmp.lt.s32.totalorder %s4934_s18, %s4934_s18 }
 0x51d   :  { %v3647_v42 = vmul.f32 %v4178_v20, %v3474_v14  ;;  %v3618_v34 = vmul.f32 %v4119_v29, %v3352_v47  ;;  %v4154_v37 = vunpack.c.l.bf16 %v4257_v4  ;;  %v4183_v48 = vunpack.c.h.bf16 %v4264_v54  ;;  %v6487_v20 = vld [vmem:[#allocation5 + $0x160] sm:$0xff]  }
 0x51e   :  { %v4155_v18 = vunpack.c.h.bf16 %v4257_v4  ;;  %v4186_v12 = vunpack.c.l.bf16 %v6478_v60  ;;  %v4131_v54 = vunpack.c.h.bf16 %v6487_v20  ;;  %p4941_p7 = por %p4940_p6, %p4939_p5 }
 0x51f   :  { %v6431_v59 = vadd.f32 %v3648_v28, %v3647_v42  ;;  %v3770_v35 = vadd.f32 %v3769_v45, %v3618_v34  ;;  %v4127_v45 = vunpack.c.h.bf16 %v4250_v56  ;;  %v4158_v28 = vunpack.c.l.bf16 %v6481_v5  ;;  %v6500_v34 = vld [vmem:[#allocation5 + $0x168] sm:$0xff]  }
 0x520   :  { %v3415_v41 = vpop.permute.xlu1 %3414  ;;  %v3419_v8 = vpop.permute.xlu0 %3418  ;;  %p4942_p8 = pnand %p4941_p7, %p4935_p4 }
 0x521   :  { %v3633_v31 = vmul.f32 %v4150_v38, %v3415_v41  ;;  %v6495_v38 = vld [vmem:[#allocation5 + $0x1a0] sm:$0xff]   ;;  %v4244_v41 = vld [vmem:[#allocation5 + $0x128] sm:$0xff]  }
 0x522   :  { %v4162_v4 = vunpack.c.l.bf16 %v6495_v38 }
 0x523   :  { %v6433_v16 = vadd.f32 %v3789_v21, %v3633_v31  ;;  %v6497_v31 = vld [vmem:[#allocation5 + $0x1e0] sm:$0xff]  }
 0x524   :  { %v3482_v61 = vpop.permute.xlu1 %3481  ;;  %v6435_v46 = vpop.permute.xlu0 %3485 }
 0x525   :  { %v3649_v62 = vmul.f32 %v4182_v17, %v3482_v61  ;;  %v6508_v61 = vld [vmem:[#allocation5 + $0x1a8] sm:$0xff]   ;;  %v4134_v17 = vunpack.c.l.bf16 %v6500_v34 }
 0x528   :  { %v3356_v49 = vpop.permute.xlu1 %3355  ;;  %v3360_v3 = vpop.permute.xlu0 %3359 }
 0x529   :  { %v3619_v23 = vmul.f32 %v4122_v22, %v3356_v49  ;;  %v3620_v9 = vmul.f32 %v4123_v2, %v3360_v3  ;;  %v3634_v49 = vmul.f32 %v4151_v25, %v3419_v8  ;;  %v4190_v22 = vunpack.c.l.bf16 %v6483_v55  ;;  %v6517_v8 = vld [vmem:[#allocation5 + $0x1e8] sm:$0xff]   ;;  %v4253_v3 = vld [vmem:[#allocation5 + $0x170] sm:$0xff]  }
 0x52b   :  { %v3771_v44 = vadd.f32 %v3770_v35, %v3619_v23  ;;  %v3791_v23 = vadd.f32 %v6433_v16, %v3634_v49  ;;  %v4102_v35 = vunpack.c.l.bf16 %v4244_v41  ;;  %v4135_v49 = vunpack.c.h.bf16 %v6500_v34 }
 0x52c   :  { %v3423_v30 = vpop.permute.xlu1 %3422  ;;  %v6437_v7 = vpop.permute.xlu0 %3426 }
 0x52d   :  { %v3635_v29 = vmul.f32 %v4154_v37, %v3423_v30  ;;  %v3772_v56 = vadd.f32 %v3771_v44, %v3620_v9  ;;  %v4245_v30 = vld [vmem:[#allocation5 + $0x130] sm:$0xff]   ;;  %v4163_v37 = vunpack.c.h.bf16 %v6495_v38  ;;  %v4103_v44 = vunpack.c.h.bf16 %v4244_v41 }
 0x52e   :  { %v3650_v38 = vmul.f32 %v4183_v48, %v6435_v46  ;;  %v3636_v41 = vmul.f32 %v4155_v18, %v6437_v7  ;;  %v4107_v48 = vunpack.c.h.bf16 %v4245_v30 }
 0x52f   :  { %v3792_v16 = vadd.f32 %v3791_v23, %v3635_v29  ;;  %v6528_v23 = vld [vmem:[#allocation5 + $0x1b0] sm:$0xff]  }
 0x530   :  { %v6439_v52 = vpop.permute.xlu1 %3489  ;;  %v6441_v51 = vpop.permute.xlu0 %3493 }
 0x531   :  { %v3793_v7 = vadd.f32 %v3792_v16, %v3636_v41 }
 0x534   :  { %v3364_v63 = vpop.permute.xlu1 %3363  ;;  %v6443_v36 = vpop.permute.xlu0 %3367 }
 0x535   :  { %v3621_v47 = vmul.f32 %v4126_v11, %v3364_v63  ;;  %v4130_v63 = vunpack.c.l.bf16 %v6487_v20  ;;  %v3811_v20 = vadd.f32 %v6431_v59, %v3649_v62  ;;  %v3622_v42 = vmul.f32 %v4127_v45, %v6443_v36 }
 0x536   :  { %v3651_v59 = vmul.f32 %v4186_v12, %v6439_v52  ;;  %v4138_v45 = vunpack.c.l.bf16 %v4253_v3  ;;  %v4167_v52 = vunpack.c.h.bf16 %v6508_v61  ;;  %v4139_v12 = vunpack.c.h.bf16 %v4253_v3 }
 0x537   :  { %v3773_v25 = vadd.f32 %v3772_v56, %v3621_v47  ;;  %v4166_v47 = vunpack.c.l.bf16 %v6508_v61  ;;  %v4106_v56 = vunpack.c.l.bf16 %v4245_v30  ;;  %v3812_v46 = vadd.f32 %v3811_v20, %v3650_v38 }
 0x538   :  { %v6445_v33 = vpop.permute.xlu1 %3430  ;;  %v6447_v50 = vpop.permute.xlu0 %3434  ;;  %v6688_v30 = vunpack.c.h.bf16 %v6481_v5 }
 0x539   :  { %v3637_v62 = vmul.f32 %v4158_v28, %v6445_v33  ;;  %v3774_v9 = vadd.f32 %v3773_v25, %v3622_v42  ;;  %v4170_v28 = vunpack.c.l.bf16 %v6528_v23  ;;  %v3813_v42 = vadd.f32 %v3812_v46, %v3651_v59 }
 0x53b   :  { %v3794_v25 = vadd.f32 %v3793_v7, %v3637_v62  ;;  %v6690_v62 = vunpack.c.l.bf16 %v6497_v31  ;;  %v4262_v7 = vld [vmem:[#allocation5 + $0x1b8] sm:$0xff]  }
 0x53c   :  { %v6449_v40 = vpop.permute.xlu1 %3497  ;;  %v6451_v24 = vpop.permute.xlu0 %3501 }
 0x53d   :  { %v3653_v16 = vmul.f32 %v4190_v22, %v6449_v40 }
 0x540   :  { %v6453_v15 = vpop.permute.xlu1 %3371  ;;  %v6455_v53 = vpop.permute.xlu0 %3375 }
 0x541   :  { %v3623_v10 = vmul.f32 %v4130_v63, %v6453_v15  ;;  %v4246_v63 = vld [vmem:[#allocation5 + $0x138] sm:$0xff]  }
 0x543   :  { %v3775_v33 = vadd.f32 %v3774_v9, %v3623_v10 }
 0x544   :  { %v6457_v57 = vpop.permute.xlu1 %3438  ;;  %v6459_v1 = vpop.permute.xlu0 %3312 }
 0x545   :  { %v3609_v36 = vmul.f32 %v4102_v35, %v6459_v1  ;;  %v4110_v35 = vunpack.c.l.bf16 %v4246_v63  ;;  %v3639_v9 = vmul.f32 %v4162_v4, %v6457_v57 }
 0x547   :  { %v3756_v20 = vadd.f32 %v6413_v6, %v3609_v36 }
 0x548   :  { %v6461_v58 = vpop.permute.xlu1 %3505  ;;  %v6463_v19 = vpop.permute.xlu0 %3379 }
 0x549   :  { %v3625_v61 = vmul.f32 %v4134_v17, %v6463_v19 }
 0x54c   :  { %v6465_v26 = vpop.permute.xlu1 %3442  ;;  %v6467_v43 = vpop.permute.xlu0 %3316 }
 0x54d   :  { %v3610_v18 = vmul.f32 %v4103_v44, %v6467_v43  ;;  %v6687_v43 = vunpack.c.h.bf16 %v6478_v60  ;;  %v3638_v44 = vmul.f32 %v6688_v30, %v6447_v50  ;;  %v4270_v30 = vld [vmem:[#allocation5 + $0x1f8] sm:$0xff]  }
 0x54f   :  { %v3652_v3 = vmul.f32 %v6687_v43, %v6441_v51  ;;  %v3795_v17 = vadd.f32 %v3794_v25, %v3638_v44  ;;  %v4111_v51 = vunpack.c.h.bf16 %v4246_v63  ;;  %v6693_v25 = vunpack.c.l.bf16 %v6517_v8 }
 0x550   :  { %v6470_v32 = vpop.permute.xlu1 %3509  ;;  %v6472_v27 = vpop.permute.xlu0 %3383 }
 0x551   :  { %v3626_v6 = vmul.f32 %v4135_v49, %v6472_v27  ;;  %v3814_v19 = vadd.f32 %v3813_v42, %v3652_v3  ;;  %v3796_v22 = vadd.f32 %v3795_v17, %v3639_v9  ;;  %v4143_v49 = vunpack.c.h.bf16 %v6532_v0 }
 0x553   :  { %v3815_v40 = vadd.f32 %v3814_v19, %v3653_v16 }
 0x554   :  { %v6474_v39 = vpop.permute.xlu1 %3446  ;;  %v6476_v13 = vpop.permute.xlu0 %3320 }
 0x555   :  { %v3611_v10 = vmul.f32 %v4106_v56, %v6476_v13  ;;  %v3640_v13 = vmul.f32 %v4163_v37, %v6465_v26  ;;  %v3641_v57 = vmul.f32 %v4166_v47, %v6474_v39  ;;  %v6689_v26 = vunpack.c.h.bf16 %v6483_v55 }
 0x556   :  { %v6691_v55 = vunpack.c.h.bf16 %v6497_v31 }
 0x557   :  { %v3654_v37 = vmul.f32 %v6689_v26, %v6451_v24  ;;  %v3797_v36 = vadd.f32 %v3796_v22, %v3640_v13  ;;  %v4206_v13 = vunpack.c.l.bf16 %v4270_v30 }
 0x558   :  { %v6489_v21 = vpop.permute.xlu1 %3513  ;;  %v6491_v14 = vpop.permute.xlu0 %3387  ;;  %v3656_v24 = vmul.f32 %v6691_v55, %v6470_v32 }
 0x559   :  { %6685 = vst [vmem:[#allocation22_spill] sm:$0xff] %v6489_v21  ;;  %v3624_v21 = vmul.f32 %v4131_v54, %v6455_v53  ;;  %v3757_v53 = vadd.f32 %v3756_v20, %v3610_v18  ;;  %v3627_v50 = vmul.f32 %v4138_v45, %v6491_v14  ;;  %v3655_v14 = vmul.f32 %v6690_v62, %v6461_v58  ;;  %v4269_v45 = vld [vmem:[#allocation5 + $0x1f0] sm:$0xff]  }
 0x55b   :  { %v3776_v38 = vadd.f32 %v3775_v33, %v3624_v21  ;;  %v3758_v59 = vadd.f32 %v3757_v53, %v3611_v10  ;;  %v4171_v21 = vunpack.c.h.bf16 %v6528_v23  ;;  %v4199_v33 = vunpack.c.h.bf16 %v6517_v8 }
 0x55c   :  { %v6510_v2 = vpop.permute.xlu1 %3450  ;;  %v3325_v11 = vpop.permute.xlu0 %3324  ;;  %v4174_v10 = vunpack.c.l.bf16 %v4262_v7 }
 0x55d   :  { %v3612_v54 = vmul.f32 %v4107_v48, %v3325_v11  ;;  %v3777_v41 = vadd.f32 %v3776_v38, %v3625_v61  ;;  %v3798_v48 = vadd.f32 %v3797_v36, %v3641_v57 }
 0x55f   :  { %v3778_v27 = vadd.f32 %v3777_v41, %v3626_v6  ;;  %v3759_v4 = vadd.f32 %v3758_v59, %v3612_v54  ;;  %v4175_v6 = vunpack.c.h.bf16 %v4262_v7 }
 0x560   :  { %v6526_v29 = vpop.permute.xlu1 %3517  ;;  %v3392_v34 = vpop.permute.xlu0 %3391  ;;  %v6692_v42 = vld [vmem:[#allocation22_spill] sm:$0xff] }
 0x561   :  { %6686 = vst [vmem:[#allocation32_spill] sm:$0xff] %v6526_v29  ;;  %v4142_v29 = vunpack.c.l.bf16 %v6532_v0  ;;  %v3628_v11 = vmul.f32 %v4139_v12, %v3392_v34  ;;  %v3779_v23 = vadd.f32 %v3778_v27, %v3627_v50  ;;  %v3816_v0 = vadd.f32 %v3815_v40, %v3654_v37 }
 0x562   :  { %v4202_v12 = vunpack.c.l.bf16 %v4269_v45 }
 0x563   :  { %v3780_v58 = vadd.f32 %v3779_v23, %v3628_v11  ;;  %v4207_v11 = vunpack.c.h.bf16 %v4270_v30 }
 0x564   :  { %v3455_v1 = vpop.permute.xlu1 %3454  ;;  %v3329_v15 = vpop.permute.xlu0 %3328 }
 0x565   :  { %v3613_v5 = vmul.f32 %v4110_v35, %v3329_v15  ;;  %v3642_v15 = vmul.f32 %v4167_v52, %v6510_v2  ;;  %v3643_v18 = vmul.f32 %v4170_v28, %v3455_v1  ;;  %v3817_v52 = vadd.f32 %v3816_v0, %v3655_v14 }
 0x566   :  { %v3657_v35 = vmul.f32 %v6693_v25, %v6692_v42  ;;  %v4203_v28 = vunpack.c.h.bf16 %v4269_v45 }
 0x567   :  { %v3760_v63 = vadd.f32 %v3759_v4, %v3613_v5  ;;  %v3818_v44 = vadd.f32 %v3817_v52, %v3656_v24 }
 0x568   :  { %v3522_v56 = vpop.permute.xlu1 %3521  ;;  %v3396_v60 = vpop.permute.xlu0 %3395  ;;  %v6694_v16 = vld [vmem:[#allocation32_spill] sm:$0xff] }
 0x569   :  { %v3629_v46 = vmul.f32 %v4142_v29, %v3396_v60  ;;  %v3799_v29 = vadd.f32 %v3798_v48, %v3642_v15  ;;  %v3658_v9 = vmul.f32 %v4199_v33, %v6694_v16  ;;  %v3819_v54 = vadd.f32 %v3818_v44, %v3657_v35 }
 0x56a   :  { %v3659_v8 = vmul.f32 %v4202_v12, %v3522_v56 }
 0x56b   :  { %v3781_v43 = vadd.f32 %v3780_v58, %v3629_v46  ;;  %v3800_v1 = vadd.f32 %v3799_v29, %v3643_v18  ;;  %v3820_v50 = vadd.f32 %v3819_v54, %v3658_v9 }
 0x56c   :  { %v3459_v39 = vpop.permute.xlu1 %3458  ;;  %v3333_v47 = vpop.permute.xlu0 %3332 }
 0x56d   :  { %v3614_v34 = vmul.f32 %v4111_v51, %v3333_v47  ;;  %v3644_v3 = vmul.f32 %v4171_v21, %v3459_v39  ;;  %v3821_v27 = vadd.f32 %v3820_v50, %v3659_v8  ;;  %v6695_v47 = vld [vmem:[#allocation33_spill] sm:$0xff] }
 0x56f   :  { %v3761_v2 = vadd.f32 %v3760_v63, %v3614_v34  ;;  %v3801_v60 = vadd.f32 %v3800_v1, %v3644_v3 }
 0x570   :  { %v3526_v20 = vpop.permute.xlu1 %3525  ;;  %v3400_v61 = vpop.permute.xlu0 %3399 }
 0x571   :  { %v3762_v31 = vrot.slane %v3761_v2, 4  ;;  %v3630_v32 = vmul.f32 %v4143_v49, %v3400_v61  ;;  %v3660_v5 = vmul.f32 %v4203_v28, %v3526_v20 }
 0x573   :  { %v3763_v38 = vadd.f32 %v3762_v31, %v3761_v2  ;;  %v3782_v53 = vadd.f32 %v3781_v43, %v3630_v32  ;;  %v3822_v62 = vadd.f32 %v3821_v27, %v3660_v5 }
 0x574   :  { %v3463_v19 = vpop.permute.xlu1 %3462  ;;  %v3467_v17 = vpop.permute.xlu0 %3466 }
 0x575   :  { %v3764_v51 = vrot.slane %v3763_v38, 2  ;;  %v3783_v41 = vrot.slane %v3782_v53, 4  ;;  %v3645_v59 = vmul.f32 %v4174_v10, %v3463_v19  ;;  %v3646_v21 = vmul.f32 %v4175_v6, %v3467_v17 }
 0x577   :  { %v3765_v40 = vadd.f32 %v3764_v51, %v3763_v38  ;;  %v3784_v22 = vadd.f32 %v3783_v41, %v3782_v53  ;;  %v3802_v57 = vadd.f32 %v3801_v60, %v3645_v59 }
 0x578   :  { %v3530_v4 = vpop.permute.xlu1 %3529 }
 0x579   :  { %v3766_v49 = vrot.slane %v3765_v40, 1  ;;  %v3785_v26 = vrot.slane %v3784_v22, 2  ;;  %v3803_v37 = vadd.f32 %v3802_v57, %v3646_v21  ;;  %v3661_v56 = vmul.f32 %v4206_v13, %v3530_v4 }
 0x57b   :  { %v3767_v14 = vadd.f32 %v3766_v49, %v3765_v40  ;;  %v3786_v36 = vadd.f32 %v3785_v26, %v3784_v22  ;;  %v3804_v15 = vrot.slane %v3803_v37, 4  ;;  %v3823_v45 = vadd.f32 %v3822_v62, %v3661_v56 }
 0x57c   :  { %v3534_v39 = vpop.permute.xlu1 %3533 }
 0x57d   :  { %v3842_v23 = vsel %vm2718_vm2, %v3767_v14, %v6695_v47  ;;  %v3787_v63 = vrot.slane %v3786_v36, 1  ;;  %v3805_v46 = vadd.f32 %v3804_v15, %v3803_v37  ;;  %v3662_v34 = vmul.f32 %v4207_v11, %v3534_v39 }
 0x57f   :  { %v3788_v7 = vadd.f32 %v3787_v63, %v3786_v36  ;;  %v3806_v0 = vrot.slane %v3805_v46, 2  ;;  %v3824_v55 = vadd.f32 %v3823_v45, %v3662_v34 }
 0x581   :  { %v3807_v24 = vadd.f32 %v3806_v0, %v3805_v46  ;;  %v3825_v48 = vrot.slane %v3824_v55, 4  ;;  %v3843_v33 = vsel %vm2720_vm3, %v3788_v7, %v3842_v23 }
 0x583   :  { %v3808_v58 = vrot.slane %v3807_v24, 1  ;;  %v3826_v18 = vadd.f32 %v3825_v48, %v3824_v55 }
 0x585   :  { %v3809_v12 = vadd.f32 %v3808_v58, %v3807_v24  ;;  %v3827_v2 = vrot.slane %v3826_v18, 2 }
 0x587   :  { %v3828_v52 = vadd.f32 %v3827_v2, %v3826_v18  ;;  %v3844_v42 = vsel %vm2722_vm4, %v3809_v12, %v3843_v33 }
 0x589   :  { %v3829_v25 = vrot.slane %v3828_v52, 1 }
 0x58b   :  { %v3830_v35 = vadd.f32 %v3829_v25, %v3828_v52 }
 0x58d   :  { %v3845_v29 = vsel %vm2724_vm5, %v3830_v35, %v3844_v42 }
 0x58e   :  { %3848 = vst [vmem:[#allocation8] sm:$0xff] %v3845_v29 }
 0x58f   :  { %4945 = shalt.err (!%p4942_p8)
}
 0x590   :  { %s4946_s21 = scalar_lea.hbm %s6592_s4, 128 }
 0x591   :  { %p4947_p9 = scmp.ne.s32.totalorder %s6592_s4, %s4946_s21  ;;  %p4950_p10 = scmp.lt.u32.totalorder %s4946_s21, %s6592_s4 }
 0x593   :  { %p4952_p11 = pnand %p4950_p10, %p4947_p9 }
 0x595   :  { %4955 = shalt.err (!%p4952_p11)
}
 0x596   :  { %3858 = dma.vmem_to_hbm [thread:$0]  %s3856_s1, 128, %s6592_s4, [#allocation4]  }
 0x597   :  { %4960 = dma.done.wait [#allocation4], 128  }
 0x598   :  { %4961 = vsyncadd [#allocation4], 4294967168 }
 0x599   :  { %4962 = dma.done.wait [#allocation10], 128  }
 0x59a   :  { %4963 = vsyncadd [#allocation10], 4294967168 }
 0x59b   :  { %3875 = vsyncpa [#allocation3], 1 }
 0x59c   :  { %3876 = vsyncpa [#allocation6], 1 }
 0x59d   :  { %3877 = vsyncpa [#allocation4], 1 }
 0x59e   :  { %3878 = vsyncpa [#allocation10], 1 }

</bundles_post_ra>
